<compile_context>
chip_gen: v7x
topology: tpu7x:2x2x1
jax: 0.10.0
libtpu: 0.0.40
codegen_flags: <defaults>
</compile_context>

<pallas_src>
import functools

import jax
import jax.numpy as jnp
from jax.experimental import pallas as pl
from jax.experimental.pallas import tpu as pltpu


# ------------------------------ Pallas kernel -------------------------------

def _encoder_cnn_kernel(x_ref, mask_ref, cw_ref, cb_ref, fw_ref, fb_ref, o_ref, *,
                        h_img, w_img, row_chunk):
    """Fused backbone stand-in (3x3 conv + bias + ReLU + GAP) + fc + ReLU for one image.

    x_ref    : ((H+3)*(W+2), Cin) f32   flattened zero-padded NHWC image (one batch item)
    mask_ref : (row_chunk*(W+2), 1) f32 1.0 for real columns, 0.0 for the 2 pad columns
    cw_ref   : (9*Cin, Cback) bf16      conv taps, row index = (dh*3 + dw)*Cin + c
    cb_ref   : (1, Cback) f32
    fw_ref   : (Cback, E) bf16
    fb_ref   : (1, E) f32
    o_ref    : (1, E) f32
    """
    wp = w_img + 2                      # padded row stride of the flattened image
    m_chunk = row_chunk * wp            # patch-matrix rows per chunk (incl. 2 pad cols/row)
    n_chunks = h_img // row_chunk
    cback = cw_ref.shape[-1]

    cw = cw_ref[...]                    # small, VMEM-resident; loaded once
    cb = cb_ref[...]
    valid = mask_ref[...]               # (m_chunk, 1) f32

    pooled = jnp.zeros((1, cback), jnp.float32)
    for i in range(n_chunks):           # short static loop: whole image per grid step
        r0 = i * row_chunk
        pieces = []
        for dh in range(3):
            slabs = []
            for dw in range(3):
                start = (r0 + dh) * wp + dw
                # one contiguous slab covers ALL (row, w) positions of this chunk for
                # tap (dh, dw) -- no per-row slicing, no unaligned concatenation games.
                slabs.append(x_ref[start:start + m_chunk, :].astype(jnp.bfloat16))
            pieces.append(jnp.concatenate(slabs, axis=-1))     # (m_chunk, 3*Cin) bf16
        patch = jnp.concatenate(pieces, axis=-1)               # (m_chunk, 9*Cin) bf16

        # single K=9*Cin MXU dot (f32 accumulation inside the MXU)
        conv = jnp.dot(patch, cw, preferred_element_type=jnp.float32)   # (m_chunk, Cback)
        feat = jnp.maximum(conv + cb, 0.0) * valid             # bias + ReLU, mask pad cols
        pooled = pooled + jnp.sum(feat, axis=0, keepdims=True)  # partial GAP sum
    pooled = pooled * (1.0 / float(h_img * w_img))             # finish the mean

    # inception.fc -> embed_size, fused ReLU.  Dropout(0.5) is identity in eval mode.
    emb = jnp.dot(pooled.astype(jnp.bfloat16), fw_ref[...],
                  preferred_element_type=jnp.float32) + fb_ref[...]
    o_ref[...] = jnp.maximum(emb, 0.0)


# ------------------------------ JAX wrapper ----------------------------------

def encoder_cnn_forward(params, images, *, row_chunk=8):
    """EncoderCNN.forward: dropout(relu(fc(backbone(images)))).  images: NCHW f32."""
    B, Cin, H, W = images.shape
    assert H % row_chunk == 0, (H, row_chunk)
    cback = params["conv_b"].shape[-1]
    embed = params["fc_b"].shape[-1]
    assert params["conv_w"].shape == (9 * Cin, cback), params["conv_w"].shape

    # NCHW -> NHWC, zero-pad (+1 conv halo on each side, +1 extra bottom row so the
    # flattened tap slabs of the last row-chunk stay in bounds), then flatten (H, W).
    # No halo duplication / im2col copy is materialized in HBM.
    x = jnp.transpose(images, (0, 2, 3, 1))
    xp = jnp.pad(x, ((0, 0), (1, 2), (1, 1), (0, 0)))          # (B, H+3, W+2, Cin)
    wp = W + 2
    flat = (H + 3) * wp
    xflat = xp.reshape(B, flat, Cin)                            # f32, streamed per image

    # Validity mask for the 2 W-pad columns that ride along in the flattened M axis
    # (computed once in the wrapper so the kernel needs no iota / integer-mod).
    m_chunk = row_chunk * wp
    col = jnp.arange(m_chunk, dtype=jnp.int32) % wp
    col_mask = (col < W).astype(jnp.float32).reshape(m_chunk, 1)

    kernel = functools.partial(_encoder_cnn_kernel,
                               h_img=H, w_img=W, row_chunk=row_chunk)
    out = pl.pallas_call(
        kernel,
        out_shape=jax.ShapeDtypeStruct((B, 1, embed), jnp.float32),
        grid=(B,),
        in_specs=[
            # one whole (flattened, padded) image per grid step, pipelined over the batch
            pl.BlockSpec((None, flat, Cin), lambda b: (b, 0, 0)),
            # constant index_maps -> DMA'd once, VMEM-resident for the whole call
            pl.BlockSpec((m_chunk, 1), lambda b: (0, 0)),
            pl.BlockSpec((9 * Cin, cback), lambda b: (0, 0)),
            pl.BlockSpec((1, cback), lambda b: (0, 0)),
            pl.BlockSpec((cback, embed), lambda b: (0, 0)),
            pl.BlockSpec((1, embed), lambda b: (0, 0)),
        ],
        out_specs=pl.BlockSpec((None, 1, embed), lambda b: (b, 0, 0)),
        compiler_params=pltpu.CompilerParams(
            # batch axis is safely "parallel": every grid step writes its own output
            # block and the GAP accumulation lives entirely inside one step.
            dimension_semantics=("parallel",),
            vmem_limit_bytes=48 * 1024 * 1024,   # <= v7x's 64 MiB physical VMEM
        ),
    )(xflat, col_mask, params["conv_w"], params["conv_b"],
      params["fc_w"], params["fc_b"])
    return out.reshape(B, embed)                                # (B, embed_size)


def init_params(key, *, in_channels, backbone_channels, embed_size):
    k = jax.random.split(key, 4)
    # conv_w is the synthetic 3x3 kernel flattened to (9*Cin, Cout) in (dh, dw, c) order;
    # matmul weights stored bf16 (MXU operands), biases f32 (VPU math stays f32).
    return {
        "conv_w": (0.1 * jax.random.normal(
            k[0], (9 * in_channels, backbone_channels), jnp.float32)).astype(jnp.bfloat16),
        "conv_b": 0.1 * jax.random.normal(k[1], (1, backbone_channels), jnp.float32),
        "fc_w": (0.1 * jax.random.normal(
            k[2], (backbone_channels, embed_size), jnp.float32)).astype(jnp.bfloat16),
        "fc_b": 0.1 * jax.random.normal(k[3], (1, embed_size), jnp.float32),
    }


def reference_forward(params, images):
    """Pure-JAX f32 reference of the same forward pass (tolerance check)."""
    x = jnp.transpose(images, (0, 2, 3, 1)).astype(jnp.float32)
    B, H, W, C = x.shape
    xp = jnp.pad(x, ((0, 0), (1, 1), (1, 1), (0, 0)))
    patches = jnp.concatenate(
        [xp[:, dh:dh + H, dw:dw + W, :] for dh in range(3) for dw in range(3)], axis=-1)
    patches = patches.reshape(B, H * W, 9 * C)
    conv = patches @ params["conv_w"].astype(jnp.float32) + params["conv_b"]
    pooled = jnp.maximum(conv, 0.0).mean(axis=1)
    emb = pooled @ params["fc_w"].astype(jnp.float32) + params["fc_b"]
    return jnp.maximum(emb, 0.0)


# --------------------------------- main ---------------------------------------

if __name__ == "__main__":
    embed_size = 256          # multiple of 128 -> lane-dense output stores
    backbone_channels = 256   # stand-in for inception.fc.in_features; fills 256-wide MXU
    batch, in_channels, spatial = 2, 3, 32
    row_chunk = 8             # conv-output rows handled per in-kernel chunk

    key = jax.random.PRNGKey(0)
    k_params, k_img = jax.random.split(key)
    params = init_params(k_params, in_channels=in_channels,
                         backbone_channels=backbone_channels, embed_size=embed_size)
    images = jax.random.normal(
        k_img, (batch, in_channels, spatial, spatial), jnp.float32)

    fwd = jax.jit(functools.partial(encoder_cnn_forward, row_chunk=row_chunk))
    features = jax.block_until_ready(fwd(params, images))

    assert features.shape == (batch, embed_size), features.shape
    assert bool(jnp.all(jnp.isfinite(features)))
    assert bool(jnp.all(features >= 0.0))          # ReLU output is non-negative
    ref = reference_forward(params, images)
    assert bool(jnp.allclose(features, ref, rtol=2e-2, atol=2e-2)), (
        "max abs diff vs f32 reference: %f" % float(jnp.max(jnp.abs(features - ref))))
    print("KERNEL_OK")
</pallas_src>

<mosaic_0001>
module attributes {stable_mosaic.version = 11 : i64} {
  func.func @_encoder_cnn_kernel(%arg0: i32, %arg1: memref<1x1190x3xf32, #tpu.memory_space<vmem>>, %arg2: memref<272x1xf32, #tpu.memory_space<vmem>>, %arg3: memref<27x256xbf16, #tpu.memory_space<vmem>>, %arg4: memref<1x256xf32, #tpu.memory_space<vmem>>, %arg5: memref<256x256xbf16, #tpu.memory_space<vmem>>, %arg6: memref<1x256xf32, #tpu.memory_space<vmem>>, %arg7: memref<1x1x256xf32, #tpu.memory_space<vmem>>) attributes {dimension_semantics = [#tpu.dimension_semantics<parallel>], iteration_bounds = array<i64: 2>, scalar_prefetch = 0 : i64, scratch_operands = 0 : i64, tpu.core_type = #tpu.core_type<tc>, window_params = [{transform_indices = @transform_0, window_bounds = array<i64: 1, 1190, 3>}, {pipeline_mode = #tpu.pipeline_mode<synchronous>, transform_indices = @transform_1, window_bounds = array<i64: 272, 1>}, {pipeline_mode = #tpu.pipeline_mode<synchronous>, transform_indices = @transform_2, window_bounds = array<i64: 27, 256>}, {pipeline_mode = #tpu.pipeline_mode<synchronous>, transform_indices = @transform_3, window_bounds = array<i64: 1, 256>}, {pipeline_mode = #tpu.pipeline_mode<synchronous>, transform_indices = @transform_4, window_bounds = array<i64: 256, 256>}, {pipeline_mode = #tpu.pipeline_mode<synchronous>, transform_indices = @transform_5, window_bounds = array<i64: 1, 256>}, {transform_indices = @transform_6, window_bounds = array<i64: 1, 1, 256>}]} {
    %c0 = arith.constant 0 : index
    %c0_0 = arith.constant 0 : index
    %0 = vector.load %arg3[%c0, %c0_0] : memref<27x256xbf16, #tpu.memory_space<vmem>>, vector<27x256xbf16>
    %c0_1 = arith.constant 0 : index
    %c0_2 = arith.constant 0 : index
    %1 = vector.load %arg4[%c0_1, %c0_2] : memref<1x256xf32, #tpu.memory_space<vmem>>, vector<1x256xf32>
    %c0_3 = arith.constant 0 : index
    %c0_4 = arith.constant 0 : index
    %2 = vector.load %arg2[%c0_3, %c0_4] : memref<272x1xf32, #tpu.memory_space<vmem>>, vector<272x1xf32>
    %cst = arith.constant 0.000000e+00 : f32
    %3 = vector.broadcast %cst : f32 to vector<1x256xf32>
    %c0_5 = arith.constant 0 : index
    %c0_6 = arith.constant 0 : index
    %c0_7 = arith.constant 0 : index
    %4 = vector.load %arg1[%c0_5, %c0_6, %c0_7] : memref<1x1190x3xf32, #tpu.memory_space<vmem>>, vector<1x272x3xf32>
    %5 = vector.shape_cast %4 : vector<1x272x3xf32> to vector<272x3xf32>
    %6 = arith.truncf %5 : vector<272x3xf32> to vector<272x3xbf16>
    %c0_8 = arith.constant 0 : index
    %c1 = arith.constant 1 : index
    %c0_9 = arith.constant 0 : index
    %7 = vector.load %arg1[%c0_8, %c1, %c0_9] : memref<1x1190x3xf32, #tpu.memory_space<vmem>>, vector<1x272x3xf32>
    %8 = vector.shape_cast %7 : vector<1x272x3xf32> to vector<272x3xf32>
    %9 = arith.truncf %8 : vector<272x3xf32> to vector<272x3xbf16>
    %c0_10 = arith.constant 0 : index
    %c2 = arith.constant 2 : index
    %c0_11 = arith.constant 0 : index
    %10 = vector.load %arg1[%c0_10, %c2, %c0_11] : memref<1x1190x3xf32, #tpu.memory_space<vmem>>, vector<1x272x3xf32>
    %11 = vector.shape_cast %10 : vector<1x272x3xf32> to vector<272x3xf32>
    %12 = arith.truncf %11 : vector<272x3xf32> to vector<272x3xbf16>
    %13 = tpu.concatenate %6, %9, %12 in 1 : vector<272x3xbf16>, vector<272x3xbf16>, vector<272x3xbf16> -> vector<272x9xbf16>
    %c0_12 = arith.constant 0 : index
    %c34 = arith.constant 34 : index
    %c0_13 = arith.constant 0 : index
    %14 = vector.load %arg1[%c0_12, %c34, %c0_13] : memref<1x1190x3xf32, #tpu.memory_space<vmem>>, vector<1x272x3xf32>
    %15 = vector.shape_cast %14 : vector<1x272x3xf32> to vector<272x3xf32>
    %16 = arith.truncf %15 : vector<272x3xf32> to vector<272x3xbf16>
    %c0_14 = arith.constant 0 : index
    %c35 = arith.constant 35 : index
    %c0_15 = arith.constant 0 : index
    %17 = vector.load %arg1[%c0_14, %c35, %c0_15] : memref<1x1190x3xf32, #tpu.memory_space<vmem>>, vector<1x272x3xf32>
    %18 = vector.shape_cast %17 : vector<1x272x3xf32> to vector<272x3xf32>
    %19 = arith.truncf %18 : vector<272x3xf32> to vector<272x3xbf16>
    %c0_16 = arith.constant 0 : index
    %c36 = arith.constant 36 : index
    %c0_17 = arith.constant 0 : index
    %20 = vector.load %arg1[%c0_16, %c36, %c0_17] : memref<1x1190x3xf32, #tpu.memory_space<vmem>>, vector<1x272x3xf32>
    %21 = vector.shape_cast %20 : vector<1x272x3xf32> to vector<272x3xf32>
    %22 = arith.truncf %21 : vector<272x3xf32> to vector<272x3xbf16>
    %23 = tpu.concatenate %16, %19, %22 in 1 : vector<272x3xbf16>, vector<272x3xbf16>, vector<272x3xbf16> -> vector<272x9xbf16>
    %c0_18 = arith.constant 0 : index
    %c68 = arith.constant 68 : index
    %c0_19 = arith.constant 0 : index
    %24 = vector.load %arg1[%c0_18, %c68, %c0_19] : memref<1x1190x3xf32, #tpu.memory_space<vmem>>, vector<1x272x3xf32>
    %25 = vector.shape_cast %24 : vector<1x272x3xf32> to vector<272x3xf32>
    %26 = arith.truncf %25 : vector<272x3xf32> to vector<272x3xbf16>
    %c0_20 = arith.constant 0 : index
    %c69 = arith.constant 69 : index
    %c0_21 = arith.constant 0 : index
    %27 = vector.load %arg1[%c0_20, %c69, %c0_21] : memref<1x1190x3xf32, #tpu.memory_space<vmem>>, vector<1x272x3xf32>
    %28 = vector.shape_cast %27 : vector<1x272x3xf32> to vector<272x3xf32>
    %29 = arith.truncf %28 : vector<272x3xf32> to vector<272x3xbf16>
    %c0_22 = arith.constant 0 : index
    %c70 = arith.constant 70 : index
    %c0_23 = arith.constant 0 : index
    %30 = vector.load %arg1[%c0_22, %c70, %c0_23] : memref<1x1190x3xf32, #tpu.memory_space<vmem>>, vector<1x272x3xf32>
    %31 = vector.shape_cast %30 : vector<1x272x3xf32> to vector<272x3xf32>
    %32 = arith.truncf %31 : vector<272x3xf32> to vector<272x3xbf16>
    %33 = tpu.concatenate %26, %29, %32 in 1 : vector<272x3xbf16>, vector<272x3xbf16>, vector<272x3xbf16> -> vector<272x9xbf16>
    %34 = tpu.concatenate %13, %23, %33 in 1 : vector<272x9xbf16>, vector<272x9xbf16>, vector<272x9xbf16> -> vector<272x27xbf16>
    %cst_24 = arith.constant dense<0.000000e+00> : vector<272x256xf32>
    %35 = tpu.matmul %34, %0, %cst_24 {dimension_numbers = #tpu.dot_dimension_numbers<[1], [0], [0], [1], [0, 0, 1, 1], [], []>} : vector<272x27xbf16>, vector<27x256xbf16>, vector<272x256xf32> -> vector<272x256xf32>
    %36 = vector.broadcast %1 : vector<1x256xf32> to vector<272x256xf32>
    %37 = arith.addf %35, %36 : vector<272x256xf32>
    %cst_25 = arith.constant 0.000000e+00 : f32
    %38 = vector.broadcast %cst_25 : f32 to vector<272x256xf32>
    %39 = arith.maximumf %37, %38 : vector<272x256xf32>
    %40 = vector.broadcast %2 : vector<272x1xf32> to vector<272x256xf32>
    %41 = arith.mulf %39, %40 : vector<272x256xf32>
    %cst_26 = arith.constant dense<0.000000e+00> : vector<256xf32>
    %42 = vector.multi_reduction <add>, %41, %cst_26 [0] : vector<272x256xf32> to vector<256xf32>
    %43 = vector.shape_cast %42 : vector<256xf32> to vector<1x256xf32>
    %44 = arith.addf %3, %43 : vector<1x256xf32>
    %c0_27 = arith.constant 0 : index
    %c272 = arith.constant 272 : index
    %c0_28 = arith.constant 0 : index
    %45 = vector.load %arg1[%c0_27, %c272, %c0_28] : memref<1x1190x3xf32, #tpu.memory_space<vmem>>, vector<1x272x3xf32>
    %46 = vector.shape_cast %45 : vector<1x272x3xf32> to vector<272x3xf32>
    %47 = arith.truncf %46 : vector<272x3xf32> to vector<272x3xbf16>
    %c0_29 = arith.constant 0 : index
    %c273 = arith.constant 273 : index
    %c0_30 = arith.constant 0 : index
    %48 = vector.load %arg1[%c0_29, %c273, %c0_30] : memref<1x1190x3xf32, #tpu.memory_space<vmem>>, vector<1x272x3xf32>
    %49 = vector.shape_cast %48 : vector<1x272x3xf32> to vector<272x3xf32>
    %50 = arith.truncf %49 : vector<272x3xf32> to vector<272x3xbf16>
    %c0_31 = arith.constant 0 : index
    %c274 = arith.constant 274 : index
    %c0_32 = arith.constant 0 : index
    %51 = vector.load %arg1[%c0_31, %c274, %c0_32] : memref<1x1190x3xf32, #tpu.memory_space<vmem>>, vector<1x272x3xf32>
    %52 = vector.shape_cast %51 : vector<1x272x3xf32> to vector<272x3xf32>
    %53 = arith.truncf %52 : vector<272x3xf32> to vector<272x3xbf16>
    %54 = tpu.concatenate %47, %50, %53 in 1 : vector<272x3xbf16>, vector<272x3xbf16>, vector<272x3xbf16> -> vector<272x9xbf16>
    %c0_33 = arith.constant 0 : index
    %c306 = arith.constant 306 : index
    %c0_34 = arith.constant 0 : index
    %55 = vector.load %arg1[%c0_33, %c306, %c0_34] : memref<1x1190x3xf32, #tpu.memory_space<vmem>>, vector<1x272x3xf32>
    %56 = vector.shape_cast %55 : vector<1x272x3xf32> to vector<272x3xf32>
    %57 = arith.truncf %56 : vector<272x3xf32> to vector<272x3xbf16>
    %c0_35 = arith.constant 0 : index
    %c307 = arith.constant 307 : index
    %c0_36 = arith.constant 0 : index
    %58 = vector.load %arg1[%c0_35, %c307, %c0_36] : memref<1x1190x3xf32, #tpu.memory_space<vmem>>, vector<1x272x3xf32>
    %59 = vector.shape_cast %58 : vector<1x272x3xf32> to vector<272x3xf32>
    %60 = arith.truncf %59 : vector<272x3xf32> to vector<272x3xbf16>
    %c0_37 = arith.constant 0 : index
    %c308 = arith.constant 308 : index
    %c0_38 = arith.constant 0 : index
    %61 = vector.load %arg1[%c0_37, %c308, %c0_38] : memref<1x1190x3xf32, #tpu.memory_space<vmem>>, vector<1x272x3xf32>
    %62 = vector.shape_cast %61 : vector<1x272x3xf32> to vector<272x3xf32>
    %63 = arith.truncf %62 : vector<272x3xf32> to vector<272x3xbf16>
    %64 = tpu.concatenate %57, %60, %63 in 1 : vector<272x3xbf16>, vector<272x3xbf16>, vector<272x3xbf16> -> vector<272x9xbf16>
    %c0_39 = arith.constant 0 : index
    %c340 = arith.constant 340 : index
    %c0_40 = arith.constant 0 : index
    %65 = vector.load %arg1[%c0_39, %c340, %c0_40] : memref<1x1190x3xf32, #tpu.memory_space<vmem>>, vector<1x272x3xf32>
    %66 = vector.shape_cast %65 : vector<1x272x3xf32> to vector<272x3xf32>
    %67 = arith.truncf %66 : vector<272x3xf32> to vector<272x3xbf16>
    %c0_41 = arith.constant 0 : index
    %c341 = arith.constant 341 : index
    %c0_42 = arith.constant 0 : index
    %68 = vector.load %arg1[%c0_41, %c341, %c0_42] : memref<1x1190x3xf32, #tpu.memory_space<vmem>>, vector<1x272x3xf32>
    %69 = vector.shape_cast %68 : vector<1x272x3xf32> to vector<272x3xf32>
    %70 = arith.truncf %69 : vector<272x3xf32> to vector<272x3xbf16>
    %c0_43 = arith.constant 0 : index
    %c342 = arith.constant 342 : index
    %c0_44 = arith.constant 0 : index
    %71 = vector.load %arg1[%c0_43, %c342, %c0_44] : memref<1x1190x3xf32, #tpu.memory_space<vmem>>, vector<1x272x3xf32>
    %72 = vector.shape_cast %71 : vector<1x272x3xf32> to vector<272x3xf32>
    %73 = arith.truncf %72 : vector<272x3xf32> to vector<272x3xbf16>
    %74 = tpu.concatenate %67, %70, %73 in 1 : vector<272x3xbf16>, vector<272x3xbf16>, vector<272x3xbf16> -> vector<272x9xbf16>
    %75 = tpu.concatenate %54, %64, %74 in 1 : vector<272x9xbf16>, vector<272x9xbf16>, vector<272x9xbf16> -> vector<272x27xbf16>
    %cst_45 = arith.constant dense<0.000000e+00> : vector<272x256xf32>
    %76 = tpu.matmul %75, %0, %cst_45 {dimension_numbers = #tpu.dot_dimension_numbers<[1], [0], [0], [1], [0, 0, 1, 1], [], []>} : vector<272x27xbf16>, vector<27x256xbf16>, vector<272x256xf32> -> vector<272x256xf32>
    %77 = vector.broadcast %1 : vector<1x256xf32> to vector<272x256xf32>
    %78 = arith.addf %76, %77 : vector<272x256xf32>
    %cst_46 = arith.constant 0.000000e+00 : f32
    %79 = vector.broadcast %cst_46 : f32 to vector<272x256xf32>
    %80 = arith.maximumf %78, %79 : vector<272x256xf32>
    %81 = vector.broadcast %2 : vector<272x1xf32> to vector<272x256xf32>
    %82 = arith.mulf %80, %81 : vector<272x256xf32>
    %cst_47 = arith.constant dense<0.000000e+00> : vector<256xf32>
    %83 = vector.multi_reduction <add>, %82, %cst_47 [0] : vector<272x256xf32> to vector<256xf32>
    %84 = vector.shape_cast %83 : vector<256xf32> to vector<1x256xf32>
    %85 = arith.addf %44, %84 : vector<1x256xf32>
    %c0_48 = arith.constant 0 : index
    %c544 = arith.constant 544 : index
    %c0_49 = arith.constant 0 : index
    %86 = vector.load %arg1[%c0_48, %c544, %c0_49] : memref<1x1190x3xf32, #tpu.memory_space<vmem>>, vector<1x272x3xf32>
    %87 = vector.shape_cast %86 : vector<1x272x3xf32> to vector<272x3xf32>
    %88 = arith.truncf %87 : vector<272x3xf32> to vector<272x3xbf16>
    %c0_50 = arith.constant 0 : index
    %c545 = arith.constant 545 : index
    %c0_51 = arith.constant 0 : index
    %89 = vector.load %arg1[%c0_50, %c545, %c0_51] : memref<1x1190x3xf32, #tpu.memory_space<vmem>>, vector<1x272x3xf32>
    %90 = vector.shape_cast %89 : vector<1x272x3xf32> to vector<272x3xf32>
    %91 = arith.truncf %90 : vector<272x3xf32> to vector<272x3xbf16>
    %c0_52 = arith.constant 0 : index
    %c546 = arith.constant 546 : index
    %c0_53 = arith.constant 0 : index
    %92 = vector.load %arg1[%c0_52, %c546, %c0_53] : memref<1x1190x3xf32, #tpu.memory_space<vmem>>, vector<1x272x3xf32>
    %93 = vector.shape_cast %92 : vector<1x272x3xf32> to vector<272x3xf32>
    %94 = arith.truncf %93 : vector<272x3xf32> to vector<272x3xbf16>
    %95 = tpu.concatenate %88, %91, %94 in 1 : vector<272x3xbf16>, vector<272x3xbf16>, vector<272x3xbf16> -> vector<272x9xbf16>
    %c0_54 = arith.constant 0 : index
    %c578 = arith.constant 578 : index
    %c0_55 = arith.constant 0 : index
    %96 = vector.load %arg1[%c0_54, %c578, %c0_55] : memref<1x1190x3xf32, #tpu.memory_space<vmem>>, vector<1x272x3xf32>
    %97 = vector.shape_cast %96 : vector<1x272x3xf32> to vector<272x3xf32>
    %98 = arith.truncf %97 : vector<272x3xf32> to vector<272x3xbf16>
    %c0_56 = arith.constant 0 : index
    %c579 = arith.constant 579 : index
    %c0_57 = arith.constant 0 : index
    %99 = vector.load %arg1[%c0_56, %c579, %c0_57] : memref<1x1190x3xf32, #tpu.memory_space<vmem>>, vector<1x272x3xf32>
    %100 = vector.shape_cast %99 : vector<1x272x3xf32> to vector<272x3xf32>
    %101 = arith.truncf %100 : vector<272x3xf32> to vector<272x3xbf16>
    %c0_58 = arith.constant 0 : index
    %c580 = arith.constant 580 : index
    %c0_59 = arith.constant 0 : index
    %102 = vector.load %arg1[%c0_58, %c580, %c0_59] : memref<1x1190x3xf32, #tpu.memory_space<vmem>>, vector<1x272x3xf32>
    %103 = vector.shape_cast %102 : vector<1x272x3xf32> to vector<272x3xf32>
    %104 = arith.truncf %103 : vector<272x3xf32> to vector<272x3xbf16>
    %105 = tpu.concatenate %98, %101, %104 in 1 : vector<272x3xbf16>, vector<272x3xbf16>, vector<272x3xbf16> -> vector<272x9xbf16>
    %c0_60 = arith.constant 0 : index
    %c612 = arith.constant 612 : index
    %c0_61 = arith.constant 0 : index
    %106 = vector.load %arg1[%c0_60, %c612, %c0_61] : memref<1x1190x3xf32, #tpu.memory_space<vmem>>, vector<1x272x3xf32>
    %107 = vector.shape_cast %106 : vector<1x272x3xf32> to vector<272x3xf32>
    %108 = arith.truncf %107 : vector<272x3xf32> to vector<272x3xbf16>
    %c0_62 = arith.constant 0 : index
    %c613 = arith.constant 613 : index
    %c0_63 = arith.constant 0 : index
    %109 = vector.load %arg1[%c0_62, %c613, %c0_63] : memref<1x1190x3xf32, #tpu.memory_space<vmem>>, vector<1x272x3xf32>
    %110 = vector.shape_cast %109 : vector<1x272x3xf32> to vector<272x3xf32>
    %111 = arith.truncf %110 : vector<272x3xf32> to vector<272x3xbf16>
    %c0_64 = arith.constant 0 : index
    %c614 = arith.constant 614 : index
    %c0_65 = arith.constant 0 : index
    %112 = vector.load %arg1[%c0_64, %c614, %c0_65] : memref<1x1190x3xf32, #tpu.memory_space<vmem>>, vector<1x272x3xf32>
    %113 = vector.shape_cast %112 : vector<1x272x3xf32> to vector<272x3xf32>
    %114 = arith.truncf %113 : vector<272x3xf32> to vector<272x3xbf16>
    %115 = tpu.concatenate %108, %111, %114 in 1 : vector<272x3xbf16>, vector<272x3xbf16>, vector<272x3xbf16> -> vector<272x9xbf16>
    %116 = tpu.concatenate %95, %105, %115 in 1 : vector<272x9xbf16>, vector<272x9xbf16>, vector<272x9xbf16> -> vector<272x27xbf16>
    %cst_66 = arith.constant dense<0.000000e+00> : vector<272x256xf32>
    %117 = tpu.matmul %116, %0, %cst_66 {dimension_numbers = #tpu.dot_dimension_numbers<[1], [0], [0], [1], [0, 0, 1, 1], [], []>} : vector<272x27xbf16>, vector<27x256xbf16>, vector<272x256xf32> -> vector<272x256xf32>
    %118 = vector.broadcast %1 : vector<1x256xf32> to vector<272x256xf32>
    %119 = arith.addf %117, %118 : vector<272x256xf32>
    %cst_67 = arith.constant 0.000000e+00 : f32
    %120 = vector.broadcast %cst_67 : f32 to vector<272x256xf32>
    %121 = arith.maximumf %119, %120 : vector<272x256xf32>
    %122 = vector.broadcast %2 : vector<272x1xf32> to vector<272x256xf32>
    %123 = arith.mulf %121, %122 : vector<272x256xf32>
    %cst_68 = arith.constant dense<0.000000e+00> : vector<256xf32>
    %124 = vector.multi_reduction <add>, %123, %cst_68 [0] : vector<272x256xf32> to vector<256xf32>
    %125 = vector.shape_cast %124 : vector<256xf32> to vector<1x256xf32>
    %126 = arith.addf %85, %125 : vector<1x256xf32>
    %c0_69 = arith.constant 0 : index
    %c816 = arith.constant 816 : index
    %c0_70 = arith.constant 0 : index
    %127 = vector.load %arg1[%c0_69, %c816, %c0_70] : memref<1x1190x3xf32, #tpu.memory_space<vmem>>, vector<1x272x3xf32>
    %128 = vector.shape_cast %127 : vector<1x272x3xf32> to vector<272x3xf32>
    %129 = arith.truncf %128 : vector<272x3xf32> to vector<272x3xbf16>
    %c0_71 = arith.constant 0 : index
    %c817 = arith.constant 817 : index
    %c0_72 = arith.constant 0 : index
    %130 = vector.load %arg1[%c0_71, %c817, %c0_72] : memref<1x1190x3xf32, #tpu.memory_space<vmem>>, vector<1x272x3xf32>
    %131 = vector.shape_cast %130 : vector<1x272x3xf32> to vector<272x3xf32>
    %132 = arith.truncf %131 : vector<272x3xf32> to vector<272x3xbf16>
    %c0_73 = arith.constant 0 : index
    %c818 = arith.constant 818 : index
    %c0_74 = arith.constant 0 : index
    %133 = vector.load %arg1[%c0_73, %c818, %c0_74] : memref<1x1190x3xf32, #tpu.memory_space<vmem>>, vector<1x272x3xf32>
    %134 = vector.shape_cast %133 : vector<1x272x3xf32> to vector<272x3xf32>
    %135 = arith.truncf %134 : vector<272x3xf32> to vector<272x3xbf16>
    %136 = tpu.concatenate %129, %132, %135 in 1 : vector<272x3xbf16>, vector<272x3xbf16>, vector<272x3xbf16> -> vector<272x9xbf16>
    %c0_75 = arith.constant 0 : index
    %c850 = arith.constant 850 : index
    %c0_76 = arith.constant 0 : index
    %137 = vector.load %arg1[%c0_75, %c850, %c0_76] : memref<1x1190x3xf32, #tpu.memory_space<vmem>>, vector<1x272x3xf32>
    %138 = vector.shape_cast %137 : vector<1x272x3xf32> to vector<272x3xf32>
    %139 = arith.truncf %138 : vector<272x3xf32> to vector<272x3xbf16>
    %c0_77 = arith.constant 0 : index
    %c851 = arith.constant 851 : index
    %c0_78 = arith.constant 0 : index
    %140 = vector.load %arg1[%c0_77, %c851, %c0_78] : memref<1x1190x3xf32, #tpu.memory_space<vmem>>, vector<1x272x3xf32>
    %141 = vector.shape_cast %140 : vector<1x272x3xf32> to vector<272x3xf32>
    %142 = arith.truncf %141 : vector<272x3xf32> to vector<272x3xbf16>
    %c0_79 = arith.constant 0 : index
    %c852 = arith.constant 852 : index
    %c0_80 = arith.constant 0 : index
    %143 = vector.load %arg1[%c0_79, %c852, %c0_80] : memref<1x1190x3xf32, #tpu.memory_space<vmem>>, vector<1x272x3xf32>
    %144 = vector.shape_cast %143 : vector<1x272x3xf32> to vector<272x3xf32>
    %145 = arith.truncf %144 : vector<272x3xf32> to vector<272x3xbf16>
    %146 = tpu.concatenate %139, %142, %145 in 1 : vector<272x3xbf16>, vector<272x3xbf16>, vector<272x3xbf16> -> vector<272x9xbf16>
    %c0_81 = arith.constant 0 : index
    %c884 = arith.constant 884 : index
    %c0_82 = arith.constant 0 : index
    %147 = vector.load %arg1[%c0_81, %c884, %c0_82] : memref<1x1190x3xf32, #tpu.memory_space<vmem>>, vector<1x272x3xf32>
    %148 = vector.shape_cast %147 : vector<1x272x3xf32> to vector<272x3xf32>
    %149 = arith.truncf %148 : vector<272x3xf32> to vector<272x3xbf16>
    %c0_83 = arith.constant 0 : index
    %c885 = arith.constant 885 : index
    %c0_84 = arith.constant 0 : index
    %150 = vector.load %arg1[%c0_83, %c885, %c0_84] : memref<1x1190x3xf32, #tpu.memory_space<vmem>>, vector<1x272x3xf32>
    %151 = vector.shape_cast %150 : vector<1x272x3xf32> to vector<272x3xf32>
    %152 = arith.truncf %151 : vector<272x3xf32> to vector<272x3xbf16>
    %c0_85 = arith.constant 0 : index
    %c886 = arith.constant 886 : index
    %c0_86 = arith.constant 0 : index
    %153 = vector.load %arg1[%c0_85, %c886, %c0_86] : memref<1x1190x3xf32, #tpu.memory_space<vmem>>, vector<1x272x3xf32>
    %154 = vector.shape_cast %153 : vector<1x272x3xf32> to vector<272x3xf32>
    %155 = arith.truncf %154 : vector<272x3xf32> to vector<272x3xbf16>
    %156 = tpu.concatenate %149, %152, %155 in 1 : vector<272x3xbf16>, vector<272x3xbf16>, vector<272x3xbf16> -> vector<272x9xbf16>
    %157 = tpu.concatenate %136, %146, %156 in 1 : vector<272x9xbf16>, vector<272x9xbf16>, vector<272x9xbf16> -> vector<272x27xbf16>
    %cst_87 = arith.constant dense<0.000000e+00> : vector<272x256xf32>
    %158 = tpu.matmul %157, %0, %cst_87 {dimension_numbers = #tpu.dot_dimension_numbers<[1], [0], [0], [1], [0, 0, 1, 1], [], []>} : vector<272x27xbf16>, vector<27x256xbf16>, vector<272x256xf32> -> vector<272x256xf32>
    %159 = vector.broadcast %1 : vector<1x256xf32> to vector<272x256xf32>
    %160 = arith.addf %158, %159 : vector<272x256xf32>
    %cst_88 = arith.constant 0.000000e+00 : f32
    %161 = vector.broadcast %cst_88 : f32 to vector<272x256xf32>
    %162 = arith.maximumf %160, %161 : vector<272x256xf32>
    %163 = vector.broadcast %2 : vector<272x1xf32> to vector<272x256xf32>
    %164 = arith.mulf %162, %163 : vector<272x256xf32>
    %cst_89 = arith.constant dense<0.000000e+00> : vector<256xf32>
    %165 = vector.multi_reduction <add>, %164, %cst_89 [0] : vector<272x256xf32> to vector<256xf32>
    %166 = vector.shape_cast %165 : vector<256xf32> to vector<1x256xf32>
    %167 = arith.addf %126, %166 : vector<1x256xf32>
    %cst_90 = arith.constant 9.765625E-4 : f32
    %168 = vector.broadcast %cst_90 : f32 to vector<1x256xf32>
    %169 = arith.mulf %167, %168 : vector<1x256xf32>
    %170 = arith.truncf %169 : vector<1x256xf32> to vector<1x256xbf16>
    %c0_91 = arith.constant 0 : index
    %c0_92 = arith.constant 0 : index
    %171 = vector.load %arg5[%c0_91, %c0_92] : memref<256x256xbf16, #tpu.memory_space<vmem>>, vector<256x256xbf16>
    %cst_93 = arith.constant dense<0.000000e+00> : vector<1x256xf32>
    %172 = tpu.matmul %170, %171, %cst_93 {dimension_numbers = #tpu.dot_dimension_numbers<[1], [0], [0], [1], [0, 0, 1, 1], [], []>} : vector<1x256xbf16>, vector<256x256xbf16>, vector<1x256xf32> -> vector<1x256xf32>
    %c0_94 = arith.constant 0 : index
    %c0_95 = arith.constant 0 : index
    %173 = vector.load %arg6[%c0_94, %c0_95] : memref<1x256xf32, #tpu.memory_space<vmem>>, vector<1x256xf32>
    %174 = arith.addf %172, %173 : vector<1x256xf32>
    %cst_96 = arith.constant 0.000000e+00 : f32
    %175 = vector.broadcast %cst_96 : f32 to vector<1x256xf32>
    %176 = arith.maximumf %174, %175 : vector<1x256xf32>
    %c0_97 = arith.constant 0 : index
    %c0_98 = arith.constant 0 : index
    %c0_99 = arith.constant 0 : index
    %177 = vector.load %arg7[%c0_97, %c0_98, %c0_99] : memref<1x1x256xf32, #tpu.memory_space<vmem>>, vector<1x1x256xf32>
    %178 = vector.shape_cast %177 : vector<1x1x256xf32> to vector<1x256xf32>
    %179 = vector.shape_cast %176 : vector<1x256xf32> to vector<1x1x256xf32>
    tpu.vector_store %arg7[%c0_97, %c0_98, %c0_99], %179 {strides = array<i32>} : memref<1x1x256xf32, #tpu.memory_space<vmem>>, vector<1x1x256xf32>,
    return
  }
  func.func @transform_0(%arg0: i32) -> (i32, i32, i32) {
    %c0_i32 = arith.constant 0 : i32
    %c0_i32_0 = arith.constant 0 : i32
    %c0_i32_1 = arith.constant 0 : i32
    return %arg0, %c0_i32, %c0_i32_0 : i32, i32, i32
  }
  func.func @transform_1(%arg0: i32) -> (i32, i32) {
    %c0_i32 = arith.constant 0 : i32
    %c0_i32_0 = arith.constant 0 : i32
    %c0_i32_1 = arith.constant 0 : i32
    return %c0_i32, %c0_i32_0 : i32, i32
  }
  func.func @transform_2(%arg0: i32) -> (i32, i32) {
    %c0_i32 = arith.constant 0 : i32
    %c0_i32_0 = arith.constant 0 : i32
    %c0_i32_1 = arith.constant 0 : i32
    return %c0_i32, %c0_i32_0 : i32, i32
  }
  func.func @transform_3(%arg0: i32) -> (i32, i32) {
    %c0_i32 = arith.constant 0 : i32
    %c0_i32_0 = arith.constant 0 : i32
    %c0_i32_1 = arith.constant 0 : i32
    return %c0_i32, %c0_i32_0 : i32, i32
  }
  func.func @transform_4(%arg0: i32) -> (i32, i32) {
    %c0_i32 = arith.constant 0 : i32
    %c0_i32_0 = arith.constant 0 : i32
    %c0_i32_1 = arith.constant 0 : i32
    return %c0_i32, %c0_i32_0 : i32, i32
  }
  func.func @transform_5(%arg0: i32) -> (i32, i32) {
    %c0_i32 = arith.constant 0 : i32
    %c0_i32_0 = arith.constant 0 : i32
    %c0_i32_1 = arith.constant 0 : i32
    return %c0_i32, %c0_i32_0 : i32, i32
  }
  func.func @transform_6(%arg0: i32) -> (i32, i32, i32) {
    %c0_i32 = arith.constant 0 : i32
    %c0_i32_0 = arith.constant 0 : i32
    %c0_i32_1 = arith.constant 0 : i32
    return %arg0, %c0_i32, %c0_i32_0 : i32, i32, i32
  }
}

</mosaic_0001>

<bundles_post_ra>
// kernel: encoder_cnn_forward.1
= control target key start
LH: loop header
LB: loop body
LE: loop exit
PB: predicated region body
PF: predicated region fallthrough
CT: control target
= control target key end

     0   :  { %s7279_s21 = smov 0   ;;  %s11892_s0 = inlined_call_operand.vmem [shape: f32[2,1190,3], index: 0, kind: input, shape index: {}]   ;;  %s11893_s1 = inlined_call_operand.vmem [shape: f32[272,1], index: 1, kind: input, shape index: {}]   ;;  %s11894_s2 = inlined_call_operand.vmem [shape: bf16[27,256], index: 2, kind: input, shape index: {}]   ;;  %s11895_s3 = inlined_call_operand.vmem [shape: f32[1,256], index: 3, kind: input, shape index: {}]   ;;  %s11896_s4 = inlined_call_operand.vmem [shape: bf16[256,256], index: 4, kind: input, shape index: {}]   ;;  %s11897_s5 = inlined_call_operand.vmem [shape: f32[1,256], index: 5, kind: input, shape index: {}]   ;;  %s11898_s6 = inlined_call_operand.vmem [shape: f32[2,1,256], index: 6, kind: output, shape index: {}]  }
   0x1 LB: > { %s7043_s22 = sadd.s32 4294967295, %s7235_s21   ;;  %p7047_p0 = scmp.ge.s32.totalorder %s7235_s21, 1  ;;  %s7235_s21 = sphi %s7279_s21, %s16_s21  }
   0x2   : > { %p212_p1 = scmp.lt.s32.totalorder %s7235_s21, 3 }
   0x4   : > { %p213_p2 = pnand %p7047_p0, %p212_p1 }
   0x6   : > { %216 = sbr.rel (%p213_p2) target bundleno = 1855 (0x73f), region = 44 }
   0xd   : > { %p241_p3 = scmp.lt.s32.totalorder %s7043_s22, 1  ;;  %s7237_s27 = smov 3   ;;  %vm545_vm0 = vcmask 23552   ;;  %vm597_vm1 = vcmask 48128   ;;  %vm1458_vm2 = vcmask 1044480   ;;  %vm1459_vm3 = vcmask 1045504  }
   0xe   : > { %s7238_s28 = smov 6   ;;  %s7240_s29 = smov 9   ;;  %vm1324_vm4 = vcmask 72704   ;;  %vm1359_vm5 = vcmask 146432   ;;  %vm1423_vm6 = vcmask 220160  }
   0xf   : > { %s12237_s22 = smov (!%p241_p3, %s7043_s22), 1  ;;  %s7242_s14 = smov 18  }
  0x10   : > { %s7156_s23 = smul.u32 1192, %s12237_s22  ;;  %s7049_s15 = sshll.u32 %s12237_s22, 1 }
  0x11   : > { %s249_s18 = scalar_lea.vmem %s11898_s6, %s7049_s15 }
  0x12   : > { %s7293_s26 = scalar_lea.vmem %s11892_s0, %s7156_s23 }
  0x13   : > { %v345_v0 = vld [vmem:[%s7293_s26 + $0x21] sm:$0xff]  ;;  %v346_v1 = vld [vmem:[%s7293_s26 + $0x29] sm:$0xff]  ;;  %v347_v5 = vld [vmem:[%s7293_s26 + $0x31] sm:$0xff] }
  0x14   : > { %v341_v2 = vld [vmem:[%s7293_s26 + $0x1] sm:$0xff]  ;;  %v377_v3 = vpack.c.bf16 %v346_v1, %v345_v0  ;;  %v342_v4 = vld [vmem:[%s7293_s26 + $0x9] sm:$0xff]  ;;  %v348_v6 = vld [vmem:[%s7293_s26 + $0x39] sm:$0xff] }
  0x15   : > { %v375_v7 = vpack.c.bf16 %v342_v4, %v341_v2  ;;  %v343_v8 = vld [vmem:[%s7293_s26 + $0x11] sm:$0xff]  ;;  %v344_v9 = vld [vmem:[%s7293_s26 + $0x19] sm:$0xff]  ;;  %v378_v10 = vpack.c.bf16 %v348_v6, %v347_v5  ;;  %v349_v14 = vld [vmem:[%s7293_s26 + $0x41] sm:$0xff] }
  0x16   : > { %464 = vrot.lane.b32.xlu1 %v377_v3, %s7237_s27  ;;  %v376_v11 = vpack.c.bf16 %v344_v9, %v343_v8  ;;  %v351_v12 = vld [vmem:[%s7293_s26 + $0x51] sm:$0xff]  ;;  %v352_v13 = vld [vmem:[%s7293_s26 + $0x59] sm:$0xff]  ;;  %v350_v15 = vld [vmem:[%s7293_s26 + $0x49] sm:$0xff] }
  0x17   : > { %460 = vrot.lane.b32.xlu0 %v375_v7, %s7237_s27  ;;  %v380_v16 = vpack.c.bf16 %v352_v13, %v351_v12  ;;  %v379_v17 = vpack.c.bf16 %v350_v15, %v349_v14  ;;  %v355_v18 = vld [vmem:[%s7293_s26 + $0x71] sm:$0xff]  ;;  %v356_v19 = vld [vmem:[%s7293_s26 + $0x79] sm:$0xff]  ;;  %v353_v20 = vld [vmem:[%s7293_s26 + $0x61] sm:$0xff] }
  0x18   : > { %v354_v21 = vld [vmem:[%s7293_s26 + $0x69] sm:$0xff]  ;;  %v382_v22 = vpack.c.bf16 %v356_v19, %v355_v18  ;;  %v359_v24 = vld [vmem:[%s7293_s26 + $0x91] sm:$0xff]  ;;  %v360_v25 = vld [vmem:[%s7293_s26 + $0x99] sm:$0xff] }
  0x19   : > { %v381_v23 = vpack.c.bf16 %v354_v21, %v353_v20  ;;  %v357_v26 = vld [vmem:[%s7293_s26 + $0x81] sm:$0xff]  ;;  %v358_v27 = vld [vmem:[%s7293_s26 + $0x89] sm:$0xff]  ;;  %v384_v28 = vpack.c.bf16 %v360_v25, %v359_v24  ;;  %v363_v30 = vld [vmem:[%s7293_s26 + $0xb1] sm:$0xff] }
  0x1a   : > { %466 = vrot.lane.b32.xlu1 %v378_v10, %s7237_s27  ;;  %v383_v29 = vpack.c.bf16 %v358_v27, %v357_v26  ;;  %v364_v31 = vld [vmem:[%s7293_s26 + $0xb9] sm:$0xff]  ;;  %v361_v32 = vld [vmem:[%s7293_s26 + $0xa1] sm:$0xff]  ;;  %v362_v33 = vld [vmem:[%s7293_s26 + $0xa9] sm:$0xff] }
  0x1b   : > { %462 = vrot.lane.b32.xlu0 %v376_v11, %s7237_s27  ;;  %v386_v34 = vpack.c.bf16 %v364_v31, %v363_v30  ;;  %v385_v35 = vpack.c.bf16 %v362_v33, %v361_v32  ;;  %v367_v36 = vld [vmem:[%s7293_s26 + $0xd1] sm:$0xff]  ;;  %v368_v37 = vld [vmem:[%s7293_s26 + $0xd9] sm:$0xff]  ;;  %v365_v38 = vld [vmem:[%s7293_s26 + $0xc1] sm:$0xff] }
  0x1c   : > { %v366_v39 = vld [vmem:[%s7293_s26 + $0xc9] sm:$0xff]  ;;  %v388_v40 = vpack.c.bf16 %v368_v37, %v367_v36  ;;  %v371_v42 = vld [vmem:[%s7293_s26 + $0xf1] sm:$0xff]  ;;  %v372_v43 = vld [vmem:[%s7293_s26 + $0xf9] sm:$0xff] }
  0x1d   : > { %v387_v41 = vpack.c.bf16 %v366_v39, %v365_v38  ;;  %v369_v44 = vld [vmem:[%s7293_s26 + $0xe1] sm:$0xff]  ;;  %v370_v45 = vld [vmem:[%s7293_s26 + $0xe9] sm:$0xff]  ;;  %v390_v46 = vpack.c.bf16 %v372_v43, %v371_v42  ;;  %v394_v56 = vld [vmem:[%s7293_s26 + $0x12] sm:$0xff] }
  0x1e   : > { %470 = vrot.lane.b32.xlu1 %v380_v16, %s7237_s27  ;;  %v389_v47 = vpack.c.bf16 %v370_v45, %v369_v44  ;;  %v392_v48 = vld [vmem:[%s7293_s26 + $0x2] sm:$0xff]  ;;  %v393_v49 = vld [vmem:[%s7293_s26 + $0xa] sm:$0xff]  ;;  %v395_v57 = vld [vmem:[%s7293_s26 + $0x1a] sm:$0xff] }
  0x1f   : > { %468 = vrot.lane.b32.xlu0 %v379_v17, %s7237_s27  ;;  %v373_v50 = vld [vmem:[%s7293_s26 + $0x101] sm:$0xff]  ;;  %v374_v51 = vld [vmem:[%s7293_s26 + $0x109] sm:$0xff]  ;;  %v426_v52 = vpack.c.bf16 %v393_v49, %v392_v48  ;;  %v427_v59 = vpack.c.bf16 %v395_v57, %v394_v56  ;;  %v398_v62 = vld [vmem:[%s7293_s26 + $0x32] sm:$0xff] }
  0x20   : > { %v391_v53 = vpack.c.bf16 %v374_v51, %v373_v50  ;;  %v396_v54 = vld [vmem:[%s7293_s26 + $0x22] sm:$0xff]  ;;  %v397_v55 = vld [vmem:[%s7293_s26 + $0x2a] sm:$0xff]  ;;  %v399_v63 = vld [vmem:[%s7293_s26 + $0x3a] sm:$0xff] }
  0x21   : > { %v7352_v58 = vpack.c.bf16 %v397_v55, %v396_v54  ;;  %v400_v60 = vld [vmem:[%s7293_s26 + $0x42] sm:$0xff]  ;;  %v401_v61 = vld [vmem:[%s7293_s26 + $0x4a] sm:$0xff]  ;;  %v7364_v1 = vpack.c.bf16 %v399_v63, %v398_v62  ;;  %v402_v4 = vld [vmem:[%s7293_s26 + $0x52] sm:$0xff] }
  0x22   : > { %474 = vrot.lane.b32.xlu1 %v382_v22, %s7237_s27  ;;  %v7361_v0 = vpack.c.bf16 %v401_v61, %v400_v60  ;;  %v404_v2 = vld [vmem:[%s7293_s26 + $0x62] sm:$0xff]  ;;  %v405_v3 = vld [vmem:[%s7293_s26 + $0x6a] sm:$0xff]  ;;  %v403_v5 = vld [vmem:[%s7293_s26 + $0x5a] sm:$0xff] }
  0x23   : > { %472 = vrot.lane.b32.xlu0 %v381_v23, %s7237_s27  ;;  %v7372_v6 = vpack.c.bf16 %v405_v3, %v404_v2  ;;  %v7376_v7 = vpack.c.bf16 %v403_v5, %v402_v4  ;;  %v408_v8 = vld [vmem:[%s7293_s26 + $0x82] sm:$0xff]  ;;  %v409_v9 = vld [vmem:[%s7293_s26 + $0x8a] sm:$0xff]  ;;  %v406_v10 = vld [vmem:[%s7293_s26 + $0x72] sm:$0xff] }
  0x24   : > { %v407_v11 = vld [vmem:[%s7293_s26 + $0x7a] sm:$0xff]  ;;  %v7384_v12 = vpack.c.bf16 %v409_v9, %v408_v8  ;;  %v412_v14 = vld [vmem:[%s7293_s26 + $0xa2] sm:$0xff]  ;;  %v413_v15 = vld [vmem:[%s7293_s26 + $0xaa] sm:$0xff] }
  0x25   : > { %v7388_v13 = vpack.c.bf16 %v407_v11, %v406_v10  ;;  %v410_v16 = vld [vmem:[%s7293_s26 + $0x92] sm:$0xff]  ;;  %v411_v17 = vld [vmem:[%s7293_s26 + $0x9a] sm:$0xff]  ;;  %v7396_v18 = vpack.c.bf16 %v413_v15, %v412_v14  ;;  %v416_v20 = vld [vmem:[%s7293_s26 + $0xc2] sm:$0xff] }
  0x26   : > { %478 = vrot.lane.b32.xlu1 %v384_v28, %s7237_s27  ;;  %v7400_v19 = vpack.c.bf16 %v411_v17, %v410_v16  ;;  %v417_v21 = vld [vmem:[%s7293_s26 + $0xca] sm:$0xff]  ;;  %v414_v22 = vld [vmem:[%s7293_s26 + $0xb2] sm:$0xff]  ;;  %v415_v23 = vld [vmem:[%s7293_s26 + $0xba] sm:$0xff] }
  0x27   : > { %476 = vrot.lane.b32.xlu0 %v383_v29, %s7237_s27  ;;  %v7408_v24 = vpack.c.bf16 %v417_v21, %v416_v20  ;;  %v7412_v25 = vpack.c.bf16 %v415_v23, %v414_v22  ;;  %v420_v26 = vld [vmem:[%s7293_s26 + $0xe2] sm:$0xff]  ;;  %v421_v27 = vld [vmem:[%s7293_s26 + $0xea] sm:$0xff]  ;;  %v418_v28 = vld [vmem:[%s7293_s26 + $0xd2] sm:$0xff] }
  0x28   : > { %v419_v29 = vld [vmem:[%s7293_s26 + $0xda] sm:$0xff]  ;;  %v7420_v30 = vpack.c.bf16 %v421_v27, %v420_v26  ;;  %v424_v32 = vld [vmem:[%s7293_s26 + $0x102] sm:$0xff]  ;;  %v425_v33 = vld [vmem:[%s7293_s26 + $0x10a] sm:$0xff] }
  0x29   : > { %v7424_v31 = vpack.c.bf16 %v419_v29, %v418_v28  ;;  %v7432_v36 = vpack.c.bf16 %v425_v33, %v424_v32  ;;  %v640_v38 = vld [vmem:[%s7293_s26 + $0x33] sm:$0xff]  ;;  %v641_v39 = vld [vmem:[%s7293_s26 + $0x3b] sm:$0xff]  ;;  %v651_v60 = vld [vmem:[%s7293_s26 + $0x8b] sm:$0xff] }
  0x2a   : > { %482 = vrot.lane.b32.xlu1 %v386_v34, %s7237_s27  ;;  %v422_v34 = vld [vmem:[%s7293_s26 + $0xf2] sm:$0xff]  ;;  %v673_v42 = vpack.c.bf16 %v641_v39, %v640_v38  ;;  %v645_v45 = vld [vmem:[%s7293_s26 + $0x5b] sm:$0xff]  ;;  %v654_v2 = vld [vmem:[%s7293_s26 + $0xa3] sm:$0xff] }
  0x2b   : > { %480 = vrot.lane.b32.xlu0 %v385_v35, %s7237_s27  ;;  %v423_v35 = vld [vmem:[%s7293_s26 + $0xfa] sm:$0xff]  ;;  %v655_v3 = vld [vmem:[%s7293_s26 + $0xab] sm:$0xff]  ;;  %v658_v11 = vld [vmem:[%s7293_s26 + $0xc3] sm:$0xff] }
  0x2c   : > { %v7436_v37 = vpack.c.bf16 %v423_v35, %v422_v34  ;;  %v644_v44 = vld [vmem:[%s7293_s26 + $0x53] sm:$0xff]  ;;  %v649_v51 = vld [vmem:[%s7293_s26 + $0x7b] sm:$0xff]  ;;  %v680_v10 = vpack.c.bf16 %v655_v3, %v654_v2  ;;  %v659_v14 = vld [vmem:[%s7293_s26 + $0xcb] sm:$0xff] }
  0x2d   : > { %v675_v48 = vpack.c.bf16 %v645_v45, %v644_v44  ;;  %v648_v50 = vld [vmem:[%s7293_s26 + $0x73] sm:$0xff]  ;;  %v653_v57 = vld [vmem:[%s7293_s26 + $0x9b] sm:$0xff]  ;;  %v682_v16 = vpack.c.bf16 %v659_v14, %v658_v11  ;;  %v662_v21 = vld [vmem:[%s7293_s26 + $0xe3] sm:$0xff] }
  0x2e   : > { %486 = vrot.lane.b32.xlu1 %v388_v40, %s7237_s27  ;;  %v638_v40 = vld [vmem:[%s7293_s26 + $0x23] sm:$0xff]  ;;  %v677_v54 = vpack.c.bf16 %v649_v51, %v648_v50  ;;  %v652_v56 = vld [vmem:[%s7293_s26 + $0x93] sm:$0xff]  ;;  %v657_v62 = vld [vmem:[%s7293_s26 + $0xbb] sm:$0xff] }
  0x2f   : > { %484 = vrot.lane.b32.xlu0 %v387_v41, %s7237_s27  ;;  %v639_v41 = vld [vmem:[%s7293_s26 + $0x2b] sm:$0xff]  ;;  %v656_v61 = vld [vmem:[%s7293_s26 + $0xb3] sm:$0xff]  ;;  %v679_v63 = vpack.c.bf16 %v653_v57, %v652_v56  ;;  %v661_v9 = vld [vmem:[%s7293_s26 + $0xdb] sm:$0xff] }
  0x30   : > { %v672_v43 = vpack.c.bf16 %v639_v41, %v638_v40  ;;  %v681_v5 = vpack.c.bf16 %v657_v62, %v656_v61  ;;  %v660_v8 = vld [vmem:[%s7293_s26 + $0xd3] sm:$0xff]  ;;  %v665_v20 = vld [vmem:[%s7293_s26 + $0xfb] sm:$0xff]  ;;  %v663_v22 = vld [vmem:[%s7293_s26 + $0xeb] sm:$0xff] }
  0x31   : > { %v683_v15 = vpack.c.bf16 %v661_v9, %v660_v8  ;;  %v664_v17 = vld [vmem:[%s7293_s26 + $0xf3] sm:$0xff]  ;;  %v684_v26 = vpack.c.bf16 %v663_v22, %v662_v21  ;;  %v669_v28 = vld [vmem:[%s7293_s26 + $0x11b] sm:$0xff]  ;;  %v666_v29 = vld [vmem:[%s7293_s26 + $0x103] sm:$0xff] }
  0x32   : > { %490 = vrot.lane.b32.xlu1 %v390_v46, %s7237_s27  ;;  %v642_v46 = vld [vmem:[%s7293_s26 + $0x43] sm:$0xff]  ;;  %v685_v23 = vpack.c.bf16 %v665_v20, %v664_v17  ;;  %v668_v27 = vld [vmem:[%s7293_s26 + $0x113] sm:$0xff]  ;;  %v667_v32 = vld [vmem:[%s7293_s26 + $0x10b] sm:$0xff] }
  0x33   : > { %488 = vrot.lane.b32.xlu0 %v389_v47, %s7237_s27  ;;  %v643_v47 = vld [vmem:[%s7293_s26 + $0x4b] sm:$0xff]  ;;  %v687_v33 = vpack.c.bf16 %v669_v28, %v668_v27  ;;  %v686_v34 = vpack.c.bf16 %v667_v32, %v666_v29  ;;  %v670_v39 = vld [vmem:[%s7293_s26 + $0x123] sm:$0xff]  ;;  %v691_v45 = vld [vmem:[%s7293_s26 + $0x34] sm:$0xff] }
  0x34   : > { %v674_v49 = vpack.c.bf16 %v643_v47, %v642_v46  ;;  %v689_v35 = vld [vmem:[%s7293_s26 + $0x24] sm:$0xff]  ;;  %v690_v38 = vld [vmem:[%s7293_s26 + $0x2c] sm:$0xff]  ;;  %v692_v46 = vld [vmem:[%s7293_s26 + $0x3c] sm:$0xff] }
  0x35   : > { %v671_v40 = vld [vmem:[%s7293_s26 + $0x12b] sm:$0xff]  ;;  %v723_v41 = vpack.c.bf16 %v690_v38, %v689_v35  ;;  %v695_v51 = vld [vmem:[%s7293_s26 + $0x54] sm:$0xff]  ;;  %v704_v3 = vld [vmem:[%s7293_s26 + $0x9c] sm:$0xff] }
  0x36   : > { %511 = vrot.lane.b32.xlu1 %v426_v52, %s7238_s28  ;;  %v646_v52 = vld [vmem:[%s7293_s26 + $0x63] sm:$0xff]  ;;  %v694_v44 = vld [vmem:[%s7293_s26 + $0x4c] sm:$0xff]  ;;  %v699_v57 = vld [vmem:[%s7293_s26 + $0x74] sm:$0xff] }
  0x37   : > { %492 = vrot.lane.b32.xlu0 %v391_v53, %s7237_s27  ;;  %v647_v53 = vld [vmem:[%s7293_s26 + $0x6b] sm:$0xff]  ;;  %v703_v2 = vld [vmem:[%s7293_s26 + $0x94] sm:$0xff]  ;;  %v708_v14 = vld [vmem:[%s7293_s26 + $0xbc] sm:$0xff] }
  0x38   : > { %v676_v55 = vpack.c.bf16 %v647_v53, %v646_v52  ;;  %v698_v50 = vld [vmem:[%s7293_s26 + $0x6c] sm:$0xff]  ;;  %v696_v52 = vld [vmem:[%s7293_s26 + $0x5c] sm:$0xff]  ;;  %v705_v62 = vld [vmem:[%s7293_s26 + $0xa4] sm:$0xff] }
  0x39   : > { %v702_v56 = vld [vmem:[%s7293_s26 + $0x8c] sm:$0xff]  ;;  %v709_v8 = vld [vmem:[%s7293_s26 + $0xc4] sm:$0xff]  ;;  %v707_v11 = vld [vmem:[%s7293_s26 + $0xb4] sm:$0xff] }
  0x3a   : > { %515 = vrot.lane.b32.xlu1 %v7352_v58, %s7238_s28  ;;  %v710_v9 = vld [vmem:[%s7293_s26 + $0xcc] sm:$0xff]  ;;  %v7551_v17 = vpack.c.bf16 %v708_v14, %v707_v11  ;;  %v713_v20 = vld [vmem:[%s7293_s26 + $0xe4] sm:$0xff]  ;;  %v715_v35 = vld [vmem:[%s7293_s26 + $0xf4] sm:$0xff] }
  0x3b   : > { %513 = vrot.lane.b32.xlu0 %v427_v59, %s7238_s28  ;;  %v650_v59 = vld [vmem:[%s7293_s26 + $0x83] sm:$0xff]  ;;  %v714_v21 = vld [vmem:[%s7293_s26 + $0xec] sm:$0xff] }
  0x3c   : > { %v678_v4 = vpack.c.bf16 %v651_v60, %v650_v59  ;;  %v700_v59 = vld [vmem:[%s7293_s26 + $0x7c] sm:$0xff]  ;;  %v7563_v28 = vpack.c.bf16 %v714_v21, %v713_v20  ;;  %v717_v32 = vld [vmem:[%s7293_s26 + $0x104] sm:$0xff]  ;;  %v938_v11 = vld [vmem:[%s7293_s26 + $0x6d] sm:$0xff] }
  0x3d   : > { %v7523_v61 = vpack.c.bf16 %v700_v59, %v699_v57  ;;  %v716_v38 = vld [vmem:[%s7293_s26 + $0xfc] sm:$0xff]  ;;  %v934_v57 = vld [vmem:[%s7293_s26 + $0x4d] sm:$0xff] }
  0x3e   : > { %519 = vrot.lane.b32.xlu1 %v7361_v0, %s7238_s28 }
  0x3f   : > { %517 = vrot.lane.b32.xlu0 %v7364_v1, %s7238_s28 }
  0x42   : > { %523 = vrot.lane.b32.xlu1 %v7372_v6, %s7238_s28 }
  0x43   : > { %521 = vrot.lane.b32.xlu0 %v7376_v7, %s7238_s28 }
  0x46   : > { %527 = vrot.lane.b32.xlu1 %v7384_v12, %s7238_s28 }
  0x47   : > { %525 = vrot.lane.b32.xlu0 %v7388_v13, %s7238_s28 }
  0x4a   : > { %531 = vrot.lane.b32.xlu1 %v7396_v18, %s7238_s28 }
  0x4b   : > { %529 = vrot.lane.b32.xlu0 %v7400_v19, %s7238_s28 }
  0x4e   : > { %535 = vrot.lane.b32.xlu1 %v7408_v24, %s7238_s28 }
  0x4f   : > { %533 = vrot.lane.b32.xlu0 %v7412_v25, %s7238_s28 }
  0x52   : > { %539 = vrot.lane.b32.xlu1 %v7420_v30, %s7238_s28 }
  0x53   : > { %537 = vrot.lane.b32.xlu0 %v7424_v31, %s7238_s28 }
  0x56   : > { %543 = vrot.lane.b32.xlu1 %v7432_v36, %s7238_s28 }
  0x57   : > { %541 = vrot.lane.b32.xlu0 %v7436_v37, %s7238_s28 }
  0x5a   : > { %759 = vrot.lane.b32.xlu1 %v673_v42, %s7237_s27  ;;  %v688_v42 = vpack.c.bf16 %v671_v40, %v670_v39 }
  0x5b   : > { %757 = vrot.lane.b32.xlu0 %v672_v43, %s7237_s27  ;;  %v693_v43 = vld [vmem:[%s7293_s26 + $0x44] sm:$0xff] }
  0x5c   : > { %v7499_v47 = vpack.c.bf16 %v694_v44, %v693_v43  ;;  %v722_v43 = vld [vmem:[%s7293_s26 + $0x12c] sm:$0xff] }
  0x5e   : > { %763 = vrot.lane.b32.xlu1 %v675_v48, %s7237_s27  ;;  %v724_v48 = vpack.c.bf16 %v692_v46, %v691_v45  ;;  %v719_v45 = vld [vmem:[%s7293_s26 + $0x114] sm:$0xff]  ;;  %v720_v46 = vld [vmem:[%s7293_s26 + $0x11c] sm:$0xff] }
  0x5f   : > { %761 = vrot.lane.b32.xlu0 %v674_v49, %s7237_s27  ;;  %v697_v49 = vld [vmem:[%s7293_s26 + $0x64] sm:$0xff] }
  0x60   : > { %v7508_v53 = vpack.c.bf16 %v698_v50, %v697_v49  ;;  %v7599_v50 = vpack.c.bf16 %v720_v46, %v719_v45  ;;  %v947_v45 = vld [vmem:[%s7293_s26 + $0xb5] sm:$0xff]  ;;  %v948_v46 = vld [vmem:[%s7293_s26 + $0xbd] sm:$0xff] }
  0x62   : > { %767 = vrot.lane.b32.xlu1 %v677_v54, %s7237_s27  ;;  %v7511_v54 = vpack.c.bf16 %v696_v52, %v695_v51  ;;  %v935_v51 = vld [vmem:[%s7293_s26 + $0x55] sm:$0xff]  ;;  %v936_v52 = vld [vmem:[%s7293_s26 + $0x5d] sm:$0xff] }
  0x63   : > { %765 = vrot.lane.b32.xlu0 %v676_v55, %s7237_s27  ;;  %v701_v55 = vld [vmem:[%s7293_s26 + $0x84] sm:$0xff] }
  0x64   : > { %v7519_v60 = vpack.c.bf16 %v702_v56, %v701_v55  ;;  %v933_v56 = vld [vmem:[%s7293_s26 + $0x45] sm:$0xff] }
  0x66   : > { %771 = vrot.lane.b32.xlu1 %v679_v63, %s7237_s27  ;;  %v706_v63 = vld [vmem:[%s7293_s26 + $0xac] sm:$0xff] }
  0x67   : > { %769 = vrot.lane.b32.xlu0 %v678_v4, %s7237_s27  ;;  %v7531_v4 = vpack.c.bf16 %v706_v63, %v705_v62  ;;  %v968_v62 = vpack.c.bf16 %v936_v52, %v935_v51  ;;  %v967_v63 = vpack.c.bf16 %v934_v57, %v933_v56  ;;  %v945_v52 = vld [vmem:[%s7293_s26 + $0xa5] sm:$0xff]  ;;  %v946_v56 = vld [vmem:[%s7293_s26 + $0xad] sm:$0xff] }
  0x6a   : > { %775 = vrot.lane.b32.xlu1 %v681_v5, %s7237_s27  ;;  %v7535_v5 = vpack.c.bf16 %v704_v3, %v703_v2  ;;  %v939_v2 = vld [vmem:[%s7293_s26 + $0x75] sm:$0xff]  ;;  %v940_v3 = vld [vmem:[%s7293_s26 + $0x7d] sm:$0xff] }
  0x6b   : > { %773 = vrot.lane.b32.xlu0 %v680_v10, %s7237_s27  ;;  %v970_v20 = vpack.c.bf16 %v940_v3, %v939_v2  ;;  %v951_v2 = vld [vmem:[%s7293_s26 + $0xd5] sm:$0xff]  ;;  %v952_v3 = vld [vmem:[%s7293_s26 + $0xdd] sm:$0xff] }
  0x6e   : > { %779 = vrot.lane.b32.xlu1 %v683_v15, %s7237_s27 }
  0x6f   : > { %777 = vrot.lane.b32.xlu0 %v682_v16, %s7237_s27  ;;  %v7547_v16 = vpack.c.bf16 %v710_v9, %v709_v8  ;;  %v937_v9 = vld [vmem:[%s7293_s26 + $0x65] sm:$0xff] }
  0x70   : > { %v969_v21 = vpack.c.bf16 %v938_v11, %v937_v9  ;;  %v949_v11 = vld [vmem:[%s7293_s26 + $0xc5] sm:$0xff] }
  0x72   : > { %783 = vrot.lane.b32.xlu1 %v685_v23, %s7237_s27  ;;  %v711_v23 = vld [vmem:[%s7293_s26 + $0xd4] sm:$0xff] }
  0x73   : > { %781 = vrot.lane.b32.xlu0 %v684_v26, %s7237_s27  ;;  %v712_v26 = vld [vmem:[%s7293_s26 + $0xdc] sm:$0xff] }
  0x74   : > { %v7567_v29 = vpack.c.bf16 %v712_v26, %v711_v23  ;;  %v943_v23 = vld [vmem:[%s7293_s26 + $0x95] sm:$0xff]  ;;  %v944_v26 = vld [vmem:[%s7293_s26 + $0x9d] sm:$0xff] }
  0x76   : > { %787 = vrot.lane.b32.xlu1 %v687_v33, %s7237_s27  ;;  %v718_v33 = vld [vmem:[%s7293_s26 + $0x10c] sm:$0xff] }
  0x77   : > { %785 = vrot.lane.b32.xlu0 %v686_v34, %s7237_s27  ;;  %v7579_v40 = vpack.c.bf16 %v718_v33, %v717_v32  ;;  %v941_v33 = vld [vmem:[%s7293_s26 + $0x85] sm:$0xff] }
  0x7a   : > { %808 = vrot.lane.b32.xlu1 %v723_v41, %s7238_s28  ;;  %v7583_v41 = vpack.c.bf16 %v716_v38, %v715_v35  ;;  %v942_v35 = vld [vmem:[%s7293_s26 + $0x8d] sm:$0xff] }
  0x7b   : > { %789 = vrot.lane.b32.xlu0 %v688_v42, %s7237_s27  ;;  %v721_v42 = vld [vmem:[%s7293_s26 + $0x124] sm:$0xff] }
  0x7c   : > { %v7595_v49 = vpack.c.bf16 %v722_v43, %v721_v42  ;;  %v972_v42 = vpack.c.bf16 %v944_v26, %v943_v23  ;;  %v971_v43 = vpack.c.bf16 %v942_v35, %v941_v33  ;;  %v976_v23 = vpack.c.bf16 %v952_v3, %v951_v2  ;;  %v955_v33 = vld [vmem:[%s7293_s26 + $0xf5] sm:$0xff]  ;;  %v956_v35 = vld [vmem:[%s7293_s26 + $0xfd] sm:$0xff]  ;;  %v957_v3 = vld [vmem:[%s7293_s26 + $0x105] sm:$0xff] }
  0x7e   : > { %812 = vrot.lane.b32.xlu1 %v7499_v47, %s7238_s28 }
  0x7f   : > { %810 = vrot.lane.b32.xlu0 %v724_v48, %s7238_s28 }
  0x82   : > { %816 = vrot.lane.b32.xlu1 %v7508_v53, %s7238_s28 }
  0x83   : > { %814 = vrot.lane.b32.xlu0 %v7511_v54, %s7238_s28 }
  0x86   : > { %820 = vrot.lane.b32.xlu1 %v7519_v60, %s7238_s28 }
  0x87   : > { %818 = vrot.lane.b32.xlu0 %v7523_v61, %s7238_s28 }
  0x88   : > { %v7539_v10 = vpop.permute.xlu1 %464 }
  0x89   : > { %v7543_v15 = vpop.permute.xlu0 %460 }
  0x8a   : > { %824 = vrot.lane.b32.xlu1 %v7531_v4, %s7238_s28 }
  0x8b   : > { %822 = vrot.lane.b32.xlu0 %v7535_v5, %s7238_s28 }
  0x8c   : > { %v7555_v22 = vpop.permute.xlu1 %466 }
  0x8d   : > { %v7559_v27 = vpop.permute.xlu0 %462 }
  0x8e   : > { %828 = vrot.lane.b32.xlu1 %v7547_v16, %s7238_s28 }
  0x8f   : > { %826 = vrot.lane.b32.xlu0 %v7551_v17, %s7238_s28 }
  0x90   : > { %v7571_v34 = vpop.permute.xlu1 %470 }
  0x91   : > { %11998 = vst [vmem:[#allocation2_spill] sm:$0xff] %v7571_v34  ;;  %v7575_v39 = vpop.permute.xlu0 %468 }
  0x92   : > { %832 = vrot.lane.b32.xlu1 %v7563_v28, %s7238_s28 }
  0x93   : > { %830 = vrot.lane.b32.xlu0 %v7567_v29, %s7238_s28 }
  0x94   : > { %v7587_v44 = vpop.permute.xlu1 %474 }
  0x95   : > { %11999 = vst [vmem:[#allocation3_spill] sm:$0xff] %v7587_v44  ;;  %v7591_v48 = vpop.permute.xlu0 %472  ;;  %v1015_v44 = vld [vmem:[%s7293_s26 + $0x13e] sm:$0xff] }
  0x96   : > { %12000 = vst [vmem:[#allocation4_spill] sm:$0xff] %v7591_v48  ;;  %836 = vrot.lane.b32.xlu1 %v7579_v40, %s7238_s28 }
  0x97   : > { %834 = vrot.lane.b32.xlu0 %v7583_v41, %s7238_s28 }
  0x98   : > { %v7603_v55 = vpop.permute.xlu1 %478 }
  0x99   : > { %12001 = vst [vmem:[#allocation5_spill] sm:$0xff] %v7603_v55  ;;  %v7607_v59 = vpop.permute.xlu0 %476 }
  0x9a   : > { %12002 = vst [vmem:[#allocation6_spill] sm:$0xff] %v7607_v59  ;;  %840 = vrot.lane.b32.xlu1 %v7595_v49, %s7238_s28 }
  0x9b   : > { %838 = vrot.lane.b32.xlu0 %v7599_v50, %s7238_s28 }
  0x9c   : > { %v7615_v8 = vpop.permute.xlu1 %482 }
  0x9d   : > { %12003 = vst [vmem:[#allocation7_spill] sm:$0xff] %v7615_v8  ;;  %v7619_v14 = vpop.permute.xlu0 %480 }
  0x9e   : > { %12004 = vst [vmem:[#allocation8_spill] sm:$0xff] %v7619_v14  ;;  %1054 = vrot.lane.b32.xlu1 %v968_v62, %s7237_s27  ;;  %v974_v62 = vpack.c.bf16 %v948_v46, %v947_v45  ;;  %v954_v45 = vld [vmem:[%s7293_s26 + $0xed] sm:$0xff] }
  0x9f   : > { %1052 = vrot.lane.b32.xlu0 %v967_v63, %s7237_s27  ;;  %v973_v63 = vpack.c.bf16 %v946_v56, %v945_v52  ;;  %v978_v52 = vpack.c.bf16 %v956_v35, %v955_v33  ;;  %v964_v33 = vld [vmem:[%s7293_s26 + $0x13d] sm:$0xff] }
  0xa0   : > { %v7625_v32 = vpop.permute.xlu1 %486 }
  0xa1   : > { %12005 = vst [vmem:[#allocation9_spill] sm:$0xff] %v7625_v32  ;;  %v7629_v38 = vpop.permute.xlu0 %484 }
  0xa2   : > { %12006 = vst [vmem:[#allocation10_spill] sm:$0xff] %v7629_v38  ;;  %1058 = vrot.lane.b32.xlu1 %v970_v20, %s7237_s27  ;;  %v950_v20 = vld [vmem:[%s7293_s26 + $0xcd] sm:$0xff] }
  0xa3   : > { %1056 = vrot.lane.b32.xlu0 %v969_v21, %s7237_s27  ;;  %v975_v26 = vpack.c.bf16 %v950_v20, %v949_v11  ;;  %v958_v11 = vld [vmem:[%s7293_s26 + $0x10d] sm:$0xff] }
  0xa4   : > { %v7635_v51 = vpop.permute.xlu1 %490 }
  0xa5   : > { %12007 = vst [vmem:[#allocation11_spill] sm:$0xff] %v7635_v51  ;;  %v7639_v57 = vpop.permute.xlu0 %488 }
  0xa6   : > { %12008 = vst [vmem:[#allocation12_spill] sm:$0xff] %v7639_v57  ;;  %1062 = vrot.lane.b32.xlu1 %v972_v42, %s7237_s27 }
  0xa7   : > { %1060 = vrot.lane.b32.xlu0 %v971_v43, %s7237_s27  ;;  %v953_v43 = vld [vmem:[%s7293_s26 + $0xe5] sm:$0xff] }
  0xa8   : > { %v7645_v9 = vpop.permute.xlu1 %511  ;;  %v977_v56 = vpack.c.bf16 %v954_v45, %v953_v43  ;;  %v961_v43 = vld [vmem:[%s7293_s26 + $0x125] sm:$0xff]  ;;  %v962_v45 = vld [vmem:[%s7293_s26 + $0x12d] sm:$0xff] }
  0xa9   : > { %v7649_v21 = vpop.permute.xlu0 %492 }
  0xaa   : > { %12009 = vst [vmem:[#allocation13_spill] sm:$0xff] %v7649_v21  ;;  %1066 = vrot.lane.b32.xlu1 %v974_v62, %s7237_s27  ;;  %v959_v62 = vld [vmem:[%s7293_s26 + $0x115] sm:$0xff] }
  0xab   : > { %1064 = vrot.lane.b32.xlu0 %v973_v63, %s7237_s27  ;;  %v960_v63 = vld [vmem:[%s7293_s26 + $0x11d] sm:$0xff] }
  0xac   : > { %v7655_v42 = vpop.permute.xlu1 %515  ;;  %v980_v21 = vpack.c.bf16 %v960_v63, %v959_v62  ;;  %v985_v62 = vld [vmem:[%s7293_s26 + $0x4e] sm:$0xff] }
  0xad   : > { %v7659_v46 = vpop.permute.xlu0 %513 }
  0xae   : > { %1070 = vrot.lane.b32.xlu1 %v976_v23, %s7237_s27  ;;  %v979_v23 = vpack.c.bf16 %v958_v11, %v957_v3  ;;  %v965_v3 = vld [vmem:[%s7293_s26 + $0x145] sm:$0xff]  ;;  %v966_v11 = vld [vmem:[%s7293_s26 + $0x14d] sm:$0xff] }
  0xaf   : > { %1068 = vrot.lane.b32.xlu0 %v975_v26, %s7237_s27  ;;  %v963_v26 = vld [vmem:[%s7293_s26 + $0x135] sm:$0xff] }
  0xb0   : > { %v7665_v2 = vpop.permute.xlu1 %519  ;;  %v982_v57 = vpack.c.bf16 %v964_v33, %v963_v26  ;;  %v989_v26 = vld [vmem:[%s7293_s26 + $0x6e] sm:$0xff] }
  0xb1   : > { %12010 = vst [vmem:[#allocation14_spill] sm:$0xff] %v7665_v2  ;;  %v7669_v20 = vpop.permute.xlu0 %517 }
  0xb2   : > { %1074 = vrot.lane.b32.xlu1 %v978_v52, %s7237_s27  ;;  %v981_v52 = vpack.c.bf16 %v962_v45, %v961_v43  ;;  %v986_v43 = vld [vmem:[%s7293_s26 + $0x56] sm:$0xff]  ;;  %v987_v45 = vld [vmem:[%s7293_s26 + $0x5e] sm:$0xff] }
  0xb3   : > { %1072 = vrot.lane.b32.xlu0 %v977_v56, %s7237_s27  ;;  %v984_v56 = vld [vmem:[%s7293_s26 + $0x46] sm:$0xff] }
  0xb4   : > { %v7675_v35 = vpop.permute.xlu1 %523  ;;  %v1018_v38 = vpack.c.bf16 %v985_v62, %v984_v56  ;;  %v993_v56 = vld [vmem:[%s7293_s26 + $0x8e] sm:$0xff] }
  0xb5   : > { %12011 = vst [vmem:[#allocation15_spill] sm:$0xff] %v7675_v35  ;;  %v7679_v51 = vpop.permute.xlu0 %521 }
  0xb6   : > { %12012 = vst [vmem:[#allocation16_spill] sm:$0xff] %v7679_v51  ;;  %1078 = vrot.lane.b32.xlu1 %v980_v21, %s7237_s27  ;;  %v983_v21 = vpack.c.bf16 %v966_v11, %v965_v3  ;;  %v990_v3 = vld [vmem:[%s7293_s26 + $0x76] sm:$0xff]  ;;  %v991_v11 = vld [vmem:[%s7293_s26 + $0x7e] sm:$0xff] }
  0xb7   : > { %1076 = vrot.lane.b32.xlu0 %v979_v23, %s7237_s27  ;;  %v988_v23 = vld [vmem:[%s7293_s26 + $0x66] sm:$0xff] }
  0xb8   : > { %v7685_v63 = vpop.permute.xlu1 %527  ;;  %v1020_v14 = vpack.c.bf16 %v989_v26, %v988_v23  ;;  %v997_v23 = vld [vmem:[%s7293_s26 + $0xae] sm:$0xff] }
  0xb9   : > { %12013 = vst [vmem:[#allocation17_spill] sm:$0xff] %v7685_v63  ;;  %v7689_v32 = vpop.permute.xlu0 %525 }
  0xba   : > { %12014 = vst [vmem:[#allocation18_spill] sm:$0xff] %v7689_v32  ;;  %1082 = vrot.lane.b32.xlu1 %v982_v57, %s7237_s27  ;;  %v1019_v57 = vpack.c.bf16 %v987_v45, %v986_v43  ;;  %v994_v43 = vld [vmem:[%s7293_s26 + $0x96] sm:$0xff]  ;;  %v995_v45 = vld [vmem:[%s7293_s26 + $0x9e] sm:$0xff] }
  0xbb   : > { %1080 = vrot.lane.b32.xlu0 %v981_v52, %s7237_s27  ;;  %v992_v52 = vld [vmem:[%s7293_s26 + $0x86] sm:$0xff] }
  0xbc   : > { %v7695_v33 = vpop.permute.xlu1 %531 }
  0xbd   : > { %12015 = vst [vmem:[#allocation19_spill] sm:$0xff] %v7695_v33  ;;  %v7699_v8 = vpop.permute.xlu0 %529 }
  0xbe   : > { %12016 = vst [vmem:[#allocation20_spill] sm:$0xff] %v7699_v8  ;;  %1103 = vrot.lane.b32.xlu1 %v1018_v38, %s7238_s28  ;;  %v1022_v8 = vpack.c.bf16 %v993_v56, %v992_v52  ;;  %v1021_v38 = vpack.c.bf16 %v991_v11, %v990_v3  ;;  %v1001_v52 = vld [vmem:[%s7293_s26 + $0xce] sm:$0xff]  ;;  %v998_v3 = vld [vmem:[%s7293_s26 + $0xb6] sm:$0xff]  ;;  %v999_v11 = vld [vmem:[%s7293_s26 + $0xbe] sm:$0xff] }
  0xbf   : > { %1084 = vrot.lane.b32.xlu0 %v983_v21, %s7237_s27  ;;  %v996_v21 = vld [vmem:[%s7293_s26 + $0xa6] sm:$0xff] }
  0xc0   : > { %v7705_v62 = vpop.permute.xlu1 %535 }
  0xc1   : > { %12017 = vst [vmem:[#allocation21_spill] sm:$0xff] %v7705_v62  ;;  %v7709_v33 = vpop.permute.xlu0 %533 }
  0xc2   : > { %12018 = vst [vmem:[#allocation22_spill] sm:$0xff] %v7709_v33  ;;  %1107 = vrot.lane.b32.xlu1 %v1020_v14, %s7238_s28  ;;  %v1024_v33 = vpack.c.bf16 %v997_v23, %v996_v21  ;;  %v1023_v14 = vpack.c.bf16 %v995_v45, %v994_v43  ;;  %v1005_v21 = vld [vmem:[%s7293_s26 + $0xee] sm:$0xff]  ;;  %v1002_v43 = vld [vmem:[%s7293_s26 + $0xd6] sm:$0xff]  ;;  %v1003_v45 = vld [vmem:[%s7293_s26 + $0xde] sm:$0xff] }
  0xc3   : > { %1105 = vrot.lane.b32.xlu0 %v1019_v57, %s7238_s28  ;;  %v1000_v57 = vld [vmem:[%s7293_s26 + $0xc6] sm:$0xff] }
  0xc4   : > { %v7715_v26 = vpop.permute.xlu1 %539 }
  0xc5   : > { %12019 = vst [vmem:[#allocation23_spill] sm:$0xff] %v7715_v26  ;;  %v7719_v62 = vpop.permute.xlu0 %537 }
  0xc6   : > { %12020 = vst [vmem:[#allocation24_spill] sm:$0xff] %v7719_v62  ;;  %1111 = vrot.lane.b32.xlu1 %v1022_v8, %s7238_s28  ;;  %v1026_v62 = vpack.c.bf16 %v1001_v52, %v1000_v57  ;;  %v1025_v8 = vpack.c.bf16 %v999_v11, %v998_v3  ;;  %v1009_v57 = vld [vmem:[%s7293_s26 + $0x10e] sm:$0xff]  ;;  %v1006_v3 = vld [vmem:[%s7293_s26 + $0xf6] sm:$0xff]  ;;  %v1007_v11 = vld [vmem:[%s7293_s26 + $0xfe] sm:$0xff] }
  0xc7   : > { %1109 = vrot.lane.b32.xlu0 %v1021_v38, %s7238_s28  ;;  %v1004_v38 = vld [vmem:[%s7293_s26 + $0xe6] sm:$0xff]  ;;  %v1029_v59 = vpack.c.bf16 %v1007_v11, %v1006_v3  ;;  %v1014_v11 = vld [vmem:[%s7293_s26 + $0x136] sm:$0xff] }
  0xc8   : > { %v7725_v56 = vpop.permute.xlu1 %543  ;;  %v1033_v51 = vpack.c.bf16 %v1015_v44, %v1014_v11 }
  0xc9   : > { %12021 = vst [vmem:[#allocation25_spill] sm:$0xff] %v7725_v56  ;;  %v7729_v26 = vpop.permute.xlu0 %541 }
  0xca   : > { %12022 = vst [vmem:[#allocation26_spill] sm:$0xff] %v7729_v26  ;;  %1115 = vrot.lane.b32.xlu1 %v1024_v33, %s7238_s28  ;;  %v1028_v26 = vpack.c.bf16 %v1005_v21, %v1004_v38  ;;  %v1027_v33 = vpack.c.bf16 %v1003_v45, %v1002_v43  ;;  %v1013_v38 = vld [vmem:[%s7293_s26 + $0x12e] sm:$0xff]  ;;  %v1011_v43 = vld [vmem:[%s7293_s26 + $0x11e] sm:$0xff]  ;;  %v11899_v45 = vmov 0  }
  0xcb   : > { %1113 = vrot.lane.b32.xlu0 %v1023_v14, %s7238_s28  ;;  %v1008_v14 = vld [vmem:[%s7293_s26 + $0x106] sm:$0xff]  ;;  %7173 = vset.pattern.permute.xlu1 %v11899_v45 }
  0xcc   : > { %v7735_v23 = vpop.permute.xlu1 %759  ;;  %v1030_v63 = vpack.c.bf16 %v1009_v57, %v1008_v14  ;;  %7172 = vset.pattern.permute.xlu0 %v11899_v45  ;;  %1500 = vmatprep.mubr.bf16.mxu0 %v11899_v45  ;;  %v1016_v14 = vld [vmem:[%s7293_s26 + $0x146] sm:$0xff]  ;;  %v1017_v57 = vld [vmem:[%s7293_s26 + $0x14e] sm:$0xff] }
  0xcd   : > { %v758_v56 = vpop.permute.xlu0 %757  ;;  %3223 = vmatprep.mubr.bf16.mxu1 %v11899_v45  ;;  %v1034_v48 = vpack.c.bf16 %v1017_v57, %v1016_v14  ;;  %v847_v57 = vsel %vm545_vm0, %v7364_v1, %v7735_v23 }
  0xce   : > { %1119 = vrot.lane.b32.xlu1 %v1026_v62, %s7238_s28  ;;  %v1012_v62 = vld [vmem:[%s7293_s26 + $0x126] sm:$0xff] }
  0xcf   : > { %1117 = vrot.lane.b32.xlu0 %v1025_v8, %s7238_s28  ;;  %v1010_v8 = vld [vmem:[%s7293_s26 + $0x116] sm:$0xff] }
  0xd0   : > { %v764_v52 = vpop.permute.xlu1 %763 }
  0xd1   : > { %v762_v55 = vpop.permute.xlu0 %761 }
  0xd2   : > { %1123 = vrot.lane.b32.xlu1 %v1028_v26, %s7238_s28  ;;  %v1032_v26 = vpack.c.bf16 %v1013_v38, %v1012_v62 }
  0xd3   : > { %1121 = vrot.lane.b32.xlu0 %v1027_v33, %s7238_s28  ;;  %v1031_v33 = vpack.c.bf16 %v1011_v43, %v1010_v8 }
  0xd4   : > { %v768_v21 = vpop.permute.xlu1 %767 }
  0xd5   : > { %v766_v32 = vpop.permute.xlu0 %765 }
  0xd6   : > { %1127 = vrot.lane.b32.xlu1 %v1030_v63, %s7238_s28 }
  0xd7   : > { %1125 = vrot.lane.b32.xlu0 %v1029_v59, %s7238_s28 }
  0xd8   : > { %v772_v3 = vpop.permute.xlu1 %771 }
  0xd9   : > { %v770_v35 = vpop.permute.xlu0 %769 }
  0xda   : > { %1131 = vrot.lane.b32.xlu1 %v1032_v26, %s7238_s28  ;;  %v844_v26 = vsel %vm545_vm0, %v7352_v58, %v758_v56  ;;  %v856_v56 = vsel %vm545_vm0, %v7372_v6, %v766_v32  ;;  %v859_v6 = vsel %vm545_vm0, %v7388_v13, %v768_v21 }
  0xdb   : > { %1129 = vrot.lane.b32.xlu0 %v1031_v33, %s7238_s28 }
  0xdc   : > { %v776_v34 = vpop.permute.xlu1 %775 }
  0xdd   : > { %v774_v45 = vpop.permute.xlu0 %773 }
  0xde   : > { %1135 = vrot.lane.b32.xlu1 %v1034_v48, %s7238_s28  ;;  %v850_v48 = vsel %vm545_vm0, %v7361_v0, %v762_v55  ;;  %v853_v0 = vsel %vm545_vm0, %v7376_v7, %v764_v52  ;;  %v868_v52 = vsel %vm545_vm0, %v7396_v18, %v774_v45 }
  0xdf   : > { %1133 = vrot.lane.b32.xlu0 %v1033_v51, %s7238_s28 }
  0xe0   : > { %v780_v59 = vpop.permute.xlu1 %779 }
  0xe1   : > { %v778_v63 = vpop.permute.xlu0 %777 }
  0xe4   : > { %v7765_v62 = vpop.permute.xlu1 %783 }
  0xe5   : > { %v782_v38 = vpop.permute.xlu0 %781 }
  0xe8   : > { %v7767_v8 = vpop.permute.xlu1 %787 }
  0xe9   : > { %v786_v43 = vpop.permute.xlu0 %785 }
  0xec   : > { %v809_v44 = vpop.permute.xlu1 %808 }
  0xed   : > { %v894_v33 = vsel %vm597_vm1, %v844_v26, %v809_v44  ;;  %v7772_v14 = vpop.permute.xlu0 %789 }
  0xee   : > { %1239 = vrot.lane.b32.xlu0 %v894_v33, %s7240_s29 }
  0xf0   : > { %v813_v51 = vpop.permute.xlu1 %812 }
  0xf1   : > { %v898_v11 = vsel %vm597_vm1, %v850_v48, %v813_v51  ;;  %v811_v2 = vpop.permute.xlu0 %810  ;;  %v874_v51 = vsel %vm545_vm0, %v7408_v24, %v778_v63  ;;  %v877_v24 = vsel %vm545_vm0, %v7424_v31, %v780_v59  ;;  %v634_v63 = vld [vmem:[%s7293_s26 + $0x122] sm:$0xff]  ;;  %v883_v31 = vsel %vm545_vm0, %v7436_v37, %v7765_v62 }
  0xf2   : > { %v896_v58 = vsel %vm597_vm1, %v847_v57, %v811_v2  ;;  %1243 = vrot.lane.b32.xlu0 %v898_v11, %s7240_s29  ;;  %v862_v2 = vsel %vm545_vm0, %v7384_v12, %v770_v35  ;;  %v865_v12 = vsel %vm545_vm0, %v7400_v19, %v772_v3  ;;  %v871_v19 = vsel %vm545_vm0, %v7412_v25, %v776_v34 }
  0xf3   : > { %1241 = vrot.lane.b32.xlu1 %v896_v58, %s7240_s29  ;;  %v880_v11 = vsel %vm545_vm0, %v7420_v30, %v782_v38  ;;  %v886_v30 = vsel %vm545_vm0, %v7432_v36, %v786_v43 }
  0xf4   : > { %v817_v26 = vpop.permute.xlu1 %816 }
  0xf5   : > { %v902_v55 = vsel %vm597_vm1, %v856_v56, %v817_v26  ;;  %v815_v44 = vpop.permute.xlu0 %814  ;;  %v635_v56 = vld [vmem:[%s7293_s26 + $0x12a] sm:$0xff]  ;;  %v632_v26 = vld [vmem:[%s7293_s26 + $0x112] sm:$0xff] }
  0xf6   : > { %v900_v1 = vsel %vm597_vm1, %v853_v0, %v815_v44  ;;  %1247 = vrot.lane.b32.xlu0 %v902_v55, %s7240_s29  ;;  %v633_v0 = vld [vmem:[%s7293_s26 + $0x11a] sm:$0xff]  ;;  %v637_v38 = vpack.c.bf16 %v635_v56, %v634_v63 }
  0xf7   : > { %1245 = vrot.lane.b32.xlu1 %v900_v1, %s7240_s29  ;;  %v7833_v59 = vpack.c.bf16 %v633_v0, %v632_v26 }
  0xf8   : > { %v821_v23 = vpop.permute.xlu1 %820  ;;  %v892_v36 = vsel %vm545_vm0, %v637_v38, %v7772_v14  ;;  %v7854_v14 = vld [vmem:[%s11894_s2] ss:$8 sps:$4 sm:$0xff]  }
  0xf9   : > { %v906_v32 = vsel %vm597_vm1, %v862_v2, %v821_v23  ;;  %v819_v33 = vpop.permute.xlu0 %818 }
  0xfa   : > { %v904_v7 = vsel %vm597_vm1, %v859_v6, %v819_v33  ;;  %1251 = vrot.lane.b32.xlu0 %v906_v32, %s7240_s29  ;;  %v889_v6 = vsel %vm545_vm0, %v7833_v59, %v7767_v8  ;;  %v7174_v33 = vld [vmem:[%s11894_s2 + $0x4] ss:$8 sps:$4 sm:$0xff]  }
  0xfb   : > { %1249 = vrot.lane.b32.xlu1 %v904_v7, %s7240_s29  ;;  %v7177_v7 = vld [vmem:[%s11894_s2 + $0x14] ss:$8 sps:$4 sm:$0x3f]   ;;  %1468 = vmatprep.subr.bf16.mxu0 %v7174_v33 }
  0xfc   : > { %v825_v48 = vpop.permute.xlu1 %824  ;;  %3191 = vmatprep.subr.bf16.mxu1 %v7174_v33  ;;  %1469 = vmatpush1.bf16.msra.mxu0 %v7854_v14 }
  0xfd   : > { %v910_v35 = vsel %vm597_vm1, %v868_v52, %v825_v48  ;;  %v823_v13 = vpop.permute.xlu0 %822  ;;  %v7241_v48 = vmov 65535   ;;  %3192 = vmatpush1.bf16.msra.mxu1 %v7854_v14 }
  0xfe   : > { %v908_v21 = vsel %vm597_vm1, %v865_v12, %v823_v13  ;;  %1255 = vrot.lane.b32.xlu0 %v910_v35, %s7240_s29  ;;  %v1460_v12 = vsel %vm1458_vm2, 4294967295, %v7241_v48  ;;  %v7179_v35 = vld [vmem:[%s11894_s2 + $0x10] ss:$8 sps:$4 sm:$0x3f]  }
  0xff   : > { %1253 = vrot.lane.b32.xlu1 %v908_v21, %s7240_s29  ;;  %v1461_v13 = vsel %vm1459_vm3, %v1460_v12, 0 }
 0x100   : > { %v829_v18 = vpop.permute.xlu1 %828  ;;  %v7864_v21 = vand.u32 %v7177_v7, %v1461_v13 }
 0x101   : > { %v914_v45 = vsel %vm597_vm1, %v874_v51, %v829_v18  ;;  %v827_v3 = vpop.permute.xlu0 %826  ;;  %v7866_v51 = vand.u32 %v7179_v35, %v1461_v13 }
 0x102   : > { %v912_v57 = vsel %vm597_vm1, %v871_v19, %v827_v3  ;;  %1259 = vrot.lane.b32.xlu0 %v914_v45, %s7240_s29  ;;  %1470 = vmatprep.subr.bf16.mxu0 %v7864_v21 }
 0x103   : > { %1257 = vrot.lane.b32.xlu1 %v912_v57, %s7240_s29  ;;  %3193 = vmatprep.subr.bf16.mxu1 %v7864_v21 }
 0x104   : > { %v833_v58 = vpop.permute.xlu1 %832  ;;  %1471 = vmatpush1.bf16.msra.mxu0 %v7866_v51  ;;  %3194 = vmatpush1.bf16.msra.mxu1 %v7866_v51 }
 0x105   : > { %v918_v25 = vsel %vm597_vm1, %v880_v11, %v833_v58  ;;  %v831_v34 = vpop.permute.xlu0 %830  ;;  %4744 = vmatprep.subr.bf16.mxu0 %v7174_v33  ;;  %6297 = vmatprep.subr.bf16.mxu1 %v7174_v33 }
 0x106   : > { %v916_v55 = vsel %vm597_vm1, %v877_v24, %v831_v34  ;;  %1263 = vrot.lane.b32.xlu0 %v918_v25, %s7240_s29 }
 0x107   : > { %1261 = vrot.lane.b32.xlu1 %v916_v55, %s7240_s29 }
 0x108   : > { %v837_v44 = vpop.permute.xlu1 %836 }
 0x109   : > { %v922_v1 = vsel %vm597_vm1, %v886_v30, %v837_v44  ;;  %v835_v2 = vpop.permute.xlu0 %834 }
 0x10a   : > { %v920_v23 = vsel %vm597_vm1, %v883_v31, %v835_v2  ;;  %1267 = vrot.lane.b32.xlu0 %v922_v1, %s7240_s29 }
 0x10b   : > { %1265 = vrot.lane.b32.xlu1 %v920_v23, %s7240_s29 }
 0x10c   : > { %v841_v43 = vpop.permute.xlu1 %840 }
 0x10d   : > { %v926_v37 = vsel %vm597_vm1, %v892_v36, %v841_v43  ;;  %v839_v62 = vpop.permute.xlu0 %838 }
 0x10e   : > { %v924_v32 = vsel %vm597_vm1, %v889_v6, %v839_v62  ;;  %1271 = vrot.lane.b32.xlu0 %v926_v37, %s7240_s29 }
 0x10f   : > { %1269 = vrot.lane.b32.xlu1 %v924_v32, %s7240_s29 }
 0x110   : > { %v1055_v8 = vpop.permute.xlu1 %1054 }
 0x111   : > { %v1053_v52 = vpop.permute.xlu0 %1052  ;;  %v1142_v2 = vsel %vm545_vm0, %v7511_v54, %v1055_v8 }
 0x112   : > { %v1139_v55 = vsel %vm545_vm0, %v7499_v47, %v1053_v52 }
 0x114   : > { %v1059_v18 = vpop.permute.xlu1 %1058 }
 0x115   : > { %v1057_v19 = vpop.permute.xlu0 %1056 }
 0x116   : > { %v1145_v31 = vsel %vm545_vm0, %v7508_v53, %v1057_v19  ;;  %v1148_v53 = vsel %vm545_vm0, %v7523_v61, %v1059_v18 }
 0x118   : > { %v1063_v45 = vpop.permute.xlu1 %1062 }
 0x119   : > { %v1061_v3 = vpop.permute.xlu0 %1060 }
 0x11a   : > { %v1151_v43 = vsel %vm545_vm0, %v7519_v60, %v1061_v3  ;;  %v1154_v60 = vsel %vm545_vm0, %v7535_v5, %v1063_v45 }
 0x11c   : > { %v1067_v57 = vpop.permute.xlu1 %1066 }
 0x11d   : > { %v1065_v11 = vpop.permute.xlu0 %1064 }
 0x11e   : > { %v1157_v32 = vsel %vm545_vm0, %v7531_v4, %v1065_v11  ;;  %v1160_v4 = vsel %vm545_vm0, %v7551_v17, %v1067_v57  ;;  %v929_v11 = vld [vmem:[%s7293_s26 + $0x144] sm:$0xff] }
 0x120   : > { %v1071_v58 = vpop.permute.xlu1 %1070 }
 0x121   : > { %v1069_v24 = vpop.permute.xlu0 %1068  ;;  %v1166_v17 = vsel %vm545_vm0, %v7567_v29, %v1071_v58 }
 0x122   : > { %v1163_v52 = vsel %vm545_vm0, %v7547_v16, %v1069_v24  ;;  %v930_v24 = vld [vmem:[%s7293_s26 + $0x14c] sm:$0xff] }
 0x124   : > { %v1075_v63 = vpop.permute.xlu1 %1074 }
 0x125   : > { %v1073_v56 = vpop.permute.xlu0 %1072 }
 0x126   : > { %v1169_v13 = vsel %vm545_vm0, %v7563_v28, %v1073_v56  ;;  %v1172_v28 = vsel %vm545_vm0, %v7583_v41, %v1075_v63  ;;  %v927_v56 = vld [vmem:[%s7293_s26 + $0x134] sm:$0xff] }
 0x128   : > { %v7872_v25 = vpop.permute.xlu1 %1078 }
 0x129   : > { %v1077_v34 = vpop.permute.xlu0 %1076  ;;  %v1178_v41 = vsel %vm545_vm0, %v7599_v50, %v7872_v25 }
 0x12a   : > { %v1175_v3 = vsel %vm545_vm0, %v7579_v40, %v1077_v34  ;;  %v7936_v34 = vpack.c.bf16 %v930_v24, %v929_v11  ;;  %v280_v11 = vld [vmem:[%s11893_s1 + $0xc0] sm:$0xff]  ;;  %v2403_v24 = vld [vmem:[%s7293_s26 + $0x133] sm:$0xff] }
 0x12c   : > { %v7874_v26 = vpop.permute.xlu1 %1082 }
 0x12d   : > { %v1081_v0 = vpop.permute.xlu0 %1080 }
 0x12e   : > { %v1181_v40 = vsel %vm545_vm0, %v7595_v49, %v1081_v0 }
 0x130   : > { %v1104_v30 = vpop.permute.xlu1 %1103 }
 0x131   : > { %v1189_v38 = vsel %vm597_vm1, %v1139_v55, %v1104_v30  ;;  %v7879_v44 = vpop.permute.xlu0 %1084  ;;  %v928_v55 = vld [vmem:[%s7293_s26 + $0x13c] sm:$0xff] }
 0x132   : > { %1290 = vrot.lane.b32.xlu1 %v1189_v38, %s7242_s14  ;;  %v7941_v63 = vpack.c.bf16 %v928_v55, %v927_v56  ;;  %v1187_v49 = vsel %vm545_vm0, %v7936_v34, %v7879_v44  ;;  %v256_v44 = vld [vmem:[%s11893_s1] sm:$0xff] }
 0x134   : > { %v1108_v1 = vpop.permute.xlu1 %1107  ;;  %v1184_v50 = vsel %vm545_vm0, %v7941_v63, %v7874_v26  ;;  %v258_v26 = vld [vmem:[%s11893_s1 + $0x10] sm:$0xff] }
 0x135   : > { %v1193_v23 = vsel %vm597_vm1, %v1145_v31, %v1108_v1  ;;  %v1106_v36 = vpop.permute.xlu0 %1105 }
 0x136   : > { %v1191_v47 = vsel %vm597_vm1, %v1142_v2, %v1106_v36  ;;  %1294 = vrot.lane.b32.xlu1 %v1193_v23, %s7242_s14 }
 0x137   : > { %1292 = vrot.lane.b32.xlu0 %v1191_v47, %s7242_s14  ;;  %v257_v47 = vld [vmem:[%s11893_s1 + $0x8] sm:$0xff] }
 0x138   : > { %v1112_v6 = vpop.permute.xlu1 %1111 }
 0x139   : > { %v1197_v37 = vsel %vm597_vm1, %v1151_v43, %v1112_v6  ;;  %v1110_v62 = vpop.permute.xlu0 %1109  ;;  %v259_v43 = vld [vmem:[%s11893_s1 + $0x18] sm:$0xff]  ;;  %v260_v6 = vld [vmem:[%s11893_s1 + $0x20] sm:$0xff] }
 0x13a   : > { %v1195_v54 = vsel %vm597_vm1, %v1148_v53, %v1110_v62  ;;  %1298 = vrot.lane.b32.xlu1 %v1197_v37, %s7242_s14  ;;  %v261_v53 = vld [vmem:[%s11893_s1 + $0x28] sm:$0xff]  ;;  %v262_v37 = vld [vmem:[%s11893_s1 + $0x30] sm:$0xff]  ;;  %v263_v62 = vld [vmem:[%s11893_s1 + $0x38] sm:$0xff] }
 0x13b   : > { %1296 = vrot.lane.b32.xlu0 %v1195_v54, %s7242_s14  ;;  %v264_v54 = vld [vmem:[%s11893_s1 + $0x40] sm:$0xff] }
 0x13c   : > { %v1116_v33 = vpop.permute.xlu1 %1115 }
 0x13d   : > { %v1201_v8 = vsel %vm597_vm1, %v1157_v32, %v1116_v33  ;;  %v1114_v7 = vpop.permute.xlu0 %1113  ;;  %v265_v32 = vld [vmem:[%s11893_s1 + $0x48] sm:$0xff]  ;;  %v266_v33 = vld [vmem:[%s11893_s1 + $0x50] sm:$0xff] }
 0x13e   : > { %v1199_v61 = vsel %vm597_vm1, %v1154_v60, %v1114_v7  ;;  %1302 = vrot.lane.b32.xlu1 %v1201_v8, %s7242_s14  ;;  %v267_v60 = vld [vmem:[%s11893_s1 + $0x58] sm:$0xff]  ;;  %v268_v8 = vld [vmem:[%s11893_s1 + $0x60] sm:$0xff]  ;;  %v269_v7 = vld [vmem:[%s11893_s1 + $0x68] sm:$0xff] }
 0x13f   : > { %1300 = vrot.lane.b32.xlu0 %v1199_v61, %s7242_s14  ;;  %v270_v61 = vld [vmem:[%s11893_s1 + $0x70] sm:$0xff] }
 0x140   : > { %v1120_v48 = vpop.permute.xlu1 %1119 }
 0x141   : > { %v1205_v12 = vsel %vm597_vm1, %v1163_v52, %v1120_v48  ;;  %v1118_v5 = vpop.permute.xlu0 %1117  ;;  %v271_v52 = vld [vmem:[%s11893_s1 + $0x78] sm:$0xff]  ;;  %v272_v48 = vld [vmem:[%s11893_s1 + $0x80] sm:$0xff] }
 0x142   : > { %v1203_v35 = vsel %vm597_vm1, %v1160_v4, %v1118_v5  ;;  %1306 = vrot.lane.b32.xlu1 %v1205_v12, %s7242_s14  ;;  %v273_v4 = vld [vmem:[%s11893_s1 + $0x88] sm:$0xff] }
 0x143   : > { %1304 = vrot.lane.b32.xlu0 %v1203_v35, %s7242_s14  ;;  %v274_v35 = vld [vmem:[%s11893_s1 + $0x90] sm:$0xff] }
 0x144   : > { %v1124_v16 = vpop.permute.xlu1 %1123 }
 0x145   : > { %v1209_v18 = vsel %vm597_vm1, %v1169_v13, %v1124_v16  ;;  %v1122_v19 = vpop.permute.xlu0 %1121  ;;  %v275_v13 = vld [vmem:[%s11893_s1 + $0x98] sm:$0xff] }
 0x146   : > { %v1207_v45 = vsel %vm597_vm1, %v1166_v17, %v1122_v19  ;;  %1310 = vrot.lane.b32.xlu1 %v1209_v18, %s7242_s14  ;;  %v276_v17 = vld [vmem:[%s11893_s1 + $0xa0] sm:$0xff]  ;;  %v277_v19 = vld [vmem:[%s11893_s1 + $0xa8] sm:$0xff] }
 0x147   : > { %1308 = vrot.lane.b32.xlu0 %v1207_v45, %s7242_s14  ;;  %v278_v45 = vld [vmem:[%s11893_s1 + $0xb0] sm:$0xff] }
 0x148   : > { %v1128_v57 = vpop.permute.xlu1 %1127 }
 0x149   : > { %v1213_v29 = vsel %vm597_vm1, %v1175_v3, %v1128_v57  ;;  %v1126_v58 = vpop.permute.xlu0 %1125  ;;  %v279_v3 = vld [vmem:[%s11893_s1 + $0xb8] sm:$0xff] }
 0x14a   : > { %v1211_v30 = vsel %vm597_vm1, %v1172_v28, %v1126_v58  ;;  %1314 = vrot.lane.b32.xlu1 %v1213_v29, %s7242_s14  ;;  %v2404_v29 = vld [vmem:[%s7293_s26 + $0x13b] sm:$0xff]  ;;  %v281_v58 = vld [vmem:[%s11893_s1 + $0xc8] sm:$0xff] }
 0x14b   : > { %1312 = vrot.lane.b32.xlu0 %v1211_v30, %s7242_s14  ;;  %v2437_v56 = vpack.c.bf16 %v2404_v29, %v2403_v24  ;;  %v2698_v30 = vld [vmem:[%s7293_s26 + $0x155] sm:$0xff] }
 0x14c   : > { %v1132_v38 = vpop.permute.xlu1 %1131 }
 0x14d   : > { %v1217_v31 = vsel %vm597_vm1, %v1181_v40, %v1132_v38  ;;  %v1130_v1 = vpop.permute.xlu0 %1129  ;;  %v2699_v40 = vld [vmem:[%s7293_s26 + $0x15d] sm:$0xff] }
 0x14e   : > { %v1215_v2 = vsel %vm597_vm1, %v1178_v41, %v1130_v1  ;;  %1318 = vrot.lane.b32.xlu1 %v1217_v31, %s7242_s14  ;;  %v2749_v41 = vld [vmem:[%s7293_s26 + $0x156] sm:$0xff]  ;;  %v2750_v31 = vld [vmem:[%s7293_s26 + $0x15e] sm:$0xff]  ;;  %v2732_v1 = vpack.c.bf16 %v2699_v40, %v2698_v30  ;;  %v2705_v40 = vld [vmem:[%s7293_s26 + $0x18d] sm:$0xff] }
 0x14f   : > { %1316 = vrot.lane.b32.xlu0 %v1215_v2, %s7242_s14  ;;  %v2783_v2 = vpack.c.bf16 %v2750_v31, %v2749_v41  ;;  %v2704_v30 = vld [vmem:[%s7293_s26 + $0x185] sm:$0xff] }
 0x150   : > { %v1136_v0 = vpop.permute.xlu1 %1135  ;;  %v2755_v31 = vld [vmem:[%s7293_s26 + $0x186] sm:$0xff] }
 0x151   : > { %v1221_v25 = vsel %vm597_vm1, %v1187_v49, %v1136_v0  ;;  %v1134_v23 = vpop.permute.xlu0 %1133  ;;  %v2405_v49 = vld [vmem:[%s7293_s26 + $0x143] sm:$0xff]  ;;  %v2406_v0 = vld [vmem:[%s7293_s26 + $0x14b] sm:$0xff] }
 0x152   : > { %v1219_v36 = vsel %vm597_vm1, %v1184_v50, %v1134_v23  ;;  %1322 = vrot.lane.b32.xlu1 %v1221_v25, %s7242_s14  ;;  %v2438_v23 = vpack.c.bf16 %v2406_v0, %v2405_v49  ;;  %v292_v49 = vld [vmem:[%s7293_s26 + $0x10] sm:$0xff]  ;;  %v2735_v0 = vpack.c.bf16 %v2705_v40, %v2704_v30 }
 0x153   : > { %1320 = vrot.lane.b32.xlu0 %v1219_v36, %s7242_s14  ;;  %v2700_v36 = vld [vmem:[%s7293_s26 + $0x165] sm:$0xff] }
 0x154   : > { %v2465_v30 = vld [vmem:[%s7293_s26 + $0x18c] sm:$0xff] }
 0x156   : > { %1746 = vperm.xlu1 %7173, %v257_v47   ;;  %v2701_v47 = vld [vmem:[%s7293_s26 + $0x16d] sm:$0xff] }
 0x157   : > { %1741 = vperm.xlu0 %7172, %v256_v44   ;;  %v2751_v44 = vld [vmem:[%s7293_s26 + $0x166] sm:$0xff] }
 0x15a   : > { %1751 = vperm.xlu1 %7173, %v258_v26   ;;  %v2733_v26 = vpack.c.bf16 %v2701_v47, %v2700_v36 }
 0x15b   : > { %1756 = vperm.xlu0 %7172, %v259_v43  }
 0x15e   : > { %1761 = vperm.xlu1 %7173, %v260_v6  }
 0x15f   : > { %1766 = vperm.xlu0 %7172, %v261_v53   ;;  %v2407_v53 = vld [vmem:[%s7293_s26 + $0x153] sm:$0xff] }
 0x160   : > { %v8011_v12 = vpop.permute.xlu0 %1239 }
 0x162   : > { %1771 = vperm.xlu1 %7173, %v262_v37   ;;  %v2408_v37 = vld [vmem:[%s7293_s26 + $0x15b] sm:$0xff] }
 0x163   : > { %1776 = vperm.xlu0 %7172, %v263_v62  }
 0x164   : > { %v8021_v16 = vpop.permute.xlu0 %1243 }
 0x165   : > { %v8013_v5 = vpop.permute.xlu1 %1241 }
 0x166   : > { %1781 = vperm.xlu1 %7173, %v264_v54   ;;  %v2458_v54 = vld [vmem:[%s7293_s26 + $0x154] sm:$0xff] }
 0x167   : > { %1786 = vperm.xlu0 %7172, %v265_v32   ;;  %v2459_v32 = vld [vmem:[%s7293_s26 + $0x15c] sm:$0xff] }
 0x168   : > { %v8037_v57 = vpop.permute.xlu0 %1247 }
 0x169   : > { %v8026_v18 = vpop.permute.xlu1 %1245 }
 0x16a   : > { %1791 = vperm.xlu1 %7173, %v266_v33   ;;  %v2439_v33 = vpack.c.bf16 %v2408_v37, %v2407_v53  ;;  %v2463_v53 = vld [vmem:[%s7293_s26 + $0x17c] sm:$0xff] }
 0x16b   : > { %1796 = vperm.xlu0 %7172, %v267_v60   ;;  %v8085_v60 = vpack.c.bf16 %v2459_v32, %v2458_v54 }
 0x16c   : > { %v8049_v55 = vpop.permute.xlu0 %1251 }
 0x16d   : > { %v8039_v28 = vpop.permute.xlu1 %1249 }
 0x16e   : > { %1801 = vperm.xlu1 %7173, %v268_v8   ;;  %v2703_v8 = vld [vmem:[%s7293_s26 + $0x17d] sm:$0xff] }
 0x16f   : > { %1806 = vperm.xlu0 %7172, %v269_v7   ;;  %v2753_v7 = vld [vmem:[%s7293_s26 + $0x176] sm:$0xff] }
 0x170   : > { %v8062_v50 = vpop.permute.xlu0 %1255 }
 0x171   : > { %v8053_v38 = vpop.permute.xlu1 %1253 }
 0x172   : > { %1811 = vperm.xlu1 %7173, %v270_v61   ;;  %v2754_v61 = vld [vmem:[%s7293_s26 + $0x17e] sm:$0xff] }
 0x173   : > { %1816 = vperm.xlu0 %7172, %v271_v52  }
 0x174   : > { %v8073_v43 = vpop.permute.xlu0 %1259 }
 0x175   : > { %v8064_v25 = vpop.permute.xlu1 %1257 }
 0x176   : > { %1821 = vperm.xlu1 %7173, %v272_v48   ;;  %v290_v48 = vld [vmem:[%s7293_s26] sm:$0xff] }
 0x177   : > { %1826 = vperm.xlu0 %7172, %v273_v4  }
 0x178   : > { %v8091_v52 = vpop.permute.xlu0 %1263 }
 0x179   : > { %v8079_v62 = vpop.permute.xlu1 %1261 }
 0x17a   : > { %1831 = vperm.xlu1 %7173, %v274_v35  }
 0x17b   : > { %1836 = vperm.xlu0 %7172, %v275_v13   ;;  %v291_v13 = vld [vmem:[%s7293_s26 + $0x8] sm:$0xff] }
 0x17c   : > { %v324_v24 = vpack.c.bf16 %v291_v13, %v290_v48  ;;  %v2758_v48 = vld [vmem:[%s7293_s26 + $0x19e] sm:$0xff] }
 0x17d   : > { %v8094_v4 = vpop.permute.xlu1 %1265  ;;  %v294_v13 = vld [vmem:[%s7293_s26 + $0x20] sm:$0xff] }
 0x17e   : > { %1841 = vperm.xlu1 %7173, %v276_v17   ;;  %v2785_v17 = vpack.c.bf16 %v2754_v61, %v2753_v7  ;;  %v2757_v61 = vld [vmem:[%s7293_s26 + $0x196] sm:$0xff] }
 0x17f   : > { %1846 = vperm.xlu0 %7172, %v277_v19   ;;  %v2409_v19 = vld [vmem:[%s7293_s26 + $0x163] sm:$0xff] }
 0x181   : > { %v8112_v41 = vpop.permute.xlu1 %1269 }
 0x182   : > { %1851 = vperm.xlu1 %7173, %v278_v45   ;;  %v2410_v45 = vld [vmem:[%s7293_s26 + $0x16b] sm:$0xff] }
 0x183   : > { %1856 = vperm.xlu0 %7172, %v279_v3   ;;  %v2460_v3 = vld [vmem:[%s7293_s26 + $0x164] sm:$0xff]  ;;  %v2440_v29 = vpack.c.bf16 %v2410_v45, %v2409_v19 }
 0x184   : > { %v295_v45 = vld [vmem:[%s7293_s26 + $0x28] sm:$0xff] }
 0x186   : > { %1861 = vperm.xlu1 %7173, %v280_v11   ;;  %v2461_v11 = vld [vmem:[%s7293_s26 + $0x16c] sm:$0xff] }
 0x187   : > { %1866 = vperm.xlu0 %7172, %v281_v58   ;;  %v8105_v58 = vpop.permute.xlu0 %1267 }
 0x18a   : > { %2522 = vrot.lane.b32.xlu1 %v2437_v56, %s7237_s27  ;;  %v8108_v56 = vpack.c.bf16 %v2461_v11, %v2460_v3  ;;  %v2787_v11 = vpack.c.bf16 %v2758_v48, %v2757_v61 }
 0x18b   : > { %2573 = vrot.lane.b32.xlu0 %v7941_v63, %s7238_s28  ;;  %v2752_v63 = vld [vmem:[%s7293_s26 + $0x16e] sm:$0xff]  ;;  %v8131_v37 = vpop.permute.xlu0 %1271 }
 0x18c   : > { %v2784_v6 = vpack.c.bf16 %v2752_v63, %v2751_v44  ;;  %v2411_v44 = vld [vmem:[%s7293_s26 + $0x173] sm:$0xff]  ;;  %v2412_v63 = vld [vmem:[%s7293_s26 + $0x17b] sm:$0xff] }
 0x18d   : > { %v2441_v32 = vpack.c.bf16 %v2412_v63, %v2411_v44  ;;  %v296_v44 = vld [vmem:[%s7293_s26 + $0x30] sm:$0xff] }
 0x18e   : > { %2817 = vrot.lane.b32.xlu1 %v2732_v1, %s7237_s27  ;;  %v2756_v1 = vld [vmem:[%s7293_s26 + $0x18e] sm:$0xff] }
 0x18f   : > { %2868 = vrot.lane.b32.xlu0 %v2783_v2, %s7238_s28  ;;  %v548_v2 = vsel %vm545_vm0, %v324_v24, %v7543_v15  ;;  %v2786_v47 = vpack.c.bf16 %v2756_v1, %v2755_v31  ;;  %v2413_v24 = vld [vmem:[%s7293_s26 + $0x183] sm:$0xff]  ;;  %v326_v31 = vpack.c.bf16 %v295_v45, %v294_v13 }
 0x190   : > { %v599_v36 = vsel %vm597_vm1, %v548_v2, %v7645_v9  ;;  %v2711_v13 = vld [vmem:[%s7293_s26 + $0x1bd] sm:$0xff] }
 0x191   : > { %v1326_v15 = vsel %vm1324_vm4, %v599_v36, %v8011_v12  ;;  %v2760_v36 = vld [vmem:[%s7293_s26 + $0x1ae] sm:$0xff] }
 0x192   : > { %2524 = vrot.lane.b32.xlu1 %v2438_v23, %s7237_s27  ;;  %v293_v23 = vld [vmem:[%s7293_s26 + $0x18] sm:$0xff] }
 0x193   : > { %2575 = vrot.lane.b32.xlu0 %v7936_v34, %s7238_s28  ;;  %v2702_v34 = vld [vmem:[%s7293_s26 + $0x175] sm:$0xff]  ;;  %v325_v54 = vpack.c.bf16 %v293_v23, %v292_v49  ;;  %v2708_v49 = vld [vmem:[%s7293_s26 + $0x1a5] sm:$0xff] }
 0x194   : > { %v2734_v35 = vpack.c.bf16 %v2703_v8, %v2702_v34  ;;  %v2706_v34 = vld [vmem:[%s7293_s26 + $0x195] sm:$0xff]  ;;  %v2707_v8 = vld [vmem:[%s7293_s26 + $0x19d] sm:$0xff]  ;;  %v2759_v23 = vld [vmem:[%s7293_s26 + $0x1a6] sm:$0xff] }
 0x195   : > { %v2736_v19 = vpack.c.bf16 %v2707_v8, %v2706_v34  ;;  %v2466_v34 = vld [vmem:[%s7293_s26 + $0x194] sm:$0xff] }
 0x196   : > { %2819 = vrot.lane.b32.xlu1 %v2733_v26, %s7237_s27 }
 0x197   : > { %2870 = vrot.lane.b32.xlu0 %v2784_v6, %s7238_s28  ;;  %v2462_v6 = vld [vmem:[%s7293_s26 + $0x174] sm:$0xff] }
 0x198   : > { %v8138_v12 = vpack.c.bf16 %v2463_v53, %v2462_v6  ;;  %v2788_v53 = vpack.c.bf16 %v2760_v36, %v2759_v23  ;;  %v2712_v36 = vld [vmem:[%s7293_s26 + $0x1c5] sm:$0xff] }
 0x19a   : > { %2526 = vrot.lane.b32.xlu1 %v2439_v33, %s7237_s27  ;;  %v12023_v33 = vmov 0  }
 0x19b   : > { %2577 = vrot.lane.b32.xlu0 %v8085_v60, %s7238_s28 }
 0x19e   : > { %2821 = vrot.lane.b32.xlu1 %v2734_v35, %s7237_s27 }
 0x19f   : > { %2872 = vrot.lane.b32.xlu0 %v2785_v17, %s7238_s28  ;;  %v551_v17 = vsel %vm545_vm0, %v325_v54, %v7559_v27  ;;  %v2464_v27 = vld [vmem:[%s7293_s26 + $0x184] sm:$0xff]  ;;  %v2416_v54 = vld [vmem:[%s7293_s26 + $0x19b] sm:$0xff] }
 0x1a0   : > { %v601_v3 = vsel %vm597_vm1, %v551_v17, %v7659_v46  ;;  %v2761_v17 = vld [vmem:[%s7293_s26 + $0x1b6] sm:$0xff] }
 0x1a2   : > { %2528 = vrot.lane.b32.xlu1 %v2440_v29, %s7237_s27  ;;  %v1328_v29 = vsel %vm1324_vm4, %v601_v3, %v8013_v5  ;;  %v8169_v5 = vpack.c.bf16 %v2465_v30, %v2464_v27  ;;  %v298_v3 = vld [vmem:[%s7293_s26 + $0x40] sm:$0xff] }
 0x1a3   : > { %2579 = vrot.lane.b32.xlu0 %v8108_v56, %s7238_s28  ;;  %v2417_v30 = vld [vmem:[%s7293_s26 + $0x1a3] sm:$0xff] }
 0x1a4   : > { %v1291_v26 = vpop.permute.xlu1 %1290 }
 0x1a5   : > { %v1361_v9 = vsel %vm1359_vm5, %v1326_v15, %v1291_v26  ;;  %v297_v15 = vld [vmem:[%s7293_s26 + $0x38] sm:$0xff] }
 0x1a6   : > { %7054 = vmatmul.mubr.msk.bf16.vlgmr.msra.gmra.mrb[0].mxu0 %vm1423_vm6, %v1361_v9  ;;  %2823 = vrot.lane.b32.xlu1 %v2735_v0, %s7237_s27  ;;  %v2709_v0 = vld [vmem:[%s7293_s26 + $0x1ad] sm:$0xff]  ;;  %v327_v61 = vpack.c.bf16 %v297_v15, %v296_v44 }
 0x1a7   : > { %1510 = vmatprep.mubr.bf16.mxu0 %v12023_v33  ;;  %2874 = vrot.lane.b32.xlu0 %v2786_v47, %s7238_s28  ;;  %v554_v47 = vsel %vm545_vm0, %v326_v31, %v7539_v10  ;;  %v2737_v63 = vpack.c.bf16 %v2709_v0, %v2708_v49  ;;  %v2415_v9 = vld [vmem:[%s7293_s26 + $0x193] sm:$0xff]  ;;  %v2468_v31 = vld [vmem:[%s7293_s26 + $0x1a4] sm:$0xff] }
 0x1a8   : > { %v1295_v7 = vpop.permute.xlu1 %1294  ;;  %4745 = vmatpush1.bf16.msra.mxu0 %v7854_v14  ;;  %v2414_v14 = vld [vmem:[%s7293_s26 + $0x18b] sm:$0xff]  ;;  %v603_v26 = vsel %vm597_vm1, %v554_v47, %v7655_v42  ;;  %v2467_v42 = vld [vmem:[%s7293_s26 + $0x19c] sm:$0xff]  ;;  %v2443_v48 = vpack.c.bf16 %v2416_v54, %v2415_v9  ;;  %v557_v45 = vsel %vm545_vm0, %v327_v61, %v7555_v22 }
 0x1a9   : > { %v1293_v35 = vpop.permute.xlu0 %1292  ;;  %4746 = vmatprep.subr.bf16.mxu0 %v7864_v21  ;;  %v2442_v2 = vpack.c.bf16 %v2414_v14, %v2413_v24  ;;  %v1330_v10 = vsel %vm1324_vm4, %v603_v26, %v8021_v16  ;;  %v8199_v16 = vpack.c.bf16 %v2467_v42, %v2466_v34  ;;  %v299_v14 = vld [vmem:[%s7293_s26 + $0x48] sm:$0xff]  ;;  %v2108_v44 = vld [vmem:[%s7293_s26 + $0x111] sm:$0xff]  ;;  %v12024_v54 = vld [vmem:[#allocation14_spill] sm:$0xff] }
 0x1aa   : > { %2530 = vrot.lane.b32.xlu1 %v2441_v32, %s7237_s27  ;;  %v1363_v46 = vsel %vm1359_vm5, %v1328_v29, %v1293_v35  ;;  %v1365_v8 = vsel %vm1359_vm5, %v1330_v10, %v1295_v7  ;;  %v2710_v35 = vld [vmem:[%s7293_s26 + $0x1b5] sm:$0xff]  ;;  %v2762_v7 = vld [vmem:[%s7293_s26 + $0x1be] sm:$0xff]  ;;  %v605_v29 = vsel %vm597_vm1, %v557_v45, %v7669_v20  ;;  %v328_v0 = vpack.c.bf16 %v299_v14, %v298_v3  ;;  %v2713_v47 = vld [vmem:[%s7293_s26 + $0x1cd] sm:$0xff] }
 0x1ab   : > { %2581 = vrot.lane.b32.xlu0 %v8138_v12, %s7238_s28  ;;  %v2738_v24 = vpack.c.bf16 %v2711_v13, %v2710_v35  ;;  %v2789_v27 = vpack.c.bf16 %v2762_v7, %v2761_v17  ;;  %v1332_v22 = vsel %vm1324_vm4, %v605_v29, %v8026_v18  ;;  %v300_v15 = vld [vmem:[%s7293_s26 + $0x50] sm:$0xff]  ;;  %v301_v9 = vld [vmem:[%s7293_s26 + $0x58] sm:$0xff]  ;;  %v2763_v42 = vld [vmem:[%s7293_s26 + $0x1c6] sm:$0xff] }
 0x1ac   : > { %4747 = vmatpush1.bf16.msra.mxu0 %v7866_v51  ;;  %v8163_v40 = vpop.permute.xlu1 %1298  ;;  %v560_v26 = vsel %vm545_vm0, %v328_v0, %v7575_v39  ;;  %v329_v35 = vpack.c.bf16 %v301_v9, %v300_v15  ;;  %v12025_v7 = vld [vmem:[#allocation2_spill] sm:$0xff]  ;;  %v303_v45 = vld [vmem:[%s7293_s26 + $0x68] sm:$0xff]  ;;  %v12026_v3 = vld [vmem:[#allocation16_spill] sm:$0xff] }
 0x1ad   : > { %v1297_v1 = vpop.permute.xlu0 %1296  ;;  %v607_v10 = vsel %vm597_vm1, %v560_v26, %v12024_v54  ;;  %v12028_v0 = vld [vmem:[#allocation15_spill] sm:$0xff]  ;;  %v306_v9 = vld [vmem:[%s7293_s26 + $0x80] sm:$0xff] }
 0x1ae   : > { %7055 = vmatmul.mubr.msk.bf16.gmra.mrb[4].mxu0 %vm1423_vm6, %v1363_v46  ;;  %2825 = vrot.lane.b32.xlu1 %v2736_v19, %s7237_s27  ;;  %v2418_v46 = vld [vmem:[%s7293_s26 + $0x1ab] sm:$0xff]  ;;  %v1367_v49 = vsel %vm1359_vm5, %v1332_v22, %v1297_v1  ;;  %v1334_v61 = vsel %vm1324_vm4, %v607_v10, %v8037_v57  ;;  %v563_v57 = vsel %vm545_vm0, %v329_v35, %v12025_v7  ;;  %v12034_v54 = vld [vmem:[#allocation18_spill] sm:$0xff] }
 0x1af   : > { %1520 = vmatprep.mubr.bf16.mxu0 %v12023_v33  ;;  %2876 = vrot.lane.b32.xlu0 %v2787_v11, %s7238_s28  ;;  %v2444_v20 = vpack.c.bf16 %v2418_v46, %v2417_v30  ;;  %v1369_v39 = vsel %vm1359_vm5, %v1334_v61, %v8163_v40  ;;  %v302_v40 = vld [vmem:[%s7293_s26 + $0x60] sm:$0xff]  ;;  %v12032_v26 = vld [vmem:[#allocation3_spill] sm:$0xff] }
 0x1b0   : > { %v8182_v6 = vpop.permute.xlu1 %1302  ;;  %v330_v46 = vpack.c.bf16 %v303_v45, %v302_v40  ;;  %v12040_v40 = vld [vmem:[#allocation17_spill] sm:$0xff] }
 0x1b1   : > { %v8190_v32 = vpop.permute.xlu0 %1300 }
 0x1b2   : > { %2532 = vrot.lane.b32.xlu1 %v2442_v2, %s7237_s27  ;;  %v2469_v2 = vld [vmem:[%s7293_s26 + $0x1ac] sm:$0xff] }
 0x1b3   : > { %2583 = vrot.lane.b32.xlu0 %v8169_v5, %s7238_s28  ;;  %v8231_v18 = vpack.c.bf16 %v2469_v2, %v2468_v31  ;;  %v12027_v31 = vld [vmem:[#allocation4_spill] sm:$0xff] }
 0x1b4   : > { %v8205_v19 = vpop.permute.xlu1 %1306  ;;  %v566_v2 = vsel %vm545_vm0, %v330_v46, %v12027_v31 }
 0x1b5   : > { %v8210_v11 = vpop.permute.xlu0 %1304 }
 0x1b6   : > { %7056 = vmatmul.mubr.msk.bf16.gmra.mrb[8].mxu0 %vm1423_vm6, %v1365_v8  ;;  %2827 = vrot.lane.b32.xlu1 %v2737_v63, %s7237_s27  ;;  %v2109_v63 = vld [vmem:[%s7293_s26 + $0x119] sm:$0xff]  ;;  %v2764_v8 = vld [vmem:[%s7293_s26 + $0x1ce] sm:$0xff] }
 0x1b7   : > { %1530 = vmatprep.mubr.bf16.mxu0 %v12023_v33  ;;  %2878 = vrot.lane.b32.xlu0 %v2788_v53, %s7238_s28  ;;  %v2739_v53 = vpack.c.bf16 %v2713_v47, %v2712_v36  ;;  %v2142_v34 = vpack.c.bf16 %v2109_v63, %v2108_v44  ;;  %v2790_v17 = vpack.c.bf16 %v2764_v8, %v2763_v42 }
 0x1b8   : > { %v8227_v23 = vpop.permute.xlu1 %1310 }
 0x1b9   : > { %v8235_v1 = vpop.permute.xlu0 %1308 }
 0x1ba   : > { %2534 = vrot.lane.b32.xlu1 %v2443_v48, %s7237_s27 }
 0x1bb   : > { %2585 = vrot.lane.b32.xlu0 %v8199_v16, %s7238_s28 }
 0x1bc   : > { %v8254_v48 = vpop.permute.xlu1 %1314 }
 0x1bd   : > { %v8256_v13 = vpop.permute.xlu0 %1312 }
 0x1be   : > { %7057 = vmatmul.mubr.msk.bf16.gmra.mrb[12].mxu0 %vm1423_vm6, %v1367_v49  ;;  %2829 = vrot.lane.b32.xlu1 %v2738_v24, %s7237_s27  ;;  %v609_v24 = vsel %vm597_vm1, %v563_v57, %v12026_v3  ;;  %v305_v49 = vld [vmem:[%s7293_s26 + $0x78] sm:$0xff]  ;;  %v308_v57 = vld [vmem:[%s7293_s26 + $0x90] sm:$0xff] }
 0x1bf   : > { %1540 = vmatprep.mubr.bf16.mxu0 %v12023_v33  ;;  %2880 = vrot.lane.b32.xlu0 %v2789_v27, %s7238_s28  ;;  %v1336_v29 = vsel %vm1324_vm4, %v609_v24, %v8039_v28  ;;  %v304_v28 = vld [vmem:[%s7293_s26 + $0x70] sm:$0xff] }
 0x1c0   : > { %v8269_v14 = vpop.permute.xlu1 %1318  ;;  %v1371_v30 = vsel %vm1359_vm5, %v1336_v29, %v8190_v32  ;;  %v331_v44 = vpack.c.bf16 %v305_v49, %v304_v28  ;;  %v310_v49 = vld [vmem:[%s7293_s26 + $0xa0] sm:$0xff] }
 0x1c1   : > { %v8275_v27 = vpop.permute.xlu0 %1316 }
 0x1c2   : > { %2536 = vrot.lane.b32.xlu1 %v2444_v20, %s7237_s27  ;;  %v611_v20 = vsel %vm597_vm1, %v566_v2, %v12028_v0  ;;  %v12044_v2 = vld [vmem:[#allocation5_spill] sm:$0xff]  ;;  %v12046_v0 = vld [vmem:[#allocation20_spill] sm:$0xff] }
 0x1c3   : > { %2587 = vrot.lane.b32.xlu0 %v8231_v18, %s7238_s28  ;;  %v1338_v32 = vsel %vm1324_vm4, %v611_v20, %v8049_v55 }
 0x1c4   : > { %v8281_v22 = vpop.permute.xlu1 %1322  ;;  %v1373_v36 = vsel %vm1359_vm5, %v1338_v32, %v8182_v6  ;;  %v307_v6 = vld [vmem:[%s7293_s26 + $0x88] sm:$0xff] }
 0x1c5   : > { %v332_v61 = vpack.c.bf16 %v307_v6, %v306_v9  ;;  %v12050_v6 = vld [vmem:[#allocation8_spill] sm:$0xff] }
 0x1c6   : > { %7058 = vmatmul.mubr.msk.bf16.gmra.mrb[16].mxu0 %vm1423_vm6, %v1369_v39  ;;  %2831 = vrot.lane.b32.xlu1 %v2739_v53, %s7237_s27  ;;  %v569_v53 = vsel %vm545_vm0, %v331_v44, %v12032_v26 }
 0x1c7   : > { %1550 = vmatprep.mubr.bf16.mxu0 %v12023_v33  ;;  %2227 = vrot.lane.b32.xlu0 %v2142_v34, %s7237_s27  ;;  %v613_v10 = vsel %vm597_vm1, %v569_v53, %v12034_v54 }
 0x1c8   : > { %v1340_v34 = vsel %vm1324_vm4, %v613_v10, %v8053_v38  ;;  %v312_v10 = vld [vmem:[%s7293_s26 + $0xb0] sm:$0xff] }
 0x1c9   : > { %v1375_v42 = vsel %vm1359_vm5, %v1340_v34, %v8210_v11  ;;  %v309_v11 = vld [vmem:[%s7293_s26 + $0x98] sm:$0xff]  ;;  %v12052_v34 = vld [vmem:[#allocation19_spill] sm:$0xff] }
 0x1ca   : > { %2882 = vrot.lane.b32.xlu1 %v2790_v17, %s7238_s28  ;;  %v12038_v17 = vld [vmem:[#allocation6_spill] sm:$0xff] }
 0x1cb   : > { %2278 = vrot.lane.b32.xlu0 %v7833_v59, %s7238_s28  ;;  %v8285_v59 = vpop.permute.xlu0 %1320  ;;  %v572_v7 = vsel %vm545_vm0, %v332_v61, %v12038_v17 }
 0x1cc   : > { %v615_v45 = vsel %vm597_vm1, %v572_v7, %v12040_v40 }
 0x1cd   : > { %v1342_v3 = vsel %vm1324_vm4, %v615_v45, %v8062_v50  ;;  %v12056_v45 = vld [vmem:[#allocation7_spill] sm:$0xff] }
 0x1ce   : > { %7059 = vmatmul.mubr.msk.bf16.gmra.mrb[20].mxu0 %vm1423_vm6, %v1371_v30  ;;  %v1377_v24 = vsel %vm1359_vm5, %v1342_v3, %v8205_v19  ;;  %v333_v30 = vpack.c.bf16 %v309_v11, %v308_v57  ;;  %v311_v19 = vld [vmem:[%s7293_s26 + $0xa8] sm:$0xff] }
 0x1cf   : > { %1560 = vmatprep.mubr.bf16.mxu0 %v12023_v33  ;;  %v334_v26 = vpack.c.bf16 %v311_v19, %v310_v49 }
 0x1d0   : > { %v575_v28 = vsel %vm545_vm0, %v333_v30, %v12044_v2  ;;  %v12058_v30 = vld [vmem:[#allocation22_spill] sm:$0xff] }
 0x1d1   : > { %v617_v20 = vsel %vm597_vm1, %v575_v28, %v12046_v0  ;;  %v578_v54 = vsel %vm545_vm0, %v334_v26, %v12050_v6  ;;  %v12062_v26 = vld [vmem:[#allocation10_spill] sm:$0xff] }
 0x1d2   : > { %v1344_v32 = vsel %vm1324_vm4, %v617_v20, %v8064_v25 }
 0x1d5   : > { %v8295_v47 = vpop.permute.xlu1 %1746 }
 0x1d6   : > { %12029 = vst [vmem:[#allocation14_spill] sm:$0xff] %v8295_v47  ;;  %v8297_v63 = vpop.permute.xlu0 %1741  ;;  %7060 = vmatmul.mubr.msk.bf16.gmra.mrb[24].mxu0 %vm1423_vm6, %v1373_v36  ;;  %v1379_v36 = vsel %vm1359_vm5, %v1344_v32, %v8235_v1  ;;  %v313_v1 = vld [vmem:[%s7293_s26 + $0xb8] sm:$0xff] }
 0x1d7   : > { %12030 = vst [vmem:[#allocation2_spill] sm:$0xff] %v8297_v63  ;;  %1570 = vmatprep.mubr.bf16.mxu0 %v12023_v33  ;;  %v335_v57 = vpack.c.bf16 %v313_v1, %v312_v10  ;;  %v2163_v1 = vld [vmem:[%s7293_s26 + $0x132] sm:$0xff] }
 0x1d9   : > { %v8301_v15 = vpop.permute.xlu1 %1751  ;;  %v581_v3 = vsel %vm545_vm0, %v335_v57, %v12056_v45 }
 0x1da   : > { %12031 = vst [vmem:[#allocation16_spill] sm:$0xff] %v8301_v15  ;;  %v8305_v55 = vpop.permute.xlu0 %1756  ;;  %v621_v2 = vsel %vm597_vm1, %v581_v3, %v12058_v30  ;;  %v12067_v30 = vld [vmem:[#allocation9_spill] sm:$0xff] }
 0x1db   : > { %12033 = vst [vmem:[#allocation4_spill] sm:$0xff] %v8305_v55  ;;  %v1348_v28 = vsel %vm1324_vm4, %v621_v2, %v8079_v62 }
 0x1dc   : > { %v1383_v49 = vsel %vm1359_vm5, %v1348_v28, %v8256_v13  ;;  %v317_v13 = vld [vmem:[%s7293_s26 + $0xd8] sm:$0xff] }
 0x1dd   : > { %v8315_v8 = vpop.permute.xlu1 %1761 }
 0x1de   : > { %12035 = vst [vmem:[#allocation15_spill] sm:$0xff] %v8315_v8  ;;  %v8317_v39 = vpop.permute.xlu0 %1766  ;;  %7061 = vmatmul.mubr.msk.bf16.gmra.mrb[28].mxu0 %vm1423_vm6, %v1375_v42  ;;  %v619_v42 = vsel %vm597_vm1, %v578_v54, %v12052_v34  ;;  %v12064_v54 = vld [vmem:[#allocation21_spill] sm:$0xff] }
 0x1df   : > { %12036 = vst [vmem:[#allocation3_spill] sm:$0xff] %v8317_v39  ;;  %1580 = vmatprep.mubr.bf16.mxu0 %v12023_v33  ;;  %v1346_v61 = vsel %vm1324_vm4, %v619_v42, %v8073_v43  ;;  %v2164_v34 = vld [vmem:[%s7293_s26 + $0x13a] sm:$0xff] }
 0x1e0   : > { %v1381_v17 = vsel %vm1359_vm5, %v1346_v61, %v8227_v23  ;;  %v315_v23 = vld [vmem:[%s7293_s26 + $0xc8] sm:$0xff]  ;;  %v8422_v3 = vpack.c.bf16 %v2164_v34, %v2163_v1 }
 0x1e1   : > { %v8321_v35 = vpop.permute.xlu1 %1771 }
 0x1e2   : > { %12037 = vst [vmem:[#allocation18_spill] sm:$0xff] %v8321_v35  ;;  %v8325_v38 = vpop.permute.xlu0 %1776 }
 0x1e3   : > { %12039 = vst [vmem:[#allocation6_spill] sm:$0xff] %v8325_v38 }
 0x1e5   : > { %v8335_v29 = vpop.permute.xlu1 %1781 }
 0x1e6   : > { %12041 = vst [vmem:[#allocation17_spill] sm:$0xff] %v8335_v29  ;;  %v8337_v46 = vpop.permute.xlu0 %1786  ;;  %7062 = vmatmul.mubr.msk.bf16.gmra.mrb[32].mxu0 %vm1423_vm6, %v1377_v24  ;;  %v314_v24 = vld [vmem:[%s7293_s26 + $0xc0] sm:$0xff] }
 0x1e7   : > { %12042 = vst [vmem:[#allocation27_spill] sm:$0xff] %v8337_v46  ;;  %1590 = vmatprep.mubr.bf16.mxu0 %v12023_v33  ;;  %v336_v0 = vpack.c.bf16 %v315_v23, %v314_v24  ;;  %v2419_v23 = vld [vmem:[%s7293_s26 + $0x1b3] sm:$0xff] }
 0x1e9   : > { %v8341_v31 = vpop.permute.xlu1 %1791  ;;  %v584_v6 = vsel %vm545_vm0, %v336_v0, %v12062_v26  ;;  %v319_v0 = vld [vmem:[%s7293_s26 + $0xe8] sm:$0xff] }
 0x1ea   : > { %12043 = vst [vmem:[#allocation28_spill] sm:$0xff] %v8341_v31  ;;  %v8345_v50 = vpop.permute.xlu0 %1796  ;;  %v623_v10 = vsel %vm597_vm1, %v584_v6, %v12064_v54 }
 0x1eb   : > { %12045 = vst [vmem:[#allocation5_spill] sm:$0xff] %v8345_v50  ;;  %v1350_v42 = vsel %vm1324_vm4, %v623_v10, %v8091_v52  ;;  %v2420_v52 = vld [vmem:[%s7293_s26 + $0x1bb] sm:$0xff] }
 0x1ec   : > { %v1385_v61 = vsel %vm1359_vm5, %v1350_v42, %v8254_v48  ;;  %v2445_v54 = vpack.c.bf16 %v2420_v52, %v2419_v23  ;;  %v2714_v10 = vld [vmem:[%s7293_s26 + $0x1d5] sm:$0xff]  ;;  %v2715_v42 = vld [vmem:[%s7293_s26 + $0x1dd] sm:$0xff]  ;;  %v2166_v52 = vld [vmem:[%s7293_s26 + $0x14a] sm:$0xff] }
 0x1ed   : > { %v8355_v44 = vpop.permute.xlu1 %1801 }
 0x1ee   : > { %12047 = vst [vmem:[#allocation20_spill] sm:$0xff] %v8355_v44  ;;  %v8357_v53 = vpop.permute.xlu0 %1806  ;;  %7063 = vmatmul.mubr.msk.bf16.gmra.mrb[36].mxu0 %vm1423_vm6, %v1379_v36  ;;  %v316_v36 = vld [vmem:[%s7293_s26 + $0xd0] sm:$0xff] }
 0x1ef   : > { %12048 = vst [vmem:[#allocation29_spill] sm:$0xff] %v8357_v53  ;;  %1600 = vmatprep.mubr.bf16.mxu0 %v12023_v33  ;;  %v337_v57 = vpack.c.bf16 %v317_v13, %v316_v36  ;;  %v12068_v36 = vld [vmem:[#allocation24_spill] sm:$0xff] }
 0x1f1   : > { %v8361_v9 = vpop.permute.xlu1 %1811  ;;  %v587_v48 = vsel %vm545_vm0, %v337_v57, %v12067_v30  ;;  %v2471_v57 = vld [vmem:[%s7293_s26 + $0x1bc] sm:$0xff] }
 0x1f2   : > { %12049 = vst [vmem:[#allocation30_spill] sm:$0xff] %v8361_v9  ;;  %v8365_v25 = vpop.permute.xlu0 %1816  ;;  %v625_v26 = vsel %vm597_vm1, %v587_v48, %v12068_v36  ;;  %v2740_v48 = vpack.c.bf16 %v2715_v42, %v2714_v10 }
 0x1f3   : > { %12051 = vst [vmem:[#allocation8_spill] sm:$0xff] %v8365_v25  ;;  %v1352_v13 = vsel %vm1324_vm4, %v625_v26, %v8094_v4  ;;  %v12069_v26 = vld [vmem:[#allocation12_spill] sm:$0xff] }
 0x1f4   : > { %v1387_v1 = vsel %vm1359_vm5, %v1352_v13, %v8275_v27  ;;  %v2165_v27 = vld [vmem:[%s7293_s26 + $0x142] sm:$0xff] }
 0x1f5   : > { %v8375_v7 = vpop.permute.xlu1 %1821  ;;  %v8462_v13 = vpack.c.bf16 %v2166_v52, %v2165_v27 }
 0x1f6   : > { %12053 = vst [vmem:[#allocation19_spill] sm:$0xff] %v8375_v7  ;;  %v8377_v11 = vpop.permute.xlu0 %1826  ;;  %7064 = vmatmul.mubr.msk.bf16.gmra.mrb[40].mxu0 %vm1423_vm6, %v1381_v17 }
 0x1f7   : > { %12054 = vst [vmem:[#allocation31_spill] sm:$0xff] %v8377_v11  ;;  %1610 = vmatprep.mubr.bf16.mxu0 %v12023_v33 }
 0x1f9   : > { %v8381_v40 = vpop.permute.xlu1 %1831 }
 0x1fa   : > { %12055 = vst [vmem:[#allocation32_spill] sm:$0xff] %v8381_v40  ;;  %v8385_v43 = vpop.permute.xlu0 %1836 }
 0x1fb   : > { %12057 = vst [vmem:[#allocation7_spill] sm:$0xff] %v8385_v43 }
 0x1fd   : > { %v8395_v19 = vpop.permute.xlu1 %1841 }
 0x1fe   : > { %12059 = vst [vmem:[#allocation22_spill] sm:$0xff] %v8395_v19  ;;  %v8397_v20 = vpop.permute.xlu0 %1846  ;;  %7065 = vmatmul.mubr.msk.bf16.gmra.mrb[44].mxu0 %vm1423_vm6, %v1383_v49  ;;  %v318_v49 = vld [vmem:[%s7293_s26 + $0xe0] sm:$0xff] }
 0x1ff   : > { %12060 = vst [vmem:[#allocation33_spill] sm:$0xff] %v8397_v20  ;;  %1620 = vmatprep.mubr.bf16.mxu0 %v12023_v33 }
 0x201   : > { %v8401_v32 = vpop.permute.xlu1 %1851 }
 0x202   : > { %12061 = vst [vmem:[#allocation34_spill] sm:$0xff] %v8401_v32  ;;  %v8406_v62 = vpop.permute.xlu0 %1856 }
 0x203   : > { %12063 = vst [vmem:[#allocation10_spill] sm:$0xff] %v8406_v62 }
 0x205   : > { %v8417_v17 = vpop.permute.xlu1 %1861 }
 0x206   : > { %12065 = vst [vmem:[#allocation21_spill] sm:$0xff] %v8417_v17  ;;  %v8419_v45 = vpop.permute.xlu0 %1866  ;;  %7066 = vmatmul.mubr.msk.bf16.gmra.mrb[48].mxu0 %vm1423_vm6, %v1385_v61  ;;  %v2470_v61 = vld [vmem:[%s7293_s26 + $0x1b4] sm:$0xff] }
 0x207   : > { %12066 = vst [vmem:[#allocation35_spill] sm:$0xff] %v8419_v45  ;;  %1630 = vmatprep.mubr.bf16.mxu0 %v12023_v33 }
 0x209   : > { %v2523_v24 = vpop.permute.xlu1 %2522 }
 0x20a   : > { %v2609_v2 = vsel %vm545_vm0, %v8422_v3, %v2523_v24  ;;  %v2574_v28 = vpop.permute.xlu0 %2573  ;;  %v338_v24 = vpack.c.bf16 %v319_v0, %v318_v49  ;;  %v2110_v49 = vld [vmem:[%s7293_s26 + $0x121] sm:$0xff]  ;;  %v2111_v0 = vld [vmem:[%s7293_s26 + $0x129] sm:$0xff] }
 0x20b   : > { %v2659_v6 = vsel %vm597_vm1, %v2609_v2, %v2574_v28  ;;  %v8454_v2 = vpack.c.bf16 %v2471_v57, %v2470_v61  ;;  %v2765_v28 = vld [vmem:[%s7293_s26 + $0x1d6] sm:$0xff]  ;;  %v2143_v61 = vpack.c.bf16 %v2111_v0, %v2110_v49  ;;  %v12071_v49 = vld [vmem:[#allocation11_spill] sm:$0xff] }
 0x20c   : > { %3004 = vrot.lane.b32.xlu1 %v2659_v6, %s7240_s29  ;;  %v590_v6 = vsel %vm545_vm0, %v338_v24, %v12069_v26 }
 0x20d   : > { %v2818_v34 = vpop.permute.xlu1 %2817 }
 0x20e   : > { %v2904_v4 = vsel %vm545_vm0, %v8085_v60, %v2818_v34  ;;  %v2869_v30 = vpop.permute.xlu0 %2868  ;;  %7067 = vmatmul.mubr.msk.bf16.gmra.mrb[52].mxu0 %vm1423_vm6, %v1387_v1  ;;  %v2766_v60 = vld [vmem:[%s7293_s26 + $0x1de] sm:$0xff]  ;;  %v320_v1 = vld [vmem:[%s7293_s26 + $0xf0] sm:$0xff] }
 0x20f   : > { %v2954_v23 = vsel %vm597_vm1, %v2904_v4, %v2869_v30  ;;  %1640 = vmatprep.mubr.bf16.mxu0 %v12023_v33  ;;  %v321_v34 = vld [vmem:[%s7293_s26 + $0xf8] sm:$0xff]  ;;  %v2791_v42 = vpack.c.bf16 %v2766_v60, %v2765_v28  ;;  %v2161_v30 = vld [vmem:[%s7293_s26 + $0x122] sm:$0xff]  ;;  %v2422_v60 = vld [vmem:[%s7293_s26 + $0x1cb] sm:$0xff] }
 0x210   : > { %2538 = vrot.lane.b32.xlu1 %v2445_v54, %s7237_s27  ;;  %3055 = vrot.lane.b32.xlu0 %v2954_v23, %s7242_s14  ;;  %v12070_v54 = vld [vmem:[#allocation23_spill] sm:$0xff]  ;;  %v339_v27 = vpack.c.bf16 %v321_v34, %v320_v1  ;;  %v12072_v34 = vld [vmem:[#allocation26_spill] sm:$0xff] }
 0x211   : > { %v2525_v36 = vpop.permute.xlu1 %2524  ;;  %v627_v4 = vsel %vm597_vm1, %v590_v6, %v12070_v54  ;;  %v2162_v23 = vld [vmem:[%s7293_s26 + $0x12a] sm:$0xff]  ;;  %v322_v6 = vld [vmem:[%s7293_s26 + $0x100] sm:$0xff] }
 0x212   : > { %v1354_v10 = vsel %vm1324_vm4, %v627_v4, %v8105_v58  ;;  %v2576_v57 = vpop.permute.xlu0 %2575  ;;  %v2612_v58 = vsel %vm545_vm0, %v8462_v13, %v2525_v36  ;;  %v2421_v28 = vld [vmem:[%s7293_s26 + $0x1c3] sm:$0xff]  ;;  %v593_v0 = vsel %vm545_vm0, %v339_v27, %v12071_v49  ;;  %v2168_v27 = vld [vmem:[%s7293_s26 + $0x15a] sm:$0xff] }
 0x213   : > { %v1389_v24 = vsel %vm1359_vm5, %v1354_v10, %v8269_v14  ;;  %v2661_v14 = vsel %vm597_vm1, %v2612_v58, %v2576_v57  ;;  %v323_v1 = vld [vmem:[%s7293_s26 + $0x108] sm:$0xff]  ;;  %v629_v54 = vsel %vm597_vm1, %v593_v0, %v12072_v34  ;;  %v2446_v10 = vpack.c.bf16 %v2422_v60, %v2421_v28  ;;  %v2113_v28 = vld [vmem:[%s7293_s26 + $0x139] sm:$0xff] }
 0x214   : > { %2833 = vrot.lane.b32.xlu1 %v2740_v48, %s7237_s27  ;;  %2589 = vrot.lane.b32.xlu0 %v8454_v2, %s7238_s28  ;;  %v2194_v48 = vpack.c.bf16 %v2162_v23, %v2161_v30  ;;  %v1356_v4 = vsel %vm1324_vm4, %v629_v54, %v8112_v41  ;;  %v2717_v57 = vld [vmem:[%s7293_s26 + $0x1ed] sm:$0xff]  ;;  %v340_v23 = vpack.c.bf16 %v323_v1, %v322_v6  ;;  %v12073_v49 = vld [vmem:[#allocation13_spill] sm:$0xff] }
 0x215   : > { %v2820_v52 = vpop.permute.xlu1 %2819  ;;  %v2473_v30 = vld [vmem:[%s7293_s26 + $0x1cc] sm:$0xff] }
 0x216   : > { %7068 = vmatmul.mubr.msk.bf16.gmra.mrb[56].mxu0 %vm1423_vm6, %v1389_v24  ;;  %v2907_v36 = vsel %vm545_vm0, %v8108_v56, %v2820_v52  ;;  %v2871_v26 = vpop.permute.xlu0 %2870  ;;  %v1391_v56 = vsel %vm1359_vm5, %v1356_v4, %v8285_v59  ;;  %v2472_v24 = vld [vmem:[%s7293_s26 + $0x1c4] sm:$0xff]  ;;  %v2167_v41 = vld [vmem:[%s7293_s26 + $0x152] sm:$0xff]  ;;  %v596_v0 = vsel %vm545_vm0, %v340_v23, %v12073_v49 }
 0x217   : > { %1650 = vmatprep.mubr.bf16.mxu0 %v12023_v33  ;;  %v8511_v59 = vpack.c.bf16 %v2473_v30, %v2472_v24  ;;  %v2767_v52 = vld [vmem:[%s7293_s26 + $0x1e6] sm:$0xff]  ;;  %v2718_v23 = vld [vmem:[%s7293_s26 + $0x1f5] sm:$0xff] }
 0x218   : > { %2884 = vrot.lane.b32.xlu1 %v2791_v42, %s7238_s28  ;;  %2229 = vrot.lane.b32.xlu0 %v2143_v61, %s7237_s27  ;;  %v2716_v42 = vld [vmem:[%s7293_s26 + $0x1e5] sm:$0xff]  ;;  %v2956_v61 = vsel %vm597_vm1, %v2907_v36, %v2871_v26  ;;  %v8519_v36 = vpack.c.bf16 %v2168_v27, %v2167_v41  ;;  %v12074_v26 = vld [vmem:[#allocation25_spill] sm:$0xff] }
 0x219   : > { %v2741_v58 = vpack.c.bf16 %v2717_v57, %v2716_v42  ;;  %v2527_v60 = vpop.permute.xlu1 %2526  ;;  %v631_v6 = vsel %vm597_vm1, %v596_v0, %v12074_v26  ;;  %v2719_v27 = vld [vmem:[%s7293_s26 + $0x1fd] sm:$0xff]  ;;  %v2115_v0 = vld [vmem:[%s7293_s26 + $0x149] sm:$0xff] }
 0x21a   : > { %v1358_v1 = vsel %vm1324_vm4, %v631_v6, %v8131_v37  ;;  %v2578_v4 = vpop.permute.xlu0 %2577  ;;  %v2615_v42 = vsel %vm545_vm0, %v8519_v36, %v2527_v60  ;;  %v2770_v60 = vld [vmem:[%s7293_s26 + $0x1fe] sm:$0xff] }
 0x21b   : > { %v2114_v49 = vld [vmem:[%s7293_s26 + $0x141] sm:$0xff] }
 0x21c   : > { %2280 = vrot.lane.b32.xlu0 %v2194_v48, %s7238_s28  ;;  %3006 = vrot.lane.b32.xlu1 %v2661_v14, %s7240_s29  ;;  %v2768_v48 = vld [vmem:[%s7293_s26 + $0x1ee] sm:$0xff] }
 0x21d   : > { %v2112_v14 = vld [vmem:[%s7293_s26 + $0x131] sm:$0xff]  ;;  %v2792_v34 = vpack.c.bf16 %v2768_v48, %v2767_v52  ;;  %v2822_v37 = vpop.permute.xlu1 %2821  ;;  %v2475_v52 = vld [vmem:[%s7293_s26 + $0x1dc] sm:$0xff] }
 0x21e   : > { %7069 = vmatmul.mubr.msk.bf16.gmra.mrb[60].mxu0 %vm1423_vm6, %v1391_v56  ;;  %v2144_v54 = vpack.c.bf16 %v2113_v28, %v2112_v14  ;;  %v2663_v56 = vsel %vm597_vm1, %v2615_v42, %v2578_v4  ;;  %v2910_v57 = vsel %vm545_vm0, %v8138_v12, %v2822_v37  ;;  %v2873_v24 = vpop.permute.xlu0 %2872  ;;  %v2169_v48 = vld [vmem:[%s7293_s26 + $0x162] sm:$0xff]  ;;  %v2170_v14 = vld [vmem:[%s7293_s26 + $0x16a] sm:$0xff]  ;;  %v2742_v12 = vpack.c.bf16 %v2719_v27, %v2718_v23 }
 0x21f   : > { %1660 = vmatprep.mubr.bf16.mxu0 %v12023_v33  ;;  %v2958_v41 = vsel %vm597_vm1, %v2910_v57, %v2873_v24  ;;  %v8559_v6 = vpack.c.bf16 %v2170_v14, %v2169_v48  ;;  %v2425_v37 = vld [vmem:[%s7293_s26 + $0x1e3] sm:$0xff]  ;;  %v2721_v23 = vld [vmem:[%s7293_s26 + $0x20d] sm:$0xff] }
 0x220   : > { %2540 = vrot.lane.b32.xlu1 %v2446_v10, %s7237_s27  ;;  %3057 = vrot.lane.b32.xlu0 %v2956_v61, %s7242_s14  ;;  %v1393_v10 = vsel %vm1359_vm5, %v1358_v1, %v8281_v22  ;;  %v2423_v22 = vld [vmem:[%s7293_s26 + $0x1d3] sm:$0xff]  ;;  %v2424_v61 = vld [vmem:[%s7293_s26 + $0x1db] sm:$0xff] }
 0x221   : > { %v2447_v30 = vpack.c.bf16 %v2424_v61, %v2423_v22  ;;  %v2529_v26 = vpop.permute.xlu1 %2528  ;;  %v2720_v24 = vld [vmem:[%s7293_s26 + $0x205] sm:$0xff]  ;;  %v2772_v14 = vld [vmem:[%s7293_s26 + $0x20e] sm:$0xff] }
 0x222   : > { %v2618_v4 = vsel %vm545_vm0, %v8559_v6, %v2529_v26  ;;  %v2477_v27 = vld [vmem:[%s7293_s26 + $0x1ec] sm:$0xff] }
 0x224   : > { %2835 = vrot.lane.b32.xlu1 %v2741_v58, %s7237_s27  ;;  %2591 = vrot.lane.b32.xlu0 %v8511_v59, %s7238_s28  ;;  %v2474_v58 = vld [vmem:[%s7293_s26 + $0x1d4] sm:$0xff] }
 0x225   : > { %v8553_v28 = vpack.c.bf16 %v2475_v52, %v2474_v58  ;;  %v2171_v58 = vld [vmem:[%s7293_s26 + $0x172] sm:$0xff]  ;;  %v2172_v52 = vld [vmem:[%s7293_s26 + $0x17a] sm:$0xff] }
 0x226   : > { %7070 = vmatmul.mubr.msk.bf16.gmra.mrb[64].mxu0 %vm1423_vm6, %v1393_v10  ;;  %v2824_v10 = vpop.permute.xlu1 %2823 }
 0x227   : > { %4776 = vmatprep.mubr.bf16.mxu0 %v12023_v33  ;;  %v2913_v22 = vsel %vm545_vm0, %v8169_v5, %v2824_v10  ;;  %v2743_v5 = vpack.c.bf16 %v2721_v23, %v2720_v24  ;;  %v2427_v10 = vld [vmem:[%s7293_s26 + $0x1f3] sm:$0xff]  ;;  %v2723_v24 = vld [vmem:[%s7293_s26 + $0x21d] sm:$0xff] }
 0x228   : > { %2886 = vrot.lane.b32.xlu1 %v2792_v34, %s7238_s28  ;;  %2231 = vrot.lane.b32.xlu0 %v2144_v54, %s7237_s27  ;;  %v2145_v34 = vpack.c.bf16 %v2115_v0, %v2114_v49  ;;  %v2580_v54 = vpop.permute.xlu0 %2579  ;;  %v8591_v49 = vpack.c.bf16 %v2172_v52, %v2171_v58  ;;  %v2479_v23 = vld [vmem:[%s7293_s26 + $0x1fc] sm:$0xff] }
 0x229   : > { %v2665_v42 = vsel %vm597_vm1, %v2618_v4, %v2580_v54  ;;  %v2774_v52 = vld [vmem:[%s7293_s26 + $0x21e] sm:$0xff] }
 0x22c   : > { %2282 = vrot.lane.b32.xlu0 %v8422_v3, %s7238_s28  ;;  %3008 = vrot.lane.b32.xlu1 %v2663_v56, %s7240_s29  ;;  %v2769_v3 = vld [vmem:[%s7293_s26 + $0x1f6] sm:$0xff]  ;;  %v2426_v56 = vld [vmem:[%s7293_s26 + $0x1eb] sm:$0xff]  ;;  %v2875_v61 = vpop.permute.xlu0 %2874 }
 0x22d   : > { %v2793_v1 = vpack.c.bf16 %v2770_v60, %v2769_v3  ;;  %v2448_v57 = vpack.c.bf16 %v2426_v56, %v2425_v37  ;;  %v2117_v3 = vld [vmem:[%s7293_s26 + $0x159] sm:$0xff]  ;;  %v2531_v60 = vpop.permute.xlu1 %2530 }
 0x230   : > { %2542 = vrot.lane.b32.xlu1 %v2447_v30, %s7237_s27  ;;  %3059 = vrot.lane.b32.xlu0 %v2958_v41, %s7242_s14  ;;  %v2960_v30 = vsel %vm597_vm1, %v2913_v22, %v2875_v61  ;;  %v2476_v41 = vld [vmem:[%s7293_s26 + $0x1e4] sm:$0xff]  ;;  %v2722_v61 = vld [vmem:[%s7293_s26 + $0x215] sm:$0xff] }
 0x231   : > { %v8585_v48 = vpack.c.bf16 %v2477_v27, %v2476_v41  ;;  %v2826_v54 = vpop.permute.xlu1 %2825  ;;  %v2173_v41 = vld [vmem:[%s7293_s26 + $0x182] sm:$0xff]  ;;  %v2174_v27 = vld [vmem:[%s7293_s26 + $0x18a] sm:$0xff] }
 0x232   : > { %v2916_v37 = vsel %vm545_vm0, %v8199_v16, %v2826_v54  ;;  %v2744_v16 = vpack.c.bf16 %v2723_v24, %v2722_v61  ;;  %v2429_v54 = vld [vmem:[%s7293_s26 + $0x203] sm:$0xff]  ;;  %v2725_v61 = vld [vmem:[%s7293_s26 + $0x22d] sm:$0xff] }
 0x233   : > { %v2481_v24 = vld [vmem:[%s7293_s26 + $0x20c] sm:$0xff] }
 0x234   : > { %2837 = vrot.lane.b32.xlu1 %v2742_v12, %s7237_s27  ;;  %2593 = vrot.lane.b32.xlu0 %v8553_v28, %s7238_s28  ;;  %v2116_v12 = vld [vmem:[%s7293_s26 + $0x151] sm:$0xff] }
 0x235   : > { %v2146_v26 = vpack.c.bf16 %v2117_v3, %v2116_v12  ;;  %v8623_v12 = vpack.c.bf16 %v2174_v27, %v2173_v41  ;;  %v2775_v41 = vld [vmem:[%s7293_s26 + $0x226] sm:$0xff] }
 0x238   : > { %2888 = vrot.lane.b32.xlu1 %v2793_v1, %s7238_s28  ;;  %2233 = vrot.lane.b32.xlu0 %v2145_v34, %s7237_s27  ;;  %v2582_v1 = vpop.permute.xlu0 %2581  ;;  %v2621_v34 = vsel %vm545_vm0, %v8591_v49, %v2531_v60 }
 0x239   : > { %v2667_v4 = vsel %vm597_vm1, %v2621_v34, %v2582_v1 }
 0x23c   : > { %2284 = vrot.lane.b32.xlu0 %v8462_v13, %s7238_s28  ;;  %3010 = vrot.lane.b32.xlu1 %v2665_v42, %s7240_s29  ;;  %v2771_v13 = vld [vmem:[%s7293_s26 + $0x206] sm:$0xff]  ;;  %v2428_v42 = vld [vmem:[%s7293_s26 + $0x1fb] sm:$0xff]  ;;  %v2877_v56 = vpop.permute.xlu0 %2876 }
 0x23d   : > { %v2794_v0 = vpack.c.bf16 %v2772_v14, %v2771_v13  ;;  %v2449_v22 = vpack.c.bf16 %v2428_v42, %v2427_v10  ;;  %v2119_v13 = vld [vmem:[%s7293_s26 + $0x169] sm:$0xff]  ;;  %v2533_v14 = vpop.permute.xlu1 %2532 }
 0x240   : > { %2544 = vrot.lane.b32.xlu1 %v2448_v57, %s7237_s27  ;;  %3061 = vrot.lane.b32.xlu0 %v2960_v30, %s7242_s14  ;;  %v2962_v57 = vsel %vm597_vm1, %v2916_v37, %v2877_v56  ;;  %v2478_v30 = vld [vmem:[%s7293_s26 + $0x1f4] sm:$0xff]  ;;  %v2724_v56 = vld [vmem:[%s7293_s26 + $0x225] sm:$0xff] }
 0x241   : > { %v8617_v58 = vpack.c.bf16 %v2479_v23, %v2478_v30  ;;  %v2828_v1 = vpop.permute.xlu1 %2827  ;;  %v2175_v30 = vld [vmem:[%s7293_s26 + $0x192] sm:$0xff]  ;;  %v2176_v23 = vld [vmem:[%s7293_s26 + $0x19a] sm:$0xff] }
 0x242   : > { %v2919_v10 = vsel %vm545_vm0, %v8231_v18, %v2828_v1  ;;  %v2745_v18 = vpack.c.bf16 %v2725_v61, %v2724_v56  ;;  %v2431_v1 = vld [vmem:[%s7293_s26 + $0x213] sm:$0xff]  ;;  %v2727_v61 = vld [vmem:[%s7293_s26 + $0x23d] sm:$0xff] }
 0x243   : > { %v2726_v56 = vld [vmem:[%s7293_s26 + $0x235] sm:$0xff] }
 0x244   : > { %2839 = vrot.lane.b32.xlu1 %v2743_v5, %s7237_s27  ;;  %2595 = vrot.lane.b32.xlu0 %v8585_v48, %s7238_s28  ;;  %v2118_v5 = vld [vmem:[%s7293_s26 + $0x161] sm:$0xff] }
 0x245   : > { %v2147_v60 = vpack.c.bf16 %v2119_v13, %v2118_v5  ;;  %v2535_v27 = vpop.permute.xlu1 %2534  ;;  %v8655_v5 = vpack.c.bf16 %v2176_v23, %v2175_v30  ;;  %v2177_v30 = vld [vmem:[%s7293_s26 + $0x1a2] sm:$0xff]  ;;  %v2746_v23 = vpack.c.bf16 %v2727_v61, %v2726_v56 }
 0x248   : > { %2890 = vrot.lane.b32.xlu1 %v2794_v0, %s7238_s28  ;;  %2235 = vrot.lane.b32.xlu0 %v2146_v26, %s7237_s27  ;;  %v2584_v0 = vpop.permute.xlu0 %2583  ;;  %v2624_v26 = vsel %vm545_vm0, %v8623_v12, %v2533_v14 }
 0x249   : > { %v2669_v34 = vsel %vm597_vm1, %v2624_v26, %v2584_v0  ;;  %v2830_v0 = vpop.permute.xlu1 %2829 }
 0x24c   : > { %2286 = vrot.lane.b32.xlu0 %v8519_v36, %s7238_s28  ;;  %3012 = vrot.lane.b32.xlu1 %v2667_v4, %s7240_s29  ;;  %v2773_v36 = vld [vmem:[%s7293_s26 + $0x216] sm:$0xff]  ;;  %v2430_v4 = vld [vmem:[%s7293_s26 + $0x20b] sm:$0xff]  ;;  %v2879_v42 = vpop.permute.xlu0 %2878 }
 0x24d   : > { %v2795_v3 = vpack.c.bf16 %v2774_v52, %v2773_v36  ;;  %v2450_v37 = vpack.c.bf16 %v2430_v4, %v2429_v54  ;;  %v2120_v36 = vld [vmem:[%s7293_s26 + $0x171] sm:$0xff]  ;;  %v2121_v52 = vld [vmem:[%s7293_s26 + $0x179] sm:$0xff]  ;;  %v2922_v54 = vsel %vm545_vm0, %v8454_v2, %v2830_v0 }
 0x24e   : > { %v2148_v14 = vpack.c.bf16 %v2121_v52, %v2120_v36  ;;  %v2483_v2 = vld [vmem:[%s7293_s26 + $0x21c] sm:$0xff]  ;;  %v2123_v36 = vld [vmem:[%s7293_s26 + $0x189] sm:$0xff] }
 0x250   : > { %2546 = vrot.lane.b32.xlu1 %v2449_v22, %s7237_s27  ;;  %3063 = vrot.lane.b32.xlu0 %v2962_v57, %s7242_s14  ;;  %v2964_v22 = vsel %vm597_vm1, %v2919_v10, %v2879_v42  ;;  %v2480_v57 = vld [vmem:[%s7293_s26 + $0x204] sm:$0xff]  ;;  %v11901_v10 = vlaneseq }
 0x254   : > { %2841 = vrot.lane.b32.xlu1 %v2744_v16, %s7237_s27  ;;  %2597 = vrot.lane.b32.xlu0 %v8617_v58, %s7238_s28  ;;  %v2776_v16 = vld [vmem:[%s7293_s26 + $0x22e] sm:$0xff] }
 0x255   : > { %v2796_v13 = vpack.c.bf16 %v2776_v16, %v2775_v41  ;;  %v2777_v41 = vld [vmem:[%s7293_s26 + $0x236] sm:$0xff]  ;;  %v2122_v16 = vld [vmem:[%s7293_s26 + $0x181] sm:$0xff] }
 0x258   : > { %2892 = vrot.lane.b32.xlu1 %v2795_v3, %s7238_s28  ;;  %2237 = vrot.lane.b32.xlu0 %v2147_v60, %s7237_s27  ;;  %v2586_v3 = vpop.permute.xlu0 %2585  ;;  %v2627_v60 = vsel %vm545_vm0, %v8655_v5, %v2535_v27  ;;  %v2778_v27 = vld [vmem:[%s7293_s26 + $0x23e] sm:$0xff] }
 0x259   : > { %v2671_v26 = vsel %vm597_vm1, %v2627_v60, %v2586_v3  ;;  %v255_v3 = vld [vmem:[%s11895_s3] sm:$0x3] }
 0x25c   : > { %2288 = vrot.lane.b32.xlu0 %v8559_v6, %s7238_s28  ;;  %3014 = vrot.lane.b32.xlu1 %v2669_v34, %s7240_s29  ;;  %v8649_v6 = vpack.c.bf16 %v2481_v24, %v2480_v57  ;;  %v2432_v34 = vld [vmem:[%s7293_s26 + $0x21b] sm:$0xff]  ;;  %v2881_v4 = vpop.permute.xlu0 %2880  ;;  %v8678_v24 = vshrl.u32 %v11901_v10, 7 }
 0x25d   : > { %v2451_v42 = vpack.c.bf16 %v2432_v34, %v2431_v1  ;;  %v2482_v57 = vld [vmem:[%s7293_s26 + $0x214] sm:$0xff]  ;;  %v2149_v1 = vpack.c.bf16 %v2123_v36, %v2122_v16 }
 0x25e   : > { %12075 = vst [vmem:[#allocation9_spill] sm:$0xff] %v8678_v24  ;;  %v11902_v60 = vsub.s32 1, %v8678_v24 }
 0x260   : > { %2548 = vrot.lane.b32.xlu1 %v2450_v37, %s7237_s27  ;;  %3065 = vrot.lane.b32.xlu0 %v2964_v22, %s7242_s14  ;;  %v2537_v37 = vpop.permute.xlu1 %2536  ;;  %v2966_v22 = vsel %vm597_vm1, %v2922_v54, %v2881_v4  ;;  %v2588_v52 = vpop.permute.xlu0 %2587  ;;  %v2057_v54 = vld [vmem:[%s7293_s26 + $0x110] sm:$0xff]  ;;  %v2058_v4 = vld [vmem:[%s7293_s26 + $0x118] sm:$0xff] }
 0x264   : > { %2843 = vrot.lane.b32.xlu1 %v2745_v18, %s7237_s27  ;;  %2599 = vrot.lane.b32.xlu0 %v8649_v6, %s7238_s28  ;;  %v8684_v18 = vpack.c.bf16 %v2483_v2, %v2482_v57  ;;  %v2433_v2 = vld [vmem:[%s7293_s26 + $0x223] sm:$0xff] }
 0x266   : > { %12076 = vst [vmem:[#allocation24_spill] sm:$0xff] %v8684_v18 }
 0x268   : > { %2894 = vrot.lane.b32.xlu1 %v2796_v13, %s7238_s28  ;;  %2239 = vrot.lane.b32.xlu0 %v2148_v14, %s7237_s27  ;;  %v2832_v13 = vpop.permute.xlu1 %2831  ;;  %v11903_v14 = vsub.s32 0, %v8678_v24 }
 0x269   : > { %v2925_v36 = vsel %vm545_vm0, %v8511_v59, %v2832_v13  ;;  %v2729_v59 = vld [vmem:[%s7293_s26 + $0x24d] sm:$0xff] }
 0x26a   : > { %v8702_v34 = vrot.slane %v255_v3, %v11903_v14  ;;  %v2780_v14 = vld [vmem:[%s7293_s26 + $0x24e] sm:$0xff] }
 0x26c   : > { %2290 = vrot.lane.b32.xlu0 %v8591_v49, %s7238_s28  ;;  %3016 = vrot.lane.b32.xlu1 %v2671_v26, %s7240_s29  ;;  %v2178_v49 = vld [vmem:[%s7293_s26 + $0x1aa] sm:$0xff]  ;;  %v2797_v26 = vpack.c.bf16 %v2778_v27, %v2777_v41  ;;  %v2883_v61 = vpop.permute.xlu1 %2882 }
 0x26d   : > { %v8695_v0 = vpack.c.bf16 %v2178_v49, %v2177_v30  ;;  %v2434_v30 = vld [vmem:[%s7293_s26 + $0x22b] sm:$0xff]  ;;  %v2091_v49 = vpack.c.bf16 %v2058_v4, %v2057_v54 }
 0x26e   : > { %v2452_v54 = vpack.c.bf16 %v2434_v30, %v2433_v2  ;;  %v2484_v4 = vld [vmem:[%s7293_s26 + $0x224] sm:$0xff]  ;;  %v2179_v2 = vld [vmem:[%s7293_s26 + $0x1b2] sm:$0xff] }
 0x26f   : > { %v2630_v56 = vsel %vm545_vm0, %v8695_v0, %v2537_v37 }
 0x270   : > { %2550 = vrot.lane.b32.xlu1 %v2451_v42, %s7237_s27  ;;  %3067 = vrot.lane.b32.xlu0 %v2966_v22, %s7242_s14  ;;  %v8708_v42 = vrot.slane %v255_v3, %v11902_v60  ;;  %v2228_v22 = vpop.permute.xlu0 %2227  ;;  %v2673_v27 = vsel %vm597_vm1, %v2630_v56, %v2588_v52 }
 0x271   : > { %v2314_v13 = vsel %vm545_vm0, %v2091_v49, %v2228_v22  ;;  %v2180_v22 = vld [vmem:[%s7293_s26 + $0x1ba] sm:$0xff] }
 0x274   : > { %2845 = vrot.lane.b32.xlu1 %v2746_v23, %s7237_s27  ;;  %2601 = vrot.lane.b32.xlu0 %v8684_v18, %s7238_s28 }
 0x278   : > { %2896 = vrot.lane.b32.xlu1 %v2797_v26, %s7238_s28  ;;  %2241 = vrot.lane.b32.xlu0 %v2149_v1, %s7237_s27 }
 0x279   : > { %v1502_v57 = vpop.f32.mrb[0].mxu0 }
 0x27a   : > { %v1503_v23 = vadd.f32 %v1502_v57, %v8702_v34  ;;  %v1504_v41 = vpop.f32.mrb[1].mxu0  ;;  %v2485_v57 = vld [vmem:[%s7293_s26 + $0x22c] sm:$0xff] }
 0x27b   : > { %v1505_v37 = vadd.f32 %v1504_v41, %v8708_v42  ;;  %v1506_v16 = vpop.f32.mrb[2].mxu0  ;;  %v2728_v41 = vld [vmem:[%s7293_s26 + $0x245] sm:$0xff]  ;;  %v8733_v30 = vpack.c.bf16 %v2485_v57, %v2484_v4  ;;  %v2125_v4 = vld [vmem:[%s7293_s26 + $0x199] sm:$0xff] }
 0x27c   : > { %v1671_v3 = vmax.f32 %v1503_v23, 0.0  ;;  %v1507_v26 = vadd.f32 %v1506_v16, %v8702_v34  ;;  %2292 = vrot.lane.b32.xlu0 %v8623_v12, %s7238_s28  ;;  %3018 = vrot.lane.b32.xlu1 %v2673_v27, %s7240_s29  ;;  %v1508_v1 = vpop.f32.mrb[3].mxu0  ;;  %v2279_v23 = vpop.permute.xlu0 %2278  ;;  %v2968_v12 = vsel %vm597_vm1, %v2925_v36, %v2883_v61  ;;  %v2747_v49 = vpack.c.bf16 %v2729_v59, %v2728_v41  ;;  %v2779_v57 = vld [vmem:[%s7293_s26 + $0x246] sm:$0xff] }
 0x27d   : > { %v1672_v52 = vmax.f32 %v1505_v37, 0.0  ;;  %v1509_v56 = vadd.f32 %v1508_v1, %v8708_v42  ;;  %v2364_v61 = vsel %vm597_vm1, %v2314_v13, %v2279_v23  ;;  %v8749_v41 = vpack.c.bf16 %v2180_v22, %v2179_v2 }
 0x27e   : > { %v1673_v16 = vmax.f32 %v1507_v26, 0.0  ;;  %v3005_v10 = vpop.permute.xlu1 %3004  ;;  %v1909_v37 = vmul.f32 %v8297_v63, %v1671_v3  ;;  %v2124_v26 = vld [vmem:[%s7293_s26 + $0x191] sm:$0xff] }
 0x27f   : > { %v1674_v27 = vmax.f32 %v1509_v56, 0.0  ;;  %v1910_v60 = vmul.f32 %v8297_v63, %v1672_v52 }
 0x280   : > { %v1911_v1 = vmul.f32 %v8295_v47, %v1673_v16  ;;  %3069 = vrot.lane.b32.xlu0 %v2968_v12, %s7242_s14  ;;  %2552 = vrot.lane.b32.xlu1 %v2452_v54, %s7237_s27  ;;  %v3090_v16 = vsel %vm1324_vm4, %v2364_v61, %v3005_v10  ;;  %v2150_v10 = vpack.c.bf16 %v2125_v4, %v2124_v26  ;;  %v2059_v26 = vld [vmem:[%s7293_s26 + $0x120] sm:$0xff]  ;;  %v2060_v4 = vld [vmem:[%s7293_s26 + $0x128] sm:$0xff] }
 0x281   : > { %v1912_v36 = vmul.f32 %v8295_v47, %v1674_v27  ;;  %v1512_v56 = vpop.f32.mrb[4].mxu0 }
 0x282   : > { %v1977_v3 = vadd.f32 %v1911_v1, %v1909_v37  ;;  %v1513_v12 = vadd.f32 %v1512_v56, %v8702_v34  ;;  %v2539_v24 = vpop.permute.xlu1 %2538  ;;  %v3056_v54 = vpop.permute.xlu0 %3055  ;;  %v2798_v37 = vpack.c.bf16 %v2780_v14, %v2779_v57  ;;  %v7228_v14 = vld [vmem:[%s11894_s2] ss:$8 sps:$4 sm:$0xff]  }
 0x283   : > { %v2016_v18 = vadd.f32 %v1912_v36, %v1910_v60  ;;  %v3124_v52 = vsel %vm1359_vm5, %v3090_v16, %v3056_v54  ;;  %v1514_v59 = vpop.f32.mrb[5].mxu0  ;;  %v2633_v16 = vsel %vm545_vm0, %v8749_v41, %v2539_v24  ;;  %v2092_v24 = vpack.c.bf16 %v2060_v4, %v2059_v26  ;;  %v2487_v26 = vld [vmem:[%s7293_s26 + $0x23c] sm:$0xff] }
 0x284   : > { %v1675_v13 = vmax.f32 %v1513_v12, 0.0  ;;  %v1515_v23 = vadd.f32 %v1514_v59, %v8708_v42  ;;  %v1516_v27 = vpop.f32.mrb[6].mxu0  ;;  %2603 = vrot.lane.b32.xlu0 %v8733_v30, %s7238_s28  ;;  %2847 = vrot.lane.b32.xlu1 %v2747_v49, %s7237_s27  ;;  %v2436_v59 = vld [vmem:[%s7293_s26 + $0x23b] sm:$0xff] }
 0x285   : > { %v1517_v60 = vadd.f32 %v1516_v27, %v8702_v34  ;;  %v1518_v2 = vpop.f32.mrb[7].mxu0  ;;  %7071 = vmatmul.mubr.msk.bf16.vlgmr.msra.gmra.mrb[0].mxu1 %vm1423_vm6, %v3124_v52  ;;  %v2435_v52 = vld [vmem:[%s7293_s26 + $0x233] sm:$0xff] }
 0x286   : > { %v1913_v1 = vmul.f32 %v8301_v15, %v1675_v13  ;;  %v1676_v22 = vmax.f32 %v1515_v23, 0.0  ;;  %v1519_v61 = vadd.f32 %v1518_v2, %v8708_v42  ;;  %v2834_v36 = vpop.permute.xlu1 %2833  ;;  %v2590_v56 = vpop.permute.xlu0 %2589  ;;  %3233 = vmatprep.mubr.bf16.mxu1 %v12023_v33  ;;  %6298 = vmatpush1.bf16.msra.mxu1 %v7228_v14 }
 0x287   : > { %v1677_v49 = vmax.f32 %v1517_v60, 0.0  ;;  %6299 = vmatprep.subr.bf16.mxu1 %v7864_v21 }
 0x288   : > { %v1978_v57 = vadd.f32 %v1977_v3, %v1913_v1  ;;  %v1914_v12 = vmul.f32 %v8301_v15, %v1676_v22  ;;  %v1678_v54 = vmax.f32 %v1519_v61, 0.0  ;;  %2243 = vrot.lane.b32.xlu0 %v2150_v10, %s7237_s27  ;;  %2898 = vrot.lane.b32.xlu1 %v2798_v37, %s7238_s28  ;;  %v2675_v37 = vsel %vm597_vm1, %v2633_v16, %v2590_v56  ;;  %v2731_v16 = vld [vmem:[%s7293_s26 + $0x25d] sm:$0xff] }
 0x289   : > { %v1915_v13 = vmul.f32 %v8305_v55, %v1677_v49  ;;  %v1522_v23 = vpop.f32.mrb[8].mxu0  ;;  %v2453_v22 = vpack.c.bf16 %v2436_v59, %v2435_v52 }
 0x28a   : > { %v2017_v27 = vadd.f32 %v2016_v18, %v1914_v12  ;;  %v1916_v60 = vmul.f32 %v8305_v55, %v1678_v54  ;;  %v1523_v21 = vadd.f32 %v1522_v23, %v8702_v34  ;;  %v2885_v3 = vpop.permute.xlu1 %2884  ;;  %v2230_v2 = vpop.permute.xlu0 %2229  ;;  %6300 = vmatpush1.bf16.msra.mxu1 %v7866_v51  ;;  %v2928_v18 = vsel %vm545_vm0, %v8553_v28, %v2834_v36  ;;  %v2486_v51 = vld [vmem:[%s7293_s26 + $0x234] sm:$0xff] }
 0x28b   : > { %v1979_v10 = vadd.f32 %v1978_v57, %v1915_v13  ;;  %v1524_v1 = vpop.f32.mrb[9].mxu0  ;;  %v2730_v57 = vld [vmem:[%s7293_s26 + $0x255] sm:$0xff]  ;;  %v2317_v36 = vsel %vm545_vm0, %v2092_v24, %v2230_v2  ;;  %v2970_v13 = vsel %vm597_vm1, %v2928_v18, %v2885_v3  ;;  %v2127_v3 = vld [vmem:[%s7293_s26 + $0x1a9] sm:$0xff] }
 0x28c   : > { %v2018_v61 = vadd.f32 %v2017_v27, %v1916_v60  ;;  %v1679_v14 = vmax.f32 %v1523_v21, 0.0  ;;  %v1525_v49 = vadd.f32 %v1524_v1, %v8708_v42  ;;  %v1526_v12 = vpop.f32.mrb[10].mxu0  ;;  %2294 = vrot.lane.b32.xlu0 %v8655_v5, %s7238_s28  ;;  %3020 = vrot.lane.b32.xlu1 %v2675_v37, %s7240_s29  ;;  %v2181_v60 = vld [vmem:[%s7293_s26 + $0x1c2] sm:$0xff]  ;;  %v2182_v21 = vld [vmem:[%s7293_s26 + $0x1ca] sm:$0xff]  ;;  %v8797_v37 = vpack.c.bf16 %v2487_v26, %v2486_v51 }
 0x28d   : > { %v1527_v56 = vadd.f32 %v1526_v12, %v8702_v34  ;;  %v1528_v4 = vpop.f32.mrb[11].mxu0 }
 0x28e   : > { %v1917_v28 = vmul.f32 %v8315_v8, %v1679_v14  ;;  %v1680_v54 = vmax.f32 %v1525_v49, 0.0  ;;  %v1529_v52 = vadd.f32 %v1528_v4, %v8708_v42  ;;  %v3007_v5 = vpop.permute.xlu1 %3006  ;;  %v2281_v59 = vpop.permute.xlu0 %2280  ;;  %v2748_v14 = vpack.c.bf16 %v2731_v16, %v2730_v57  ;;  %v2126_v49 = vld [vmem:[%s7293_s26 + $0x1a1] sm:$0xff] }
 0x28f   : > { %v1681_v23 = vmax.f32 %v1527_v56, 0.0  ;;  %v2366_v27 = vsel %vm597_vm1, %v2317_v36, %v2281_v59  ;;  %v2781_v56 = vld [vmem:[%s7293_s26 + $0x256] sm:$0xff]  ;;  %v2782_v4 = vld [vmem:[%s7293_s26 + $0x25e] sm:$0xff]  ;;  %v8810_v59 = vpack.c.bf16 %v2182_v21, %v2181_v60  ;;  %v2151_v16 = vpack.c.bf16 %v2127_v3, %v2126_v49 }
 0x290   : > { %v1980_v1 = vadd.f32 %v1979_v10, %v1917_v28  ;;  %v1918_v24 = vmul.f32 %v8315_v8, %v1680_v54  ;;  %v1682_v2 = vmax.f32 %v1529_v52, 0.0  ;;  %3071 = vrot.lane.b32.xlu0 %v2970_v13, %s7242_s14  ;;  %2554 = vrot.lane.b32.xlu1 %v2453_v22, %s7237_s27  ;;  %v3092_v28 = vsel %vm1324_vm4, %v2366_v27, %v3007_v5 }
 0x291   : > { %v1919_v18 = vmul.f32 %v8317_v39, %v1681_v23  ;;  %v1532_v12 = vpop.f32.mrb[12].mxu0  ;;  %v2799_v5 = vpack.c.bf16 %v2782_v4, %v2781_v56 }
 0x292   : > { %v2019_v36 = vadd.f32 %v2018_v61, %v1918_v24  ;;  %v1920_v51 = vmul.f32 %v8317_v39, %v1682_v2  ;;  %v1533_v10 = vadd.f32 %v1532_v12, %v8702_v34  ;;  %v2541_v26 = vpop.permute.xlu1 %2540  ;;  %v3058_v54 = vpop.permute.xlu0 %3057  ;;  %v2061_v12 = vld [vmem:[%s7293_s26 + $0x130] sm:$0xff] }
 0x293   : > { %v1981_v52 = vadd.f32 %v1980_v1, %v1919_v18  ;;  %v3126_v22 = vsel %vm1359_vm5, %v3092_v28, %v3058_v54  ;;  %v1534_v57 = vpop.f32.mrb[13].mxu0  ;;  %v2636_v4 = vsel %vm545_vm0, %v8810_v59, %v2541_v26  ;;  %v3957_v28 = vld [vmem:[%s7293_s26 + $0x24b] sm:$0xff] }
 0x294   : > { %v2020_v13 = vadd.f32 %v2019_v36, %v1920_v51  ;;  %v1683_v23 = vmax.f32 %v1533_v10, 0.0  ;;  %v1535_v61 = vadd.f32 %v1534_v57, %v8708_v42  ;;  %v1536_v24 = vpop.f32.mrb[14].mxu0  ;;  %2605 = vrot.lane.b32.xlu0 %v8797_v37, %s7238_s28  ;;  %2849 = vrot.lane.b32.xlu1 %v2748_v14, %s7237_s27  ;;  %v2062_v14 = vld [vmem:[%s7293_s26 + $0x138] sm:$0xff]  ;;  %v3956_v10 = vld [vmem:[%s7293_s26 + $0x243] sm:$0xff] }
 0x295   : > { %v1537_v27 = vadd.f32 %v1536_v24, %v8702_v34  ;;  %v1538_v60 = vpop.f32.mrb[15].mxu0  ;;  %7072 = vmatmul.mubr.msk.bf16.gmra.mrb[4].mxu1 %vm1423_vm6, %v3126_v22 }
 0x296   : > { %v1921_v21 = vmul.f32 %v8321_v35, %v1683_v23  ;;  %v1684_v1 = vmax.f32 %v1535_v61, 0.0  ;;  %v1539_v2 = vadd.f32 %v1538_v60, %v8708_v42  ;;  %v2836_v49 = vpop.permute.xlu1 %2835  ;;  %v2592_v3 = vpop.permute.xlu0 %2591  ;;  %3243 = vmatprep.mubr.bf16.mxu1 %v12023_v33  ;;  %v2093_v61 = vpack.c.bf16 %v2062_v14, %v2061_v12  ;;  %v4007_v12 = vld [vmem:[%s7293_s26 + $0x244] sm:$0xff]  ;;  %v4008_v14 = vld [vmem:[%s7293_s26 + $0x24c] sm:$0xff] }
 0x297   : > { %v1685_v18 = vmax.f32 %v1537_v27, 0.0  ;;  %v3990_v60 = vpack.c.bf16 %v3957_v28, %v3956_v10 }
 0x298   : > { %v1982_v56 = vadd.f32 %v1981_v52, %v1921_v21  ;;  %v1922_v36 = vmul.f32 %v8321_v35, %v1684_v1  ;;  %v1686_v51 = vmax.f32 %v1539_v2, 0.0  ;;  %2245 = vrot.lane.b32.xlu0 %v2151_v16, %s7237_s27  ;;  %2900 = vrot.lane.b32.xlu1 %v2799_v5, %s7238_s28  ;;  %v2677_v16 = vsel %vm597_vm1, %v2636_v4, %v2592_v3  ;;  %v4251_v4 = vld [vmem:[%s7293_s26 + $0x265] sm:$0xff] }
 0x299   : > { %v1923_v54 = vmul.f32 %v8325_v38, %v1685_v18  ;;  %v1542_v22 = vpop.f32.mrb[16].mxu0 }
 0x29a   : > { %v2021_v57 = vadd.f32 %v2020_v13, %v1922_v36  ;;  %v1924_v23 = vmul.f32 %v8325_v38, %v1686_v51  ;;  %v1543_v52 = vadd.f32 %v1542_v22, %v8702_v34  ;;  %v2887_v26 = vpop.permute.xlu1 %2886  ;;  %v2232_v24 = vpop.permute.xlu0 %2231  ;;  %v2931_v13 = vsel %vm545_vm0, %v8585_v48, %v2836_v49  ;;  %v4252_v36 = vld [vmem:[%s7293_s26 + $0x26d] sm:$0xff]  ;;  %v5856_v38 = vld [vmem:[%s7293_s26 + $0x37e] sm:$0xff] }
 0x29b   : > { %v1983_v27 = vadd.f32 %v1982_v56, %v1923_v54  ;;  %v1544_v5 = vpop.f32.mrb[17].mxu0  ;;  %v2320_v48 = vsel %vm545_vm0, %v2093_v61, %v2232_v24  ;;  %v2972_v54 = vsel %vm597_vm1, %v2931_v13, %v2887_v26  ;;  %v4285_v61 = vpack.c.bf16 %v4252_v36, %v4251_v4  ;;  %v4302_v24 = vld [vmem:[%s7293_s26 + $0x266] sm:$0xff]  ;;  %v5509_v26 = vld [vmem:[%s7293_s26 + $0x353] sm:$0xff]  ;;  %v5510_v13 = vld [vmem:[%s7293_s26 + $0x35b] sm:$0xff] }
 0x29c   : > { %v2022_v21 = vadd.f32 %v2021_v57, %v1924_v23  ;;  %v1687_v1 = vmax.f32 %v1543_v52, 0.0  ;;  %v1545_v2 = vadd.f32 %v1544_v5, %v8708_v42  ;;  %v1546_v18 = vpop.f32.mrb[18].mxu0  ;;  %2296 = vrot.lane.b32.xlu0 %v8695_v0, %s7238_s28  ;;  %3022 = vrot.lane.b32.xlu1 %v2677_v16, %s7240_s29  ;;  %v8851_v23 = vpack.c.bf16 %v4008_v14, %v4007_v12 }
 0x29d   : > { %v1547_v56 = vadd.f32 %v1546_v18, %v8702_v34  ;;  %v1548_v3 = vpop.f32.mrb[19].mxu0 }
 0x29e   : > { %v1925_v51 = vmul.f32 %v8335_v29, %v1687_v1  ;;  %v1688_v49 = vmax.f32 %v1545_v2, 0.0  ;;  %v1549_v10 = vadd.f32 %v1548_v3, %v8708_v42  ;;  %v3009_v28 = vpop.permute.xlu1 %3008  ;;  %v2283_v0 = vpop.permute.xlu0 %2282  ;;  %v4303_v1 = vld [vmem:[%s7293_s26 + $0x26e] sm:$0xff] }
 0x29f   : > { %v1689_v22 = vmax.f32 %v1547_v56, 0.0  ;;  %v2368_v57 = vsel %vm597_vm1, %v2320_v48, %v2283_v0  ;;  %v4336_v48 = vpack.c.bf16 %v4303_v1, %v4302_v24  ;;  %v2183_v1 = vld [vmem:[%s7293_s26 + $0x1d2] sm:$0xff] }
 0x2a0   : > { %v1984_v52 = vadd.f32 %v1983_v27, %v1925_v51  ;;  %v1926_v16 = vmul.f32 %v8335_v29, %v1688_v49  ;;  %v1690_v5 = vmax.f32 %v1549_v10, 0.0  ;;  %3073 = vrot.lane.b32.xlu0 %v2972_v54, %s7242_s14  ;;  %4075 = vrot.lane.b32.xlu1 %v3990_v60, %s7237_s27  ;;  %v3094_v3 = vsel %vm1324_vm4, %v2368_v57, %v3009_v28  ;;  %v5560_v54 = vld [vmem:[%s7293_s26 + $0x354] sm:$0xff] }
 0x2a1   : > { %v1927_v2 = vmul.f32 %v8337_v46, %v1689_v22  ;;  %v1552_v18 = vpop.f32.mrb[20].mxu0  ;;  %v5543_v28 = vpack.c.bf16 %v5510_v13, %v5509_v26  ;;  %v5561_v22 = vld [vmem:[%s7293_s26 + $0x35c] sm:$0xff] }
 0x2a2   : > { %v2023_v56 = vadd.f32 %v2022_v21, %v1926_v16  ;;  %v1928_v12 = vmul.f32 %v8337_v46, %v1690_v5  ;;  %v1553_v27 = vadd.f32 %v1552_v18, %v8702_v34  ;;  %v8863_v14 = vpop.permute.xlu1 %2542  ;;  %v3060_v60 = vpop.permute.xlu0 %3059  ;;  %v5804_v16 = vld [vmem:[%s7293_s26 + $0x375] sm:$0xff]  ;;  %v5805_v5 = vld [vmem:[%s7293_s26 + $0x37d] sm:$0xff] }
 0x2a3   : > { %v1985_v4 = vadd.f32 %v1984_v52, %v1927_v2  ;;  %v3128_v36 = vsel %vm1359_vm5, %v3094_v3, %v3060_v60  ;;  %v1554_v51 = vpop.f32.mrb[21].mxu0  ;;  %v2184_v13 = vld [vmem:[%s7293_s26 + $0x1da] sm:$0xff]  ;;  %v5594_v3 = vpack.c.bf16 %v5561_v22, %v5560_v54 }
 0x2a4   : > { %v2024_v21 = vadd.f32 %v2023_v56, %v1928_v12  ;;  %v1691_v49 = vmax.f32 %v1553_v27, 0.0  ;;  %v1555_v10 = vadd.f32 %v1554_v51, %v8708_v42  ;;  %v1556_v0 = vpop.f32.mrb[22].mxu0  ;;  %4126 = vrot.lane.b32.xlu0 %v8851_v23, %s7238_s28  ;;  %4370 = vrot.lane.b32.xlu1 %v4285_v61, %s7237_s27  ;;  %v2063_v12 = vld [vmem:[%s7293_s26 + $0x140] sm:$0xff]  ;;  %v2064_v27 = vld [vmem:[%s7293_s26 + $0x148] sm:$0xff] }
 0x2a5   : > { %v1557_v57 = vadd.f32 %v1556_v0, %v8702_v34  ;;  %v1558_v52 = vpop.f32.mrb[23].mxu0  ;;  %7073 = vmatmul.mubr.msk.bf16.gmra.mrb[8].mxu1 %vm1423_vm6, %v3128_v36  ;;  %v2129_v0 = vld [vmem:[%s7293_s26 + $0x1b9] sm:$0xff]  ;;  %v2094_v22 = vpack.c.bf16 %v2064_v27, %v2063_v12 }
 0x2a6   : > { %v1929_v24 = vmul.f32 %v8341_v31, %v1691_v49  ;;  %v1692_v2 = vmax.f32 %v1555_v10, 0.0  ;;  %v1559_v61 = vadd.f32 %v1558_v52, %v8708_v42  ;;  %v8880_v18 = vpop.permute.xlu1 %2837  ;;  %v8882_v26 = vpop.permute.xlu0 %2593  ;;  %3253 = vmatprep.mubr.bf16.mxu1 %v12023_v33  ;;  %v5838_v49 = vpack.c.bf16 %v5805_v5, %v5804_v16  ;;  %v2128_v10 = vld [vmem:[%s7293_s26 + $0x1b1] sm:$0xff] }
 0x2a7   : > { %v1693_v56 = vmax.f32 %v1557_v57, 0.0  ;;  %v5855_v29 = vld [vmem:[%s7293_s26 + $0x376] sm:$0xff]  ;;  %v2152_v5 = vpack.c.bf16 %v2129_v0, %v2128_v10 }
 0x2a8   : > { %v1986_v60 = vadd.f32 %v1985_v4, %v1929_v24  ;;  %v1930_v36 = vmul.f32 %v8341_v31, %v1692_v2  ;;  %v1694_v51 = vmax.f32 %v1559_v61, 0.0  ;;  %4421 = vrot.lane.b32.xlu0 %v4336_v48, %s7238_s28  ;;  %5628 = vrot.lane.b32.xlu1 %v5543_v28, %s7237_s27  ;;  %v8900_v48 = vpack.c.bf16 %v2184_v13, %v2183_v1  ;;  %v3958_v10 = vld [vmem:[%s7293_s26 + $0x253] sm:$0xff]  ;;  %v3959_v0 = vld [vmem:[%s7293_s26 + $0x25b] sm:$0xff] }
 0x2a9   : > { %v1931_v52 = vmul.f32 %v8345_v50, %v1693_v56  ;;  %v1562_v46 = vpop.f32.mrb[24].mxu0 }
 0x2aa   : > { %v2025_v57 = vadd.f32 %v2024_v21, %v1930_v36  ;;  %v1932_v35 = vmul.f32 %v8345_v50, %v1694_v51  ;;  %v1563_v4 = vadd.f32 %v1562_v46, %v8702_v34  ;;  %v8898_v54 = vpop.permute.xlu1 %2888  ;;  %v2234_v24 = vpop.permute.xlu0 %2233  ;;  %v5889_v21 = vpack.c.bf16 %v5856_v38, %v5855_v29 }
 0x2ab   : > { %v1987_v28 = vadd.f32 %v1986_v60, %v1931_v52  ;;  %v1564_v16 = vpop.f32.mrb[25].mxu0  ;;  %v2323_v13 = vsel %vm545_vm0, %v2094_v22, %v2234_v24  ;;  %v2639_v38 = vsel %vm545_vm0, %v8900_v48, %v8863_v14 }
 0x2ac   : > { %v2026_v2 = vadd.f32 %v2025_v57, %v1932_v35  ;;  %v1695_v61 = vmax.f32 %v1563_v4, 0.0  ;;  %v1565_v56 = vadd.f32 %v1564_v16, %v8708_v42  ;;  %v1566_v31 = vpop.f32.mrb[26].mxu0  ;;  %5679 = vrot.lane.b32.xlu0 %v5594_v3, %s7238_s28  ;;  %5923 = vrot.lane.b32.xlu1 %v5838_v49, %s7237_s27 }
 0x2ad   : > { %v1567_v46 = vadd.f32 %v1566_v31, %v8702_v34  ;;  %v1568_v12 = vpop.f32.mrb[27].mxu0 }
 0x2ae   : > { %v1933_v1 = vmul.f32 %v8355_v44, %v1695_v61  ;;  %v1696_v27 = vmax.f32 %v1565_v56, 0.0  ;;  %v1569_v35 = vadd.f32 %v1568_v12, %v8708_v42  ;;  %v3011_v60 = vpop.permute.xlu1 %3010  ;;  %v2285_v36 = vpop.permute.xlu0 %2284 }
 0x2af   : > { %v1697_v51 = vmax.f32 %v1567_v46, 0.0  ;;  %v2370_v3 = vsel %vm597_vm1, %v2323_v13, %v2285_v36  ;;  %v2934_v46 = vsel %vm545_vm0, %v8617_v58, %v8880_v18  ;;  %v4253_v58 = vld [vmem:[%s7293_s26 + $0x275] sm:$0xff]  ;;  %v4254_v18 = vld [vmem:[%s7293_s26 + $0x27d] sm:$0xff] }
 0x2b0   : > { %v1988_v29 = vadd.f32 %v1987_v28, %v1933_v1  ;;  %v1934_v31 = vmul.f32 %v8355_v44, %v1696_v27  ;;  %v1698_v49 = vmax.f32 %v1569_v35, 0.0  ;;  %2247 = vrot.lane.b32.xlu0 %v2152_v5, %s7237_s27  ;;  %5974 = vrot.lane.b32.xlu1 %v5889_v21, %s7238_s28  ;;  %v3096_v28 = vsel %vm1324_vm4, %v2370_v3, %v3011_v60  ;;  %v4010_v35 = vld [vmem:[%s7293_s26 + $0x25c] sm:$0xff] }
 0x2b1   : > { %v1935_v52 = vmul.f32 %v8357_v53, %v1697_v51  ;;  %v1572_v57 = vpop.f32.mrb[28].mxu0  ;;  %v2679_v5 = vsel %vm597_vm1, %v2639_v38, %v8882_v26  ;;  %v3991_v21 = vpack.c.bf16 %v3959_v0, %v3958_v10  ;;  %v4009_v26 = vld [vmem:[%s7293_s26 + $0x254] sm:$0xff] }
 0x2b2   : > { %v2027_v4 = vadd.f32 %v2026_v2, %v1934_v31  ;;  %v1936_v22 = vmul.f32 %v8357_v53, %v1698_v49  ;;  %v1573_v24 = vadd.f32 %v1572_v57, %v8702_v34  ;;  %v8921_v14 = vpop.permute.xlu1 %2544  ;;  %v3062_v16 = vpop.permute.xlu0 %3061  ;;  %v2974_v31 = vsel %vm597_vm1, %v2934_v46, %v8898_v54  ;;  %v2065_v10 = vld [vmem:[%s7293_s26 + $0x150] sm:$0xff]  ;;  %v2066_v0 = vld [vmem:[%s7293_s26 + $0x158] sm:$0xff] }
 0x2b3   : > { %v1989_v61 = vadd.f32 %v1988_v29, %v1935_v52  ;;  %v3130_v56 = vsel %vm1359_vm5, %v3096_v28, %v3062_v16  ;;  %v1574_v2 = vpop.f32.mrb[29].mxu0  ;;  %v8951_v52 = vpack.c.bf16 %v4010_v35, %v4009_v26  ;;  %v4304_v28 = vld [vmem:[%s7293_s26 + $0x276] sm:$0xff]  ;;  %v4305_v16 = vld [vmem:[%s7293_s26 + $0x27e] sm:$0xff] }
 0x2b4   : > { %v2028_v12 = vadd.f32 %v2027_v4, %v1936_v22  ;;  %v1699_v1 = vmax.f32 %v1573_v24, 0.0  ;;  %v1575_v13 = vadd.f32 %v1574_v2, %v8708_v42  ;;  %v1576_v27 = vpop.f32.mrb[30].mxu0  ;;  %2298 = vrot.lane.b32.xlu0 %v8749_v41, %s7238_s28  ;;  %3024 = vrot.lane.b32.xlu1 %v2679_v5, %s7240_s29  ;;  %v4286_v24 = vpack.c.bf16 %v4254_v18, %v4253_v58  ;;  %v5512_v2 = vld [vmem:[%s7293_s26 + $0x36b] sm:$0xff]  ;;  %v5270_v53 = vld [vmem:[%s7293_s26 + $0x35a] sm:$0xff] }
 0x2b5   : > { %v1577_v60 = vadd.f32 %v1576_v27, %v8702_v34  ;;  %v1578_v36 = vpop.f32.mrb[31].mxu0  ;;  %7074 = vmatmul.mubr.msk.bf16.gmra.mrb[12].mxu1 %vm1423_vm6, %v3130_v56  ;;  %v5511_v56 = vld [vmem:[%s7293_s26 + $0x363] sm:$0xff]  ;;  %v2095_v27 = vpack.c.bf16 %v2066_v0, %v2065_v10  ;;  %v5807_v0 = vld [vmem:[%s7293_s26 + $0x38d] sm:$0xff] }
 0x2b6   : > { %v1937_v51 = vmul.f32 %v8361_v9, %v1699_v1  ;;  %v1700_v3 = vmax.f32 %v1575_v13, 0.0  ;;  %v1579_v38 = vadd.f32 %v1578_v36, %v8708_v42  ;;  %v8942_v41 = vpop.permute.xlu1 %2839  ;;  %v8944_v29 = vpop.permute.xlu0 %2595  ;;  %3263 = vmatprep.mubr.bf16.mxu1 %v12023_v33  ;;  %v5806_v10 = vld [vmem:[%s7293_s26 + $0x385] sm:$0xff] }
 0x2b7   : > { %v1701_v49 = vmax.f32 %v1577_v60, 0.0  ;;  %v4337_v60 = vpack.c.bf16 %v4305_v16, %v4304_v28 }
 0x2b8   : > { %v1990_v57 = vadd.f32 %v1989_v61, %v1937_v51  ;;  %v1938_v4 = vmul.f32 %v8361_v9, %v1700_v3  ;;  %v1702_v22 = vmax.f32 %v1579_v38, 0.0  ;;  %3075 = vrot.lane.b32.xlu0 %v2974_v31, %s7242_s14  ;;  %4077 = vrot.lane.b32.xlu1 %v3991_v21, %s7237_s27  ;;  %v5544_v51 = vpack.c.bf16 %v5512_v2, %v5511_v56  ;;  %v5562_v3 = vld [vmem:[%s7293_s26 + $0x364] sm:$0xff]  ;;  %v5563_v38 = vld [vmem:[%s7293_s26 + $0x36c] sm:$0xff] }
 0x2b9   : > { %v1939_v5 = vmul.f32 %v8365_v25, %v1701_v49  ;;  %v1582_v54 = vpop.f32.mrb[32].mxu0 }
 0x2ba   : > { %v2029_v46 = vadd.f32 %v2028_v12, %v1938_v4  ;;  %v1940_v1 = vmul.f32 %v8365_v25, %v1702_v22  ;;  %v1583_v61 = vadd.f32 %v1582_v54, %v8702_v34  ;;  %v8963_v13 = vpop.permute.xlu1 %2890  ;;  %v2236_v21 = vpop.permute.xlu0 %2235  ;;  %v2186_v54 = vld [vmem:[%s7293_s26 + $0x1ea] sm:$0xff] }
 0x2bb   : > { %v1991_v26 = vadd.f32 %v1990_v57, %v1939_v5  ;;  %v1584_v35 = vpop.f32.mrb[33].mxu0  ;;  %v2326_v4 = vsel %vm545_vm0, %v2095_v27, %v2236_v21  ;;  %v5839_v27 = vpack.c.bf16 %v5807_v0, %v5806_v10  ;;  %v2130_v21 = vld [vmem:[%s7293_s26 + $0x1c1] sm:$0xff]  ;;  %v5858_v25 = vld [vmem:[%s7293_s26 + $0x38e] sm:$0xff] }
 0x2bc   : > { %v2030_v36 = vadd.f32 %v2029_v46, %v1940_v1  ;;  %v1703_v58 = vmax.f32 %v1583_v61, 0.0  ;;  %v1585_v18 = vadd.f32 %v1584_v35, %v8708_v42  ;;  %v1586_v12 = vpop.f32.mrb[34].mxu0  ;;  %4128 = vrot.lane.b32.xlu0 %v8951_v52, %s7238_s28  ;;  %4372 = vrot.lane.b32.xlu1 %v4286_v24, %s7237_s27  ;;  %v2185_v24 = vld [vmem:[%s7293_s26 + $0x1e2] sm:$0xff]  ;;  %v5595_v46 = vpack.c.bf16 %v5563_v38, %v5562_v3 }
 0x2bd   : > { %v1587_v31 = vadd.f32 %v1586_v12, %v8702_v34  ;;  %v1588_v49 = vpop.f32.mrb[35].mxu0 }
 0x2be   : > { %v1941_v57 = vmul.f32 %v8375_v7, %v1703_v58  ;;  %v1704_v22 = vmax.f32 %v1585_v18, 0.0  ;;  %v1589_v28 = vadd.f32 %v1588_v49, %v8708_v42  ;;  %v3013_v16 = vpop.permute.xlu1 %3012  ;;  %v2287_v5 = vpop.permute.xlu0 %2286  ;;  %v2131_v58 = vld [vmem:[%s7293_s26 + $0x1c9] sm:$0xff] }
 0x2bf   : > { %v1705_v56 = vmax.f32 %v1587_v31, 0.0  ;;  %v2372_v2 = vsel %vm597_vm1, %v2326_v4, %v2287_v5  ;;  %v5857_v49 = vld [vmem:[%s7293_s26 + $0x386] sm:$0xff] }
 0x2c0   : > { %v1992_v1 = vadd.f32 %v1991_v26, %v1941_v57  ;;  %v1942_v61 = vmul.f32 %v8375_v7, %v1704_v22  ;;  %v1706_v35 = vmax.f32 %v1589_v28, 0.0  ;;  %4423 = vrot.lane.b32.xlu0 %v4337_v60, %s7238_s28  ;;  %5630 = vrot.lane.b32.xlu1 %v5544_v51, %s7237_s27  ;;  %v3098_v38 = vsel %vm1324_vm4, %v2372_v2, %v3013_v16 }
 0x2c1   : > { %v1943_v18 = vmul.f32 %v8377_v11, %v1705_v56  ;;  %v1592_v12 = vpop.f32.mrb[36].mxu0  ;;  %v8993_v57 = vpack.c.bf16 %v2186_v54, %v2185_v24  ;;  %v2153_v22 = vpack.c.bf16 %v2131_v58, %v2130_v21  ;;  %v5890_v16 = vpack.c.bf16 %v5858_v25, %v5857_v49  ;;  %v2067_v25 = vld [vmem:[%s7293_s26 + $0x160] sm:$0xff] }
 0x2c2   : > { %v2031_v31 = vadd.f32 %v2030_v36, %v1942_v61  ;;  %v1944_v4 = vmul.f32 %v8377_v11, %v1706_v35  ;;  %v1593_v26 = vadd.f32 %v1592_v12, %v8702_v34  ;;  %v8990_v3 = vpop.permute.xlu1 %2546  ;;  %v3064_v60 = vpop.permute.xlu0 %3063 }
 0x2c3   : > { %v1993_v51 = vadd.f32 %v1992_v1, %v1943_v18  ;;  %v3132_v10 = vsel %vm1359_vm5, %v3098_v38, %v3064_v60  ;;  %v1594_v0 = vpop.f32.mrb[37].mxu0  ;;  %v2642_v58 = vsel %vm545_vm0, %v8993_v57, %v8921_v14 }
 0x2c4   : > { %v2032_v28 = vadd.f32 %v2031_v31, %v1944_v4  ;;  %v1707_v5 = vmax.f32 %v1593_v26, 0.0  ;;  %v1595_v36 = vadd.f32 %v1594_v0, %v8708_v42  ;;  %v1596_v56 = vpop.f32.mrb[38].mxu0  ;;  %5681 = vrot.lane.b32.xlu0 %v5595_v46, %s7238_s28  ;;  %5925 = vrot.lane.b32.xlu1 %v5839_v27, %s7237_s27  ;;  %v2068_v27 = vld [vmem:[%s7293_s26 + $0x168] sm:$0xff] }
 0x2c5   : > { %v1597_v24 = vadd.f32 %v1596_v56, %v8702_v34  ;;  %v1598_v54 = vpop.f32.mrb[39].mxu0  ;;  %7075 = vmatmul.mubr.msk.bf16.gmra.mrb[16].mxu1 %vm1423_vm6, %v3132_v10  ;;  %v3960_v31 = vld [vmem:[%s7293_s26 + $0x263] sm:$0xff]  ;;  %v3961_v4 = vld [vmem:[%s7293_s26 + $0x26b] sm:$0xff] }
 0x2c6   : > { %v1945_v2 = vmul.f32 %v8381_v40, %v1707_v5  ;;  %v1708_v1 = vmax.f32 %v1595_v36, 0.0  ;;  %v1599_v61 = vadd.f32 %v1598_v54, %v8708_v42  ;;  %v9003_v35 = vpop.permute.xlu1 %2841  ;;  %v9005_v21 = vpop.permute.xlu0 %2597  ;;  %3273 = vmatprep.mubr.bf16.mxu1 %v12023_v33 }
 0x2c7   : > { %v1709_v46 = vmax.f32 %v1597_v24, 0.0 }
 0x2c8   : > { %v1994_v18 = vadd.f32 %v1993_v51, %v1945_v2  ;;  %v1946_v12 = vmul.f32 %v8381_v40, %v1708_v1  ;;  %v1710_v49 = vmax.f32 %v1599_v61, 0.0  ;;  %2249 = vrot.lane.b32.xlu0 %v2153_v22, %s7237_s27  ;;  %5976 = vrot.lane.b32.xlu1 %v5890_v16, %s7238_s28  ;;  %v2096_v51 = vpack.c.bf16 %v2068_v27, %v2067_v25  ;;  %v4011_v61 = vld [vmem:[%s7293_s26 + $0x264] sm:$0xff] }
 0x2c9   : > { %v1947_v26 = vmul.f32 %v8385_v43, %v1709_v46  ;;  %v1602_v38 = vpop.f32.mrb[40].mxu0  ;;  %v2681_v22 = vsel %vm597_vm1, %v2642_v58, %v8944_v29  ;;  %v3992_v16 = vpack.c.bf16 %v3961_v4, %v3960_v31  ;;  %v4012_v29 = vld [vmem:[%s7293_s26 + $0x26c] sm:$0xff] }
 0x2ca   : > { %v2033_v60 = vadd.f32 %v2032_v28, %v1946_v12  ;;  %v1948_v10 = vmul.f32 %v8385_v43, %v1710_v49  ;;  %v1603_v0 = vadd.f32 %v1602_v38, %v8702_v34  ;;  %v9021_v14 = vpop.permute.xlu1 %2892  ;;  %v2238_v5 = vpop.permute.xlu0 %2237  ;;  %v2937_v28 = vsel %vm545_vm0, %v8649_v6, %v8942_v41  ;;  %v4255_v27 = vld [vmem:[%s7293_s26 + $0x285] sm:$0xff]  ;;  %v4256_v58 = vld [vmem:[%s7293_s26 + $0x28d] sm:$0xff] }
 0x2cb   : > { %v1995_v36 = vadd.f32 %v1994_v18, %v1947_v26  ;;  %v1604_v56 = vpop.f32.mrb[41].mxu0  ;;  %v2329_v6 = vsel %vm545_vm0, %v2096_v51, %v2238_v5  ;;  %v2976_v31 = vsel %vm597_vm1, %v2937_v28, %v8963_v13  ;;  %v9043_v38 = vpack.c.bf16 %v4012_v29, %v4011_v61  ;;  %v4306_v5 = vld [vmem:[%s7293_s26 + $0x286] sm:$0xff]  ;;  %v5513_v13 = vld [vmem:[%s7293_s26 + $0x373] sm:$0xff]  ;;  %v5514_v28 = vld [vmem:[%s7293_s26 + $0x37b] sm:$0xff] }
 0x2cc   : > { %v2034_v24 = vadd.f32 %v2033_v60, %v1948_v10  ;;  %v1711_v54 = vmax.f32 %v1603_v0, 0.0  ;;  %v1605_v2 = vadd.f32 %v1604_v56, %v8708_v42  ;;  %v1606_v1 = vpop.f32.mrb[42].mxu0  ;;  %2300 = vrot.lane.b32.xlu0 %v8810_v59, %s7238_s28  ;;  %3026 = vrot.lane.b32.xlu1 %v2681_v22, %s7240_s29  ;;  %v4287_v51 = vpack.c.bf16 %v4256_v58, %v4255_v27  ;;  %v4307_v22 = vld [vmem:[%s7293_s26 + $0x28e] sm:$0xff] }
 0x2cd   : > { %v1607_v46 = vadd.f32 %v1606_v1, %v8702_v34  ;;  %v1608_v25 = vpop.f32.mrb[43].mxu0  ;;  %v4338_v58 = vpack.c.bf16 %v4307_v22, %v4306_v5 }
 0x2ce   : > { %v1949_v18 = vmul.f32 %v8395_v19, %v1711_v54  ;;  %v1712_v41 = vmax.f32 %v1605_v2, 0.0  ;;  %v1609_v12 = vadd.f32 %v1608_v25, %v8708_v42  ;;  %v3015_v49 = vpop.permute.xlu1 %3014  ;;  %v2289_v59 = vpop.permute.xlu0 %2288 }
 0x2cf   : > { %v1713_v4 = vmax.f32 %v1607_v46, 0.0  ;;  %v2374_v26 = vsel %vm597_vm1, %v2329_v6, %v2289_v59  ;;  %v5565_v59 = vld [vmem:[%s7293_s26 + $0x37c] sm:$0xff] }
 0x2d0   : > { %v1996_v60 = vadd.f32 %v1995_v36, %v1949_v18  ;;  %v1950_v10 = vmul.f32 %v8395_v19, %v1712_v41  ;;  %v1714_v0 = vmax.f32 %v1609_v12, 0.0  ;;  %3077 = vrot.lane.b32.xlu0 %v2976_v31, %s7242_s14  ;;  %4079 = vrot.lane.b32.xlu1 %v3992_v16, %s7237_s27  ;;  %v3100_v29 = vsel %vm1324_vm4, %v2374_v26, %v3015_v49  ;;  %v5564_v49 = vld [vmem:[%s7293_s26 + $0x374] sm:$0xff] }
 0x2d1   : > { %v1951_v56 = vmul.f32 %v8397_v20, %v1713_v4  ;;  %v1612_v54 = vpop.f32.mrb[44].mxu0  ;;  %v5545_v12 = vpack.c.bf16 %v5514_v28, %v5513_v13  ;;  %v5808_v26 = vld [vmem:[%s7293_s26 + $0x395] sm:$0xff] }
 0x2d2   : > { %v2035_v2 = vadd.f32 %v2034_v24, %v1950_v10  ;;  %v1952_v1 = vmul.f32 %v8397_v20, %v1714_v0  ;;  %v1613_v36 = vadd.f32 %v1612_v54, %v8702_v34  ;;  %v9055_v61 = vpop.permute.xlu1 %2548  ;;  %v3066_v16 = vpop.permute.xlu0 %3065  ;;  %v2187_v10 = vld [vmem:[%s7293_s26 + $0x1f2] sm:$0xff]  ;;  %v2188_v54 = vld [vmem:[%s7293_s26 + $0x1fa] sm:$0xff] }
 0x2d3   : > { %v1997_v46 = vadd.f32 %v1996_v60, %v1951_v56  ;;  %v3134_v25 = vsel %vm1359_vm5, %v3100_v29, %v3066_v16  ;;  %v1614_v27 = vpop.f32.mrb[45].mxu0  ;;  %v5809_v60 = vld [vmem:[%s7293_s26 + $0x39d] sm:$0xff]  ;;  %v2069_v28 = vld [vmem:[%s7293_s26 + $0x170] sm:$0xff] }
 0x2d4   : > { %v2036_v24 = vadd.f32 %v2035_v2, %v1952_v1  ;;  %v1715_v18 = vmax.f32 %v1613_v36, 0.0  ;;  %v1615_v6 = vadd.f32 %v1614_v27, %v8708_v42  ;;  %v1616_v41 = vpop.f32.mrb[46].mxu0  ;;  %4130 = vrot.lane.b32.xlu0 %v9043_v38, %s7238_s28  ;;  %4374 = vrot.lane.b32.xlu1 %v4287_v51, %s7237_s27  ;;  %v2070_v2 = vld [vmem:[%s7293_s26 + $0x178] sm:$0xff]  ;;  %v9080_v1 = vpack.c.bf16 %v5565_v59, %v5564_v49 }
 0x2d5   : > { %v1617_v31 = vadd.f32 %v1616_v41, %v8702_v34  ;;  %v1618_v4 = vpop.f32.mrb[47].mxu0  ;;  %7076 = vmatmul.mubr.msk.bf16.gmra.mrb[20].mxu1 %vm1423_vm6, %v3134_v25  ;;  %v5840_v25 = vpack.c.bf16 %v5809_v60, %v5808_v26  ;;  %v2132_v27 = vld [vmem:[%s7293_s26 + $0x1d1] sm:$0xff] }
 0x2d6   : > { %v1953_v0 = vmul.f32 %v8401_v32, %v1715_v18  ;;  %v1716_v5 = vmax.f32 %v1615_v6, 0.0  ;;  %v1619_v51 = vadd.f32 %v1618_v4, %v8708_v42  ;;  %v9072_v22 = vpop.permute.xlu1 %2843  ;;  %v9074_v56 = vpop.permute.xlu0 %2599  ;;  %3283 = vmatprep.mubr.bf16.mxu1 %v12023_v33  ;;  %v2133_v18 = vld [vmem:[%s7293_s26 + $0x1d9] sm:$0xff] }
 0x2d7   : > { %v1717_v13 = vmax.f32 %v1617_v31, 0.0  ;;  %v5859_v4 = vld [vmem:[%s7293_s26 + $0x396] sm:$0xff]  ;;  %v5860_v31 = vld [vmem:[%s7293_s26 + $0x39e] sm:$0xff]  ;;  %v2154_v60 = vpack.c.bf16 %v2133_v18, %v2132_v27 }
 0x2d8   : > { %v1998_v36 = vadd.f32 %v1997_v46, %v1953_v0  ;;  %v1954_v29 = vmul.f32 %v8401_v32, %v1716_v5  ;;  %v1718_v16 = vmax.f32 %v1619_v51, 0.0  ;;  %4425 = vrot.lane.b32.xlu0 %v4338_v58, %s7238_s28  ;;  %5632 = vrot.lane.b32.xlu1 %v5545_v12, %s7237_s27  ;;  %v2097_v0 = vpack.c.bf16 %v2070_v2, %v2069_v28 }
 0x2d9   : > { %v1955_v6 = vmul.f32 %v8406_v62, %v1717_v13  ;;  %v1622_v41 = vpop.f32.mrb[48].mxu0  ;;  %v9094_v58 = vpack.c.bf16 %v2188_v54, %v2187_v10 }
 0x2da   : > { %v2037_v20 = vadd.f32 %v2036_v24, %v1954_v29  ;;  %v1956_v49 = vmul.f32 %v8406_v62, %v1718_v16  ;;  %v1623_v46 = vadd.f32 %v1622_v41, %v8702_v34  ;;  %v9092_v59 = vpop.permute.xlu1 %2894  ;;  %v2240_v5 = vpop.permute.xlu0 %2239  ;;  %v5891_v24 = vpack.c.bf16 %v5860_v31, %v5859_v4  ;;  %v3962_v31 = vld [vmem:[%s7293_s26 + $0x273] sm:$0xff]  ;;  %v5868_v62 = vld [vmem:[%s7293_s26 + $0x3de] sm:$0xff] }
 0x2db   : > { %v1999_v12 = vadd.f32 %v1998_v36, %v1955_v6  ;;  %v1624_v26 = vpop.f32.mrb[49].mxu0  ;;  %v2332_v54 = vsel %vm545_vm0, %v2097_v0, %v2240_v5 }
 0x2dc   : > { %v2038_v51 = vadd.f32 %v2037_v20, %v1956_v49  ;;  %v1719_v32 = vmax.f32 %v1623_v46, 0.0  ;;  %v1625_v13 = vadd.f32 %v1624_v26, %v8708_v42  ;;  %v1626_v19 = vpop.f32.mrb[50].mxu0  ;;  %5683 = vrot.lane.b32.xlu0 %v9080_v1, %s7238_s28  ;;  %5927 = vrot.lane.b32.xlu1 %v5840_v25, %s7237_s27  ;;  %v2645_v25 = vsel %vm545_vm0, %v9094_v58, %v8990_v3  ;;  %v3963_v49 = vld [vmem:[%s7293_s26 + $0x27b] sm:$0xff] }
 0x2dd   : > { %v1627_v29 = vadd.f32 %v1626_v19, %v8702_v34  ;;  %v1628_v28 = vpop.f32.mrb[51].mxu0  ;;  %v2683_v26 = vsel %vm597_vm1, %v2645_v25, %v9005_v21  ;;  %v3993_v21 = vpack.c.bf16 %v3963_v49, %v3962_v31  ;;  %v2072_v25 = vld [vmem:[%s7293_s26 + $0x188] sm:$0xff]  ;;  %v4309_v31 = vld [vmem:[%s7293_s26 + $0x29e] sm:$0xff] }
 0x2de   : > { %v1957_v10 = vmul.f32 %v8417_v17, %v1719_v32  ;;  %v1720_v20 = vmax.f32 %v1625_v13, 0.0  ;;  %v1629_v2 = vadd.f32 %v1628_v28, %v8708_v42  ;;  %v3017_v36 = vpop.permute.xlu1 %3016  ;;  %v2291_v16 = vpop.permute.xlu0 %2290  ;;  %v5515_v49 = vld [vmem:[%s7293_s26 + $0x383] sm:$0xff] }
 0x2df   : > { %v1721_v27 = vmax.f32 %v1627_v29, 0.0  ;;  %v2376_v18 = vsel %vm597_vm1, %v2332_v54, %v2291_v16  ;;  %v4013_v54 = vld [vmem:[%s7293_s26 + $0x274] sm:$0xff] }
 0x2e0   : > { %v2000_v19 = vadd.f32 %v1999_v12, %v1957_v10  ;;  %v1958_v6 = vmul.f32 %v8417_v17, %v1720_v20  ;;  %v1722_v32 = vmax.f32 %v1629_v2, 0.0  ;;  %2251 = vrot.lane.b32.xlu0 %v2154_v60, %s7237_s27  ;;  %5978 = vrot.lane.b32.xlu1 %v5891_v24, %s7238_s28  ;;  %v3102_v3 = vsel %vm1324_vm4, %v2376_v18, %v3017_v36  ;;  %v4257_v2 = vld [vmem:[%s7293_s26 + $0x295] sm:$0xff]  ;;  %v4258_v36 = vld [vmem:[%s7293_s26 + $0x29d] sm:$0xff] }
 0x2e1   : > { %v1959_v41 = vmul.f32 %v8419_v45, %v1721_v27  ;;  %v9112_v4 = vpop.f32.mrb[52].mxu0  ;;  %v2071_v18 = vld [vmem:[%s7293_s26 + $0x180] sm:$0xff] }
 0x2e2   : > { %12077 = vst [vmem:[#allocation12_spill] sm:$0xff] %v9112_v4  ;;  %v2039_v46 = vadd.f32 %v2038_v51, %v1958_v6  ;;  %v1960_v0 = vmul.f32 %v8419_v45, %v1722_v32  ;;  %v9117_v5 = vpop.permute.xlu1 %2550  ;;  %v3068_v12 = vpop.permute.xlu0 %3067  ;;  %v12080_v51 = vld [vmem:[#allocation24_spill] sm:$0xff]  ;;  %v4288_v6 = vpack.c.bf16 %v4258_v36, %v4257_v2 }
 0x2e3   : > { %v9122_v60 = vadd.f32 %v2000_v19, %v1959_v41  ;;  %v3136_v13 = vsel %vm1359_vm5, %v3102_v3, %v3068_v12  ;;  %v9125_v24 = vpop.f32.mrb[53].mxu0  ;;  %v2940_v29 = vsel %vm545_vm0, %v12080_v51, %v9003_v35  ;;  %v4014_v35 = vld [vmem:[%s7293_s26 + $0x27c] sm:$0xff]  ;;  %v5811_v2 = vld [vmem:[%s7293_s26 + $0x3ad] sm:$0xff] }
 0x2e4   : > { %12079 = vst [vmem:[#allocation11_spill] sm:$0xff] %v9125_v24  ;;  %v9130_v28 = vadd.f32 %v2039_v46, %v1960_v0  ;;  %v9132_v10 = vpop.f32.mrb[54].mxu0  ;;  %2302 = vrot.lane.b32.xlu0 %v8900_v48, %s7238_s28  ;;  %3028 = vrot.lane.b32.xlu1 %v2683_v26, %s7240_s29  ;;  %v2978_v48 = vsel %vm597_vm1, %v2940_v29, %v9021_v14  ;;  %v4308_v32 = vld [vmem:[%s7293_s26 + $0x296] sm:$0xff]  ;;  %v5516_v46 = vld [vmem:[%s7293_s26 + $0x38b] sm:$0xff] }
 0x2e5   : > { %12078 = vst [vmem:[#allocation23_spill] sm:$0xff] %v9122_v60  ;;  %12082 = vst [vmem:[#allocation13_spill] sm:$0xff] %v9132_v10  ;;  %v9138_v20 = vpop.f32.mrb[55].mxu0  ;;  %7077 = vmatmul.mubr.msk.bf16.gmra.mrb[24].mxu1 %vm1423_vm6, %v3136_v13  ;;  %v9155_v19 = vpack.c.bf16 %v4014_v35, %v4013_v54  ;;  %v2098_v0 = vpack.c.bf16 %v2072_v25, %v2071_v18  ;;  %v4339_v13 = vpack.c.bf16 %v4309_v31, %v4308_v32  ;;  %v5566_v29 = vld [vmem:[%s7293_s26 + $0x384] sm:$0xff]  ;;  %v5567_v54 = vld [vmem:[%s7293_s26 + $0x38c] sm:$0xff] }
 0x2e6   : > { %12081 = vst [vmem:[#allocation26_spill] sm:$0xff] %v9130_v28  ;;  %12083 = vst [vmem:[#allocation25_spill] sm:$0xff] %v9138_v20  ;;  %v9144_v16 = vpop.permute.xlu1 %2845  ;;  %v9146_v27 = vpop.permute.xlu0 %2601  ;;  %3293 = vmatprep.mubr.bf16.mxu1 %v12023_v33  ;;  %v5546_v51 = vpack.c.bf16 %v5516_v46, %v5515_v49  ;;  %v5810_v35 = vld [vmem:[%s7293_s26 + $0x3a5] sm:$0xff]  ;;  %v9184_v32 = vpack.c.bf16 %v5567_v54, %v5566_v29  ;;  %v5866_v10 = vld [vmem:[%s7293_s26 + $0x3ce] sm:$0xff] }
 0x2e7   : > { %v2189_v25 = vld [vmem:[%s7293_s26 + $0x202] sm:$0xff]  ;;  %v5841_v31 = vpack.c.bf16 %v5811_v2, %v5810_v35 }
 0x2e8   : > { %3079 = vrot.lane.b32.xlu0 %v2978_v48, %s7242_s14  ;;  %4081 = vrot.lane.b32.xlu1 %v3993_v21, %s7237_s27  ;;  %v2134_v49 = vld [vmem:[%s7293_s26 + $0x1e1] sm:$0xff]  ;;  %v2135_v60 = vld [vmem:[%s7293_s26 + $0x1e9] sm:$0xff] }
 0x2e9   : > { %v9158_v41 = vpop.f32.mrb[56].mxu0  ;;  %v2155_v54 = vpack.c.bf16 %v2135_v60, %v2134_v49 }
 0x2ea   : > { %12084 = vst [vmem:[#allocation24_spill] sm:$0xff] %v9158_v41  ;;  %v9163_v14 = vpop.permute.xlu1 %2896  ;;  %v2242_v3 = vpop.permute.xlu0 %2241 }
 0x2eb   : > { %v9165_v12 = vpop.f32.mrb[57].mxu0  ;;  %v2335_v36 = vsel %vm545_vm0, %v2098_v0, %v2242_v3 }
 0x2ec   : > { %12085 = vst [vmem:[#allocation36_spill] sm:$0xff] %v9165_v12  ;;  %v9167_v26 = vpop.f32.mrb[58].mxu0  ;;  %4132 = vrot.lane.b32.xlu0 %v9155_v19, %s7238_s28  ;;  %4376 = vrot.lane.b32.xlu1 %v4288_v6, %s7237_s27  ;;  %v2190_v6 = vld [vmem:[%s7293_s26 + $0x20a] sm:$0xff] }
 0x2ed   : > { %12086 = vst [vmem:[#allocation37_spill] sm:$0xff] %v9167_v26  ;;  %v9173_v21 = vpop.f32.mrb[59].mxu0  ;;  %v5862_v26 = vld [vmem:[%s7293_s26 + $0x3ae] sm:$0xff] }
 0x2ee   : > { %12087 = vst [vmem:[#allocation38_spill] sm:$0xff] %v9173_v21  ;;  %v3019_v48 = vpop.permute.xlu1 %3018  ;;  %v2293_v18 = vpop.permute.xlu0 %2292  ;;  %v5861_v21 = vld [vmem:[%s7293_s26 + $0x3a6] sm:$0xff] }
 0x2ef   : > { %v2378_v28 = vsel %vm597_vm1, %v2335_v36, %v2293_v18  ;;  %v5892_v35 = vpack.c.bf16 %v5862_v26, %v5861_v21  ;;  %v3964_v26 = vld [vmem:[%s7293_s26 + $0x283] sm:$0xff]  ;;  %v3965_v21 = vld [vmem:[%s7293_s26 + $0x28b] sm:$0xff] }
 0x2f0   : > { %4427 = vrot.lane.b32.xlu0 %v4339_v13, %s7238_s28  ;;  %5634 = vrot.lane.b32.xlu1 %v5546_v51, %s7237_s27  ;;  %v3104_v3 = vsel %vm1324_vm4, %v2378_v28, %v3019_v48  ;;  %v9198_v51 = vpack.c.bf16 %v2190_v6, %v2189_v25  ;;  %v2073_v25 = vld [vmem:[%s7293_s26 + $0x190] sm:$0xff]  ;;  %v2074_v6 = vld [vmem:[%s7293_s26 + $0x198] sm:$0xff] }
 0x2f1   : > { %v9187_v46 = vpop.f32.mrb[60].mxu0  ;;  %v2099_v49 = vpack.c.bf16 %v2074_v6, %v2073_v25  ;;  %v4015_v25 = vld [vmem:[%s7293_s26 + $0x284] sm:$0xff] }
 0x2f2   : > { %12088 = vst [vmem:[#allocation39_spill] sm:$0xff] %v9187_v46  ;;  %v9192_v0 = vpop.permute.xlu1 %2552  ;;  %v3070_v36 = vpop.permute.xlu0 %3069 }
 0x2f3   : > { %v3138_v13 = vsel %vm1359_vm5, %v3104_v3, %v3070_v36  ;;  %v9196_v18 = vpop.f32.mrb[61].mxu0  ;;  %v2648_v3 = vsel %vm545_vm0, %v9198_v51, %v9055_v61 }
 0x2f4   : > { %12089 = vst [vmem:[#allocation40_spill] sm:$0xff] %v9196_v18  ;;  %v9200_v29 = vpop.f32.mrb[62].mxu0  ;;  %5685 = vrot.lane.b32.xlu0 %v9184_v32, %s7238_s28  ;;  %5929 = vrot.lane.b32.xlu1 %v5841_v31, %s7237_s27  ;;  %v5864_v18 = vld [vmem:[%s7293_s26 + $0x3be] sm:$0xff] }
 0x2f5   : > { %12090 = vst [vmem:[#allocation41_spill] sm:$0xff] %v9200_v29  ;;  %v9205_v28 = vpop.f32.mrb[63].mxu0  ;;  %7078 = vmatmul.mubr.msk.bf16.gmra.mrb[28].mxu1 %vm1423_vm6, %v3138_v13  ;;  %v2685_v13 = vsel %vm597_vm1, %v2648_v3, %v9074_v56  ;;  %v4016_v56 = vld [vmem:[%s7293_s26 + $0x28c] sm:$0xff] }
 0x2f6   : > { %12091 = vst [vmem:[#allocation42_spill] sm:$0xff] %v9205_v28  ;;  %v9208_v2 = vpop.permute.xlu1 %2847  ;;  %v9210_v48 = vpop.permute.xlu0 %2603  ;;  %3303 = vmatprep.mubr.bf16.mxu1 %v12023_v33  ;;  %v4259_v3 = vld [vmem:[%s7293_s26 + $0x2a5] sm:$0xff]  ;;  %v5518_v28 = vld [vmem:[%s7293_s26 + $0x39b] sm:$0xff] }
 0x2f8   : > { %2253 = vrot.lane.b32.xlu0 %v2155_v54, %s7237_s27  ;;  %5980 = vrot.lane.b32.xlu1 %v5892_v35, %s7238_s28  ;;  %v2943_v54 = vsel %vm545_vm0, %v8733_v30, %v9072_v22 }
 0x2f9   : > { %v9220_v60 = vpop.f32.mrb[64].mxu0 }
 0x2fa   : > { %12092 = vst [vmem:[#allocation43_spill] sm:$0xff] %v9220_v60  ;;  %v9224_v31 = vpop.permute.xlu1 %2898  ;;  %v2244_v36 = vpop.permute.xlu0 %2243  ;;  %v3994_v60 = vpack.c.bf16 %v3965_v21, %v3964_v26  ;;  %v9250_v26 = vpack.c.bf16 %v4016_v56, %v4015_v25  ;;  %v5568_v25 = vld [vmem:[%s7293_s26 + $0x394] sm:$0xff]  ;;  %v5569_v56 = vld [vmem:[%s7293_s26 + $0x39c] sm:$0xff] }
 0x2fb   : > { %v9228_v61 = vpop.f32.mrb[65].mxu0  ;;  %v2338_v30 = vsel %vm545_vm0, %v2099_v49, %v2244_v36  ;;  %v4311_v49 = vld [vmem:[%s7293_s26 + $0x2ae] sm:$0xff] }
 0x2fc   : > { %12093 = vst [vmem:[#allocation44_spill] sm:$0xff] %v9228_v61  ;;  %v9233_v35 = vpop.f32.mrb[66].mxu0  ;;  %2304 = vrot.lane.b32.xlu0 %v8993_v57, %s7238_s28  ;;  %3030 = vrot.lane.b32.xlu1 %v2685_v13, %s7240_s29  ;;  %v4260_v61 = vld [vmem:[%s7293_s26 + $0x2ad] sm:$0xff]  ;;  %v2980_v57 = vsel %vm597_vm1, %v2943_v54, %v9092_v59 }
 0x2fd   : > { %12094 = vst [vmem:[#allocation45_spill] sm:$0xff] %v9233_v35  ;;  %v9239_v6 = vpop.f32.mrb[67].mxu0  ;;  %v4289_v21 = vpack.c.bf16 %v4260_v61, %v4259_v3  ;;  %v5517_v36 = vld [vmem:[%s7293_s26 + $0x393] sm:$0xff] }
 0x2fe   : > { %12095 = vst [vmem:[#allocation46_spill] sm:$0xff] %v9239_v6  ;;  %v3021_v22 = vpop.permute.xlu1 %3020  ;;  %v2295_v35 = vpop.permute.xlu0 %2294  ;;  %v4310_v6 = vld [vmem:[%s7293_s26 + $0x2a6] sm:$0xff]  ;;  %v5812_v3 = vld [vmem:[%s7293_s26 + $0x3b5] sm:$0xff] }
 0x2ff   : > { %v2380_v13 = vsel %vm597_vm1, %v2338_v30, %v2295_v35  ;;  %v4340_v61 = vpack.c.bf16 %v4311_v49, %v4310_v6  ;;  %v5547_v35 = vpack.c.bf16 %v5518_v28, %v5517_v36  ;;  %v5813_v30 = vld [vmem:[%s7293_s26 + $0x3bd] sm:$0xff]  ;;  %v2076_v6 = vld [vmem:[%s7293_s26 + $0x1a8] sm:$0xff]  ;;  %v9279_v49 = vpack.c.bf16 %v5569_v56, %v5568_v25 }
 0x300   : > { %3081 = vrot.lane.b32.xlu0 %v2980_v57, %s7242_s14  ;;  %4083 = vrot.lane.b32.xlu1 %v3994_v60, %s7237_s27  ;;  %v3106_v59 = vsel %vm1324_vm4, %v2380_v13, %v3021_v22  ;;  %v2191_v13 = vld [vmem:[%s7293_s26 + $0x212] sm:$0xff]  ;;  %v2192_v28 = vld [vmem:[%s7293_s26 + $0x21a] sm:$0xff]  ;;  %v5842_v36 = vpack.c.bf16 %v5813_v30, %v5812_v3 }
 0x301   : > { %v9287_v20 = vpack.c.bf16 %v2192_v28, %v2191_v13  ;;  %v3966_v13 = vld [vmem:[%s7293_s26 + $0x293] sm:$0xff] }
 0x302   : > { %v9256_v29 = vpop.permute.xlu1 %2554  ;;  %v3072_v54 = vpop.permute.xlu0 %3071 }
 0x303   : > { %v3140_v60 = vsel %vm1359_vm5, %v3106_v59, %v3072_v54  ;;  %v2136_v59 = vld [vmem:[%s7293_s26 + $0x1f1] sm:$0xff]  ;;  %v2137_v54 = vld [vmem:[%s7293_s26 + $0x1f9] sm:$0xff] }
 0x304   : > { %4134 = vrot.lane.b32.xlu0 %v9250_v26, %s7238_s28  ;;  %4378 = vrot.lane.b32.xlu1 %v4289_v21, %s7237_s27  ;;  %v2075_v21 = vld [vmem:[%s7293_s26 + $0x1a0] sm:$0xff] }
 0x305   : > { %7079 = vmatmul.mubr.msk.bf16.gmra.mrb[32].mxu1 %vm1423_vm6, %v3140_v60  ;;  %v5863_v60 = vld [vmem:[%s7293_s26 + $0x3b6] sm:$0xff]  ;;  %v2100_v12 = vpack.c.bf16 %v2076_v6, %v2075_v21  ;;  %v2651_v21 = vsel %vm545_vm0, %v9287_v20, %v9117_v5  ;;  %v2946_v5 = vsel %vm545_vm0, %v8797_v37, %v9144_v16 }
 0x306   : > { %v9268_v22 = vpop.permute.xlu1 %2849  ;;  %v9270_v57 = vpop.permute.xlu0 %2605  ;;  %3313 = vmatprep.mubr.bf16.mxu1 %v12023_v33  ;;  %v2687_v28 = vsel %vm597_vm1, %v2651_v21, %v9146_v27  ;;  %v4018_v27 = vld [vmem:[%s7293_s26 + $0x29c] sm:$0xff]  ;;  %v2982_v37 = vsel %vm597_vm1, %v2946_v5, %v9163_v14  ;;  %v5520_v21 = vld [vmem:[%s7293_s26 + $0x3ab] sm:$0xff] }
 0x307   : > { %v5815_v5 = vld [vmem:[%s7293_s26 + $0x3cd] sm:$0xff] }
 0x308   : > { %4429 = vrot.lane.b32.xlu0 %v4340_v61, %s7238_s28  ;;  %5636 = vrot.lane.b32.xlu1 %v5547_v35, %s7237_s27  ;;  %v2156_v61 = vpack.c.bf16 %v2137_v54, %v2136_v59  ;;  %v5893_v35 = vpack.c.bf16 %v5864_v18, %v5863_v60  ;;  %v3967_v18 = vld [vmem:[%s7293_s26 + $0x29b] sm:$0xff] }
 0x309   : > { %v3995_v59 = vpack.c.bf16 %v3967_v18, %v3966_v13  ;;  %v4017_v54 = vld [vmem:[%s7293_s26 + $0x294] sm:$0xff] }
 0x30a   : > { %v9285_v46 = vpop.permute.xlu1 %2900  ;;  %v2246_v41 = vpop.permute.xlu0 %2245  ;;  %v4261_v60 = vld [vmem:[%s7293_s26 + $0x2b5] sm:$0xff] }
 0x30b   : > { %v2341_v25 = vsel %vm545_vm0, %v2100_v12, %v2246_v41 }
 0x30c   : > { %5687 = vrot.lane.b32.xlu0 %v9279_v49, %s7238_s28  ;;  %5931 = vrot.lane.b32.xlu1 %v5842_v36, %s7237_s27 }
 0x30e   : > { %v3023_v56 = vpop.permute.xlu1 %3022  ;;  %v2297_v3 = vpop.permute.xlu0 %2296 }
 0x30f   : > { %v2382_v30 = vsel %vm597_vm1, %v2341_v25, %v2297_v3  ;;  %v4313_v3 = vld [vmem:[%s7293_s26 + $0x2be] sm:$0xff] }
 0x310   : > { %2255 = vrot.lane.b32.xlu0 %v2156_v61, %s7237_s27  ;;  %5982 = vrot.lane.b32.xlu1 %v5893_v35, %s7238_s28  ;;  %v3108_v41 = vsel %vm1324_vm4, %v2382_v30, %v3023_v56  ;;  %v4262_v61 = vld [vmem:[%s7293_s26 + $0x2bd] sm:$0xff] }
 0x311   : > { %v4290_v16 = vpack.c.bf16 %v4262_v61, %v4261_v60  ;;  %v4312_v56 = vld [vmem:[%s7293_s26 + $0x2b6] sm:$0xff]  ;;  %v5519_v30 = vld [vmem:[%s7293_s26 + $0x3a3] sm:$0xff] }
 0x312   : > { %v9301_v6 = vpop.permute.xlu1 %4075  ;;  %v3074_v12 = vpop.permute.xlu0 %3073  ;;  %v4341_v18 = vpack.c.bf16 %v4313_v3, %v4312_v56  ;;  %v2077_v60 = vld [vmem:[%s7293_s26 + $0x1b0] sm:$0xff]  ;;  %v2078_v61 = vld [vmem:[%s7293_s26 + $0x1b8] sm:$0xff]  ;;  %v2138_v3 = vld [vmem:[%s7293_s26 + $0x201] sm:$0xff] }
 0x313   : > { %v3142_v36 = vsel %vm1359_vm5, %v3108_v41, %v3074_v12  ;;  %v5548_v41 = vpack.c.bf16 %v5520_v21, %v5519_v30  ;;  %v5570_v12 = vld [vmem:[%s7293_s26 + $0x3a4] sm:$0xff]  ;;  %v2101_v4 = vpack.c.bf16 %v2078_v61, %v2077_v60 }
 0x314   : > { %2306 = vrot.lane.b32.xlu0 %v9094_v58, %s7238_s28  ;;  %3032 = vrot.lane.b32.xlu1 %v2687_v28, %s7240_s29  ;;  %v9327_v58 = vpack.c.bf16 %v4018_v27, %v4017_v54  ;;  %v5571_v28 = vld [vmem:[%s7293_s26 + $0x3ac] sm:$0xff]  ;;  %v2397_v27 = vld [vmem:[%s7293_s26 + $0x222] sm:$0xff] }
 0x315   : > { %7080 = vmatmul.mubr.msk.bf16.gmra.mrb[36].mxu1 %vm1423_vm6, %v3142_v36  ;;  %v5814_v36 = vld [vmem:[%s7293_s26 + $0x3c5] sm:$0xff] }
 0x316   : > { %v9318_v35 = vpop.permute.xlu1 %4370  ;;  %v9320_v25 = vpop.permute.xlu0 %4126  ;;  %3323 = vmatprep.mubr.bf16.mxu1 %v12023_v33  ;;  %12096 = vst [vmem:[#allocation47_spill] sm:$0xff] %v9327_v58  ;;  %v5843_v56 = vpack.c.bf16 %v5815_v5, %v5814_v36  ;;  %v2139_v30 = vld [vmem:[%s7293_s26 + $0x209] sm:$0xff] }
 0x317   : > { %v5865_v21 = vld [vmem:[%s7293_s26 + $0x3c6] sm:$0xff] }
 0x318   : > { %3083 = vrot.lane.b32.xlu0 %v2982_v37, %s7242_s14  ;;  %4085 = vrot.lane.b32.xlu1 %v3995_v59, %s7237_s27  ;;  %v2398_v37 = vld [vmem:[%s7293_s26 + $0x22a] sm:$0xff] }
 0x319   : > { %v9362_v17 = vpack.c.bf16 %v2398_v37, %v2397_v27  ;;  %v3968_v27 = vld [vmem:[%s7293_s26 + $0x2a3] sm:$0xff] }
 0x31a   : > { %v9333_v13 = vpop.permute.xlu1 %5628  ;;  %v9335_v14 = vpop.permute.xlu0 %4421 }
 0x31b   : > { %v2654_v60 = vsel %vm545_vm0, %v9362_v17, %v9192_v0  ;;  %v2949_v0 = vsel %vm545_vm0, %v8851_v23, %v9208_v2 }
 0x31c   : > { %4136 = vrot.lane.b32.xlu0 %v9327_v58, %s7238_s28  ;;  %4380 = vrot.lane.b32.xlu1 %v4290_v16, %s7237_s27  ;;  %v9354_v16 = vpack.c.bf16 %v5571_v28, %v5570_v12  ;;  %v2689_v37 = vsel %vm597_vm1, %v2654_v60, %v9210_v48  ;;  %v4020_v48 = vld [vmem:[%s7293_s26 + $0x2ac] sm:$0xff]  ;;  %v2984_v23 = vsel %vm597_vm1, %v2949_v0, %v9224_v31  ;;  %v5522_v60 = vld [vmem:[%s7293_s26 + $0x3bb] sm:$0xff] }
 0x31d   : > { %v5817_v0 = vld [vmem:[%s7293_s26 + $0x3dd] sm:$0xff]  ;;  %v5869_v58 = vld [vmem:[%s7293_s26 + $0x3e6] sm:$0xff] }
 0x31e   : > { %v9344_v59 = vpop.permute.xlu1 %5923  ;;  %v9346_v54 = vpop.permute.xlu0 %5679  ;;  %12097 = vst [vmem:[#allocation48_spill] sm:$0xff] %v9354_v16 }
 0x320   : > { %4431 = vrot.lane.b32.xlu0 %v4341_v18, %s7238_s28  ;;  %5638 = vrot.lane.b32.xlu1 %v5548_v41, %s7237_s27  ;;  %v2157_v18 = vpack.c.bf16 %v2139_v30, %v2138_v3  ;;  %v5894_v41 = vpack.c.bf16 %v5866_v10, %v5865_v21  ;;  %v3969_v10 = vld [vmem:[%s7293_s26 + $0x2ab] sm:$0xff] }
 0x321   : > { %v3996_v3 = vpack.c.bf16 %v3969_v10, %v3968_v27  ;;  %v4019_v30 = vld [vmem:[%s7293_s26 + $0x2a4] sm:$0xff] }
 0x322   : > { %v9360_v24 = vpop.permute.xlu1 %5974  ;;  %v2248_v45 = vpop.permute.xlu0 %2247  ;;  %v4263_v21 = vld [vmem:[%s7293_s26 + $0x2c5] sm:$0xff] }
 0x323   : > { %v2344_v12 = vsel %vm545_vm0, %v2101_v4, %v2248_v45 }
 0x324   : > { %5689 = vrot.lane.b32.xlu0 %v9354_v16, %s7238_s28  ;;  %5933 = vrot.lane.b32.xlu1 %v5843_v56, %s7237_s27 }
 0x326   : > { %v3025_v28 = vpop.permute.xlu1 %3024  ;;  %v2299_v36 = vpop.permute.xlu0 %2298 }
 0x327   : > { %v2384_v5 = vsel %vm597_vm1, %v2344_v12, %v2299_v36  ;;  %v4315_v36 = vld [vmem:[%s7293_s26 + $0x2ce] sm:$0xff] }
 0x328   : > { %2257 = vrot.lane.b32.xlu0 %v2157_v18, %s7237_s27  ;;  %5984 = vrot.lane.b32.xlu1 %v5894_v41, %s7238_s28  ;;  %v3110_v45 = vsel %vm1324_vm4, %v2384_v5, %v3025_v28  ;;  %v4264_v18 = vld [vmem:[%s7293_s26 + $0x2cd] sm:$0xff] }
 0x329   : > { %v4291_v2 = vpack.c.bf16 %v4264_v18, %v4263_v21  ;;  %v4314_v28 = vld [vmem:[%s7293_s26 + $0x2c6] sm:$0xff]  ;;  %v5521_v5 = vld [vmem:[%s7293_s26 + $0x3b3] sm:$0xff] }
 0x32a   : > { %v9376_v61 = vpop.permute.xlu1 %4077  ;;  %v3076_v4 = vpop.permute.xlu0 %3075  ;;  %v4342_v10 = vpack.c.bf16 %v4315_v36, %v4314_v28  ;;  %v2079_v21 = vld [vmem:[%s7293_s26 + $0x1c0] sm:$0xff]  ;;  %v2080_v18 = vld [vmem:[%s7293_s26 + $0x1c8] sm:$0xff]  ;;  %v2140_v36 = vld [vmem:[%s7293_s26 + $0x211] sm:$0xff] }
 0x32b   : > { %v3144_v56 = vsel %vm1359_vm5, %v3110_v45, %v3076_v4  ;;  %v5549_v45 = vpack.c.bf16 %v5522_v60, %v5521_v5  ;;  %v5572_v4 = vld [vmem:[%s7293_s26 + $0x3b4] sm:$0xff]  ;;  %v2102_v40 = vpack.c.bf16 %v2080_v18, %v2079_v21 }
 0x32c   : > { %2308 = vrot.lane.b32.xlu0 %v9198_v51, %s7238_s28  ;;  %3034 = vrot.lane.b32.xlu1 %v2689_v37, %s7240_s29  ;;  %v9402_v51 = vpack.c.bf16 %v4020_v48, %v4019_v30  ;;  %v5573_v37 = vld [vmem:[%s7293_s26 + $0x3bc] sm:$0xff]  ;;  %v2399_v48 = vld [vmem:[%s7293_s26 + $0x232] sm:$0xff] }
 0x32d   : > { %7081 = vmatmul.mubr.msk.bf16.gmra.mrb[40].mxu1 %vm1423_vm6, %v3144_v56  ;;  %v5816_v56 = vld [vmem:[%s7293_s26 + $0x3d5] sm:$0xff] }
 0x32e   : > { %v9393_v41 = vpop.permute.xlu1 %4372  ;;  %v9395_v12 = vpop.permute.xlu0 %4128  ;;  %3333 = vmatprep.mubr.bf16.mxu1 %v12023_v33  ;;  %12098 = vst [vmem:[#allocation49_spill] sm:$0xff] %v9402_v51  ;;  %v5844_v28 = vpack.c.bf16 %v5817_v0, %v5816_v56  ;;  %v2141_v5 = vld [vmem:[%s7293_s26 + $0x219] sm:$0xff] }
 0x32f   : > { %v5867_v60 = vld [vmem:[%s7293_s26 + $0x3d6] sm:$0xff] }
 0x330   : > { %3085 = vrot.lane.b32.xlu0 %v2984_v23, %s7242_s14  ;;  %4087 = vrot.lane.b32.xlu1 %v3996_v3, %s7237_s27  ;;  %v2400_v23 = vld [vmem:[%s7293_s26 + $0x23a] sm:$0xff] }
 0x331   : > { %v9437_v7 = vpack.c.bf16 %v2400_v23, %v2399_v48  ;;  %v3970_v48 = vld [vmem:[%s7293_s26 + $0x2b3] sm:$0xff] }
 0x332   : > { %v9408_v27 = vpop.permute.xlu1 %5630  ;;  %v9410_v31 = vpop.permute.xlu0 %4423 }
 0x333   : > { %v2657_v21 = vsel %vm545_vm0, %v9437_v7, %v9256_v29  ;;  %v2952_v29 = vsel %vm545_vm0, %v8951_v52, %v9268_v22 }
 0x334   : > { %4138 = vrot.lane.b32.xlu0 %v9402_v51, %s7238_s28  ;;  %4382 = vrot.lane.b32.xlu1 %v4291_v2, %s7237_s27  ;;  %v9429_v2 = vpack.c.bf16 %v5573_v37, %v5572_v4  ;;  %v2691_v23 = vsel %vm597_vm1, %v2657_v21, %v9270_v57  ;;  %v4022_v57 = vld [vmem:[%s7293_s26 + $0x2bc] sm:$0xff]  ;;  %v2986_v52 = vsel %vm597_vm1, %v2952_v29, %v9285_v46  ;;  %v5269_v51 = vld [vmem:[%s7293_s26 + $0x352] sm:$0xff] }
 0x335   : > { %v4317_v21 = vld [vmem:[%s7293_s26 + $0x2de] sm:$0xff] }
 0x336   : > { %v9419_v3 = vpop.permute.xlu1 %5925  ;;  %v9421_v30 = vpop.permute.xlu0 %5681  ;;  %12099 = vst [vmem:[#allocation50_spill] sm:$0xff] %v9429_v2 }
 0x338   : > { %4433 = vrot.lane.b32.xlu0 %v4342_v10, %s7238_s28  ;;  %5640 = vrot.lane.b32.xlu1 %v5549_v45, %s7237_s27  ;;  %v2158_v10 = vpack.c.bf16 %v2141_v5, %v2140_v36  ;;  %v5895_v45 = vpack.c.bf16 %v5868_v62, %v5867_v60  ;;  %v3971_v62 = vld [vmem:[%s7293_s26 + $0x2bb] sm:$0xff] }
 0x339   : > { %v3997_v36 = vpack.c.bf16 %v3971_v62, %v3970_v48  ;;  %v4021_v5 = vld [vmem:[%s7293_s26 + $0x2b4] sm:$0xff] }
 0x33a   : > { %v9435_v43 = vpop.permute.xlu1 %5976  ;;  %v2250_v11 = vpop.permute.xlu0 %2249  ;;  %v4265_v60 = vld [vmem:[%s7293_s26 + $0x2d5] sm:$0xff] }
 0x33b   : > { %v2347_v4 = vsel %vm545_vm0, %v2102_v40, %v2250_v11 }
 0x33c   : > { %5691 = vrot.lane.b32.xlu0 %v9429_v2, %s7238_s28  ;;  %5935 = vrot.lane.b32.xlu1 %v5844_v28, %s7237_s27 }
 0x33e   : > { %v3027_v37 = vpop.permute.xlu1 %3026  ;;  %v2301_v56 = vpop.permute.xlu0 %2300 }
 0x33f   : > { %v2386_v0 = vsel %vm597_vm1, %v2347_v4, %v2301_v56  ;;  %v3662_v56 = vld [vmem:[%s7293_s26 + $0x229] sm:$0xff] }
 0x340   : > { %2259 = vrot.lane.b32.xlu0 %v2158_v10, %s7237_s27  ;;  %5986 = vrot.lane.b32.xlu1 %v5895_v45, %s7238_s28  ;;  %v3112_v11 = vsel %vm1324_vm4, %v2386_v0, %v3027_v37  ;;  %v4266_v10 = vld [vmem:[%s7293_s26 + $0x2dd] sm:$0xff] }
 0x341   : > { %v4292_v22 = vpack.c.bf16 %v4266_v10, %v4265_v60  ;;  %v3661_v37 = vld [vmem:[%s7293_s26 + $0x221] sm:$0xff]  ;;  %v4316_v0 = vld [vmem:[%s7293_s26 + $0x2d6] sm:$0xff] }
 0x342   : > { %v9451_v18 = vpop.permute.xlu1 %4079  ;;  %v3078_v40 = vpop.permute.xlu0 %3077  ;;  %v3695_v46 = vpack.c.bf16 %v3662_v56, %v3661_v37  ;;  %v2082_v60 = vld [vmem:[%s7293_s26 + $0x1d8] sm:$0xff]  ;;  %v5574_v37 = vld [vmem:[%s7293_s26 + $0x3c4] sm:$0xff]  ;;  %v5575_v56 = vld [vmem:[%s7293_s26 + $0x3cc] sm:$0xff] }
 0x343   : > { %v3146_v28 = vsel %vm1359_vm5, %v3112_v11, %v3078_v40  ;;  %v4343_v11 = vpack.c.bf16 %v4317_v21, %v4316_v0  ;;  %v5523_v40 = vld [vmem:[%s7293_s26 + $0x3c3] sm:$0xff] }
 0x344   : > { %2310 = vrot.lane.b32.xlu0 %v9287_v20, %s7238_s28  ;;  %3036 = vrot.lane.b32.xlu1 %v2691_v23, %s7240_s29  ;;  %v9477_v20 = vpack.c.bf16 %v4022_v57, %v4021_v5  ;;  %v5524_v23 = vld [vmem:[%s7293_s26 + $0x3cb] sm:$0xff] }
 0x345   : > { %7082 = vmatmul.mubr.msk.bf16.gmra.mrb[44].mxu1 %vm1423_vm6, %v3146_v28  ;;  %v3717_v5 = vld [vmem:[%s7293_s26 + $0x24a] sm:$0xff]  ;;  %v5550_v10 = vpack.c.bf16 %v5524_v23, %v5523_v40  ;;  %v5215_v23 = vld [vmem:[%s7293_s26 + $0x339] sm:$0xff] }
 0x346   : > { %v9468_v45 = vpop.permute.xlu1 %4374  ;;  %v9470_v4 = vpop.permute.xlu0 %4130  ;;  %3343 = vmatprep.mubr.bf16.mxu1 %v12023_v33  ;;  %12100 = vst [vmem:[#allocation51_spill] sm:$0xff] %v9477_v20  ;;  %v2081_v57 = vld [vmem:[%s7293_s26 + $0x1d0] sm:$0xff] }
 0x347   : > { %v5214_v40 = vld [vmem:[%s7293_s26 + $0x331] sm:$0xff] }
 0x348   : > { %3087 = vrot.lane.b32.xlu0 %v2986_v52, %s7242_s14  ;;  %4089 = vrot.lane.b32.xlu1 %v3997_v36, %s7237_s27  ;;  %v3716_v36 = vld [vmem:[%s7293_s26 + $0x242] sm:$0xff] }
 0x349   : > { %v5818_v52 = vld [vmem:[%s7293_s26 + $0x3e5] sm:$0xff]  ;;  %v9508_v2 = vpack.c.bf16 %v3717_v5, %v3716_v36 }
 0x34a   : > { %v9483_v48 = vpop.permute.xlu1 %5632  ;;  %v9485_v62 = vpop.permute.xlu0 %4425 }
 0x34b   : > { %v4162_v36 = vsel %vm545_vm0, %v9508_v2, %v9301_v6 }
 0x34c   : > { %4140 = vrot.lane.b32.xlu0 %v9477_v20, %s7238_s28  ;;  %4384 = vrot.lane.b32.xlu1 %v4292_v22, %s7237_s27  ;;  %v5819_v22 = vld [vmem:[%s7293_s26 + $0x3ed] sm:$0xff]  ;;  %v2103_v20 = vpack.c.bf16 %v2082_v60, %v2081_v57  ;;  %v5248_v60 = vpack.c.bf16 %v5215_v23, %v5214_v40 }
 0x34d   : > { %v5870_v57 = vld [vmem:[%s7293_s26 + $0x3ee] sm:$0xff] }
 0x34e   : > { %v9492_v28 = vpop.permute.xlu1 %5927  ;;  %v9494_v29 = vpop.permute.xlu0 %5683 }
 0x350   : > { %3780 = vrot.lane.b32.xlu0 %v3695_v46, %s7237_s27  ;;  %4435 = vrot.lane.b32.xlu1 %v4343_v11, %s7238_s28  ;;  %v5845_v46 = vpack.c.bf16 %v5819_v22, %v5818_v52  ;;  %v9513_v11 = vpack.c.bf16 %v5575_v56, %v5574_v37  ;;  %v9530_v22 = vpack.c.bf16 %v5270_v53, %v5269_v51 }
 0x351   : > { %v4457_v53 = vsel %vm545_vm0, %v9043_v38, %v9318_v35 }
 0x352   : > { %v9506_v0 = vpop.permute.xlu1 %5978  ;;  %v2252_v21 = vpop.permute.xlu0 %2251  ;;  %12101 = vst [vmem:[#allocation52_spill] sm:$0xff] %v9513_v11  ;;  %v4507_v38 = vsel %vm597_vm1, %v4457_v53, %v9335_v14 }
 0x353   : > { %v2350_v44 = vsel %vm545_vm0, %v2103_v20, %v2252_v21 }
 0x354   : > { %5642 = vrot.lane.b32.xlu0 %v5550_v10, %s7237_s27  ;;  %3831 = vrot.lane.b32.xlu1 %v9362_v17, %s7238_s28 }
 0x356   : > { %v3029_v9 = vpop.permute.xlu1 %3028  ;;  %v2303_v16 = vpop.permute.xlu0 %2302 }
 0x357   : > { %v2388_v5 = vsel %vm597_vm1, %v2350_v44, %v2303_v16  ;;  %v5896_v44 = vpack.c.bf16 %v5870_v57, %v5869_v58  ;;  %v4212_v16 = vsel %vm597_vm1, %v4162_v36, %v9320_v25  ;;  %v5265_v25 = vld [vmem:[%s7293_s26 + $0x332] sm:$0xff]  ;;  %v5266_v58 = vld [vmem:[%s7293_s26 + $0x33a] sm:$0xff] }
 0x358   : > { %v3225_v17 = vpop.f32.mrb[0].mxu1  ;;  %5937 = vrot.lane.b32.xlu1 %v5845_v46, %s7237_s27  ;;  %5693 = vrot.lane.b32.xlu0 %v9513_v11, %s7238_s28  ;;  %v3114_v40 = vsel %vm1324_vm4, %v2388_v5, %v3029_v9 }
 0x359   : > { %v3226_v10 = vadd.f32 %v3225_v17, %v8702_v34  ;;  %v3227_v52 = vpop.f32.mrb[1].mxu1 }
 0x35a   : > { %v3228_v20 = vadd.f32 %v3227_v52, %v8708_v42  ;;  %v3229_v37 = vpop.f32.mrb[2].mxu1  ;;  %v9533_v6 = vpop.permute.xlu1 %4081 }
 0x35b   : > { %v3394_v56 = vmax.f32 %v3226_v10, 0.0  ;;  %v3230_v21 = vadd.f32 %v3229_v37, %v8702_v34  ;;  %v3231_v46 = vpop.f32.mrb[3].mxu1  ;;  %v3080_v23 = vpop.permute.xlu0 %3079  ;;  %v5299_v10 = vpack.c.bf16 %v5266_v58, %v5265_v25  ;;  %v4268_v25 = vld [vmem:[%s7293_s26 + $0x2ed] sm:$0xff] }
 0x35c   : > { %v3395_v51 = vmax.f32 %v3228_v20, 0.0  ;;  %v3232_v17 = vadd.f32 %v3231_v46, %v8708_v42  ;;  %v3148_v52 = vsel %vm1359_vm5, %v3114_v40, %v3080_v23  ;;  %5333 = vrot.lane.b32.xlu1 %v5248_v60, %s7237_s27  ;;  %4557 = vrot.lane.b32.xlu0 %v4212_v16, %s7240_s29  ;;  %v5715_v20 = vsel %vm545_vm0, %v9530_v22, %v9333_v13 }
 0x35d   : > { %v3396_v57 = vmax.f32 %v3230_v21, 0.0  ;;  %7083 = vmatmul.mubr.msk.bf16.gmra.mrb[48].mxu1 %vm1423_vm6, %v3148_v52  ;;  %v3462_v35 = vmul.f32 %v3394_v56, %v8297_v63  ;;  %v3972_v56 = vld [vmem:[%s7293_s26 + $0x2c3] sm:$0xff]  ;;  %v3973_v21 = vld [vmem:[%s7293_s26 + $0x2cb] sm:$0xff]  ;;  %v5765_v13 = vsel %vm597_vm1, %v5715_v20, %v9346_v54 }
 0x35e   : > { %v3397_v9 = vmax.f32 %v3232_v17, 0.0  ;;  %v9549_v36 = vpop.permute.xlu1 %4376  ;;  %3353 = vmatprep.mubr.bf16.mxu1 %v12023_v33  ;;  %v3463_v37 = vmul.f32 %v3395_v51, %v8297_v63  ;;  %v3998_v53 = vpack.c.bf16 %v3973_v21, %v3972_v56  ;;  %v4023_v51 = vld [vmem:[%s7293_s26 + $0x2c4] sm:$0xff]  ;;  %v4024_v17 = vld [vmem:[%s7293_s26 + $0x2cc] sm:$0xff]  ;;  %v5526_v63 = vld [vmem:[%s7293_s26 + $0x3db] sm:$0xff] }
 0x35f   : > { %v3464_v5 = vmul.f32 %v3396_v57, %v8295_v47  ;;  %v9556_v60 = vpop.permute.xlu0 %4132  ;;  %v4267_v52 = vld [vmem:[%s7293_s26 + $0x2e5] sm:$0xff] }
 0x360   : > { %v3465_v16 = vmul.f32 %v3397_v9, %v8295_v47  ;;  %5988 = vrot.lane.b32.xlu0 %v5896_v44, %s7238_s28  ;;  %4608 = vrot.lane.b32.xlu1 %v4507_v38, %s7242_s14  ;;  %v6010_v44 = vsel %vm545_vm0, %v9080_v1, %v9344_v59  ;;  %v2083_v1 = vld [vmem:[%s7293_s26 + $0x1e0] sm:$0xff]  ;;  %v2084_v9 = vld [vmem:[%s7293_s26 + $0x1e8] sm:$0xff]  ;;  %v9592_v38 = vpack.c.bf16 %v4024_v17, %v4023_v51 }
 0x361   : > { %v3530_v14 = vadd.f32 %v3464_v5, %v3462_v35  ;;  %v6060_v58 = vsel %vm597_vm1, %v6010_v44, %v9360_v24  ;;  %v4293_v35 = vpack.c.bf16 %v4268_v25, %v4267_v52  ;;  %v4318_v5 = vld [vmem:[%s7293_s26 + $0x2e6] sm:$0xff]  ;;  %v3664_v24 = vld [vmem:[%s7293_s26 + $0x239] sm:$0xff]  ;;  %v2104_v17 = vpack.c.bf16 %v2084_v9, %v2083_v1 }
 0x362   : > { %v3569_v46 = vadd.f32 %v3465_v16, %v3463_v37  ;;  %v9567_v40 = vpop.permute.xlu1 %5634  ;;  %12102 = vst [vmem:[#allocation53_spill] sm:$0xff] %v9592_v38  ;;  %v4319_v37 = vld [vmem:[%s7293_s26 + $0x2ee] sm:$0xff] }
 0x363   : > { %v9571_v23 = vpop.permute.xlu0 %4427  ;;  %v3663_v16 = vld [vmem:[%s7293_s26 + $0x231] sm:$0xff] }
 0x364   : > { %5384 = vrot.lane.b32.xlu0 %v5299_v10, %s7238_s28  ;;  %6110 = vrot.lane.b32.xlu1 %v5765_v13, %s7240_s29  ;;  %v5525_v47 = vld [vmem:[%s7293_s26 + $0x3d3] sm:$0xff] }
 0x366   : > { %v9582_v54 = vpop.permute.xlu1 %5929 }
 0x367   : > { %v9586_v57 = vpop.permute.xlu0 %5685 }
 0x368   : > { %v3235_v59 = vpop.f32.mrb[4].mxu1  ;;  %6161 = vrot.lane.b32.xlu0 %v6060_v58, %s7242_s14  ;;  %4091 = vrot.lane.b32.xlu1 %v3998_v53, %s7237_s27 }
 0x369   : > { %v3236_v10 = vadd.f32 %v3235_v59, %v8702_v34  ;;  %v3237_v20 = vpop.f32.mrb[5].mxu1  ;;  %v4344_v59 = vpack.c.bf16 %v4319_v37, %v4318_v5 }
 0x36a   : > { %v3238_v56 = vadd.f32 %v3237_v20, %v8708_v42  ;;  %v3239_v21 = vpop.f32.mrb[6].mxu1  ;;  %v9600_v13 = vpop.permute.xlu1 %5980  ;;  %v3696_v20 = vpack.c.bf16 %v3664_v24, %v3663_v16  ;;  %v5551_v16 = vpack.c.bf16 %v5526_v63, %v5525_v47  ;;  %v3719_v24 = vld [vmem:[%s7293_s26 + $0x25a] sm:$0xff] }
 0x36b   : > { %v3398_v44 = vmax.f32 %v3236_v10, 0.0  ;;  %v3240_v53 = vadd.f32 %v3239_v21, %v8702_v34  ;;  %v3241_v51 = vpop.f32.mrb[7].mxu1  ;;  %v2254_v52 = vpop.permute.xlu0 %2253 }
 0x36c   : > { %v3399_v25 = vmax.f32 %v3238_v56, 0.0  ;;  %v3242_v58 = vadd.f32 %v3241_v51, %v8708_v42  ;;  %4142 = vrot.lane.b32.xlu0 %v9592_v38, %s7238_s28  ;;  %4386 = vrot.lane.b32.xlu1 %v4293_v35, %s7237_s27  ;;  %v3718_v51 = vld [vmem:[%s7293_s26 + $0x252] sm:$0xff]  ;;  %v2353_v5 = vsel %vm545_vm0, %v2104_v17, %v2254_v52 }
 0x36d   : > { %v3466_v10 = vmul.f32 %v3398_v44, %v8301_v15  ;;  %v3400_v21 = vmax.f32 %v3240_v53, 0.0  ;;  %v9625_v47 = vpack.c.bf16 %v3719_v24, %v3718_v51  ;;  %v5271_v51 = vld [vmem:[%s7293_s26 + $0x362] sm:$0xff] }
 0x36e   : > { %v3467_v1 = vmul.f32 %v3399_v25, %v8301_v15  ;;  %v3401_v9 = vmax.f32 %v3242_v58, 0.0  ;;  %v3031_v56 = vpop.permute.xlu1 %3030  ;;  %v5820_v25 = vld [vmem:[%s7293_s26 + $0x3f5] sm:$0xff] }
 0x36f   : > { %v3531_v38 = vadd.f32 %v3530_v14, %v3466_v10  ;;  %v3468_v35 = vmul.f32 %v3400_v21, %v8305_v55  ;;  %v2305_v37 = vpop.permute.xlu0 %2304  ;;  %v5821_v14 = vld [vmem:[%s7293_s26 + $0x3fd] sm:$0xff]  ;;  %v5576_v10 = vld [vmem:[%s7293_s26 + $0x3d4] sm:$0xff] }
 0x370   : > { %v3570_v11 = vadd.f32 %v3569_v46, %v3467_v1  ;;  %v3469_v44 = vmul.f32 %v3401_v9, %v8305_v55  ;;  %v2390_v53 = vsel %vm597_vm1, %v2353_v5, %v2305_v37  ;;  %4437 = vrot.lane.b32.xlu1 %v4344_v59, %s7238_s28  ;;  %3782 = vrot.lane.b32.xlu0 %v3696_v20, %s7237_s27  ;;  %v5577_v21 = vld [vmem:[%s7293_s26 + $0x3dc] sm:$0xff]  ;;  %v5217_v1 = vld [vmem:[%s7293_s26 + $0x349] sm:$0xff] }
 0x371   : > { %v3532_v58 = vadd.f32 %v3531_v38, %v3468_v35  ;;  %v3116_v63 = vsel %vm1324_vm4, %v2390_v53, %v3031_v56  ;;  %v5846_v38 = vpack.c.bf16 %v5821_v14, %v5820_v25  ;;  %v9632_v20 = vpack.c.bf16 %v5577_v21, %v5576_v10  ;;  %v5272_v35 = vld [vmem:[%s7293_s26 + $0x36a] sm:$0xff]  ;;  %v5872_v53 = vld [vmem:[%s7293_s26 + $0x3fe] sm:$0xff] }
 0x372   : > { %v3571_v17 = vadd.f32 %v3570_v11, %v3469_v44  ;;  %v9623_v52 = vpop.permute.xlu1 %4083  ;;  %v5216_v11 = vld [vmem:[%s7293_s26 + $0x341] sm:$0xff]  ;;  %v5871_v44 = vld [vmem:[%s7293_s26 + $0x3f6] sm:$0xff]  ;;  %v9658_v21 = vpack.c.bf16 %v5272_v35, %v5271_v51  ;;  %v5268_v51 = vld [vmem:[%s7293_s26 + $0x34a] sm:$0xff] }
 0x373   : > { %v3082_v46 = vpop.permute.xlu0 %3081  ;;  %12103 = vst [vmem:[#allocation54_spill] sm:$0xff] %v9632_v20  ;;  %v5249_v37 = vpack.c.bf16 %v5217_v1, %v5216_v11  ;;  %v4460_v11 = vsel %vm545_vm0, %v9155_v19, %v9393_v41 }
 0x374   : > { %v3150_v59 = vsel %vm1359_vm5, %v3116_v63, %v3082_v46  ;;  %3833 = vrot.lane.b32.xlu1 %v9437_v7, %s7238_s28  ;;  %5644 = vrot.lane.b32.xlu0 %v5551_v16, %s7237_s27  ;;  %v4165_v7 = vsel %vm545_vm0, %v9625_v47, %v9376_v61  ;;  %v4509_v41 = vsel %vm597_vm1, %v4460_v11, %v9410_v31  ;;  %v2085_v31 = vld [vmem:[%s7293_s26 + $0x1f0] sm:$0xff] }
 0x375   : > { %7084 = vmatmul.mubr.msk.bf16.gmra.mrb[52].mxu1 %vm1423_vm6, %v3150_v59  ;;  %v4214_v10 = vsel %vm597_vm1, %v4165_v7, %v9395_v12  ;;  %v5897_v12 = vpack.c.bf16 %v5872_v53, %v5871_v44  ;;  %v5267_v7 = vld [vmem:[%s7293_s26 + $0x342] sm:$0xff]  ;;  %v3974_v11 = vld [vmem:[%s7293_s26 + $0x2d3] sm:$0xff] }
 0x376   : > { %v9637_v9 = vpop.permute.xlu1 %4378  ;;  %3363 = vmatprep.mubr.bf16.mxu1 %v12023_v33 }
 0x377   : > { %v9640_v56 = vpop.permute.xlu0 %4134 }
 0x378   : > { %v3245_v5 = vpop.f32.mrb[8].mxu1  ;;  %5939 = vrot.lane.b32.xlu1 %v5846_v38, %s7237_s27  ;;  %5695 = vrot.lane.b32.xlu0 %v9632_v20, %s7238_s28  ;;  %v12108_v20 = vld [vmem:[#allocation17_spill] sm:$0xff] }
 0x379   : > { %v3246_v16 = vadd.f32 %v3245_v5, %v8702_v34  ;;  %v3247_v24 = vpop.f32.mrb[9].mxu1 }
 0x37a   : > { %v3248_v25 = vadd.f32 %v3247_v24, %v8708_v42  ;;  %v3249_v14 = vpop.f32.mrb[10].mxu1  ;;  %v9654_v61 = vpop.permute.xlu1 %5636 }
 0x37b   : > { %v3402_v63 = vmax.f32 %v3246_v16, 0.0  ;;  %v3250_v46 = vadd.f32 %v3249_v14, %v8702_v34  ;;  %v3251_v59 = vpop.f32.mrb[11].mxu1  ;;  %v9661_v38 = vpop.permute.xlu0 %4429 }
 0x37c   : > { %v3403_v1 = vmax.f32 %v3248_v25, 0.0  ;;  %v3252_v5 = vadd.f32 %v3251_v59, %v8708_v42  ;;  %5335 = vrot.lane.b32.xlu1 %v5249_v37, %s7237_s27  ;;  %4559 = vrot.lane.b32.xlu0 %v4214_v10, %s7240_s29  ;;  %v5300_v25 = vpack.c.bf16 %v5268_v51, %v5267_v7  ;;  %v5718_v10 = vsel %vm545_vm0, %v9658_v21, %v9408_v27 }
 0x37d   : > { %v3470_v35 = vmul.f32 %v3402_v63, %v8315_v8  ;;  %v3404_v16 = vmax.f32 %v3250_v46, 0.0  ;;  %v5767_v27 = vsel %vm597_vm1, %v5718_v10, %v9421_v30 }
 0x37e   : > { %v3471_v24 = vmul.f32 %v3403_v1, %v8315_v8  ;;  %v3405_v14 = vmax.f32 %v3252_v5, 0.0  ;;  %v9673_v19 = vpop.permute.xlu1 %5931  ;;  %v3975_v1 = vld [vmem:[%s7293_s26 + $0x2db] sm:$0xff] }
 0x37f   : > { %v3533_v37 = vadd.f32 %v3532_v58, %v3470_v35  ;;  %v3472_v44 = vmul.f32 %v3404_v16, %v8317_v39  ;;  %v9678_v53 = vpop.permute.xlu0 %5687  ;;  %v2086_v58 = vld [vmem:[%s7293_s26 + $0x1f8] sm:$0xff]  ;;  %v3999_v35 = vpack.c.bf16 %v3975_v1, %v3974_v11  ;;  %v3665_v1 = vld [vmem:[%s7293_s26 + $0x241] sm:$0xff] }
 0x380   : > { %v3572_v63 = vadd.f32 %v3571_v17, %v3471_v24  ;;  %v3473_v46 = vmul.f32 %v3405_v14, %v8317_v39  ;;  %5990 = vrot.lane.b32.xlu0 %v5897_v12, %s7238_s28  ;;  %4610 = vrot.lane.b32.xlu1 %v4509_v41, %s7242_s14  ;;  %v2105_v17 = vpack.c.bf16 %v2086_v58, %v2085_v31  ;;  %v4269_v16 = vld [vmem:[%s7293_s26 + $0x2f5] sm:$0xff]  ;;  %v4270_v24 = vld [vmem:[%s7293_s26 + $0x2fd] sm:$0xff] }
 0x381   : > { %v3534_v59 = vadd.f32 %v3533_v37, %v3472_v44  ;;  %v6013_v12 = vsel %vm545_vm0, %v9184_v32, %v9419_v3  ;;  %v4025_v14 = vld [vmem:[%s7293_s26 + $0x2d4] sm:$0xff]  ;;  %v4026_v41 = vld [vmem:[%s7293_s26 + $0x2dc] sm:$0xff]  ;;  %v4294_v10 = vpack.c.bf16 %v4270_v24, %v4269_v16 }
 0x382   : > { %v3573_v5 = vadd.f32 %v3572_v63, %v3473_v46  ;;  %v9690_v7 = vpop.permute.xlu1 %5982  ;;  %v6062_v37 = vsel %vm597_vm1, %v6013_v12, %v9435_v43  ;;  %v9709_v63 = vpack.c.bf16 %v4026_v41, %v4025_v14  ;;  %v4320_v46 = vld [vmem:[%s7293_s26 + $0x2f6] sm:$0xff]  ;;  %v4321_v31 = vld [vmem:[%s7293_s26 + $0x2fe] sm:$0xff]  ;;  %v3666_v43 = vld [vmem:[%s7293_s26 + $0x249] sm:$0xff] }
 0x383   : > { %v2256_v51 = vpop.permute.xlu0 %2255  ;;  %v4345_v41 = vpack.c.bf16 %v4321_v31, %v4320_v46 }
 0x384   : > { %5386 = vrot.lane.b32.xlu0 %v5300_v25, %s7238_s28  ;;  %6112 = vrot.lane.b32.xlu1 %v5767_v27, %s7240_s29  ;;  %v2356_v44 = vsel %vm545_vm0, %v2105_v17, %v2256_v51  ;;  %12104 = vst [vmem:[#allocation55_spill] sm:$0xff] %v9709_v63 }
 0x386   : > { %v3033_v30 = vpop.permute.xlu1 %3032 }
 0x387   : > { %v2307_v32 = vpop.permute.xlu0 %2306 }
 0x388   : > { %v2392_v3 = vsel %vm597_vm1, %v2356_v44, %v2307_v32  ;;  %v3255_v25 = vpop.f32.mrb[12].mxu1  ;;  %4093 = vrot.lane.b32.xlu1 %v3999_v35, %s7237_s27  ;;  %6163 = vrot.lane.b32.xlu0 %v6062_v37, %s7242_s14 }
 0x389   : > { %v3256_v58 = vadd.f32 %v3255_v25, %v8702_v34  ;;  %v3257_v11 = vpop.f32.mrb[13].mxu1  ;;  %v3118_v24 = vsel %vm1324_vm4, %v2392_v3, %v3033_v30  ;;  %v3697_v25 = vpack.c.bf16 %v3666_v43, %v3665_v1  ;;  %v5527_v30 = vld [vmem:[%s7293_s26 + $0x3e3] sm:$0xff]  ;;  %v5528_v3 = vld [vmem:[%s7293_s26 + $0x3eb] sm:$0xff] }
 0x38a   : > { %v3258_v27 = vadd.f32 %v3257_v11, %v8708_v42  ;;  %v3259_v17 = vpop.f32.mrb[14].mxu1  ;;  %v9717_v51 = vpop.permute.xlu1 %4085  ;;  %v12106_v43 = vld [vmem:[#allocation6_spill] sm:$0xff] }
 0x38b   : > { %v3406_v12 = vmax.f32 %v3256_v58, 0.0  ;;  %v3260_v35 = vadd.f32 %v3259_v17, %v8702_v34  ;;  %v3261_v16 = vpop.f32.mrb[15].mxu1  ;;  %v3084_v14 = vpop.permute.xlu0 %3083  ;;  %v12105_v58 = vld [vmem:[#allocation18_spill] sm:$0xff] }
 0x38c   : > { %v3407_v37 = vmax.f32 %v3258_v27, 0.0  ;;  %v3262_v44 = vadd.f32 %v3261_v16, %v8708_v42  ;;  %v3152_v32 = vsel %vm1359_vm5, %v3118_v24, %v3084_v14  ;;  %4388 = vrot.lane.b32.xlu1 %v4294_v10, %s7237_s27  ;;  %4144 = vrot.lane.b32.xlu0 %v9709_v63, %s7238_s28  ;;  %v3720_v10 = vld [vmem:[%s7293_s26 + $0x262] sm:$0xff]  ;;  %v3721_v16 = vld [vmem:[%s7293_s26 + $0x26a] sm:$0xff] }
 0x38d   : > { %v3474_v11 = vmul.f32 %v3406_v12, %v12105_v58  ;;  %v3408_v17 = vmax.f32 %v3260_v35, 0.0  ;;  %7085 = vmatmul.mubr.msk.bf16.gmra.mrb[56].mxu1 %vm1423_vm6, %v3152_v32 }
 0x38e   : > { %v3475_v46 = vmul.f32 %v3407_v37, %v12105_v58  ;;  %v3409_v31 = vmax.f32 %v3262_v44, 0.0  ;;  %v9731_v27 = vpop.permute.xlu1 %4380  ;;  %3373 = vmatprep.mubr.bf16.mxu1 %v12023_v33  ;;  %v5552_v37 = vpack.c.bf16 %v5528_v3, %v5527_v30  ;;  %v5822_v44 = vld [vmem:[%s7293_s26 + $0x405] sm:$0xff]  ;;  %v5218_v30 = vld [vmem:[%s7293_s26 + $0x351] sm:$0xff]  ;;  %v5219_v3 = vld [vmem:[%s7293_s26 + $0x359] sm:$0xff] }
 0x38f   : > { %v3535_v1 = vadd.f32 %v3534_v59, %v3474_v11  ;;  %v3476_v12 = vmul.f32 %v3408_v17, %v12106_v43  ;;  %v9736_v35 = vpop.permute.xlu0 %4136  ;;  %v5823_v59 = vld [vmem:[%s7293_s26 + $0x40d] sm:$0xff]  ;;  %v5578_v11 = vld [vmem:[%s7293_s26 + $0x3e4] sm:$0xff] }
 0x390   : > { %v3574_v24 = vadd.f32 %v3573_v5, %v3475_v46  ;;  %v3477_v14 = vmul.f32 %v3409_v31, %v12106_v43  ;;  %4439 = vrot.lane.b32.xlu1 %v4345_v41, %s7238_s28  ;;  %3784 = vrot.lane.b32.xlu0 %v3697_v25, %s7237_s27  ;;  %v5579_v17 = vld [vmem:[%s7293_s26 + $0x3ec] sm:$0xff]  ;;  %v9750_v46 = vpack.c.bf16 %v3721_v16, %v3720_v10  ;;  %v2087_v16 = vld [vmem:[%s7293_s26 + $0x200] sm:$0xff] }
 0x391   : > { %v3536_v32 = vadd.f32 %v3535_v1, %v3476_v12  ;;  %v5847_v41 = vpack.c.bf16 %v5823_v59, %v5822_v44  ;;  %v9755_v25 = vpack.c.bf16 %v5579_v17, %v5578_v11  ;;  %v5273_v1 = vld [vmem:[%s7293_s26 + $0x372] sm:$0xff]  ;;  %v5274_v12 = vld [vmem:[%s7293_s26 + $0x37a] sm:$0xff]  ;;  %v5873_v11 = vld [vmem:[%s7293_s26 + $0x406] sm:$0xff] }
 0x392   : > { %v3575_v58 = vadd.f32 %v3574_v24, %v3477_v14  ;;  %v9746_v39 = vpop.permute.xlu1 %5638  ;;  %v4168_v10 = vsel %vm545_vm0, %v9750_v46, %v9451_v18  ;;  %v2088_v14 = vld [vmem:[%s7293_s26 + $0x208] sm:$0xff]  ;;  %v9776_v43 = vpack.c.bf16 %v5274_v12, %v5273_v1 }
 0x393   : > { %v9748_v5 = vpop.permute.xlu0 %4431  ;;  %12107 = vst [vmem:[#allocation56_spill] sm:$0xff] %v9755_v25  ;;  %v5874_v17 = vld [vmem:[%s7293_s26 + $0x40e] sm:$0xff] }
 0x394   : > { %3835 = vrot.lane.b32.xlu1 %v9508_v2, %s7238_s28  ;;  %5646 = vrot.lane.b32.xlu0 %v5552_v37, %s7237_s27  ;;  %v5250_v37 = vpack.c.bf16 %v5219_v3, %v5218_v30  ;;  %v2106_v30 = vpack.c.bf16 %v2088_v14, %v2087_v16  ;;  %v12109_v14 = vld [vmem:[#allocation27_spill] sm:$0xff] }
 0x396   : > { %v9759_v31 = vpop.permute.xlu1 %5933 }
 0x397   : > { %v9763_v24 = vpop.permute.xlu0 %5689 }
 0x398   : > { %v3265_v2 = vpop.f32.mrb[16].mxu1  ;;  %5941 = vrot.lane.b32.xlu1 %v5847_v41, %s7237_s27  ;;  %5697 = vrot.lane.b32.xlu0 %v9755_v25, %s7238_s28  ;;  %v4216_v41 = vsel %vm597_vm1, %v4168_v10, %v9470_v4 }
 0x399   : > { %v3266_v44 = vadd.f32 %v3265_v2, %v8702_v34  ;;  %v3267_v59 = vpop.f32.mrb[17].mxu1  ;;  %v4463_v2 = vsel %vm545_vm0, %v9250_v26, %v9468_v45 }
 0x39a   : > { %v3268_v8 = vadd.f32 %v3267_v59, %v8708_v42  ;;  %v3269_v55 = vpop.f32.mrb[18].mxu1  ;;  %v9779_v18 = vpop.permute.xlu1 %5984  ;;  %v5898_v59 = vpack.c.bf16 %v5874_v17, %v5873_v11  ;;  %v4511_v45 = vsel %vm597_vm1, %v4463_v2, %v9485_v62  ;;  %v3976_v62 = vld [vmem:[%s7293_s26 + $0x2e3] sm:$0xff] }
 0x39b   : > { %v3410_v15 = vmax.f32 %v3266_v44, 0.0  ;;  %v3270_v25 = vadd.f32 %v3269_v55, %v8702_v34  ;;  %v3271_v63 = vpop.f32.mrb[19].mxu1  ;;  %v2258_v3 = vpop.permute.xlu0 %2257  ;;  %v5721_v55 = vsel %vm545_vm0, %v9776_v43, %v9483_v48 }
 0x39c   : > { %v3411_v1 = vmax.f32 %v3268_v8, 0.0  ;;  %v3272_v12 = vadd.f32 %v3271_v63, %v8708_v42  ;;  %5337 = vrot.lane.b32.xlu1 %v5250_v37, %s7237_s27  ;;  %4561 = vrot.lane.b32.xlu0 %v4216_v41, %s7240_s29  ;;  %v2359_v44 = vsel %vm545_vm0, %v2106_v30, %v2258_v3 }
 0x39d   : > { %v3478_v4 = vmul.f32 %v3410_v15, %v12108_v20  ;;  %v3412_v10 = vmax.f32 %v3270_v25, 0.0 }
 0x39e   : > { %v3479_v16 = vmul.f32 %v3411_v1, %v12108_v20  ;;  %v3413_v26 = vmax.f32 %v3272_v12, 0.0  ;;  %v3035_v8 = vpop.permute.xlu1 %3034  ;;  %v6016_v1 = vsel %vm545_vm0, %v9279_v49, %v9492_v28 }
 0x39f   : > { %v3537_v63 = vadd.f32 %v3536_v32, %v3478_v4  ;;  %v3480_v37 = vmul.f32 %v3412_v10, %v12109_v14  ;;  %v2309_v15 = vpop.permute.xlu0 %2308  ;;  %v3977_v32 = vld [vmem:[%s7293_s26 + $0x2eb] sm:$0xff]  ;;  %v6064_v49 = vsel %vm597_vm1, %v6016_v1, %v9506_v0 }
 0x3a0   : > { %v3576_v25 = vadd.f32 %v3575_v58, %v3479_v16  ;;  %v3481_v11 = vmul.f32 %v3413_v26, %v12109_v14  ;;  %v2394_v17 = vsel %vm597_vm1, %v2359_v44, %v2309_v15  ;;  %4612 = vrot.lane.b32.xlu1 %v4511_v45, %s7242_s14  ;;  %5992 = vrot.lane.b32.xlu0 %v5898_v59, %s7238_s28  ;;  %v4271_v4 = vld [vmem:[%s7293_s26 + $0x305] sm:$0xff]  ;;  %v4323_v44 = vld [vmem:[%s7293_s26 + $0x30e] sm:$0xff] }
 0x3a1   : > { %v3538_v48 = vadd.f32 %v3537_v63, %v3480_v37  ;;  %v5769_v58 = vsel %vm597_vm1, %v5721_v55, %v9494_v29  ;;  %v3120_v30 = vsel %vm1324_vm4, %v2394_v17, %v3035_v8  ;;  %v4000_v59 = vpack.c.bf16 %v3977_v32, %v3976_v62  ;;  %v4272_v29 = vld [vmem:[%s7293_s26 + $0x30d] sm:$0xff]  ;;  %v4027_v10 = vld [vmem:[%s7293_s26 + $0x2e4] sm:$0xff] }
 0x3a2   : > { %v3577_v41 = vadd.f32 %v3576_v25, %v3481_v11  ;;  %v9805_v2 = vpop.permute.xlu1 %4087  ;;  %v4028_v55 = vld [vmem:[%s7293_s26 + $0x2ec] sm:$0xff]  ;;  %v4295_v26 = vpack.c.bf16 %v4272_v29, %v4271_v4  ;;  %v3668_v25 = vld [vmem:[%s7293_s26 + $0x259] sm:$0xff] }
 0x3a3   : > { %v3086_v3 = vpop.permute.xlu0 %3085  ;;  %v9831_v8 = vpack.c.bf16 %v4028_v55, %v4027_v10  ;;  %v4322_v45 = vld [vmem:[%s7293_s26 + $0x306] sm:$0xff]  ;;  %v3667_v15 = vld [vmem:[%s7293_s26 + $0x251] sm:$0xff] }
 0x3a4   : > { %v3154_v12 = vsel %vm1359_vm5, %v3120_v30, %v3086_v3  ;;  %6114 = vrot.lane.b32.xlu1 %v5769_v58, %s7240_s29  ;;  %5388 = vrot.lane.b32.xlu0 %v9530_v22, %s7238_s28  ;;  %v12111_v4 = vld [vmem:[#allocation28_spill] sm:$0xff] }
 0x3a5   : > { %7086 = vmatmul.mubr.msk.bf16.gmra.mrb[60].mxu1 %vm1423_vm6, %v3154_v12  ;;  %12110 = vst [vmem:[#allocation57_spill] sm:$0xff] %v9831_v8  ;;  %v4346_v12 = vpack.c.bf16 %v4323_v44, %v4322_v45  ;;  %v5529_v55 = vld [vmem:[%s7293_s26 + $0x3f3] sm:$0xff] }
 0x3a6   : > { %v9822_v16 = vpop.permute.xlu1 %4382  ;;  %3383 = vmatprep.mubr.bf16.mxu1 %v12023_v33 }
 0x3a7   : > { %v9827_v28 = vpop.permute.xlu0 %4138 }
 0x3a8   : > { %v3275_v22 = vpop.f32.mrb[20].mxu1  ;;  %4095 = vrot.lane.b32.xlu1 %v4000_v59, %s7237_s27  ;;  %6165 = vrot.lane.b32.xlu0 %v6064_v49, %s7242_s14  ;;  %v3698_v59 = vpack.c.bf16 %v3668_v25, %v3667_v15  ;;  %v5530_v49 = vld [vmem:[%s7293_s26 + $0x3fb] sm:$0xff]  ;;  %v2089_v15 = vld [vmem:[%s7293_s26 + $0x210] sm:$0xff] }
 0x3a9   : > { %v3276_v63 = vadd.f32 %v3275_v22, %v8702_v34  ;;  %v3277_v37 = vpop.f32.mrb[21].mxu1 }
 0x3aa   : > { %v3278_v0 = vadd.f32 %v3277_v37, %v8708_v42  ;;  %v3279_v11 = vpop.f32.mrb[22].mxu1  ;;  %v9839_v17 = vpop.permute.xlu1 %5640 }
 0x3ab   : > { %v3414_v62 = vmax.f32 %v3276_v63, 0.0  ;;  %v3280_v32 = vadd.f32 %v3279_v11, %v8702_v34  ;;  %v3281_v58 = vpop.f32.mrb[23].mxu1  ;;  %v9842_v30 = vpop.permute.xlu0 %4433 }
 0x3ac   : > { %v3415_v3 = vmax.f32 %v3278_v0, 0.0  ;;  %v3282_v1 = vadd.f32 %v3281_v58, %v8708_v42  ;;  %4390 = vrot.lane.b32.xlu1 %v4295_v26, %s7237_s27  ;;  %4146 = vrot.lane.b32.xlu0 %v9831_v8, %s7238_s28  ;;  %v3722_v26 = vld [vmem:[%s7293_s26 + $0x272] sm:$0xff]  ;;  %v3723_v0 = vld [vmem:[%s7293_s26 + $0x27a] sm:$0xff]  ;;  %v5553_v58 = vpack.c.bf16 %v5530_v49, %v5529_v55 }
 0x3ad   : > { %v3482_v29 = vmul.f32 %v3414_v62, %v12111_v4  ;;  %v3416_v10 = vmax.f32 %v3280_v32, 0.0  ;;  %v2090_v32 = vld [vmem:[%s7293_s26 + $0x218] sm:$0xff]  ;;  %v5220_v49 = vld [vmem:[%s7293_s26 + $0x361] sm:$0xff] }
 0x3ae   : > { %v3483_v22 = vmul.f32 %v3415_v3, %v12111_v4  ;;  %v3417_v63 = vmax.f32 %v3282_v1, 0.0  ;;  %v9852_v37 = vpop.permute.xlu1 %5935  ;;  %v5824_v3 = vld [vmem:[%s7293_s26 + $0x415] sm:$0xff] }
 0x3af   : > { %v3539_v11 = vadd.f32 %v3538_v48, %v3482_v29  ;;  %v3484_v45 = vmul.f32 %v3416_v10, %v8345_v50  ;;  %v9857_v44 = vpop.permute.xlu0 %5691  ;;  %v5825_v48 = vld [vmem:[%s7293_s26 + $0x41d] sm:$0xff]  ;;  %v5580_v29 = vld [vmem:[%s7293_s26 + $0x3f4] sm:$0xff] }
 0x3b0   : > { %v3578_v25 = vadd.f32 %v3577_v41, %v3483_v22  ;;  %v3485_v62 = vmul.f32 %v3417_v63, %v8345_v50  ;;  %4441 = vrot.lane.b32.xlu1 %v4346_v12, %s7238_s28  ;;  %3786 = vrot.lane.b32.xlu0 %v3698_v59, %s7237_s27  ;;  %v5581_v10 = vld [vmem:[%s7293_s26 + $0x3fc] sm:$0xff]  ;;  %v2107_v22 = vpack.c.bf16 %v2090_v32, %v2089_v15 }
 0x3b1   : > { %v3540_v1 = vadd.f32 %v3539_v11, %v3484_v45  ;;  %v9870_v63 = vpack.c.bf16 %v3723_v0, %v3722_v26  ;;  %v5848_v59 = vpack.c.bf16 %v5825_v48, %v5824_v3  ;;  %v9875_v55 = vpack.c.bf16 %v5581_v10, %v5580_v29  ;;  %v5221_v11 = vld [vmem:[%s7293_s26 + $0x369] sm:$0xff]  ;;  %v5875_v15 = vld [vmem:[%s7293_s26 + $0x416] sm:$0xff]  ;;  %v5876_v32 = vld [vmem:[%s7293_s26 + $0x41e] sm:$0xff] }
 0x3b2   : > { %v3579_v4 = vadd.f32 %v3578_v25, %v3485_v62  ;;  %v9868_v41 = vpop.permute.xlu1 %5986  ;;  %v5275_v45 = vld [vmem:[%s7293_s26 + $0x382] sm:$0xff]  ;;  %v5276_v62 = vld [vmem:[%s7293_s26 + $0x38a] sm:$0xff] }
 0x3b3   : > { %v2260_v12 = vpop.permute.xlu0 %2259  ;;  %12112 = vst [vmem:[#allocation58_spill] sm:$0xff] %v9875_v55  ;;  %v4171_v26 = vsel %vm545_vm0, %v9870_v63, %v9533_v6  ;;  %v9892_v29 = vpack.c.bf16 %v5276_v62, %v5275_v45  ;;  %v5899_v6 = vpack.c.bf16 %v5876_v32, %v5875_v15 }
 0x3b4   : > { %3837 = vrot.lane.b32.xlu1 %v9625_v47, %s7238_s28  ;;  %5648 = vrot.lane.b32.xlu0 %v5553_v58, %s7237_s27  ;;  %v2362_v50 = vsel %vm545_vm0, %v2107_v22, %v2260_v12  ;;  %v5251_v58 = vpack.c.bf16 %v5221_v11, %v5220_v49 }
 0x3b6   : > { %v3037_v25 = vpop.permute.xlu1 %3036 }
 0x3b7   : > { %v2311_v14 = vpop.permute.xlu0 %2310 }
 0x3b8   : > { %v2396_v47 = vsel %vm597_vm1, %v2362_v50, %v2311_v14  ;;  %v3285_v0 = vpop.f32.mrb[24].mxu1  ;;  %5943 = vrot.lane.b32.xlu1 %v5848_v59, %s7237_s27  ;;  %5699 = vrot.lane.b32.xlu0 %v9875_v55, %s7238_s28  ;;  %v4218_v50 = vsel %vm597_vm1, %v4171_v26, %v9556_v60  ;;  %v12114_v60 = vld [vmem:[#allocation20_spill] sm:$0xff] }
 0x3b9   : > { %v3286_v3 = vadd.f32 %v3285_v0, %v8702_v34  ;;  %v3287_v48 = vpop.f32.mrb[25].mxu1  ;;  %v3122_v49 = vsel %vm1324_vm4, %v2396_v47, %v3037_v25  ;;  %v12113_v0 = vld [vmem:[#allocation47_spill] sm:$0xff] }
 0x3ba   : > { %v3288_v10 = vadd.f32 %v3287_v48, %v8708_v42  ;;  %v3289_v22 = vpop.f32.mrb[26].mxu1  ;;  %v9895_v12 = vpop.permute.xlu1 %4089  ;;  %v4466_v45 = vsel %vm545_vm0, %v12113_v0, %v9549_v36 }
 0x3bb   : > { %v3418_v14 = vmax.f32 %v3286_v3, 0.0  ;;  %v3290_v59 = vadd.f32 %v3289_v22, %v8702_v34  ;;  %v3291_v20 = vpop.f32.mrb[27].mxu1  ;;  %v3088_v11 = vpop.permute.xlu0 %3087 }
 0x3bc   : > { %v3419_v62 = vmax.f32 %v3288_v10, 0.0  ;;  %v3292_v48 = vadd.f32 %v3291_v20, %v8708_v42  ;;  %v3156_v55 = vsel %vm1359_vm5, %v3122_v49, %v3088_v11  ;;  %5339 = vrot.lane.b32.xlu1 %v5251_v58, %s7237_s27  ;;  %4563 = vrot.lane.b32.xlu0 %v4218_v50, %s7240_s29  ;;  %v4513_v20 = vsel %vm597_vm1, %v4466_v45, %v9571_v23  ;;  %v12115_v58 = vld [vmem:[#allocation29_spill] sm:$0xff]  ;;  %v12116_v11 = vld [vmem:[#allocation48_spill] sm:$0xff] }
 0x3bd   : > { %v3486_v15 = vmul.f32 %v3418_v14, %v12114_v60  ;;  %v3420_v32 = vmax.f32 %v3290_v59, 0.0  ;;  %7087 = vmatmul.mubr.msk.bf16.gmra.mrb[64].mxu1 %vm1423_vm6, %v3156_v55  ;;  %v5724_v55 = vsel %vm545_vm0, %v9892_v29, %v9567_v40  ;;  %v3979_v14 = vld [vmem:[%s7293_s26 + $0x2fb] sm:$0xff]  ;;  %v6019_v0 = vsel %vm545_vm0, %v12116_v11, %v9582_v54 }
 0x3be   : > { %v3487_v25 = vmul.f32 %v3419_v62, %v12114_v60  ;;  %v3421_v26 = vmax.f32 %v3292_v48, 0.0  ;;  %v9911_v36 = vpop.permute.xlu1 %4384  ;;  %6329 = vmatprep.mubr.bf16.mxu1 %v12023_v33  ;;  %v5771_v40 = vsel %vm597_vm1, %v5724_v55, %v9586_v57  ;;  %v4273_v45 = vld [vmem:[%s7293_s26 + $0x315] sm:$0xff]  ;;  %v4274_v62 = vld [vmem:[%s7293_s26 + $0x31d] sm:$0xff] }
 0x3bf   : > { %v3541_v47 = vadd.f32 %v3540_v1, %v3486_v15  ;;  %v3488_v3 = vmul.f32 %v3420_v32, %v12115_v58  ;;  %v9917_v10 = vpop.permute.xlu0 %4140  ;;  %v3978_v1 = vld [vmem:[%s7293_s26 + $0x2f3] sm:$0xff]  ;;  %v4030_v15 = vld [vmem:[%s7293_s26 + $0x2fc] sm:$0xff]  ;;  %v6066_v32 = vsel %vm597_vm1, %v6019_v0, %v9600_v13  ;;  %v3670_v13 = vld [vmem:[%s7293_s26 + $0x269] sm:$0xff] }
 0x3c0   : > { %v3580_v22 = vadd.f32 %v3579_v4, %v3487_v25  ;;  %v3489_v50 = vmul.f32 %v3421_v26, %v12115_v58  ;;  %4614 = vrot.lane.b32.xlu1 %v4513_v20, %s7242_s14  ;;  %5994 = vrot.lane.b32.xlu0 %v5899_v6, %s7238_s28  ;;  %v4001_v6 = vpack.c.bf16 %v3979_v14, %v3978_v1  ;;  %v4029_v48 = vld [vmem:[%s7293_s26 + $0x2f4] sm:$0xff]  ;;  %v3610_v25 = vld [vmem:[%s7293_s26 + $0x220] sm:$0xff] }
 0x3c1   : > { %v3542_v23 = vadd.f32 %v3541_v47, %v3488_v3  ;;  %v3611_v26 = vld [vmem:[%s7293_s26 + $0x228] sm:$0xff]  ;;  %v9949_v47 = vpack.c.bf16 %v4030_v15, %v4029_v48  ;;  %v4324_v3 = vld [vmem:[%s7293_s26 + $0x316] sm:$0xff] }
 0x3c2   : > { %v3581_v59 = vadd.f32 %v3580_v22, %v3489_v50  ;;  %v9927_v49 = vpop.permute.xlu1 %4435  ;;  %v4325_v50 = vld [vmem:[%s7293_s26 + $0x31e] sm:$0xff]  ;;  %v3644_v0 = vpack.c.bf16 %v3611_v26, %v3610_v25  ;;  %v5532_v26 = vld [vmem:[%s7293_s26 + $0x40b] sm:$0xff] }
 0x3c3   : > { %v3781_v4 = vpop.permute.xlu0 %3780  ;;  %12117 = vst [vmem:[#allocation47_spill] sm:$0xff] %v9949_v47  ;;  %v3669_v1 = vld [vmem:[%s7293_s26 + $0x261] sm:$0xff] }
 0x3c4   : > { %6116 = vrot.lane.b32.xlu1 %v5771_v40, %s7240_s29  ;;  %5390 = vrot.lane.b32.xlu0 %v9658_v21, %s7238_s28  ;;  %v4296_v21 = vpack.c.bf16 %v4274_v62, %v4273_v45  ;;  %v5531_v25 = vld [vmem:[%s7293_s26 + $0x403] sm:$0xff] }
 0x3c6   : > { %v3832_v57 = vpop.permute.xlu1 %3831 }
 0x3c7   : > { %v9944_v54 = vpop.permute.xlu0 %5642 }
 0x3c8   : > { %v3295_v20 = vpop.f32.mrb[28].mxu1  ;;  %4097 = vrot.lane.b32.xlu1 %v4001_v6, %s7237_s27  ;;  %6167 = vrot.lane.b32.xlu0 %v6066_v32, %s7242_s14 }
 0x3c9   : > { %v3296_v55 = vadd.f32 %v3295_v20, %v8702_v34  ;;  %v3297_v22 = vpop.f32.mrb[29].mxu1  ;;  %v4347_v20 = vpack.c.bf16 %v4325_v50, %v4324_v3  ;;  %v5163_v50 = vld [vmem:[%s7293_s26 + $0x330] sm:$0xff] }
 0x3ca   : > { %v3298_v14 = vadd.f32 %v3297_v22, %v8708_v42  ;;  %v3299_v40 = vpop.f32.mrb[30].mxu1  ;;  %v9957_v11 = vpop.permute.xlu1 %5937  ;;  %v3699_v22 = vpack.c.bf16 %v3670_v13, %v3669_v1  ;;  %v5554_v13 = vpack.c.bf16 %v5532_v26, %v5531_v25  ;;  %v5583_v25 = vld [vmem:[%s7293_s26 + $0x40c] sm:$0xff] }
 0x3cb   : > { %12118 = vst [vmem:[#allocation48_spill] sm:$0xff] %v9957_v11  ;;  %v3422_v6 = vmax.f32 %v3296_v55, 0.0  ;;  %v3300_v45 = vadd.f32 %v3299_v40, %v8702_v34  ;;  %v3301_v62 = vpop.f32.mrb[31].mxu1  ;;  %v9960_v48 = vpop.permute.xlu0 %5693  ;;  %v12120_v55 = vld [vmem:[#allocation30_spill] sm:$0xff]  ;;  %v3725_v11 = vld [vmem:[%s7293_s26 + $0x28a] sm:$0xff] }
 0x3cc   : > { %12119 = vst [vmem:[#allocation59_spill] sm:$0xff] %v9960_v48  ;;  %v3423_v15 = vmax.f32 %v3298_v14, 0.0  ;;  %v3302_v32 = vadd.f32 %v3301_v62, %v8708_v42  ;;  %4392 = vrot.lane.b32.xlu1 %v4296_v21, %s7237_s27  ;;  %4148 = vrot.lane.b32.xlu0 %v9949_v47, %s7238_s28  ;;  %v3724_v62 = vld [vmem:[%s7293_s26 + $0x282] sm:$0xff]  ;;  %v12121_v48 = vld [vmem:[#allocation8_spill] sm:$0xff]  ;;  %v3867_v47 = vsel %vm545_vm0, %v3644_v0, %v3781_v4 }
 0x3cd   : > { %v3490_v40 = vmul.f32 %v3422_v6, %v12120_v55  ;;  %v3424_v58 = vmax.f32 %v3300_v45, 0.0 }
 0x3ce   : > { %v3491_v60 = vmul.f32 %v3423_v15, %v12120_v55  ;;  %v3425_v14 = vmax.f32 %v3302_v32, 0.0  ;;  %v5334_v8 = vpop.permute.xlu1 %5333  ;;  %v5164_v15 = vld [vmem:[%s7293_s26 + $0x338] sm:$0xff]  ;;  %v5826_v32 = vld [vmem:[%s7293_s26 + $0x425] sm:$0xff]  ;;  %v3917_v55 = vsel %vm597_vm1, %v3867_v47, %v3832_v57  ;;  %v9988_v57 = vpack.c.bf16 %v3725_v11, %v3724_v62 }
 0x3cf   : > { %v3543_v21 = vadd.f32 %v3542_v23, %v3490_v40  ;;  %v3492_v3 = vmul.f32 %v3424_v58, %v12121_v48  ;;  %v4558_v1 = vpop.permute.xlu0 %4557  ;;  %v5827_v40 = vld [vmem:[%s7293_s26 + $0x42d] sm:$0xff]  ;;  %v5582_v58 = vld [vmem:[%s7293_s26 + $0x404] sm:$0xff]  ;;  %v5197_v4 = vpack.c.bf16 %v5164_v15, %v5163_v50  ;;  %v5278_v50 = vld [vmem:[%s7293_s26 + $0x39a] sm:$0xff] }
 0x3d0   : > { %v3582_v6 = vadd.f32 %v3581_v59, %v3491_v60  ;;  %v3493_v45 = vmul.f32 %v3425_v14, %v12121_v48  ;;  %4443 = vrot.lane.b32.xlu1 %v4347_v20, %s7238_s28  ;;  %3788 = vrot.lane.b32.xlu0 %v3699_v22, %s7237_s27  ;;  %v4643_v60 = vsel %vm1324_vm4, %v3917_v55, %v4558_v1  ;;  %v5222_v55 = vld [vmem:[%s7293_s26 + $0x371] sm:$0xff]  ;;  %v5223_v14 = vld [vmem:[%s7293_s26 + $0x379] sm:$0xff] }
 0x3d1   : > { %v3544_v23 = vadd.f32 %v3543_v21, %v3492_v3  ;;  %v5849_v47 = vpack.c.bf16 %v5827_v40, %v5826_v32  ;;  %v9993_v22 = vpack.c.bf16 %v5583_v25, %v5582_v58  ;;  %v5277_v21 = vld [vmem:[%s7293_s26 + $0x392] sm:$0xff]  ;;  %v5420_v11 = vsel %vm545_vm0, %v5197_v4, %v5334_v8  ;;  %v5877_v1 = vld [vmem:[%s7293_s26 + $0x426] sm:$0xff]  ;;  %v3727_v48 = vld [vmem:[%s7293_s26 + $0x29a] sm:$0xff] }
 0x3d2   : > { %v3583_v26 = vadd.f32 %v3582_v6, %v3493_v45  ;;  %v4609_v59 = vpop.permute.xlu1 %4608  ;;  %v5878_v6 = vld [vmem:[%s7293_s26 + $0x42e] sm:$0xff]  ;;  %v5252_v15 = vpack.c.bf16 %v5223_v14, %v5222_v55  ;;  %v10012_v8 = vpack.c.bf16 %v5278_v50, %v5277_v21 }
 0x3d3   : > { %v4677_v0 = vsel %vm1359_vm5, %v4643_v60, %v4609_v59  ;;  %v9986_v20 = vpop.permute.xlu0 %5988  ;;  %12122 = vst [vmem:[#allocation60_spill] sm:$0xff] %v9993_v22 }
 0x3d4   : > { %3839 = vrot.lane.b32.xlu1 %v9750_v46, %s7238_s28  ;;  %5650 = vrot.lane.b32.xlu0 %v5554_v13, %s7237_s27  ;;  %v4174_v46 = vsel %vm545_vm0, %v9988_v57, %v9623_v52  ;;  %v5900_v52 = vpack.c.bf16 %v5878_v6, %v5877_v1 }
 0x3d5   : > { %7088 = vmatmul.mubr.msk.bf16.vlgmr.msra.gmra.mrb[68].mxu0 %vm1423_vm6, %v4677_v0  ;;  %v4220_v59 = vsel %vm597_vm1, %v4174_v46, %v9640_v56  ;;  %v12124_v56 = vld [vmem:[#allocation19_spill] sm:$0xff] }
 0x3d6   : > { %v6111_v3 = vpop.permute.xlu1 %6110  ;;  %4786 = vmatprep.mubr.bf16.mxu0 %v12023_v33 }
 0x3d7   : > { %v5385_v62 = vpop.permute.xlu0 %5384 }
 0x3d8   : > { %v5470_v13 = vsel %vm597_vm1, %v5420_v11, %v5385_v62  ;;  %v3305_v45 = vpop.f32.mrb[32].mxu1  ;;  %5945 = vrot.lane.b32.xlu1 %v5849_v47, %s7237_s27  ;;  %5701 = vrot.lane.b32.xlu0 %v9993_v22, %s7238_s28  ;;  %v12123_v11 = vld [vmem:[#allocation49_spill] sm:$0xff]  ;;  %v12129_v22 = vld [vmem:[#allocation7_spill] sm:$0xff] }
 0x3d9   : > { %v3306_v32 = vadd.f32 %v3305_v45, %v8702_v34  ;;  %v3307_v40 = vpop.f32.mrb[33].mxu1  ;;  %v6196_v55 = vsel %vm1324_vm4, %v5470_v13, %v6111_v3  ;;  %v4469_v21 = vsel %vm545_vm0, %v12123_v11, %v9637_v9 }
 0x3da   : > { %v3308_v58 = vadd.f32 %v3307_v40, %v8708_v42  ;;  %v3309_v25 = vpop.f32.mrb[34].mxu1  ;;  %v10015_v60 = vpop.permute.xlu1 %4091  ;;  %v4515_v13 = vsel %vm597_vm1, %v4469_v21, %v9661_v38  ;;  %v4275_v21 = vld [vmem:[%s7293_s26 + $0x325] sm:$0xff] }
 0x3db   : > { %v3426_v4 = vmax.f32 %v3306_v32, 0.0  ;;  %v3310_v0 = vadd.f32 %v3309_v25, %v8702_v34  ;;  %v3311_v47 = vpop.f32.mrb[35].mxu1  ;;  %v6162_v14 = vpop.permute.xlu0 %6161  ;;  %v12125_v32 = vld [vmem:[#allocation31_spill] sm:$0xff]  ;;  %v5727_v25 = vsel %vm545_vm0, %v10012_v8, %v9654_v61 }
 0x3dc   : > { %v3427_v50 = vmax.f32 %v3308_v58, 0.0  ;;  %v3312_v62 = vadd.f32 %v3311_v47, %v8708_v42  ;;  %v6230_v45 = vsel %vm1359_vm5, %v6196_v55, %v6162_v14  ;;  %5341 = vrot.lane.b32.xlu1 %v5252_v15, %s7237_s27  ;;  %4565 = vrot.lane.b32.xlu0 %v4220_v59, %s7240_s29  ;;  %v5773_v61 = vsel %vm597_vm1, %v5727_v25, %v9678_v53  ;;  %v12126_v14 = vld [vmem:[#allocation50_spill] sm:$0xff] }
 0x3dd   : > { %v3494_v1 = vmul.f32 %v3426_v4, %v12124_v56  ;;  %v3428_v6 = vmax.f32 %v3310_v0, 0.0  ;;  %7105 = vmatmul.mubr.msk.bf16.vlgmr.msra.gmra.mrb[68].mxu1 %vm1423_vm6, %v6230_v45  ;;  %v3981_v0 = vld [vmem:[%s7293_s26 + $0x30b] sm:$0xff]  ;;  %v6022_v11 = vsel %vm545_vm0, %v12126_v14, %v9673_v19 }
 0x3de   : > { %v3495_v3 = vmul.f32 %v3427_v50, %v12124_v56  ;;  %v3429_v46 = vmax.f32 %v3312_v62, 0.0  ;;  %v10031_v9 = vpop.permute.xlu1 %4386  ;;  %6339 = vmatprep.mubr.bf16.mxu1 %v12023_v33  ;;  %v4276_v50 = vld [vmem:[%s7293_s26 + $0x32d] sm:$0xff]  ;;  %v4031_v62 = vld [vmem:[%s7293_s26 + $0x304] sm:$0xff] }
 0x3df   : > { %v3545_v15 = vadd.f32 %v3544_v23, %v3494_v1  ;;  %v3496_v40 = vmul.f32 %v3428_v6, %v12125_v32  ;;  %v10037_v58 = vpop.permute.xlu0 %4142  ;;  %v3980_v23 = vld [vmem:[%s7293_s26 + $0x303] sm:$0xff]  ;;  %v4032_v45 = vld [vmem:[%s7293_s26 + $0x30c] sm:$0xff]  ;;  %v6068_v1 = vsel %vm597_vm1, %v6022_v11, %v9690_v7  ;;  %v3672_v7 = vld [vmem:[%s7293_s26 + $0x279] sm:$0xff] }
 0x3e0   : > { %v3584_v59 = vadd.f32 %v3583_v26, %v3495_v3  ;;  %v3497_v4 = vmul.f32 %v3429_v46, %v12125_v32  ;;  %4616 = vrot.lane.b32.xlu1 %v4515_v13, %s7242_s14  ;;  %5996 = vrot.lane.b32.xlu0 %v5900_v52, %s7238_s28  ;;  %v4002_v52 = vpack.c.bf16 %v3981_v0, %v3980_v23  ;;  %v3612_v6 = vld [vmem:[%s7293_s26 + $0x230] sm:$0xff]  ;;  %v3613_v3 = vld [vmem:[%s7293_s26 + $0x238] sm:$0xff] }
 0x3e1   : > { %v3546_v38 = vadd.f32 %v3545_v15, %v3496_v40  ;;  %v10069_v13 = vpack.c.bf16 %v4032_v45, %v4031_v62  ;;  %v4326_v15 = vld [vmem:[%s7293_s26 + $0x326] sm:$0xff]  ;;  %v3645_v14 = vpack.c.bf16 %v3613_v3, %v3612_v6  ;;  %v5533_v6 = vld [vmem:[%s7293_s26 + $0x413] sm:$0xff]  ;;  %v5534_v3 = vld [vmem:[%s7293_s26 + $0x41b] sm:$0xff] }
 0x3e2   : > { %v3585_v47 = vadd.f32 %v3584_v59, %v3497_v4  ;;  %v10047_v55 = vpop.permute.xlu1 %4437  ;;  %v4327_v59 = vld [vmem:[%s7293_s26 + $0x32e] sm:$0xff] }
 0x3e3   : > { %v3783_v26 = vpop.permute.xlu0 %3782  ;;  %12127 = vst [vmem:[#allocation49_spill] sm:$0xff] %v10069_v13  ;;  %v3671_v4 = vld [vmem:[%s7293_s26 + $0x271] sm:$0xff] }
 0x3e4   : > { %6118 = vrot.lane.b32.xlu1 %v5773_v61, %s7240_s29  ;;  %5392 = vrot.lane.b32.xlu0 %v9776_v43, %s7238_s28  ;;  %v4297_v43 = vpack.c.bf16 %v4276_v50, %v4275_v21 }
 0x3e6   : > { %v3834_v53 = vpop.permute.xlu1 %3833 }
 0x3e7   : > { %v10064_v19 = vpop.permute.xlu0 %5644 }
 0x3e8   : > { %v3315_v46 = vpop.f32.mrb[36].mxu1  ;;  %4099 = vrot.lane.b32.xlu1 %v4002_v52, %s7237_s27  ;;  %6169 = vrot.lane.b32.xlu0 %v6068_v1, %s7242_s14  ;;  %v4348_v1 = vpack.c.bf16 %v4327_v59, %v4326_v15  ;;  %v5165_v59 = vld [vmem:[%s7293_s26 + $0x340] sm:$0xff] }
 0x3e9   : > { %v3316_v40 = vadd.f32 %v3315_v46, %v8702_v34  ;;  %v3317_v25 = vpop.f32.mrb[37].mxu1  ;;  %v3700_v46 = vpack.c.bf16 %v3672_v7, %v3671_v4  ;;  %v5555_v7 = vpack.c.bf16 %v5534_v3, %v5533_v6  ;;  %v5585_v6 = vld [vmem:[%s7293_s26 + $0x41c] sm:$0xff] }
 0x3ea   : > { %v3318_v23 = vadd.f32 %v3317_v25, %v8708_v42  ;;  %v3319_v0 = vpop.f32.mrb[38].mxu1  ;;  %v10077_v61 = vpop.permute.xlu1 %5939 }
 0x3eb   : > { %v3430_v11 = vmax.f32 %v3316_v40, 0.0  ;;  %v3320_v52 = vadd.f32 %v3319_v0, %v8702_v34  ;;  %v3321_v21 = vpop.f32.mrb[39].mxu1  ;;  %v10080_v50 = vpop.permute.xlu0 %5695  ;;  %v12128_v40 = vld [vmem:[#allocation32_spill] sm:$0xff] }
 0x3ec   : > { %v3431_v62 = vmax.f32 %v3318_v23, 0.0  ;;  %v3322_v45 = vadd.f32 %v3321_v21, %v8708_v42  ;;  %4394 = vrot.lane.b32.xlu1 %v4297_v43, %s7237_s27  ;;  %4150 = vrot.lane.b32.xlu0 %v10069_v13, %s7238_s28  ;;  %v3726_v21 = vld [vmem:[%s7293_s26 + $0x292] sm:$0xff]  ;;  %v3870_v13 = vsel %vm545_vm0, %v3645_v14, %v3783_v26 }
 0x3ed   : > { %v3498_v25 = vmul.f32 %v3430_v11, %v12128_v40  ;;  %v3432_v0 = vmax.f32 %v3320_v52, 0.0 }
 0x3ee   : > { %v3499_v32 = vmul.f32 %v3431_v62, %v12128_v40  ;;  %v3433_v23 = vmax.f32 %v3322_v45, 0.0  ;;  %v5336_v56 = vpop.permute.xlu1 %5335  ;;  %v5166_v62 = vld [vmem:[%s7293_s26 + $0x348] sm:$0xff]  ;;  %v5828_v45 = vld [vmem:[%s7293_s26 + $0x435] sm:$0xff]  ;;  %v3919_v40 = vsel %vm597_vm1, %v3870_v13, %v3834_v53  ;;  %v10112_v53 = vpack.c.bf16 %v3727_v48, %v3726_v21 }
 0x3ef   : > { %v3547_v43 = vadd.f32 %v3546_v38, %v3498_v25  ;;  %v3500_v15 = vmul.f32 %v3432_v0, %v12129_v22  ;;  %v4560_v4 = vpop.permute.xlu0 %4559  ;;  %v5829_v25 = vld [vmem:[%s7293_s26 + $0x43d] sm:$0xff]  ;;  %v5584_v0 = vld [vmem:[%s7293_s26 + $0x414] sm:$0xff]  ;;  %v5198_v26 = vpack.c.bf16 %v5166_v62, %v5165_v59  ;;  %v5280_v59 = vld [vmem:[%s7293_s26 + $0x3aa] sm:$0xff] }
 0x3f0   : > { %v3586_v11 = vadd.f32 %v3585_v47, %v3499_v32  ;;  %v3501_v52 = vmul.f32 %v3433_v23, %v12129_v22  ;;  %4445 = vrot.lane.b32.xlu1 %v4348_v1, %s7238_s28  ;;  %3790 = vrot.lane.b32.xlu0 %v3700_v46, %s7237_s27  ;;  %v4645_v32 = vsel %vm1324_vm4, %v3919_v40, %v4560_v4  ;;  %v5224_v40 = vld [vmem:[%s7293_s26 + $0x381] sm:$0xff]  ;;  %v5225_v23 = vld [vmem:[%s7293_s26 + $0x389] sm:$0xff] }
 0x3f1   : > { %v10101_v38 = vadd.f32 %v3547_v43, %v3500_v15  ;;  %v5850_v13 = vpack.c.bf16 %v5829_v25, %v5828_v45  ;;  %v10117_v46 = vpack.c.bf16 %v5585_v6, %v5584_v0  ;;  %v5423_v48 = vsel %vm545_vm0, %v5198_v26, %v5336_v56  ;;  %v5279_v15 = vld [vmem:[%s7293_s26 + $0x3a2] sm:$0xff] }
 0x3f2   : > { %v10106_v3 = vadd.f32 %v3586_v11, %v3501_v52  ;;  %v4611_v47 = vpop.permute.xlu1 %4610  ;;  %v5879_v11 = vld [vmem:[%s7293_s26 + $0x436] sm:$0xff]  ;;  %v5880_v52 = vld [vmem:[%s7293_s26 + $0x43e] sm:$0xff]  ;;  %v10139_v45 = vpack.c.bf16 %v5280_v59, %v5279_v15  ;;  %v12131_v0 = vld [vmem:[#allocation51_spill] sm:$0xff] }
 0x3f3   : > { %v4679_v14 = vsel %vm1359_vm5, %v4645_v32, %v4611_v47  ;;  %v10110_v1 = vpop.permute.xlu0 %5990  ;;  %12130 = vst [vmem:[#allocation50_spill] sm:$0xff] %v10117_v46  ;;  %v4472_v6 = vsel %vm545_vm0, %v12131_v0, %v9731_v27  ;;  %v5901_v47 = vpack.c.bf16 %v5880_v52, %v5879_v11  ;;  %v12132_v11 = vld [vmem:[#allocation52_spill] sm:$0xff]  ;;  %v4278_v0 = vld [vmem:[%s7293_s26 + $0x33d] sm:$0xff] }
 0x3f4   : > { %3841 = vrot.lane.b32.xlu1 %v9870_v63, %s7238_s28  ;;  %5652 = vrot.lane.b32.xlu0 %v5555_v7, %s7237_s27  ;;  %v4177_v63 = vsel %vm545_vm0, %v10112_v53, %v9717_v51  ;;  %v5253_v7 = vpack.c.bf16 %v5225_v23, %v5224_v40  ;;  %v4517_v26 = vsel %vm597_vm1, %v4472_v6, %v9748_v5  ;;  %v12133_v6 = vld [vmem:[#allocation22_spill] sm:$0xff] }
 0x3f5   : > { %7089 = vmatmul.mubr.msk.bf16.gmra.mrb[72].mxu0 %vm1423_vm6, %v4679_v14  ;;  %v4222_v56 = vsel %vm597_vm1, %v4177_v63, %v9736_v35  ;;  %v5730_v27 = vsel %vm545_vm0, %v10139_v45, %v9746_v39  ;;  %v6025_v52 = vsel %vm545_vm0, %v12132_v11, %v9759_v31 }
 0x3f6   : > { %v6113_v43 = vpop.permute.xlu1 %6112  ;;  %4796 = vmatprep.mubr.bf16.mxu0 %v12023_v33  ;;  %v5775_v39 = vsel %vm597_vm1, %v5730_v27, %v9763_v24  ;;  %v4034_v27 = vld [vmem:[%s7293_s26 + $0x31c] sm:$0xff] }
 0x3f7   : > { %v5387_v21 = vpop.permute.xlu0 %5386 }
 0x3f8   : > { %v5472_v4 = vsel %vm597_vm1, %v5423_v48, %v5387_v21  ;;  %5947 = vrot.lane.b32.xlu1 %v5850_v13, %s7237_s27  ;;  %5703 = vrot.lane.b32.xlu0 %v10117_v46, %s7238_s28  ;;  %v3983_v48 = vld [vmem:[%s7293_s26 + $0x31b] sm:$0xff] }
 0x3f9   : > { %v6198_v51 = vsel %vm1324_vm4, %v5472_v4, %v6113_v43  ;;  %v3982_v43 = vld [vmem:[%s7293_s26 + $0x313] sm:$0xff] }
 0x3fa   : > { %v10135_v62 = vpop.permute.xlu1 %4093  ;;  %v4003_v24 = vpack.c.bf16 %v3983_v48, %v3982_v43  ;;  %v12134_v43 = vld [vmem:[#allocation33_spill] sm:$0xff] }
 0x3fb   : > { %v6164_v25 = vpop.permute.xlu0 %6163 }
 0x3fc   : > { %v6232_v32 = vsel %vm1359_vm5, %v6198_v51, %v6164_v25  ;;  %5343 = vrot.lane.b32.xlu1 %v5253_v7, %s7237_s27  ;;  %4567 = vrot.lane.b32.xlu0 %v4222_v56, %s7240_s29  ;;  %v4277_v25 = vld [vmem:[%s7293_s26 + $0x335] sm:$0xff] }
 0x3fd   : > { %7106 = vmatmul.mubr.msk.bf16.gmra.mrb[72].mxu1 %vm1423_vm6, %v6232_v32 }
 0x3fe   : > { %v10149_v35 = vpop.permute.xlu1 %4388  ;;  %6349 = vmatprep.mubr.bf16.mxu1 %v12023_v33 }
 0x3ff   : > { %v10154_v14 = vpop.permute.xlu0 %4144 }
 0x400   : > { %v3325_v13 = vpop.f32.mrb[40].mxu1  ;;  %4618 = vrot.lane.b32.xlu1 %v4517_v26, %s7242_s14  ;;  %5998 = vrot.lane.b32.xlu0 %v5901_v47, %s7238_s28  ;;  %v4033_v26 = vld [vmem:[%s7293_s26 + $0x314] sm:$0xff] }
 0x401   : > { %v3326_v40 = vadd.f32 %v3325_v13, %v8702_v34  ;;  %v3327_v23 = vpop.f32.mrb[41].mxu1 }
 0x402   : > { %v3328_v5 = vadd.f32 %v3327_v23, %v8708_v42  ;;  %v3329_v21 = vpop.f32.mrb[42].mxu1  ;;  %v10165_v63 = vpop.permute.xlu1 %4439  ;;  %v6070_v23 = vsel %vm597_vm1, %v6025_v52, %v9779_v18  ;;  %v10195_v18 = vpack.c.bf16 %v4034_v27, %v4033_v26  ;;  %v4329_v52 = vld [vmem:[%s7293_s26 + $0x33e] sm:$0xff]  ;;  %v5536_v27 = vld [vmem:[%s7293_s26 + $0x42b] sm:$0xff] }
 0x403   : > { %v3434_v15 = vmax.f32 %v3326_v40, 0.0  ;;  %v3330_v59 = vadd.f32 %v3329_v21, %v8702_v34  ;;  %v3331_v4 = vpop.f32.mrb[43].mxu1  ;;  %v3785_v7 = vpop.permute.xlu0 %3784  ;;  %v5535_v26 = vld [vmem:[%s7293_s26 + $0x423] sm:$0xff] }
 0x404   : > { %v3435_v56 = vmax.f32 %v3328_v5, 0.0  ;;  %v3332_v51 = vadd.f32 %v3331_v4, %v8708_v42  ;;  %6120 = vrot.lane.b32.xlu1 %v5775_v39, %s7240_s29  ;;  %5394 = vrot.lane.b32.xlu0 %v9892_v29, %s7238_s28  ;;  %v3614_v5 = vld [vmem:[%s7293_s26 + $0x240] sm:$0xff]  ;;  %v4298_v39 = vpack.c.bf16 %v4278_v0, %v4277_v25  ;;  %v3615_v4 = vld [vmem:[%s7293_s26 + $0x248] sm:$0xff]  ;;  %12135 = vst [vmem:[#allocation51_spill] sm:$0xff] %v10195_v18 }
 0x405   : > { %v3502_v32 = vmul.f32 %v3434_v15, %v12133_v6  ;;  %v3436_v47 = vmax.f32 %v3330_v59, 0.0  ;;  %v3646_v0 = vpack.c.bf16 %v3615_v4, %v3614_v5 }
 0x406   : > { %v3503_v31 = vmul.f32 %v3435_v56, %v12133_v6  ;;  %v3437_v13 = vmax.f32 %v3332_v51, 0.0  ;;  %v3836_v40 = vpop.permute.xlu1 %3835  ;;  %v3673_v56 = vld [vmem:[%s7293_s26 + $0x281] sm:$0xff] }
 0x407   : > { %v3549_v29 = vadd.f32 %v10101_v38, %v3502_v32  ;;  %v3504_v48 = vmul.f32 %v3436_v47, %v12134_v43  ;;  %v10188_v21 = vpop.permute.xlu0 %5646  ;;  %v4328_v38 = vld [vmem:[%s7293_s26 + $0x336] sm:$0xff]  ;;  %v3873_v5 = vsel %vm545_vm0, %v3646_v0, %v3785_v7 }
 0x408   : > { %v3588_v15 = vadd.f32 %v10106_v3, %v3503_v31  ;;  %v3505_v59 = vmul.f32 %v3437_v13, %v12134_v43  ;;  %4101 = vrot.lane.b32.xlu1 %v4003_v24, %s7237_s27  ;;  %6171 = vrot.lane.b32.xlu0 %v6070_v23, %s7242_s14  ;;  %v3674_v3 = vld [vmem:[%s7293_s26 + $0x289] sm:$0xff]  ;;  %v4349_v32 = vpack.c.bf16 %v4329_v52, %v4328_v38 }
 0x409   : > { %v10198_v11 = vadd.f32 %v3549_v29, %v3504_v48  ;;  %v3701_v47 = vpack.c.bf16 %v3674_v3, %v3673_v56  ;;  %v3728_v13 = vld [vmem:[%s7293_s26 + $0x2a2] sm:$0xff]  ;;  %v3729_v23 = vld [vmem:[%s7293_s26 + $0x2aa] sm:$0xff]  ;;  %v3921_v4 = vsel %vm597_vm1, %v3873_v5, %v3836_v40  ;;  %v5282_v5 = vld [vmem:[%s7293_s26 + $0x3ba] sm:$0xff] }
 0x40a   : > { %v10203_v51 = vadd.f32 %v3588_v15, %v3505_v59  ;;  %v10205_v25 = vpop.permute.xlu1 %5941  ;;  %v5167_v29 = vld [vmem:[%s7293_s26 + $0x350] sm:$0xff]  ;;  %v5168_v15 = vld [vmem:[%s7293_s26 + $0x358] sm:$0xff]  ;;  %v5830_v59 = vld [vmem:[%s7293_s26 + $0x445] sm:$0xff] }
 0x40b   : > { %v10207_v24 = vpop.permute.xlu0 %5697  ;;  %v5831_v38 = vld [vmem:[%s7293_s26 + $0x44d] sm:$0xff]  ;;  %v5586_v52 = vld [vmem:[%s7293_s26 + $0x424] sm:$0xff]  ;;  %v5199_v7 = vpack.c.bf16 %v5168_v15, %v5167_v29  ;;  %v5227_v29 = vld [vmem:[%s7293_s26 + $0x399] sm:$0xff] }
 0x40c   : > { %4396 = vrot.lane.b32.xlu1 %v4298_v39, %s7237_s27  ;;  %4152 = vrot.lane.b32.xlu0 %v10195_v18, %s7238_s28  ;;  %v5556_v39 = vpack.c.bf16 %v5536_v27, %v5535_v26  ;;  %v5587_v56 = vld [vmem:[%s7293_s26 + $0x42c] sm:$0xff]  ;;  %v5851_v40 = vpack.c.bf16 %v5831_v38, %v5830_v59 }
 0x40d   : > { %v10235_v26 = vpack.c.bf16 %v5587_v56, %v5586_v52  ;;  %v5226_v27 = vld [vmem:[%s7293_s26 + $0x391] sm:$0xff]  ;;  %v5881_v15 = vld [vmem:[%s7293_s26 + $0x446] sm:$0xff] }
 0x40e   : > { %v5338_v31 = vpop.permute.xlu1 %5337  ;;  %v5254_v38 = vpack.c.bf16 %v5227_v29, %v5226_v27 }
 0x40f   : > { %v4562_v48 = vpop.permute.xlu0 %4561  ;;  %12136 = vst [vmem:[#allocation52_spill] sm:$0xff] %v10235_v26 }
 0x410   : > { %4447 = vrot.lane.b32.xlu1 %v4349_v32, %s7238_s28  ;;  %3792 = vrot.lane.b32.xlu0 %v3701_v47, %s7237_s27  ;;  %v4647_v3 = vsel %vm1324_vm4, %v3921_v4, %v4562_v48  ;;  %v10230_v47 = vpack.c.bf16 %v3729_v23, %v3728_v13  ;;  %v5281_v48 = vld [vmem:[%s7293_s26 + $0x3b2] sm:$0xff]  ;;  %v5426_v13 = vsel %vm545_vm0, %v5199_v7, %v5338_v31 }
 0x411   : > { %v5882_v4 = vld [vmem:[%s7293_s26 + $0x44e] sm:$0xff]  ;;  %v10254_v31 = vpack.c.bf16 %v5282_v5, %v5281_v48 }
 0x412   : > { %v4613_v43 = vpop.permute.xlu1 %4612 }
 0x413   : > { %v4681_v0 = vsel %vm1359_vm5, %v4647_v3, %v4613_v43  ;;  %v10228_v32 = vpop.permute.xlu0 %5992 }
 0x414   : > { %3843 = vrot.lane.b32.xlu1 %v9988_v57, %s7238_s28  ;;  %5654 = vrot.lane.b32.xlu0 %v5556_v39, %s7237_s27  ;;  %v4180_v57 = vsel %vm545_vm0, %v10230_v47, %v9805_v2  ;;  %v5902_v2 = vpack.c.bf16 %v5882_v4, %v5881_v15 }
 0x415   : > { %7090 = vmatmul.mubr.msk.bf16.gmra.mrb[76].mxu0 %vm1423_vm6, %v4681_v0 }
 0x416   : > { %v6115_v43 = vpop.permute.xlu1 %6114  ;;  %4806 = vmatprep.mubr.bf16.mxu0 %v12023_v33 }
 0x417   : > { %v5389_v23 = vpop.permute.xlu0 %5388 }
 0x418   : > { %v5474_v39 = vsel %vm597_vm1, %v5426_v13, %v5389_v23  ;;  %v3335_v59 = vpop.f32.mrb[44].mxu1  ;;  %5949 = vrot.lane.b32.xlu1 %v5851_v40, %s7237_s27  ;;  %5705 = vrot.lane.b32.xlu0 %v10235_v26, %s7238_s28  ;;  %v4224_v13 = vsel %vm597_vm1, %v4180_v57, %v9827_v28  ;;  %v12138_v28 = vld [vmem:[#allocation34_spill] sm:$0xff] }
 0x419   : > { %v3336_v52 = vadd.f32 %v3335_v59, %v8702_v34  ;;  %v3337_v56 = vpop.f32.mrb[45].mxu1  ;;  %v6200_v27 = vsel %vm1324_vm4, %v5474_v39, %v6115_v43  ;;  %v12137_v59 = vld [vmem:[#allocation53_spill] sm:$0xff] }
 0x41a   : > { %v3338_v3 = vadd.f32 %v3337_v56, %v8708_v42  ;;  %v3339_v7 = vpop.f32.mrb[46].mxu1  ;;  %v10257_v0 = vpop.permute.xlu1 %4095  ;;  %v4475_v48 = vsel %vm545_vm0, %v12137_v59, %v9822_v16 }
 0x41b   : > { %v3438_v23 = vmax.f32 %v3336_v52, 0.0  ;;  %v3340_v40 = vadd.f32 %v3339_v7, %v8702_v34  ;;  %v3341_v6 = vpop.f32.mrb[47].mxu1  ;;  %v6166_v29 = vpop.permute.xlu0 %6165 }
 0x41c   : > { %v3439_v5 = vmax.f32 %v3338_v3, 0.0  ;;  %v3342_v56 = vadd.f32 %v3341_v6, %v8708_v42  ;;  %v6234_v22 = vsel %vm1359_vm5, %v6200_v27, %v6166_v29  ;;  %5345 = vrot.lane.b32.xlu1 %v5254_v38, %s7237_s27  ;;  %4569 = vrot.lane.b32.xlu0 %v4224_v13, %s7240_s29  ;;  %v4519_v6 = vsel %vm597_vm1, %v4475_v48, %v9842_v30  ;;  %v12139_v38 = vld [vmem:[#allocation10_spill] sm:$0xff] }
 0x41d   : > { %v3506_v15 = vmul.f32 %v3438_v23, %v12138_v28  ;;  %v3440_v4 = vmax.f32 %v3340_v40, 0.0  ;;  %7107 = vmatmul.mubr.msk.bf16.gmra.mrb[76].mxu1 %vm1423_vm6, %v6234_v22  ;;  %v5733_v22 = vsel %vm545_vm0, %v10254_v31, %v9839_v17  ;;  %v3985_v23 = vld [vmem:[%s7293_s26 + $0x32b] sm:$0xff]  ;;  %v12140_v29 = vld [vmem:[#allocation54_spill] sm:$0xff] }
 0x41e   : > { %v3507_v43 = vmul.f32 %v3439_v5, %v12138_v28  ;;  %v3441_v57 = vmax.f32 %v3342_v56, 0.0  ;;  %v10273_v16 = vpop.permute.xlu1 %4390  ;;  %6359 = vmatprep.mubr.bf16.mxu1 %v12023_v33  ;;  %v6028_v59 = vsel %vm545_vm0, %v12140_v29, %v9852_v37  ;;  %v4279_v48 = vld [vmem:[%s7293_s26 + $0x345] sm:$0xff]  ;;  %v4280_v5 = vld [vmem:[%s7293_s26 + $0x34d] sm:$0xff] }
 0x41f   : > { %v3551_v39 = vadd.f32 %v10198_v11, %v3506_v15  ;;  %v3508_v52 = vmul.f32 %v3440_v4, %v12139_v38  ;;  %v10280_v3 = vpop.permute.xlu0 %4146  ;;  %v3984_v11 = vld [vmem:[%s7293_s26 + $0x323] sm:$0xff]  ;;  %v4036_v15 = vld [vmem:[%s7293_s26 + $0x32c] sm:$0xff]  ;;  %v6072_v4 = vsel %vm597_vm1, %v6028_v59, %v9868_v41  ;;  %v3676_v41 = vld [vmem:[%s7293_s26 + $0x299] sm:$0xff] }
 0x420   : > { %v3590_v7 = vadd.f32 %v10203_v51, %v3507_v43  ;;  %v3509_v13 = vmul.f32 %v3441_v57, %v12139_v38  ;;  %4620 = vrot.lane.b32.xlu1 %v4519_v6, %s7242_s14  ;;  %6000 = vrot.lane.b32.xlu0 %v5902_v2, %s7238_s28  ;;  %v5777_v51 = vsel %vm597_vm1, %v5733_v22, %v9857_v44  ;;  %v4035_v56 = vld [vmem:[%s7293_s26 + $0x324] sm:$0xff]  ;;  %v3616_v43 = vld [vmem:[%s7293_s26 + $0x250] sm:$0xff] }
 0x421   : > { %v10289_v30 = vadd.f32 %v3551_v39, %v3508_v52  ;;  %v4004_v2 = vpack.c.bf16 %v3985_v23, %v3984_v11  ;;  %v3617_v57 = vld [vmem:[%s7293_s26 + $0x258] sm:$0xff]  ;;  %v10317_v6 = vpack.c.bf16 %v4036_v15, %v4035_v56  ;;  %v4330_v39 = vld [vmem:[%s7293_s26 + $0x346] sm:$0xff]  ;;  %v4331_v52 = vld [vmem:[%s7293_s26 + $0x34e] sm:$0xff] }
 0x422   : > { %v10293_v40 = vadd.f32 %v3590_v7, %v3509_v13  ;;  %v10295_v17 = vpop.permute.xlu1 %4441  ;;  %v3675_v22 = vld [vmem:[%s7293_s26 + $0x291] sm:$0xff]  ;;  %v3647_v11 = vpack.c.bf16 %v3617_v57, %v3616_v43  ;;  %v4350_v23 = vpack.c.bf16 %v4331_v52, %v4330_v39  ;;  %v5538_v59 = vld [vmem:[%s7293_s26 + $0x43b] sm:$0xff]  ;;  %v5170_v43 = vld [vmem:[%s7293_s26 + $0x368] sm:$0xff] }
 0x423   : > { %v3787_v27 = vpop.permute.xlu0 %3786  ;;  %12141 = vst [vmem:[#allocation53_spill] sm:$0xff] %v10317_v6  ;;  %v5537_v29 = vld [vmem:[%s7293_s26 + $0x433] sm:$0xff]  ;;  %v5169_v56 = vld [vmem:[%s7293_s26 + $0x360] sm:$0xff] }
 0x424   : > { %6122 = vrot.lane.b32.xlu1 %v5777_v51, %s7240_s29  ;;  %5396 = vrot.lane.b32.xlu0 %v10012_v8, %s7238_s28  ;;  %v4299_v8 = vpack.c.bf16 %v4280_v5, %v4279_v48  ;;  %v3702_v51 = vpack.c.bf16 %v3676_v41, %v3675_v22  ;;  %v3730_v48 = vld [vmem:[%s7293_s26 + $0x2b2] sm:$0xff]  ;;  %v3731_v5 = vld [vmem:[%s7293_s26 + $0x2ba] sm:$0xff] }
 0x425   : > { %v5832_v39 = vld [vmem:[%s7293_s26 + $0x455] sm:$0xff]  ;;  %v5833_v38 = vld [vmem:[%s7293_s26 + $0x45d] sm:$0xff]  ;;  %v10345_v26 = vpack.c.bf16 %v3731_v5, %v3730_v48 }
 0x426   : > { %v3838_v44 = vpop.permute.xlu1 %3837  ;;  %v5588_v28 = vld [vmem:[%s7293_s26 + $0x434] sm:$0xff]  ;;  %v5852_v5 = vpack.c.bf16 %v5833_v38, %v5832_v39 }
 0x427   : > { %v10312_v37 = vpop.permute.xlu0 %5648 }
 0x428   : > { %4103 = vrot.lane.b32.xlu1 %v4004_v2, %s7237_s27  ;;  %6173 = vrot.lane.b32.xlu0 %v6072_v4, %s7242_s14  ;;  %v3876_v4 = vsel %vm545_vm0, %v3647_v11, %v3787_v27 }
 0x429   : > { %v3923_v52 = vsel %vm597_vm1, %v3876_v4, %v3838_v44 }
 0x42a   : > { %v10323_v7 = vpop.permute.xlu1 %5943 }
 0x42b   : > { %v10325_v13 = vpop.permute.xlu0 %5699 }
 0x42c   : > { %4398 = vrot.lane.b32.xlu1 %v4299_v8, %s7237_s27  ;;  %4154 = vrot.lane.b32.xlu0 %v10317_v6, %s7238_s28  ;;  %v5557_v8 = vpack.c.bf16 %v5538_v59, %v5537_v29  ;;  %v5589_v6 = vld [vmem:[%s7293_s26 + $0x43c] sm:$0xff]  ;;  %v5200_v29 = vpack.c.bf16 %v5170_v43, %v5169_v56  ;;  %v5229_v43 = vld [vmem:[%s7293_s26 + $0x3a9] sm:$0xff] }
 0x42d   : > { %v5228_v56 = vld [vmem:[%s7293_s26 + $0x3a1] sm:$0xff] }
 0x42e   : > { %v5340_v2 = vpop.permute.xlu1 %5339 }
 0x42f   : > { %v4564_v15 = vpop.permute.xlu0 %4563 }
 0x430   : > { %v3345_v57 = vpop.f32.mrb[48].mxu1  ;;  %4449 = vrot.lane.b32.xlu1 %v4350_v23, %s7238_s28  ;;  %3794 = vrot.lane.b32.xlu0 %v3702_v51, %s7237_s27  ;;  %v4649_v27 = vsel %vm1324_vm4, %v3923_v52, %v4564_v15  ;;  %v10357_v15 = vpack.c.bf16 %v5589_v6, %v5588_v28  ;;  %v12142_v52 = vld [vmem:[#allocation21_spill] sm:$0xff]  ;;  %v5429_v28 = vsel %vm545_vm0, %v5200_v29, %v5340_v2  ;;  %v12143_v6 = vld [vmem:[#allocation35_spill] sm:$0xff] }
 0x431   : > { %v3346_v22 = vadd.f32 %v3345_v57, %v8702_v34  ;;  %v3347_v41 = vpop.f32.mrb[49].mxu1  ;;  %v5883_v29 = vld [vmem:[%s7293_s26 + $0x456] sm:$0xff] }
 0x432   : > { %v3348_v11 = vadd.f32 %v3347_v41, %v8708_v42  ;;  %v3349_v23 = vpop.f32.mrb[50].mxu1  ;;  %v4615_v51 = vpop.permute.xlu1 %4614 }
 0x433   : > { %v3442_v59 = vmax.f32 %v3346_v22, 0.0  ;;  %v3350_v44 = vadd.f32 %v3349_v23, %v8702_v34  ;;  %v3351_v4 = vpop.f32.mrb[51].mxu1  ;;  %v4683_v57 = vsel %vm1359_vm5, %v4649_v27, %v4615_v51  ;;  %v10351_v18 = vpop.permute.xlu0 %5994  ;;  %v4183_v27 = vsel %vm545_vm0, %v10345_v26, %v9895_v12 }
 0x434   : > { %v3443_v46 = vmax.f32 %v3348_v11, 0.0  ;;  %v3352_v48 = vadd.f32 %v3351_v4, %v8708_v42  ;;  %3845 = vrot.lane.b32.xlu1 %v10112_v53, %s7238_s28  ;;  %5656 = vrot.lane.b32.xlu0 %v5557_v8, %s7237_s27  ;;  %v5255_v51 = vpack.c.bf16 %v5229_v43, %v5228_v56  ;;  %v12146_v43 = vld [vmem:[#allocation55_spill] sm:$0xff] }
 0x435   : > { %v3510_v22 = vmul.f32 %v3442_v59, %v12142_v52  ;;  %v3444_v41 = vmax.f32 %v3350_v44, 0.0  ;;  %7091 = vmatmul.mubr.msk.bf16.gmra.mrb[80].mxu0 %vm1423_vm6, %v4683_v57  ;;  %v5283_v57 = vld [vmem:[%s7293_s26 + $0x3c2] sm:$0xff] }
 0x436   : > { %v3511_v11 = vmul.f32 %v3443_v46, %v12142_v52  ;;  %v3445_v53 = vmax.f32 %v3352_v48, 0.0  ;;  %v6117_v8 = vpop.permute.xlu1 %6116  ;;  %4816 = vmatprep.mubr.bf16.mxu0 %v12023_v33  ;;  %v5284_v48 = vld [vmem:[%s7293_s26 + $0x3ca] sm:$0xff] }
 0x437   : > { %v3553_v38 = vadd.f32 %v10289_v30, %v3510_v22  ;;  %v3512_v39 = vmul.f32 %v3444_v41, %v12143_v6  ;;  %v5391_v23 = vpop.permute.xlu0 %5390  ;;  %v5884_v30 = vld [vmem:[%s7293_s26 + $0x45e] sm:$0xff]  ;;  %v4478_v22 = vsel %vm545_vm0, %v12146_v43, %v9911_v36  ;;  %v5171_v52 = vld [vmem:[%s7293_s26 + $0x370] sm:$0xff] }
 0x438   : > { %v3592_v12 = vadd.f32 %v10293_v40, %v3511_v11  ;;  %v3513_v59 = vmul.f32 %v3445_v53, %v12143_v6  ;;  %v5476_v46 = vsel %vm597_vm1, %v5429_v28, %v5391_v23  ;;  %5951 = vrot.lane.b32.xlu1 %v5852_v5, %s7237_s27  ;;  %5707 = vrot.lane.b32.xlu0 %v10357_v15, %s7238_s28  ;;  %v3987_v28 = vld [vmem:[%s7293_s26 + $0x33b] sm:$0xff]  ;;  %v12147_v23 = vld [vmem:[#allocation59_spill] sm:$0xff] }
 0x439   : > { %v10377_v2 = vadd.f32 %v3553_v38, %v3512_v39  ;;  %v4226_v40 = vsel %vm597_vm1, %v4183_v27, %v9917_v10  ;;  %v6202_v56 = vsel %vm1324_vm4, %v5476_v46, %v6117_v8  ;;  %v5903_v11 = vpack.c.bf16 %v5884_v30, %v5883_v29  ;;  %v3986_v8 = vld [vmem:[%s7293_s26 + $0x333] sm:$0xff]  ;;  %v4282_v46 = vld [vmem:[%s7293_s26 + $0x35d] sm:$0xff]  ;;  %v3733_v6 = vld [vmem:[%s7293_s26 + $0x2ca] sm:$0xff] }
 0x43a   : > { %v10381_v44 = vadd.f32 %v3592_v12, %v3513_v59  ;;  %v10383_v4 = vpop.permute.xlu1 %4097  ;;  %v10397_v10 = vpack.c.bf16 %v5284_v48, %v5283_v57  ;;  %v4521_v36 = vsel %vm597_vm1, %v4478_v22, %v9927_v49  ;;  %v4005_v12 = vpack.c.bf16 %v3987_v28, %v3986_v8  ;;  %v4281_v59 = vld [vmem:[%s7293_s26 + $0x355] sm:$0xff]  ;;  %v3677_v28 = vld [vmem:[%s7293_s26 + $0x2a1] sm:$0xff] }
 0x43b   : > { %12144 = vst [vmem:[#allocation54_spill] sm:$0xff] %v10377_v2  ;;  %v6168_v5 = vpop.permute.xlu0 %6167  ;;  %v4037_v29 = vld [vmem:[%s7293_s26 + $0x334] sm:$0xff]  ;;  %v5591_v2 = vld [vmem:[%s7293_s26 + $0x44c] sm:$0xff] }
 0x43c   : > { %12145 = vst [vmem:[#allocation61_spill] sm:$0xff] %v10381_v44  ;;  %v6236_v41 = vsel %vm1359_vm5, %v6202_v56, %v6168_v5  ;;  %5347 = vrot.lane.b32.xlu1 %v5255_v51, %s7237_s27  ;;  %4571 = vrot.lane.b32.xlu0 %v4226_v40, %s7240_s29  ;;  %v5736_v38 = vsel %vm545_vm0, %v10397_v10, %v9944_v54  ;;  %v4038_v54 = vld [vmem:[%s7293_s26 + $0x33c] sm:$0xff]  ;;  %v12148_v30 = vld [vmem:[#allocation48_spill] sm:$0xff] }
 0x43d   : > { %7108 = vmatmul.mubr.msk.bf16.gmra.mrb[80].mxu1 %vm1423_vm6, %v6236_v41  ;;  %v5779_v49 = vsel %vm597_vm1, %v5736_v38, %v12147_v23  ;;  %v12149_v40 = vld [vmem:[#allocation56_spill] sm:$0xff]  ;;  %v3618_v5 = vld [vmem:[%s7293_s26 + $0x260] sm:$0xff]  ;;  %v4300_v41 = vpack.c.bf16 %v4282_v46, %v4281_v59 }
 0x43e   : > { %v10399_v27 = vpop.permute.xlu1 %4392  ;;  %6369 = vmatprep.mubr.bf16.mxu1 %v12023_v33  ;;  %v6031_v57 = vsel %vm545_vm0, %v12149_v40, %v12148_v30  ;;  %v3678_v38 = vld [vmem:[%s7293_s26 + $0x2a9] sm:$0xff] }
 0x43f   : > { %v10404_v53 = vpop.permute.xlu0 %4148  ;;  %v6074_v56 = vsel %vm597_vm1, %v6031_v57, %v9986_v20  ;;  %v4333_v20 = vld [vmem:[%s7293_s26 + $0x35e] sm:$0xff]  ;;  %v5540_v40 = vld [vmem:[%s7293_s26 + $0x44b] sm:$0xff] }
 0x440   : > { %4622 = vrot.lane.b32.xlu1 %v4521_v36, %s7242_s14  ;;  %6002 = vrot.lane.b32.xlu0 %v5903_v11, %s7238_s28  ;;  %v10437_v11 = vpack.c.bf16 %v4038_v54, %v4037_v29  ;;  %v4332_v36 = vld [vmem:[%s7293_s26 + $0x356] sm:$0xff]  ;;  %v3703_v54 = vpack.c.bf16 %v3678_v38, %v3677_v28  ;;  %v5539_v30 = vld [vmem:[%s7293_s26 + $0x443] sm:$0xff] }
 0x441   : > { %v4351_v29 = vpack.c.bf16 %v4333_v20, %v4332_v36  ;;  %v5834_v36 = vld [vmem:[%s7293_s26 + $0x465] sm:$0xff]  ;;  %v5835_v28 = vld [vmem:[%s7293_s26 + $0x46d] sm:$0xff] }
 0x442   : > { %v10413_v39 = vpop.permute.xlu1 %4443  ;;  %v5590_v38 = vld [vmem:[%s7293_s26 + $0x444] sm:$0xff] }
 0x443   : > { %v3789_v51 = vpop.permute.xlu0 %3788 }
 0x444   : > { %6124 = vrot.lane.b32.xlu1 %v5779_v49, %s7240_s29  ;;  %5398 = vrot.lane.b32.xlu0 %v10139_v45, %s7238_s28  ;;  %v3619_v45 = vld [vmem:[%s7293_s26 + $0x268] sm:$0xff] }
 0x445   : > { %v3648_v46 = vpack.c.bf16 %v3619_v45, %v3618_v5  ;;  %v5172_v45 = vld [vmem:[%s7293_s26 + $0x378] sm:$0xff] }
 0x446   : > { %v3840_v48 = vpop.permute.xlu1 %3839 }
 0x447   : > { %v10430_v43 = vpop.permute.xlu0 %5650  ;;  %v3879_v5 = vsel %vm545_vm0, %v3648_v46, %v3789_v51 }
 0x448   : > { %v10433_v22 = vpop.f32.mrb[52].mxu1  ;;  %4105 = vrot.lane.b32.xlu1 %v4005_v12, %s7237_s27  ;;  %6175 = vrot.lane.b32.xlu0 %v6074_v56, %s7242_s14  ;;  %v3732_v56 = vld [vmem:[%s7293_s26 + $0x2c2] sm:$0xff]  ;;  %v3925_v20 = vsel %vm597_vm1, %v3879_v5, %v3840_v48  ;;  %v5853_v48 = vpack.c.bf16 %v5835_v28, %v5834_v36  ;;  %v12154_v36 = vld [vmem:[#allocation57_spill] sm:$0xff] }
 0x449   : > { %12150 = vst [vmem:[#allocation55_spill] sm:$0xff] %v10433_v22  ;;  %v10440_v8 = vpop.f32.mrb[53].mxu1 }
 0x44a   : > { %12151 = vst [vmem:[#allocation59_spill] sm:$0xff] %v10440_v8  ;;  %v10445_v23 = vpop.f32.mrb[54].mxu1  ;;  %v10447_v49 = vpop.permute.xlu1 %5945  ;;  %v5201_v8 = vpack.c.bf16 %v5172_v45, %v5171_v52  ;;  %v5230_v52 = vld [vmem:[%s7293_s26 + $0x3b1] sm:$0xff]  ;;  %v5286_v45 = vld [vmem:[%s7293_s26 + $0x3da] sm:$0xff] }
 0x44b   : > { %12152 = vst [vmem:[#allocation48_spill] sm:$0xff] %v10445_v23  ;;  %v10449_v12 = vpop.f32.mrb[55].mxu1  ;;  %v10451_v59 = vpop.permute.xlu0 %5701 }
 0x44c   : > { %12153 = vst [vmem:[#allocation56_spill] sm:$0xff] %v10449_v12  ;;  %4400 = vrot.lane.b32.xlu1 %v4300_v41, %s7237_s27  ;;  %4156 = vrot.lane.b32.xlu0 %v10437_v11, %s7238_s28  ;;  %v5558_v41 = vpack.c.bf16 %v5540_v40, %v5539_v30  ;;  %v5885_v40 = vld [vmem:[%s7293_s26 + $0x466] sm:$0xff] }
 0x44e   : > { %v5342_v57 = vpop.permute.xlu1 %5341 }
 0x44f   : > { %v4566_v44 = vpop.permute.xlu0 %4565 }
 0x450   : > { %4451 = vrot.lane.b32.xlu1 %v4351_v29, %s7238_s28  ;;  %3796 = vrot.lane.b32.xlu0 %v3703_v54, %s7237_s27  ;;  %v4651_v12 = vsel %vm1324_vm4, %v3925_v20, %v4566_v44  ;;  %v10474_v29 = vpack.c.bf16 %v3733_v6, %v3732_v56  ;;  %v10479_v54 = vpack.c.bf16 %v5591_v2, %v5590_v38  ;;  %v5231_v44 = vld [vmem:[%s7293_s26 + $0x3b9] sm:$0xff]  ;;  %v5886_v56 = vld [vmem:[%s7293_s26 + $0x46e] sm:$0xff] }
 0x451   : > { %v5432_v6 = vsel %vm545_vm0, %v5201_v8, %v5342_v57  ;;  %v5256_v2 = vpack.c.bf16 %v5231_v44, %v5230_v52  ;;  %v5285_v57 = vld [vmem:[%s7293_s26 + $0x3d2] sm:$0xff]  ;;  %v4481_v20 = vsel %vm545_vm0, %v12154_v36, %v10031_v9  ;;  %v5904_v38 = vpack.c.bf16 %v5886_v56, %v5885_v40 }
 0x452   : > { %v4617_v23 = vpop.permute.xlu1 %4616 }
 0x453   : > { %v4685_v51 = vsel %vm1359_vm5, %v4651_v12, %v4617_v23  ;;  %v10472_v46 = vpop.permute.xlu0 %5996 }
 0x454   : > { %3847 = vrot.lane.b32.xlu1 %v10230_v47, %s7238_s28  ;;  %5658 = vrot.lane.b32.xlu0 %v5558_v41, %s7237_s27  ;;  %v4186_v47 = vsel %vm545_vm0, %v10474_v29, %v10015_v60 }
 0x455   : > { %7092 = vmatmul.mubr.msk.bf16.gmra.mrb[84].mxu0 %vm1423_vm6, %v4685_v51  ;;  %v4228_v8 = vsel %vm597_vm1, %v4186_v47, %v10037_v58  ;;  %v10509_v58 = vpack.c.bf16 %v5286_v45, %v5285_v57  ;;  %v4039_v57 = vld [vmem:[%s7293_s26 + $0x344] sm:$0xff]  ;;  %v4040_v45 = vld [vmem:[%s7293_s26 + $0x34c] sm:$0xff] }
 0x456   : > { %v6119_v23 = vpop.permute.xlu1 %6118  ;;  %4826 = vmatprep.mubr.bf16.mxu0 %v12023_v33 }
 0x457   : > { %v5393_v12 = vpop.permute.xlu0 %5392 }
 0x458   : > { %v5478_v30 = vsel %vm597_vm1, %v5432_v6, %v5393_v12  ;;  %5953 = vrot.lane.b32.xlu1 %v5853_v48, %s7237_s27  ;;  %5709 = vrot.lane.b32.xlu0 %v10479_v54, %s7238_s28  ;;  %v4523_v48 = vsel %vm597_vm1, %v4481_v20, %v10047_v55  ;;  %v3989_v6 = vld [vmem:[%s7293_s26 + $0x34b] sm:$0xff]  ;;  %v5739_v55 = vsel %vm545_vm0, %v10509_v58, %v10064_v19 }
 0x459   : > { %v6204_v41 = vsel %vm1324_vm4, %v5478_v30, %v6119_v23  ;;  %v3988_v23 = vld [vmem:[%s7293_s26 + $0x343] sm:$0xff]  ;;  %v5781_v30 = vsel %vm597_vm1, %v5739_v55, %v10080_v50  ;;  %v3620_v20 = vld [vmem:[%s7293_s26 + $0x270] sm:$0xff] }
 0x45a   : > { %v10495_v5 = vpop.permute.xlu1 %4099  ;;  %v4006_v56 = vpack.c.bf16 %v3989_v6, %v3988_v23  ;;  %v4283_v19 = vld [vmem:[%s7293_s26 + $0x365] sm:$0xff]  ;;  %v4335_v23 = vld [vmem:[%s7293_s26 + $0x36e] sm:$0xff] }
 0x45b   : > { %v6170_v60 = vpop.permute.xlu0 %6169  ;;  %v3679_v6 = vld [vmem:[%s7293_s26 + $0x2b1] sm:$0xff] }
 0x45c   : > { %v6238_v28 = vsel %vm1359_vm5, %v6204_v41, %v6170_v60  ;;  %5349 = vrot.lane.b32.xlu1 %v5256_v2, %s7237_s27  ;;  %4573 = vrot.lane.b32.xlu0 %v4228_v8, %s7240_s29  ;;  %v4284_v8 = vld [vmem:[%s7293_s26 + $0x36d] sm:$0xff]  ;;  %v12159_v41 = vld [vmem:[#allocation58_spill] sm:$0xff] }
 0x45d   : > { %7109 = vmatmul.mubr.msk.bf16.gmra.mrb[84].mxu1 %vm1423_vm6, %v6238_v28  ;;  %v6034_v50 = vsel %vm545_vm0, %v12159_v41, %v10077_v61  ;;  %v4334_v61 = vld [vmem:[%s7293_s26 + $0x366] sm:$0xff] }
 0x45e   : > { %v10511_v51 = vpop.permute.xlu1 %4394  ;;  %6379 = vmatprep.mubr.bf16.mxu1 %v12023_v33  ;;  %v6076_v36 = vsel %vm597_vm1, %v6034_v50, %v10110_v1  ;;  %v3680_v1 = vld [vmem:[%s7293_s26 + $0x2b9] sm:$0xff] }
 0x45f   : > { %v10516_v9 = vpop.permute.xlu0 %4150  ;;  %v3734_v50 = vld [vmem:[%s7293_s26 + $0x2d2] sm:$0xff] }
 0x460   : > { %v10518_v52 = vpop.f32.mrb[56].mxu1  ;;  %4624 = vrot.lane.b32.xlu1 %v4523_v48, %s7242_s14  ;;  %6004 = vrot.lane.b32.xlu0 %v5904_v38, %s7238_s28  ;;  %v4301_v38 = vpack.c.bf16 %v4284_v8, %v4283_v19  ;;  %v10555_v48 = vpack.c.bf16 %v4040_v45, %v4039_v57  ;;  %v3704_v19 = vpack.c.bf16 %v3680_v1, %v3679_v6  ;;  %v5541_v8 = vld [vmem:[%s7293_s26 + $0x453] sm:$0xff]  ;;  %v5542_v57 = vld [vmem:[%s7293_s26 + $0x45b] sm:$0xff] }
 0x461   : > { %12155 = vst [vmem:[#allocation57_spill] sm:$0xff] %v10518_v52  ;;  %v10522_v44 = vpop.f32.mrb[57].mxu1  ;;  %v5837_v6 = vld [vmem:[%s7293_s26 + $0x47d] sm:$0xff]  ;;  %v5592_v1 = vld [vmem:[%s7293_s26 + $0x454] sm:$0xff] }
 0x462   : > { %12156 = vst [vmem:[#allocation62_spill] sm:$0xff] %v10522_v44  ;;  %v10529_v12 = vpop.f32.mrb[58].mxu1  ;;  %v10531_v47 = vpop.permute.xlu1 %4445  ;;  %12160 = vst [vmem:[#allocation58_spill] sm:$0xff] %v10555_v48  ;;  %v5593_v44 = vld [vmem:[%s7293_s26 + $0x45c] sm:$0xff] }
 0x463   : > { %12157 = vst [vmem:[#allocation63_spill] sm:$0xff] %v10529_v12  ;;  %v10535_v2 = vpop.f32.mrb[59].mxu1  ;;  %v3791_v40 = vpop.permute.xlu0 %3790 }
 0x464   : > { %12158 = vst [vmem:[#allocation64_spill] sm:$0xff] %v10535_v2  ;;  %6126 = vrot.lane.b32.xlu1 %v5781_v30, %s7240_s29  ;;  %5400 = vrot.lane.b32.xlu0 %v10254_v31, %s7238_s28  ;;  %v3621_v31 = vld [vmem:[%s7293_s26 + $0x278] sm:$0xff]  ;;  %v5173_v2 = vld [vmem:[%s7293_s26 + $0x380] sm:$0xff] }
 0x465   : > { %v3649_v41 = vpack.c.bf16 %v3621_v31, %v3620_v20  ;;  %v5174_v31 = vld [vmem:[%s7293_s26 + $0x388] sm:$0xff] }
 0x466   : > { %v3842_v60 = vpop.permute.xlu1 %3841 }
 0x467   : > { %v10550_v28 = vpop.permute.xlu0 %5652  ;;  %v3882_v20 = vsel %vm545_vm0, %v3649_v41, %v3791_v40 }
 0x468   : > { %4107 = vrot.lane.b32.xlu1 %v4006_v56, %s7237_s27  ;;  %6177 = vrot.lane.b32.xlu0 %v6076_v36, %s7242_s14  ;;  %v4352_v56 = vpack.c.bf16 %v4335_v23, %v4334_v61  ;;  %v3735_v36 = vld [vmem:[%s7293_s26 + $0x2da] sm:$0xff]  ;;  %v3927_v23 = vsel %vm597_vm1, %v3882_v20, %v3842_v60 }
 0x469   : > { %v5836_v61 = vld [vmem:[%s7293_s26 + $0x475] sm:$0xff] }
 0x46a   : > { %v10561_v55 = vpop.permute.xlu1 %5947  ;;  %v5854_v60 = vpack.c.bf16 %v5837_v6, %v5836_v61  ;;  %v5887_v20 = vld [vmem:[%s7293_s26 + $0x476] sm:$0xff]  ;;  %v5288_v61 = vld [vmem:[%s7293_s26 + $0x3ea] sm:$0xff] }
 0x46b   : > { %v10563_v30 = vpop.permute.xlu0 %5703 }
 0x46c   : > { %4402 = vrot.lane.b32.xlu1 %v4301_v38, %s7237_s27  ;;  %4158 = vrot.lane.b32.xlu0 %v10555_v48, %s7238_s28  ;;  %v5559_v38 = vpack.c.bf16 %v5542_v57, %v5541_v8  ;;  %v5202_v48 = vpack.c.bf16 %v5174_v31, %v5173_v2  ;;  %v5233_v2 = vld [vmem:[%s7293_s26 + $0x3c9] sm:$0xff]  ;;  %v5888_v31 = vld [vmem:[%s7293_s26 + $0x47e] sm:$0xff] }
 0x46e   : > { %v5344_v45 = vpop.permute.xlu1 %5343 }
 0x46f   : > { %v4568_v12 = vpop.permute.xlu0 %4567 }
 0x470   : > { %4453 = vrot.lane.b32.xlu1 %v4352_v56, %s7238_s28  ;;  %3798 = vrot.lane.b32.xlu0 %v3704_v19, %s7237_s27  ;;  %v4653_v52 = vsel %vm1324_vm4, %v3927_v23, %v4568_v12  ;;  %v10586_v56 = vpack.c.bf16 %v3735_v36, %v3734_v50  ;;  %v10591_v19 = vpack.c.bf16 %v5593_v44, %v5592_v1  ;;  %v5232_v12 = vld [vmem:[%s7293_s26 + $0x3c1] sm:$0xff] }
 0x471   : > { %v5257_v50 = vpack.c.bf16 %v5233_v2, %v5232_v12 }
 0x472   : > { %v4619_v22 = vpop.permute.xlu1 %4618 }
 0x473   : > { %v4687_v40 = vsel %vm1359_vm5, %v4653_v52, %v4619_v22  ;;  %v10584_v41 = vpop.permute.xlu0 %5998  ;;  %v5435_v22 = vsel %vm545_vm0, %v5202_v48, %v5344_v45 }
 0x474   : > { %3849 = vrot.lane.b32.xlu1 %v10345_v26, %s7238_s28  ;;  %5660 = vrot.lane.b32.xlu0 %v5559_v38, %s7237_s27  ;;  %v4189_v26 = vsel %vm545_vm0, %v10586_v56, %v10135_v62  ;;  %v5287_v38 = vld [vmem:[%s7293_s26 + $0x3e2] sm:$0xff] }
 0x475   : > { %7093 = vmatmul.mubr.msk.bf16.gmra.mrb[88].mxu0 %vm1423_vm6, %v4687_v40  ;;  %v4230_v62 = vsel %vm597_vm1, %v4189_v26, %v10154_v14  ;;  %v12161_v40 = vld [vmem:[#allocation47_spill] sm:$0xff]  ;;  %v5905_v14 = vpack.c.bf16 %v5888_v31, %v5887_v20  ;;  %v10629_v2 = vpack.c.bf16 %v5288_v61, %v5287_v38 }
 0x476   : > { %v6121_v8 = vpop.permute.xlu1 %6120  ;;  %4836 = vmatprep.mubr.bf16.mxu0 %v12023_v33  ;;  %v3737_v26 = vld [vmem:[%s7293_s26 + $0x2ea] sm:$0xff] }
 0x477   : > { %v5395_v52 = vpop.permute.xlu0 %5394  ;;  %v5742_v20 = vsel %vm545_vm0, %v10629_v2, %v10188_v21  ;;  %v12162_v21 = vld [vmem:[#allocation60_spill] sm:$0xff] }
 0x478   : > { %v5480_v44 = vsel %vm597_vm1, %v5435_v22, %v5395_v52  ;;  %v10602_v57 = vpop.f32.mrb[60].mxu1  ;;  %5955 = vrot.lane.b32.xlu1 %v5854_v60, %s7237_s27  ;;  %5711 = vrot.lane.b32.xlu0 %v10591_v19, %s7238_s28  ;;  %v4484_v60 = vsel %vm545_vm0, %v12161_v40, %v10149_v35  ;;  %v3736_v52 = vld [vmem:[%s7293_s26 + $0x2e2] sm:$0xff] }
 0x479   : > { %v10607_v36 = vpop.f32.mrb[61].mxu1  ;;  %v6206_v6 = vsel %vm1324_vm4, %v5480_v44, %v6121_v8  ;;  %v4525_v22 = vsel %vm597_vm1, %v4484_v60, %v10165_v63  ;;  %v3681_v44 = vld [vmem:[%s7293_s26 + $0x2c1] sm:$0xff]  ;;  %v5783_v63 = vsel %vm597_vm1, %v5742_v20, %v10207_v24  ;;  %v10651_v38 = vpack.c.bf16 %v3737_v26, %v3736_v52  ;;  %v5289_v52 = vld [vmem:[%s7293_s26 + $0x3f2] sm:$0xff] }
 0x47a   : > { %v10611_v48 = vpop.f32.mrb[62].mxu1  ;;  %v10613_v45 = vpop.permute.xlu1 %4101  ;;  %v5290_v26 = vld [vmem:[%s7293_s26 + $0x3fa] sm:$0xff] }
 0x47b   : > { %v10619_v23 = vpop.f32.mrb[63].mxu1  ;;  %v6172_v1 = vpop.permute.xlu0 %6171  ;;  %v4192_v60 = vsel %vm545_vm0, %v10651_v38, %v10257_v0  ;;  %v12163_v0 = vld [vmem:[#allocation49_spill] sm:$0xff] }
 0x47c   : > { %v6240_v12 = vsel %vm1359_vm5, %v6206_v6, %v6172_v1  ;;  %5351 = vrot.lane.b32.xlu1 %v5257_v50, %s7237_s27  ;;  %4575 = vrot.lane.b32.xlu0 %v4230_v62, %s7240_s29  ;;  %v3682_v50 = vld [vmem:[%s7293_s26 + $0x2c9] sm:$0xff]  ;;  %v6037_v6 = vsel %vm545_vm0, %v12162_v21, %v10205_v25 }
 0x47d   : > { %7110 = vmatmul.mubr.msk.bf16.gmra.mrb[88].mxu1 %vm1423_vm6, %v6240_v12  ;;  %v3705_v61 = vpack.c.bf16 %v3682_v50, %v3681_v44  ;;  %v6078_v24 = vsel %vm597_vm1, %v6037_v6, %v10228_v32  ;;  %v3622_v12 = vld [vmem:[%s7293_s26 + $0x280] sm:$0xff]  ;;  %v4232_v32 = vsel %vm597_vm1, %v4192_v60, %v10280_v3  ;;  %v4487_v50 = vsel %vm545_vm0, %v12163_v0, %v10273_v16  ;;  %v3738_v6 = vld [vmem:[%s7293_s26 + $0x2f2] sm:$0xff] }
 0x47e   : > { %v10631_v8 = vpop.permute.xlu1 %4396  ;;  %6389 = vmatprep.mubr.bf16.mxu1 %v12023_v33  ;;  %v10686_v3 = vpack.c.bf16 %v5290_v26, %v5289_v52  ;;  %v4527_v21 = vsel %vm597_vm1, %v4487_v50, %v10295_v17  ;;  %v5175_v60 = vld [vmem:[%s7293_s26 + $0x390] sm:$0xff]  ;;  %v3684_v52 = vld [vmem:[%s7293_s26 + $0x2d9] sm:$0xff] }
 0x47f   : > { %v10636_v35 = vpop.permute.xlu0 %4152 }
 0x480   : > { %4626 = vrot.lane.b32.xlu1 %v4525_v22, %s7242_s14  ;;  %6006 = vrot.lane.b32.xlu0 %v5905_v14, %s7238_s28  ;;  %v5234_v14 = vld [vmem:[%s7293_s26 + $0x3d1] sm:$0xff]  ;;  %v5235_v22 = vld [vmem:[%s7293_s26 + $0x3d9] sm:$0xff]  ;;  %v5745_v17 = vsel %vm545_vm0, %v10686_v3, %v10312_v37 }
 0x481   : > { %v5785_v50 = vsel %vm597_vm1, %v5745_v17, %v10325_v13  ;;  %v12167_v13 = vld [vmem:[#allocation50_spill] sm:$0xff]  ;;  %v5292_v17 = vld [vmem:[%s7293_s26 + $0x40a] sm:$0xff] }
 0x482   : > { %v10647_v31 = vpop.permute.xlu1 %4447 }
 0x483   : > { %v3793_v62 = vpop.permute.xlu0 %3792 }
 0x484   : > { %6128 = vrot.lane.b32.xlu1 %v5783_v63, %s7240_s29  ;;  %5402 = vrot.lane.b32.xlu0 %v10397_v10, %s7238_s28  ;;  %v3623_v10 = vld [vmem:[%s7293_s26 + $0x288] sm:$0xff]  ;;  %v5258_v63 = vpack.c.bf16 %v5235_v22, %v5234_v14 }
 0x485   : > { %v3650_v20 = vpack.c.bf16 %v3623_v10, %v3622_v12  ;;  %v5176_v12 = vld [vmem:[%s7293_s26 + $0x398] sm:$0xff] }
 0x486   : > { %v3844_v1 = vpop.permute.xlu1 %3843 }
 0x487   : > { %v10661_v40 = vpop.permute.xlu0 %5654  ;;  %v3885_v16 = vsel %vm545_vm0, %v3650_v20, %v3793_v62  ;;  %v5203_v20 = vpack.c.bf16 %v5176_v12, %v5175_v60 }
 0x488   : > { %3800 = vrot.lane.b32.xlu1 %v3705_v61, %s7237_s27  ;;  %6179 = vrot.lane.b32.xlu0 %v6078_v24, %s7242_s14  ;;  %v3929_v14 = vsel %vm597_vm1, %v3885_v16, %v3844_v1 }
 0x48a   : > { %v10672_v25 = vpop.permute.xlu1 %5949 }
 0x48b   : > { %v10678_v44 = vpop.permute.xlu0 %5705 }
 0x48c   : > { %4577 = vrot.lane.b32.xlu1 %v4232_v32, %s7240_s29  ;;  %3851 = vrot.lane.b32.xlu0 %v10474_v29, %s7238_s28  ;;  %v3739_v29 = vld [vmem:[%s7293_s26 + $0x2fa] sm:$0xff]  ;;  %v3683_v32 = vld [vmem:[%s7293_s26 + $0x2d1] sm:$0xff] }
 0x48d   : > { %v10717_v16 = vpack.c.bf16 %v3739_v29, %v3738_v6  ;;  %v3706_v37 = vpack.c.bf16 %v3684_v52, %v3683_v32  ;;  %v5237_v32 = vld [vmem:[%s7293_s26 + $0x3e9] sm:$0xff] }
 0x48e   : > { %v5346_v61 = vpop.permute.xlu1 %5345 }
 0x48f   : > { %v4570_v24 = vpop.permute.xlu0 %4569  ;;  %v5438_v12 = vsel %vm545_vm0, %v5203_v20, %v5346_v61  ;;  %v5291_v61 = vld [vmem:[%s7293_s26 + $0x402] sm:$0xff] }
 0x490   : > { %v10694_v10 = vpop.f32.mrb[64].mxu1  ;;  %4628 = vrot.lane.b32.xlu1 %v4527_v21, %s7242_s14  ;;  %5353 = vrot.lane.b32.xlu0 %v5258_v63, %s7237_s27  ;;  %v4655_v62 = vsel %vm1324_vm4, %v3929_v14, %v4570_v24  ;;  %v6040_v24 = vsel %vm545_vm0, %v12167_v13, %v10323_v7  ;;  %v5236_v7 = vld [vmem:[%s7293_s26 + $0x3e1] sm:$0xff] }
 0x491   : > { %v10700_v22 = vpop.f32.mrb[65].mxu1  ;;  %v6080_v6 = vsel %vm597_vm1, %v6040_v24, %v10351_v18  ;;  %v3740_v24 = vld [vmem:[%s7293_s26 + $0x302] sm:$0xff] }
 0x492   : > { %12164 = vst [vmem:[#allocation47_spill] sm:$0xff] %v10700_v22  ;;  %v10708_v26 = vpop.f32.mrb[66].mxu1  ;;  %v4621_v0 = vpop.permute.xlu1 %4620 }
 0x493   : > { %12165 = vst [vmem:[#allocation60_spill] sm:$0xff] %v10708_v26  ;;  %v4689_v63 = vsel %vm1359_vm5, %v4655_v62, %v4621_v0  ;;  %v10713_v1 = vpop.f32.mrb[67].mxu1  ;;  %v10715_v21 = vpop.permute.xlu0 %6000  ;;  %v12168_v0 = vld [vmem:[#allocation51_spill] sm:$0xff] }
 0x494   : > { %12166 = vst [vmem:[#allocation49_spill] sm:$0xff] %v10713_v1  ;;  %6130 = vrot.lane.b32.xlu1 %v5785_v50, %s7240_s29  ;;  %5404 = vrot.lane.b32.xlu0 %v10509_v58, %s7238_s28  ;;  %v4195_v58 = vsel %vm545_vm0, %v10717_v16, %v10383_v4  ;;  %v4490_v50 = vsel %vm545_vm0, %v12168_v0, %v10399_v27  ;;  %v5178_v1 = vld [vmem:[%s7293_s26 + $0x3a8] sm:$0xff] }
 0x495   : > { %7094 = vmatmul.mubr.msk.bf16.gmra.mrb[92].mxu0 %vm1423_vm6, %v4689_v63  ;;  %v4234_v18 = vsel %vm597_vm1, %v4195_v58, %v10404_v53  ;;  %v5259_v53 = vpack.c.bf16 %v5237_v32, %v5236_v7  ;;  %v10753_v63 = vpack.c.bf16 %v5292_v17, %v5291_v61  ;;  %v4529_v27 = vsel %vm597_vm1, %v4490_v50, %v10413_v39  ;;  %v12169_v32 = vld [vmem:[#allocation52_spill] sm:$0xff]  ;;  %v5239_v50 = vld [vmem:[%s7293_s26 + $0x3f9] sm:$0xff] }
 0x496   : > { %v6123_v60 = vpop.permute.xlu1 %6122  ;;  %4846 = vmatprep.mubr.bf16.mxu0 %v12023_v33 }
 0x497   : > { %v5397_v29 = vpop.permute.xlu0 %5396 }
 0x498   : > { %v5482_v14 = vsel %vm597_vm1, %v5438_v12, %v5397_v29  ;;  %3802 = vrot.lane.b32.xlu1 %v3706_v37, %s7237_s27  ;;  %6181 = vrot.lane.b32.xlu0 %v6080_v6, %s7242_s14  ;;  %v3686_v6 = vld [vmem:[%s7293_s26 + $0x2e9] sm:$0xff]  ;;  %v5748_v12 = vsel %vm545_vm0, %v10753_v63, %v10430_v43  ;;  %v6043_v43 = vsel %vm545_vm0, %v12169_v32, %v10447_v49  ;;  %v12170_v32 = vld [vmem:[#allocation53_spill] sm:$0xff] }
 0x499   : > { %v6208_v62 = vsel %vm1324_vm4, %v5482_v14, %v6123_v60  ;;  %v3685_v60 = vld [vmem:[%s7293_s26 + $0x2e1] sm:$0xff]  ;;  %v5787_v39 = vsel %vm597_vm1, %v5748_v12, %v10451_v59  ;;  %v6082_v61 = vsel %vm597_vm1, %v6043_v43, %v10472_v46  ;;  %v5238_v46 = vld [vmem:[%s7293_s26 + $0x3f1] sm:$0xff]  ;;  %v4493_v43 = vsel %vm545_vm0, %v12170_v32, %v10511_v51 }
 0x49a   : > { %v10738_v52 = vpop.permute.xlu1 %4103  ;;  %v3707_v7 = vpack.c.bf16 %v3686_v6, %v3685_v60  ;;  %v4531_v51 = vsel %vm597_vm1, %v4493_v43, %v10531_v47 }
 0x49b   : > { %v6174_v4 = vpop.permute.xlu0 %6173 }
 0x49c   : > { %v6242_v20 = vsel %vm1359_vm5, %v6208_v62, %v6174_v4  ;;  %4579 = vrot.lane.b32.xlu1 %v4234_v18, %s7240_s29  ;;  %3853 = vrot.lane.b32.xlu0 %v10586_v56, %s7238_s28  ;;  %v3741_v56 = vld [vmem:[%s7293_s26 + $0x30a] sm:$0xff]  ;;  %v3625_v4 = vld [vmem:[%s7293_s26 + $0x298] sm:$0xff] }
 0x49d   : > { %7111 = vmatmul.mubr.msk.bf16.gmra.mrb[92].mxu1 %vm1423_vm6, %v6242_v20  ;;  %v10775_v14 = vpack.c.bf16 %v3741_v56, %v3740_v24  ;;  %v3624_v62 = vld [vmem:[%s7293_s26 + $0x290] sm:$0xff]  ;;  %v5294_v56 = vld [vmem:[%s7293_s26 + $0x41a] sm:$0xff] }
 0x49e   : > { %v10755_v37 = vpop.permute.xlu1 %4398  ;;  %6399 = vmatprep.mubr.bf16.mxu1 %v12023_v33  ;;  %v5293_v24 = vld [vmem:[%s7293_s26 + $0x412] sm:$0xff]  ;;  %v3651_v60 = vpack.c.bf16 %v3625_v4, %v3624_v62 }
 0x49f   : > { %v10760_v13 = vpop.permute.xlu0 %4154  ;;  %v4198_v17 = vsel %vm545_vm0, %v10775_v14, %v10495_v5  ;;  %v10816_v4 = vpack.c.bf16 %v5294_v56, %v5293_v24 }
 0x4a0   : > { %4630 = vrot.lane.b32.xlu1 %v4529_v27, %s7242_s14  ;;  %5355 = vrot.lane.b32.xlu0 %v5259_v53, %s7237_s27  ;;  %v4236_v5 = vsel %vm597_vm1, %v4198_v17, %v10516_v9  ;;  %v5260_v17 = vpack.c.bf16 %v5239_v50, %v5238_v46 }
 0x4a2   : > { %v10771_v29 = vpop.permute.xlu1 %4449 }
 0x4a3   : > { %v3795_v58 = vpop.permute.xlu0 %3794 }
 0x4a4   : > { %6132 = vrot.lane.b32.xlu1 %v5787_v39, %s7240_s29  ;;  %5406 = vrot.lane.b32.xlu0 %v10629_v2, %s7238_s28  ;;  %v3888_v46 = vsel %vm545_vm0, %v3651_v60, %v3795_v58  ;;  %v5751_v58 = vsel %vm545_vm0, %v10816_v4, %v10550_v28 }
 0x4a6   : > { %v3846_v18 = vpop.permute.xlu1 %3845 }
 0x4a7   : > { %v10785_v59 = vpop.permute.xlu0 %5656  ;;  %v3931_v47 = vsel %vm597_vm1, %v3888_v46, %v3846_v18 }
 0x4a8   : > { %v4778_v2 = vpop.f32.mrb[68].mxu0  ;;  %3804 = vrot.lane.b32.xlu1 %v3707_v7, %s7237_s27  ;;  %6183 = vrot.lane.b32.xlu0 %v6082_v61, %s7242_s14  ;;  %v3742_v61 = vld [vmem:[%s7293_s26 + $0x312] sm:$0xff] }
 0x4a9   : > { %v4779_v49 = vadd.f32 %v4778_v2, %v8702_v34  ;;  %v4780_v0 = vpop.f32.mrb[69].mxu0  ;;  %v3743_v2 = vld [vmem:[%s7293_s26 + $0x31a] sm:$0xff] }
 0x4aa   : > { %v4781_v20 = vadd.f32 %v4780_v0, %v8708_v42  ;;  %v4782_v53 = vpop.f32.mrb[70].mxu0  ;;  %v10798_v27 = vpop.permute.xlu1 %5951 }
 0x4ab   : > { %v4947_v6 = vmax.f32 %v4779_v49, 0.0  ;;  %v4783_v12 = vadd.f32 %v4782_v53, %v8702_v34  ;;  %v10805_v39 = vpop.permute.xlu0 %5707  ;;  %v4784_v7 = vpop.f32.mrb[71].mxu0  ;;  %v5177_v53 = vld [vmem:[%s7293_s26 + $0x3a0] sm:$0xff] }
 0x4ac   : > { %v4948_v0 = vmax.f32 %v4781_v20, 0.0  ;;  %v4785_v9 = vadd.f32 %v4784_v7, %v8708_v42  ;;  %3855 = vrot.lane.b32.xlu0 %v10651_v38, %s7238_s28  ;;  %4581 = vrot.lane.b32.xlu1 %v4236_v5, %s7240_s29  ;;  %v10822_v20 = vpack.c.bf16 %v3743_v2, %v3742_v61  ;;  %v12171_v7 = vld [vmem:[#allocation2_spill] sm:$0xff]  ;;  %v5204_v43 = vpack.c.bf16 %v5178_v1, %v5177_v53  ;;  %v3687_v2 = vld [vmem:[%s7293_s26 + $0x2f1] sm:$0xff] }
 0x4ad   : > { %v4949_v62 = vmax.f32 %v4783_v12, 0.0  ;;  %v5015_v32 = vmul.f32 %v4947_v6, %v12171_v7  ;;  %v12172_v38 = vld [vmem:[#allocation14_spill] sm:$0xff] }
 0x4ae   : > { %v4950_v49 = vmax.f32 %v4785_v9, 0.0  ;;  %v5348_v26 = vpop.permute.xlu1 %5347  ;;  %v5016_v50 = vmul.f32 %v4948_v0, %v12171_v7  ;;  %v3688_v9 = vld [vmem:[%s7293_s26 + $0x2f9] sm:$0xff] }
 0x4af   : > { %v5017_v22 = vmul.f32 %v4949_v62, %v12172_v38  ;;  %v4572_v5 = vpop.permute.xlu0 %4571 }
 0x4b0   : > { %v5018_v24 = vmul.f32 %v4950_v49, %v12172_v38  ;;  %v6331_v56 = vpop.f32.mrb[68].mxu1  ;;  %4632 = vrot.lane.b32.xlu1 %v4531_v51, %s7242_s14  ;;  %5357 = vrot.lane.b32.xlu0 %v5260_v17, %s7237_s27  ;;  %v4657_v0 = vsel %vm1324_vm4, %v3931_v47, %v4572_v5  ;;  %v3708_v5 = vpack.c.bf16 %v3688_v9, %v3687_v2 }
 0x4b1   : > { %v10832_v12 = vadd.f32 %v5017_v22, %v5015_v32  ;;  %v6332_v6 = vadd.f32 %v6331_v56, %v8702_v34  ;;  %v6333_v61 = vpop.f32.mrb[69].mxu1  ;;  %v5789_v22 = vsel %vm597_vm1, %v5751_v58, %v10563_v30  ;;  %v6046_v30 = vsel %vm545_vm0, %v10357_v15, %v10561_v55  ;;  %v5240_v58 = vld [vmem:[%s7293_s26 + $0x401] sm:$0xff] }
 0x4b2   : > { %v10840_v60 = vadd.f32 %v5018_v24, %v5016_v50  ;;  %v6334_v17 = vadd.f32 %v6333_v61, %v8708_v42  ;;  %v6335_v62 = vpop.f32.mrb[70].mxu1  ;;  %v4623_v18 = vpop.permute.xlu1 %4622  ;;  %v6084_v24 = vsel %vm597_vm1, %v6046_v30, %v10584_v41 }
 0x4b3   : > { %v6500_v1 = vmax.f32 %v6332_v6, 0.0  ;;  %v6336_v49 = vadd.f32 %v6335_v62, %v8702_v34  ;;  %v4691_v53 = vsel %vm1359_vm5, %v4657_v0, %v4623_v18  ;;  %v6337_v51 = vpop.f32.mrb[71].mxu1  ;;  %v10848_v32 = vpop.permute.xlu0 %6002  ;;  %v5441_v6 = vsel %vm545_vm0, %v5204_v43, %v5348_v26  ;;  %v5241_v26 = vld [vmem:[%s7293_s26 + $0x409] sm:$0xff] }
 0x4b4   : > { %v6501_v28 = vmax.f32 %v6334_v17, 0.0  ;;  %v6338_v46 = vadd.f32 %v6337_v51, %v8708_v42  ;;  %5408 = vrot.lane.b32.xlu0 %v10686_v3, %s7238_s28  ;;  %6134 = vrot.lane.b32.xlu1 %v5789_v22, %s7240_s29  ;;  %v4201_v3 = vsel %vm545_vm0, %v10822_v20, %v10613_v45  ;;  %v4496_v22 = vsel %vm545_vm0, %v10437_v11, %v10631_v8  ;;  %v3744_v51 = vld [vmem:[%s7293_s26 + $0x322] sm:$0xff] }
 0x4b5   : > { %v6502_v50 = vmax.f32 %v6336_v49, 0.0  ;;  %7095 = vmatmul.mubr.msk.bf16.gmra.mrb[96].mxu0 %vm1423_vm6, %v4691_v53  ;;  %v6568_v15 = vmul.f32 %v6500_v1, %v12171_v7  ;;  %v4238_v17 = vsel %vm597_vm1, %v4201_v3, %v10636_v35  ;;  %v5261_v35 = vpack.c.bf16 %v5241_v26, %v5240_v58  ;;  %v5297_v58 = vld [vmem:[%s7293_s26 + $0x432] sm:$0xff]  ;;  %v5298_v26 = vld [vmem:[%s7293_s26 + $0x43a] sm:$0xff] }
 0x4b6   : > { %v6503_v56 = vmax.f32 %v6338_v46, 0.0  ;;  %v6125_v47 = vpop.permute.xlu1 %6124  ;;  %4856 = vmatprep.mubr.bf16.mxu0 %v12023_v33  ;;  %v6569_v41 = vmul.f32 %v6501_v28, %v12171_v7  ;;  %v5295_v7 = vld [vmem:[%s7293_s26 + $0x422] sm:$0xff]  ;;  %v4533_v11 = vsel %vm597_vm1, %v4496_v22, %v10647_v31 }
 0x4b7   : > { %v6570_v55 = vmul.f32 %v6502_v50, %v12172_v38  ;;  %v5399_v61 = vpop.permute.xlu0 %5398  ;;  %v3689_v28 = vld [vmem:[%s7293_s26 + $0x301] sm:$0xff]  ;;  %v3690_v46 = vld [vmem:[%s7293_s26 + $0x309] sm:$0xff] }
 0x4b8   : > { %v6571_v2 = vmul.f32 %v6503_v56, %v12172_v38  ;;  %v5484_v9 = vsel %vm597_vm1, %v5441_v6, %v5399_v61  ;;  %3806 = vrot.lane.b32.xlu1 %v3708_v5, %s7237_s27  ;;  %6185 = vrot.lane.b32.xlu0 %v6084_v24, %s7242_s14  ;;  %v5296_v38 = vld [vmem:[%s7293_s26 + $0x42a] sm:$0xff]  ;;  %v3709_v56 = vpack.c.bf16 %v3690_v46, %v3689_v28  ;;  %v3626_v6 = vld [vmem:[%s7293_s26 + $0x2a0] sm:$0xff] }
 0x4b9   : > { %v10872_v45 = vadd.f32 %v6570_v55, %v6568_v15  ;;  %v6210_v62 = vsel %vm1324_vm4, %v5484_v9, %v6125_v47  ;;  %v10893_v49 = vpack.c.bf16 %v5296_v38, %v5295_v7  ;;  %v3627_v15 = vld [vmem:[%s7293_s26 + $0x2a8] sm:$0xff]  ;;  %v5243_v61 = vld [vmem:[%s7293_s26 + $0x419] sm:$0xff]  ;;  %v12174_v28 = vld [vmem:[#allocation16_spill] sm:$0xff] }
 0x4ba   : > { %v10876_v43 = vadd.f32 %v6571_v2, %v6569_v41  ;;  %v10878_v0 = vpop.permute.xlu1 %4105  ;;  %v12173_v22 = vld [vmem:[#allocation58_spill] sm:$0xff] }
 0x4bb   : > { %v6176_v18 = vpop.permute.xlu0 %6175  ;;  %v5754_v5 = vsel %vm545_vm0, %v10893_v49, %v10661_v40  ;;  %v6049_v40 = vsel %vm545_vm0, %v10479_v54, %v10672_v25 }
 0x4bc   : > { %v6244_v1 = vsel %vm1359_vm5, %v6210_v62, %v6176_v18  ;;  %3857 = vrot.lane.b32.xlu0 %v10717_v16, %s7238_s28  ;;  %4583 = vrot.lane.b32.xlu1 %v4238_v17, %s7240_s29  ;;  %v3745_v16 = vld [vmem:[%s7293_s26 + $0x32a] sm:$0xff]  ;;  %v5791_v31 = vsel %vm597_vm1, %v5754_v5, %v10678_v44  ;;  %v6086_v3 = vsel %vm597_vm1, %v6049_v40, %v10715_v21 }
 0x4bd   : > { %7112 = vmatmul.mubr.msk.bf16.gmra.mrb[96].mxu1 %vm1423_vm6, %v6244_v1  ;;  %v10915_v24 = vpack.c.bf16 %v3745_v16, %v3744_v51  ;;  %v5242_v21 = vld [vmem:[%s7293_s26 + $0x411] sm:$0xff]  ;;  %v3652_v17 = vpack.c.bf16 %v3627_v15, %v3626_v6  ;;  %v4499_v1 = vsel %vm545_vm0, %v12173_v22, %v10755_v37 }
 0x4be   : > { %v10895_v53 = vpop.permute.xlu1 %4400  ;;  %6409 = vmatprep.mubr.bf16.mxu1 %v12023_v33  ;;  %v5262_v16 = vpack.c.bf16 %v5243_v61, %v5242_v21  ;;  %v5179_v40 = vld [vmem:[%s7293_s26 + $0x3b0] sm:$0xff]  ;;  %v4535_v6 = vsel %vm597_vm1, %v4499_v1, %v10771_v29 }
 0x4bf   : > { %v10900_v8 = vpop.permute.xlu0 %4156 }
 0x4c0   : > { %5359 = vrot.lane.b32.xlu0 %v5261_v35, %s7237_s27  ;;  %4634 = vrot.lane.b32.xlu1 %v4533_v11, %s7242_s14  ;;  %v10951_v35 = vld [vmem:[%s7293_s26 + $0x332] sm:$0xff]  ;;  %v10954_v11 = vld [vmem:[%s7293_s26 + $0x33a] sm:$0xff] }
 0x4c2   : > { %v10911_v30 = vpop.permute.xlu1 %4451 }
 0x4c3   : > { %v3797_v50 = vpop.permute.xlu0 %3796 }
 0x4c4   : > { %5410 = vrot.lane.b32.xlu0 %v10753_v63, %s7238_s28  ;;  %6136 = vrot.lane.b32.xlu1 %v5791_v31, %s7240_s29  ;;  %v4204_v63 = vsel %vm545_vm0, %v10915_v24, %v10738_v52  ;;  %v10961_v31 = vpack.c.bf16 %v5298_v26, %v5297_v58  ;;  %v3891_v21 = vsel %vm545_vm0, %v3652_v17, %v3797_v50  ;;  %v3691_v50 = vld [vmem:[%s7293_s26 + $0x311] sm:$0xff]  ;;  %v3692_v17 = vld [vmem:[%s7293_s26 + $0x319] sm:$0xff] }
 0x4c5   : > { %v4240_v52 = vsel %vm597_vm1, %v4204_v63, %v10760_v13 }
 0x4c6   : > { %v3848_v47 = vpop.permute.xlu1 %3847 }
 0x4c7   : > { %v10925_v44 = vpop.permute.xlu0 %5658  ;;  %v3933_v29 = vsel %vm597_vm1, %v3891_v21, %v3848_v47 }
 0x4c8   : > { %v4788_v55 = vpop.f32.mrb[72].mxu0  ;;  %3808 = vrot.lane.b32.xlu1 %v3709_v56, %s7237_s27  ;;  %6187 = vrot.lane.b32.xlu0 %v6086_v3, %s7242_s14  ;;  %v5180_v3 = vld [vmem:[%s7293_s26 + $0x3b8] sm:$0xff] }
 0x4c9   : > { %v4789_v54 = vadd.f32 %v4788_v55, %v8702_v34  ;;  %v4790_v25 = vpop.f32.mrb[73].mxu0  ;;  %v12175_v55 = vld [vmem:[#allocation4_spill] sm:$0xff] }
 0x4ca   : > { %v4791_v41 = vadd.f32 %v4790_v25, %v8708_v42  ;;  %v4792_v2 = vpop.f32.mrb[74].mxu0  ;;  %v10938_v9 = vpop.permute.xlu1 %5953 }
 0x4cb   : > { %v4951_v7 = vmax.f32 %v4789_v54, 0.0  ;;  %v4793_v38 = vadd.f32 %v4792_v2, %v8702_v34  ;;  %v10945_v62 = vpop.permute.xlu0 %5709  ;;  %v4794_v18 = vpop.f32.mrb[75].mxu0 }
 0x4cc   : > { %v4952_v13 = vmax.f32 %v4791_v41, 0.0  ;;  %v4795_v51 = vadd.f32 %v4794_v18, %v8708_v42  ;;  %3859 = vrot.lane.b32.xlu0 %v10775_v14, %s7238_s28  ;;  %4585 = vrot.lane.b32.xlu1 %v4240_v52, %s7240_s29  ;;  %v3954_v14 = vpack.c.bf16 %v10954_v11, %v10951_v35  ;;  %v4245_v35 = vld [vmem:[%s7293_s26 + $0x354] sm:$0xff]  ;;  %v4246_v11 = vld [vmem:[%s7293_s26 + $0x35c] sm:$0xff] }
 0x4cd   : > { %v5019_v46 = vmul.f32 %v4951_v7, %v12174_v28  ;;  %v4953_v5 = vmax.f32 %v4793_v38, 0.0 }
 0x4ce   : > { %v5020_v37 = vmul.f32 %v4952_v13, %v12174_v28  ;;  %v4954_v56 = vmax.f32 %v4795_v51, 0.0  ;;  %v5350_v63 = vpop.permute.xlu1 %5349 }
 0x4cf   : > { %v5084_v15 = vadd.f32 %v10832_v12, %v5019_v46  ;;  %v5021_v54 = vmul.f32 %v4953_v5, %v12175_v55  ;;  %v4574_v25 = vpop.permute.xlu0 %4573  ;;  %v5205_v12 = vpack.c.bf16 %v5180_v3, %v5179_v40 }
 0x4d0   : > { %v5123_v61 = vadd.f32 %v10840_v60, %v5020_v37  ;;  %v5022_v41 = vmul.f32 %v4954_v56, %v12175_v55  ;;  %v6341_v2 = vpop.f32.mrb[72].mxu1  ;;  %5361 = vrot.lane.b32.xlu0 %v5262_v16, %s7237_s27  ;;  %4636 = vrot.lane.b32.xlu1 %v4535_v6, %s7242_s14  ;;  %v5757_v60 = vsel %vm545_vm0, %v10961_v31, %v10785_v59 }
 0x4d1   : > { %v10978_v52 = vadd.f32 %v5084_v15, %v5021_v54  ;;  %v6342_v58 = vadd.f32 %v6341_v2, %v8702_v34  ;;  %v6343_v26 = vpop.f32.mrb[73].mxu1  ;;  %v4659_v38 = vsel %vm1324_vm4, %v3933_v29, %v4574_v25  ;;  %v5793_v1 = vsel %vm597_vm1, %v5757_v60, %v10805_v39 }
 0x4d2   : > { %v10986_v7 = vadd.f32 %v5123_v61, %v5022_v41  ;;  %v6344_v18 = vadd.f32 %v6343_v26, %v8708_v42  ;;  %v6345_v22 = vpop.f32.mrb[74].mxu1  ;;  %v4625_v47 = vpop.permute.xlu1 %4624  ;;  %v3710_v56 = vpack.c.bf16 %v3692_v17, %v3691_v50  ;;  %v6052_v39 = vsel %vm545_vm0, %v10591_v19, %v10798_v27 }
 0x4d3   : > { %v6504_v13 = vmax.f32 %v6342_v58, 0.0  ;;  %v6346_v51 = vadd.f32 %v6345_v22, %v8702_v34  ;;  %v4693_v16 = vsel %vm1359_vm5, %v4659_v38, %v4625_v47  ;;  %v6347_v46 = vpop.f32.mrb[75].mxu1  ;;  %v10996_v59 = vpop.permute.xlu0 %6004  ;;  %v6088_v6 = vsel %vm597_vm1, %v6052_v39, %v10848_v32  ;;  %v5799_v22 = vld [vmem:[%s7293_s26 + $0x46c] sm:$0xff] }
 0x4d4   : > { %v6505_v5 = vmax.f32 %v6344_v18, 0.0  ;;  %v6348_v37 = vadd.f32 %v6347_v46, %v8708_v42  ;;  %5412 = vrot.lane.b32.xlu0 %v10816_v4, %s7238_s28  ;;  %6138 = vrot.lane.b32.xlu1 %v5793_v1, %s7240_s29  ;;  %v4249_v15 = vpack.c.bf16 %v4246_v11, %v4245_v35  ;;  %v4207_v19 = vsel %vm545_vm0, %v3954_v14, %v10878_v0  ;;  %v5244_v14 = vld [vmem:[%s7293_s26 + $0x421] sm:$0xff]  ;;  %v3694_v11 = vld [vmem:[%s7293_s26 + $0x329] sm:$0xff] }
 0x4d5   : > { %v6572_v40 = vmul.f32 %v6504_v13, %v12174_v28  ;;  %v6506_v3 = vmax.f32 %v6346_v51, 0.0  ;;  %7096 = vmatmul.mubr.msk.bf16.gmra.mrb[100].mxu0 %vm1423_vm6, %v4693_v16  ;;  %v5444_v27 = vsel %vm545_vm0, %v5205_v12, %v5350_v63  ;;  %v5245_v63 = vld [vmem:[%s7293_s26 + $0x429] sm:$0xff]  ;;  %v4242_v12 = vsel %vm597_vm1, %v4207_v19, %v10900_v8  ;;  %v3693_v35 = vld [vmem:[%s7293_s26 + $0x321] sm:$0xff]  ;;  %v5246_v19 = vld [vmem:[%s7293_s26 + $0x431] sm:$0xff] }
 0x4d6   : > { %v6573_v54 = vmul.f32 %v6505_v5, %v12174_v28  ;;  %v6507_v4 = vmax.f32 %v6348_v37, 0.0  ;;  %v6127_v25 = vpop.permute.xlu1 %6126  ;;  %4866 = vmatprep.mubr.bf16.mxu0 %v12023_v33  ;;  %v4502_v50 = vsel %vm545_vm0, %v4249_v15, %v10895_v53  ;;  %v5263_v8 = vpack.c.bf16 %v5245_v63, %v5244_v14  ;;  %v5798_v18 = vld [vmem:[%s7293_s26 + $0x464] sm:$0xff]  ;;  %v4248_v39 = vld [vmem:[%s7293_s26 + $0x36c] sm:$0xff] }
 0x4d7   : > { %v6637_v21 = vadd.f32 %v10872_v45, %v6572_v40  ;;  %v6574_v32 = vmul.f32 %v6506_v3, %v12175_v55  ;;  %v5401_v61 = vpop.permute.xlu0 %5400  ;;  %v4537_v53 = vsel %vm597_vm1, %v4502_v50, %v10911_v30  ;;  %v3952_v1 = vld [vmem:[%s7293_s26 + $0x342] sm:$0xff]  ;;  %v5802_v51 = vpack.c.bf16 %v5799_v22, %v5798_v18 }
 0x4d8   : > { %v6676_v41 = vadd.f32 %v10876_v43, %v6573_v54  ;;  %v6575_v28 = vmul.f32 %v6507_v4, %v12175_v55  ;;  %v5486_v2 = vsel %vm597_vm1, %v5444_v27, %v5401_v61  ;;  %3810 = vrot.lane.b32.xlu1 %v3710_v56, %s7237_s27  ;;  %6189 = vrot.lane.b32.xlu0 %v6088_v6, %s7242_s14  ;;  %v5503_v43 = vld [vmem:[%s7293_s26 + $0x442] sm:$0xff]  ;;  %v5504_v55 = vld [vmem:[%s7293_s26 + $0x44a] sm:$0xff] }
 0x4d9   : > { %v11021_v0 = vadd.f32 %v6637_v21, %v6574_v32  ;;  %v6212_v58 = vsel %vm1324_vm4, %v5486_v2, %v6127_v25  ;;  %v5507_v60 = vpack.c.bf16 %v5504_v55, %v5503_v43  ;;  %v3711_v37 = vpack.c.bf16 %v3694_v11, %v3693_v35  ;;  %v4247_v56 = vld [vmem:[%s7293_s26 + $0x364] sm:$0xff]  ;;  %v3629_v54 = vld [vmem:[%s7293_s26 + $0x2b8] sm:$0xff] }
 0x4da   : > { %v11025_v29 = vadd.f32 %v6676_v41, %v6575_v28  ;;  %v4108_v45 = vpop.permute.xlu1 %4107  ;;  %v4250_v15 = vpack.c.bf16 %v4248_v39, %v4247_v56  ;;  %v5505_v28 = vld [vmem:[%s7293_s26 + $0x452] sm:$0xff]  ;;  %v5506_v2 = vld [vmem:[%s7293_s26 + $0x45a] sm:$0xff] }
 0x4db   : > { %v6178_v26 = vpop.permute.xlu0 %6177  ;;  %v5760_v13 = vsel %vm545_vm0, %v5507_v60, %v10925_v44  ;;  %v6055_v44 = vsel %vm545_vm0, %v5802_v51, %v10938_v9  ;;  %v5508_v18 = vpack.c.bf16 %v5506_v2, %v5505_v28  ;;  %v282_v28 = vld [vmem:[%s11893_s1 + $0xd0] sm:$0xff] }
 0x4dc   : > { %v6246_v17 = vsel %vm1359_vm5, %v6212_v58, %v6178_v26  ;;  %3861 = vrot.lane.b32.xlu0 %v10822_v20, %s7238_s28  ;;  %4587 = vrot.lane.b32.xlu1 %v4242_v12, %s7240_s29  ;;  %v3953_v20 = vld [vmem:[%s7293_s26 + $0x34a] sm:$0xff]  ;;  %v5795_v30 = vsel %vm597_vm1, %v5760_v13, %v10945_v62  ;;  %v6090_v3 = vsel %vm597_vm1, %v6055_v44, %v10996_v59  ;;  %v5247_v59 = vld [vmem:[%s7293_s26 + $0x439] sm:$0xff] }
 0x4dd   : > { %7113 = vmatmul.mubr.msk.bf16.gmra.mrb[100].mxu1 %vm1423_vm6, %v6246_v17  ;;  %v3955_v5 = vpack.c.bf16 %v3953_v20, %v3952_v1  ;;  %v5800_v58 = vld [vmem:[%s7293_s26 + $0x474] sm:$0xff]  ;;  %v5801_v26 = vld [vmem:[%s7293_s26 + $0x47c] sm:$0xff]  ;;  %v5264_v17 = vpack.c.bf16 %v5247_v59, %v5246_v19  ;;  %v12177_v13 = vld [vmem:[#allocation3_spill] sm:$0xff] }
 0x4de   : > { %v4403_v38 = vpop.permute.xlu1 %4402  ;;  %6419 = vmatprep.mubr.bf16.mxu1 %v12023_v33  ;;  %v5181_v1 = vld [vmem:[%s7293_s26 + $0x3c0] sm:$0xff] }
 0x4df   : > { %v4159_v47 = vpop.permute.xlu0 %4158  ;;  %v4210_v6 = vsel %vm545_vm0, %v3955_v5, %v4108_v45  ;;  %v4505_v43 = vsel %vm545_vm0, %v4250_v15, %v4403_v38  ;;  %v5182_v38 = vld [vmem:[%s7293_s26 + $0x3c8] sm:$0xff] }
 0x4e0   : > { %5363 = vrot.lane.b32.xlu0 %v5263_v8, %s7237_s27  ;;  %4638 = vrot.lane.b32.xlu1 %v4537_v53, %s7242_s14  ;;  %v4244_v61 = vsel %vm597_vm1, %v4210_v6, %v4159_v47  ;;  %v12176_v8 = vld [vmem:[#allocation15_spill] sm:$0xff] }
 0x4e2   : > { %v4454_v16 = vpop.permute.xlu1 %4453 }
 0x4e3   : > { %v3799_v46 = vpop.permute.xlu0 %3798  ;;  %v4539_v35 = vsel %vm597_vm1, %v4505_v43, %v4454_v16  ;;  %v3631_v43 = vld [vmem:[%s7293_s26 + $0x2c8] sm:$0xff] }
 0x4e4   : > { %5414 = vrot.lane.b32.xlu0 %v10893_v49, %s7238_s28  ;;  %6140 = vrot.lane.b32.xlu1 %v5795_v30, %s7240_s29  ;;  %v3628_v49 = vld [vmem:[%s7293_s26 + $0x2b0] sm:$0xff] }
 0x4e5   : > { %v3653_v41 = vpack.c.bf16 %v3629_v54, %v3628_v49 }
 0x4e6   : > { %v3850_v40 = vpop.permute.xlu1 %3849 }
 0x4e7   : > { %v5661_v62 = vpop.permute.xlu0 %5660  ;;  %v3894_v5 = vsel %vm545_vm0, %v3653_v41, %v3799_v46 }
 0x4e8   : > { %v4798_v4 = vpop.f32.mrb[76].mxu0  ;;  %3812 = vrot.lane.b32.xlu1 %v3711_v37, %s7237_s27  ;;  %6191 = vrot.lane.b32.xlu0 %v6090_v3, %s7242_s14  ;;  %v3935_v44 = vsel %vm597_vm1, %v3894_v5, %v3850_v40  ;;  %v5763_v15 = vsel %vm545_vm0, %v5508_v18, %v5661_v62  ;;  %v283_v18 = vld [vmem:[%s11893_s1 + $0xd8] sm:$0xff] }
 0x4e9   : > { %v4799_v25 = vadd.f32 %v4798_v4, %v8702_v34  ;;  %v4800_v9 = vpop.f32.mrb[77].mxu0  ;;  %v5184_v5 = vld [vmem:[%s7293_s26 + $0x3d8] sm:$0xff] }
 0x4ea   : > { %v4801_v27 = vadd.f32 %v4800_v9, %v8708_v42  ;;  %v4802_v21 = vpop.f32.mrb[78].mxu0  ;;  %v5956_v32 = vpop.permute.xlu1 %5955 }
 0x4eb   : > { %v4955_v14 = vmax.f32 %v4799_v25, 0.0  ;;  %v4803_v63 = vadd.f32 %v4802_v21, %v8702_v34  ;;  %v5712_v45 = vpop.permute.xlu0 %5711  ;;  %v4804_v12 = vpop.f32.mrb[79].mxu0 }
 0x4ec   : > { %v4956_v55 = vmax.f32 %v4801_v27, 0.0  ;;  %v4805_v50 = vadd.f32 %v4804_v12, %v8708_v42  ;;  %3863 = vrot.lane.b32.xlu0 %v10915_v24, %s7238_s28  ;;  %4589 = vrot.lane.b32.xlu1 %v4244_v61, %s7240_s29  ;;  %v5803_v24 = vpack.c.bf16 %v5801_v26, %v5800_v58  ;;  %v5797_v25 = vsel %vm597_vm1, %v5763_v15, %v5712_v45  ;;  %v3630_v12 = vld [vmem:[%s7293_s26 + $0x2c0] sm:$0xff]  ;;  %v289_v15 = vld [vmem:[%s11893_s1 + $0x108] sm:$0xff] }
 0x4ed   : > { %v5023_v60 = vmul.f32 %v4955_v14, %v12176_v8  ;;  %v4957_v53 = vmax.f32 %v4803_v63, 0.0 }
 0x4ee   : > { %v5024_v22 = vmul.f32 %v4956_v55, %v12176_v8  ;;  %v4958_v47 = vmax.f32 %v4805_v50, 0.0  ;;  %v5352_v20 = vpop.permute.xlu1 %5351  ;;  %v6058_v2 = vsel %vm545_vm0, %v5803_v24, %v5956_v32 }
 0x4ef   : > { %v5086_v11 = vadd.f32 %v10978_v52, %v5023_v60  ;;  %v5025_v51 = vmul.f32 %v4957_v53, %v12177_v13  ;;  %v4576_v30 = vpop.permute.xlu0 %4575  ;;  %v5206_v52 = vpack.c.bf16 %v5182_v38, %v5181_v1  ;;  %v3654_v53 = vpack.c.bf16 %v3631_v43, %v3630_v12 }
 0x4f0   : > { %v5125_v37 = vadd.f32 %v10986_v7, %v5024_v22  ;;  %v5026_v56 = vmul.f32 %v4958_v47, %v12177_v13  ;;  %v6351_v39 = vpop.f32.mrb[76].mxu1  ;;  %5365 = vrot.lane.b32.xlu0 %v5264_v17, %s7237_s27  ;;  %4640 = vrot.lane.b32.xlu1 %v4539_v35, %s7242_s14  ;;  %v4661_v7 = vsel %vm1324_vm4, %v3935_v44, %v4576_v30  ;;  %v286_v35 = vld [vmem:[%s11893_s1 + $0xf0] sm:$0xff] }
 0x4f1   : > { %v11096_v16 = vadd.f32 %v5086_v11, %v5025_v51  ;;  %v6352_v3 = vadd.f32 %v6351_v39, %v8702_v34  ;;  %v6353_v6 = vpop.f32.mrb[77].mxu1  ;;  %v285_v11 = vld [vmem:[%s11893_s1 + $0xe8] sm:$0xff]  ;;  %v5183_v30 = vld [vmem:[%s7293_s26 + $0x3d0] sm:$0xff] }
 0x4f2   : > { %v11100_v46 = vadd.f32 %v5125_v37, %v5026_v56  ;;  %v6354_v49 = vadd.f32 %v6353_v6, %v8708_v42  ;;  %v6355_v54 = vpop.f32.mrb[78].mxu1  ;;  %v4627_v4 = vpop.permute.xlu1 %4626  ;;  %v288_v37 = vld [vmem:[%s11893_s1 + $0x100] sm:$0xff]  ;;  %v287_v56 = vld [vmem:[%s11893_s1 + $0xf8] sm:$0xff] }
 0x4f3   : > { %v6508_v9 = vmax.f32 %v6352_v3, 0.0  ;;  %v6356_v40 = vadd.f32 %v6355_v54, %v8702_v34  ;;  %v4695_v19 = vsel %vm1359_vm5, %v4661_v7, %v4627_v4  ;;  %v6357_v59 = vpop.f32.mrb[79].mxu1  ;;  %v6007_v27 = vpop.permute.xlu0 %6006  ;;  %v5207_v3 = vpack.c.bf16 %v5184_v5, %v5183_v30  ;;  %v3633_v54 = vld [vmem:[%s7293_s26 + $0x2d8] sm:$0xff] }
 0x4f4   : > { %v6509_v62 = vmax.f32 %v6354_v49, 0.0  ;;  %v6358_v21 = vadd.f32 %v6357_v59, %v8708_v42  ;;  %5416 = vrot.lane.b32.xlu0 %v10961_v31, %s7238_s28  ;;  %6142 = vrot.lane.b32.xlu1 %v5797_v25, %s7240_s29  ;;  %v5447_v31 = vsel %vm545_vm0, %v5206_v52, %v5352_v20  ;;  %v6092_v26 = vsel %vm597_vm1, %v6058_v2, %v6007_v27  ;;  %v3632_v49 = vld [vmem:[%s7293_s26 + $0x2d0] sm:$0xff] }
 0x4f5   : > { %v6576_v61 = vmul.f32 %v6508_v9, %v12176_v8  ;;  %v6510_v41 = vmax.f32 %v6356_v40, 0.0  ;;  %7097 = vmatmul.mubr.msk.bf16.gmra.mrb[104].mxu0 %vm1423_vm6, %v4695_v19  ;;  %v3655_v27 = vpack.c.bf16 %v3633_v54, %v3632_v49 }
 0x4f6   : > { %v6577_v14 = vmul.f32 %v6509_v62, %v12176_v8  ;;  %v6511_v63 = vmax.f32 %v6358_v21, 0.0  ;;  %v6129_v45 = vpop.permute.xlu1 %6128  ;;  %4876 = vmatprep.mubr.bf16.mxu0 %v12023_v33 }
 0x4f7   : > { %v6639_v55 = vadd.f32 %v11021_v0, %v6576_v61  ;;  %v6578_v58 = vmul.f32 %v6510_v41, %v12177_v13  ;;  %v5403_v50 = vpop.permute.xlu0 %5402  ;;  %v284_v0 = vld [vmem:[%s11893_s1 + $0xe0] sm:$0xff] }
 0x4f8   : > { %v6678_v17 = vadd.f32 %v11025_v29, %v6577_v14  ;;  %v6579_v32 = vmul.f32 %v6511_v63, %v12177_v13  ;;  %v5488_v8 = vsel %vm597_vm1, %v5447_v31, %v5403_v50  ;;  %1871 = vperm.xlu1 %7173, %v282_v28   ;;  %6193 = vrot.lane.b32.xlu0 %v6092_v26, %s7242_s14  ;;  %v12178_v31 = vld [vmem:[#allocation18_spill] sm:$0xff] }
 0x4f9   : > { %v11129_v60 = vadd.f32 %v6639_v55, %v6578_v58  ;;  %v6214_v47 = vsel %vm1324_vm4, %v5488_v8, %v6129_v45 }
 0x4fa   : > { %v11137_v22 = vadd.f32 %v6678_v17, %v6579_v32  ;;  %v3801_v29 = vpop.permute.xlu1 %3800 }
 0x4fb   : > { %v6180_v1 = vpop.permute.xlu0 %6179  ;;  %v3897_v20 = vsel %vm545_vm0, %v3654_v53, %v3801_v29  ;;  %v12179_v53 = vld [vmem:[#allocation6_spill] sm:$0xff] }
 0x4fc   : > { %v6248_v38 = vsel %vm1359_vm5, %v6214_v47, %v6180_v1  ;;  %1881 = vperm.xlu1 %7173, %v284_v0   ;;  %1876 = vperm.xlu0 %7172, %v283_v18  }
 0x4fd   : > { %7114 = vmatmul.mubr.msk.bf16.gmra.mrb[104].mxu1 %vm1423_vm6, %v6248_v38 }
 0x4fe   : > { %v4578_v13 = vpop.permute.xlu1 %4577  ;;  %6429 = vmatprep.mubr.bf16.mxu1 %v12023_v33 }
 0x4ff   : > { %v3852_v51 = vpop.permute.xlu0 %3851 }
 0x500   : > { %v3937_v24 = vsel %vm597_vm1, %v3897_v20, %v3852_v51  ;;  %1891 = vperm.xlu1 %7173, %v286_v35   ;;  %1886 = vperm.xlu0 %7172, %v285_v11   ;;  %v5185_v20 = vld [vmem:[%s7293_s26 + $0x3e0] sm:$0xff]  ;;  %v5186_v35 = vld [vmem:[%s7293_s26 + $0x3e8] sm:$0xff] }
 0x501   : > { %v4663_v44 = vsel %vm1324_vm4, %v3937_v24, %v4578_v13 }
 0x502   : > { %v4629_v39 = vpop.permute.xlu1 %4628 }
 0x503   : > { %v4697_v52 = vsel %vm1359_vm5, %v4663_v44, %v4629_v39  ;;  %v5354_v6 = vpop.permute.xlu0 %5353 }
 0x504   : > { %1901 = vperm.xlu1 %7173, %v288_v37   ;;  %1896 = vperm.xlu0 %7172, %v287_v56   ;;  %v5450_v4 = vsel %vm545_vm0, %v5207_v3, %v5354_v6 }
 0x505   : > { %7098 = vmatmul.mubr.msk.bf16.gmra.mrb[108].mxu0 %vm1423_vm6, %v4697_v52  ;;  %v5208_v52 = vpack.c.bf16 %v5186_v35, %v5185_v20 }
 0x506   : > { %v6131_v7 = vpop.permute.xlu1 %6130  ;;  %4886 = vmatprep.mubr.bf16.mxu0 %v12023_v33 }
 0x507   : > { %v5405_v25 = vpop.permute.xlu0 %5404 }
 0x508   : > { %v5490_v9 = vsel %vm597_vm1, %v5450_v4, %v5405_v25  ;;  %v4808_v40 = vpop.f32.mrb[80].mxu0  ;;  %1906 = vperm.xlu0 %7172, %v289_v15  }
 0x509   : > { %v4809_v19 = vadd.f32 %v4808_v40, %v8702_v34  ;;  %v4810_v59 = vpop.f32.mrb[81].mxu0  ;;  %v6216_v2 = vsel %vm1324_vm4, %v5490_v9, %v6131_v7  ;;  %v3634_v9 = vld [vmem:[%s7293_s26 + $0x2e0] sm:$0xff]  ;;  %v3635_v40 = vld [vmem:[%s7293_s26 + $0x2e8] sm:$0xff] }
 0x50a   : > { %v4811_v62 = vadd.f32 %v4810_v59, %v8708_v42  ;;  %v4812_v21 = vpop.f32.mrb[82].mxu0  ;;  %v3803_v61 = vpop.permute.xlu1 %3802 }
 0x50b   : > { %v4959_v41 = vmax.f32 %v4809_v19, 0.0  ;;  %v4813_v28 = vadd.f32 %v4812_v21, %v8702_v34  ;;  %v6182_v14 = vpop.permute.xlu0 %6181  ;;  %v4814_v63 = vpop.f32.mrb[83].mxu0  ;;  %v3900_v26 = vsel %vm545_vm0, %v3655_v27, %v3803_v61 }
 0x50c   : > { %v4960_v45 = vmax.f32 %v4811_v62, 0.0  ;;  %v6250_v12 = vsel %vm1359_vm5, %v6216_v2, %v6182_v14  ;;  %v4815_v43 = vadd.f32 %v4814_v63, %v8708_v42  ;;  %v3656_v2 = vpack.c.bf16 %v3635_v40, %v3634_v9 }
 0x50d   : > { %v5027_v55 = vmul.f32 %v4959_v41, %v12178_v31  ;;  %v4961_v58 = vmax.f32 %v4813_v28, 0.0  ;;  %7115 = vmatmul.mubr.msk.bf16.gmra.mrb[108].mxu1 %vm1423_vm6, %v6250_v12 }
 0x50e   : > { %v5028_v50 = vmul.f32 %v4960_v45, %v12178_v31  ;;  %v4962_v17 = vmax.f32 %v4815_v43, 0.0  ;;  %v4580_v32 = vpop.permute.xlu1 %4579  ;;  %6439 = vmatprep.mubr.bf16.mxu1 %v12023_v33 }
 0x50f   : > { %v5088_v8 = vadd.f32 %v11096_v16, %v5027_v55  ;;  %v5029_v0 = vmul.f32 %v4961_v58, %v12179_v53  ;;  %v3854_v18 = vpop.permute.xlu0 %3853  ;;  %v5187_v58 = vld [vmem:[%s7293_s26 + $0x3f0] sm:$0xff] }
 0x510   : > { %v5127_v29 = vadd.f32 %v11100_v46, %v5028_v50  ;;  %v5030_v47 = vmul.f32 %v4962_v17, %v12179_v53  ;;  %v3939_v1 = vsel %vm597_vm1, %v3900_v26, %v3854_v18  ;;  %v6361_v38 = vpop.f32.mrb[80].mxu1  ;;  %v5188_v26 = vld [vmem:[%s7293_s26 + $0x3f8] sm:$0xff]  ;;  %v3636_v18 = vld [vmem:[%s7293_s26 + $0x2f0] sm:$0xff] }
 0x511   : > { %v11188_v11 = vadd.f32 %v5088_v8, %v5029_v0  ;;  %v6362_v13 = vadd.f32 %v6361_v38, %v8702_v34  ;;  %v6363_v51 = vpop.f32.mrb[81].mxu1  ;;  %v4665_v46 = vsel %vm1324_vm4, %v3939_v1, %v4580_v32  ;;  %v5209_v8 = vpack.c.bf16 %v5188_v26, %v5187_v58 }
 0x512   : > { %v11191_v24 = vadd.f32 %v5127_v29, %v5030_v47  ;;  %v6364_v16 = vadd.f32 %v6363_v51, %v8708_v42  ;;  %v6365_v30 = vpop.f32.mrb[82].mxu1  ;;  %v4631_v5 = vpop.permute.xlu1 %4630  ;;  %v3637_v29 = vld [vmem:[%s7293_s26 + $0x2f8] sm:$0xff] }
 0x513   : > { %v6512_v37 = vmax.f32 %v6362_v13, 0.0  ;;  %v6366_v56 = vadd.f32 %v6365_v30, %v8702_v34  ;;  %v6367_v39 = vpop.f32.mrb[83].mxu1  ;;  %v4699_v44 = vsel %vm1359_vm5, %v4665_v46, %v4631_v5  ;;  %v5356_v3 = vpop.permute.xlu0 %5355  ;;  %v3657_v51 = vpack.c.bf16 %v3637_v29, %v3636_v18 }
 0x514   : > { %v6513_v6 = vmax.f32 %v6364_v16, 0.0  ;;  %v6368_v15 = vadd.f32 %v6367_v39, %v8708_v42  ;;  %7099 = vmatmul.mubr.msk.bf16.gmra.mrb[112].mxu0 %vm1423_vm6, %v4699_v44  ;;  %v5453_v27 = vsel %vm545_vm0, %v5208_v52, %v5356_v3 }
 0x515   : > { %v6580_v7 = vmul.f32 %v6512_v37, %v12178_v31  ;;  %v6514_v49 = vmax.f32 %v6366_v56, 0.0  ;;  %4896 = vmatprep.mubr.bf16.mxu0 %v12023_v33 }
 0x516   : > { %v6581_v54 = vmul.f32 %v6513_v6, %v12178_v31  ;;  %v6515_v4 = vmax.f32 %v6368_v15, 0.0  ;;  %v6133_v25 = vpop.permute.xlu1 %6132  ;;  %v12180_v15 = vld [vmem:[#allocation17_spill] sm:$0xff] }
 0x517   : > { %v6641_v19 = vadd.f32 %v11129_v60, %v6580_v7  ;;  %v6582_v59 = vmul.f32 %v6514_v49, %v12179_v53  ;;  %v5407_v62 = vpop.permute.xlu0 %5406 }
 0x518   : > { %v6680_v21 = vadd.f32 %v11137_v22, %v6581_v54  ;;  %v6583_v61 = vmul.f32 %v6515_v4, %v12179_v53  ;;  %v5492_v41 = vsel %vm597_vm1, %v5453_v27, %v5407_v62 }
 0x519   : > { %v11210_v28 = vadd.f32 %v6641_v19, %v6582_v59  ;;  %v6218_v60 = vsel %vm1324_vm4, %v5492_v41, %v6133_v25  ;;  %v12181_v19 = vld [vmem:[#allocation27_spill] sm:$0xff] }
 0x51a   : > { %v11212_v14 = vadd.f32 %v6680_v21, %v6583_v61  ;;  %v3805_v63 = vpop.permute.xlu1 %3804 }
 0x51b   : > { %v6184_v45 = vpop.permute.xlu0 %6183  ;;  %v3903_v43 = vsel %vm545_vm0, %v3656_v2, %v3805_v63  ;;  %v5189_v2 = vld [vmem:[%s7293_s26 + $0x400] sm:$0xff]  ;;  %v5190_v63 = vld [vmem:[%s7293_s26 + $0x408] sm:$0xff] }
 0x51c   : > { %v6252_v12 = vsel %vm1359_vm5, %v6218_v60, %v6184_v45 }
 0x51d   : > { %7116 = vmatmul.mubr.msk.bf16.gmra.mrb[112].mxu1 %vm1423_vm6, %v6252_v12 }
 0x51e   : > { %v4582_v22 = vpop.permute.xlu1 %4581  ;;  %6449 = vmatprep.mubr.bf16.mxu1 %v12023_v33 }
 0x51f   : > { %v3856_v31 = vpop.permute.xlu0 %3855 }
 0x520   : > { %v3941_v55 = vsel %vm597_vm1, %v3903_v43, %v3856_v31 }
 0x521   : > { %v4667_v17 = vsel %vm1324_vm4, %v3941_v55, %v4582_v22 }
 0x522   : > { %v4633_v50 = vpop.permute.xlu1 %4632 }
 0x523   : > { %v4701_v32 = vsel %vm1359_vm5, %v4667_v17, %v4633_v50  ;;  %v5358_v53 = vpop.permute.xlu0 %5357  ;;  %v5210_v17 = vpack.c.bf16 %v5190_v63, %v5189_v2 }
 0x524   : > { %7100 = vmatmul.mubr.msk.bf16.gmra.mrb[116].mxu0 %vm1423_vm6, %v4701_v32  ;;  %v5456_v47 = vsel %vm545_vm0, %v5209_v8, %v5358_v53 }
 0x525   : > { %4906 = vmatprep.mubr.bf16.mxu0 %v12023_v33 }
 0x526   : > { %v6135_v0 = vpop.permute.xlu1 %6134 }
 0x527   : > { %v5409_v1 = vpop.permute.xlu0 %5408 }
 0x528   : > { %v5494_v38 = vsel %vm597_vm1, %v5456_v47, %v5409_v1  ;;  %v4818_v20 = vpop.f32.mrb[84].mxu0 }
 0x529   : > { %v4819_v35 = vadd.f32 %v4818_v20, %v8702_v34  ;;  %v4820_v13 = vpop.f32.mrb[85].mxu0  ;;  %v6220_v56 = vsel %vm1324_vm4, %v5494_v38, %v6135_v0  ;;  %v3638_v38 = vld [vmem:[%s7293_s26 + $0x300] sm:$0xff]  ;;  %v3639_v20 = vld [vmem:[%s7293_s26 + $0x308] sm:$0xff] }
 0x52a   : > { %v4821_v16 = vadd.f32 %v4820_v13, %v8708_v42  ;;  %v4822_v30 = vpop.f32.mrb[86].mxu0  ;;  %v3807_v5 = vpop.permute.xlu1 %3806 }
 0x52b   : > { %v4963_v46 = vmax.f32 %v4819_v35, 0.0  ;;  %v4823_v37 = vadd.f32 %v4822_v30, %v8702_v34  ;;  %v6186_v39 = vpop.permute.xlu0 %6185  ;;  %v4824_v44 = vpop.f32.mrb[87].mxu0  ;;  %v3906_v54 = vsel %vm545_vm0, %v3657_v51, %v3807_v5 }
 0x52c   : > { %v4964_v52 = vmax.f32 %v4821_v16, 0.0  ;;  %v6254_v3 = vsel %vm1359_vm5, %v6220_v56, %v6186_v39  ;;  %v4825_v6 = vadd.f32 %v4824_v44, %v8708_v42  ;;  %v3658_v56 = vpack.c.bf16 %v3639_v20, %v3638_v38 }
 0x52d   : > { %v5031_v7 = vmul.f32 %v4963_v46, %v12180_v15  ;;  %v4965_v49 = vmax.f32 %v4823_v37, 0.0  ;;  %7117 = vmatmul.mubr.msk.bf16.gmra.mrb[116].mxu1 %vm1423_vm6, %v6254_v3 }
 0x52e   : > { %v5032_v4 = vmul.f32 %v4964_v52, %v12180_v15  ;;  %v4966_v25 = vmax.f32 %v4825_v6, 0.0  ;;  %v4584_v9 = vpop.permute.xlu1 %4583  ;;  %6459 = vmatprep.mubr.bf16.mxu1 %v12023_v33 }
 0x52f   : > { %v5090_v40 = vadd.f32 %v11188_v11, %v5031_v7  ;;  %v5033_v59 = vmul.f32 %v4965_v49, %v12181_v19  ;;  %v3858_v27 = vpop.permute.xlu0 %3857  ;;  %v5191_v49 = vld [vmem:[%s7293_s26 + $0x410] sm:$0xff] }
 0x530   : > { %v5129_v62 = vadd.f32 %v11191_v24, %v5032_v4  ;;  %v5034_v21 = vmul.f32 %v4966_v25, %v12181_v19  ;;  %v3943_v61 = vsel %vm597_vm1, %v3906_v54, %v3858_v27  ;;  %v6371_v41 = vpop.f32.mrb[84].mxu1  ;;  %v5192_v54 = vld [vmem:[%s7293_s26 + $0x418] sm:$0xff]  ;;  %v3640_v27 = vld [vmem:[%s7293_s26 + $0x310] sm:$0xff] }
 0x531   : > { %v11248_v60 = vadd.f32 %v5090_v40, %v5033_v59  ;;  %v6372_v45 = vadd.f32 %v6371_v41, %v8702_v34  ;;  %v6373_v12 = vpop.f32.mrb[85].mxu1  ;;  %v4669_v24 = vsel %vm1324_vm4, %v3943_v61, %v4584_v9  ;;  %v5211_v40 = vpack.c.bf16 %v5192_v54, %v5191_v49 }
 0x532   : > { %v11251_v43 = vadd.f32 %v5129_v62, %v5034_v21  ;;  %v6374_v11 = vadd.f32 %v6373_v12, %v8708_v42  ;;  %v6375_v22 = vpop.f32.mrb[86].mxu1  ;;  %v4635_v31 = vpop.permute.xlu1 %4634  ;;  %v3641_v62 = vld [vmem:[%s7293_s26 + $0x318] sm:$0xff] }
 0x533   : > { %v6516_v55 = vmax.f32 %v6372_v45, 0.0  ;;  %v6376_v58 = vadd.f32 %v6375_v22, %v8702_v34  ;;  %v6377_v26 = vpop.f32.mrb[87].mxu1  ;;  %v4703_v50 = vsel %vm1359_vm5, %v4669_v24, %v4635_v31  ;;  %v5360_v32 = vpop.permute.xlu0 %5359  ;;  %v3659_v12 = vpack.c.bf16 %v3641_v62, %v3640_v27 }
 0x534   : > { %v6517_v8 = vmax.f32 %v6374_v11, 0.0  ;;  %v6378_v53 = vadd.f32 %v6377_v26, %v8708_v42  ;;  %7101 = vmatmul.mubr.msk.bf16.gmra.mrb[120].mxu0 %vm1423_vm6, %v4703_v50  ;;  %v5459_v51 = vsel %vm545_vm0, %v5210_v17, %v5360_v32 }
 0x535   : > { %v6584_v0 = vmul.f32 %v6516_v55, %v12180_v15  ;;  %v6518_v18 = vmax.f32 %v6376_v58, 0.0  ;;  %4916 = vmatprep.mubr.bf16.mxu0 %v12023_v33 }
 0x536   : > { %v6585_v29 = vmul.f32 %v6517_v8, %v12180_v15  ;;  %v6519_v47 = vmax.f32 %v6378_v53, 0.0  ;;  %v6137_v1 = vpop.permute.xlu1 %6136  ;;  %v12182_v53 = vld [vmem:[#allocation28_spill] sm:$0xff] }
 0x537   : > { %v6643_v35 = vadd.f32 %v11210_v28, %v6584_v0  ;;  %v6586_v13 = vmul.f32 %v6518_v18, %v12181_v19  ;;  %v5411_v16 = vpop.permute.xlu0 %5410 }
 0x538   : > { %v6682_v30 = vadd.f32 %v11212_v14, %v6585_v29  ;;  %v6587_v5 = vmul.f32 %v6519_v47, %v12181_v19  ;;  %v5496_v46 = vsel %vm597_vm1, %v5459_v51, %v5411_v16 }
 0x539   : > { %v11270_v37 = vadd.f32 %v6643_v35, %v6586_v13  ;;  %v6222_v28 = vsel %vm1324_vm4, %v5496_v46, %v6137_v1  ;;  %v12183_v35 = vld [vmem:[#allocation5_spill] sm:$0xff] }
 0x53a   : > { %v11272_v39 = vadd.f32 %v6682_v30, %v6587_v5  ;;  %v3809_v44 = vpop.permute.xlu1 %3808 }
 0x53b   : > { %v6188_v52 = vpop.permute.xlu0 %6187  ;;  %v3909_v6 = vsel %vm545_vm0, %v3658_v56, %v3809_v44  ;;  %v5193_v56 = vld [vmem:[%s7293_s26 + $0x420] sm:$0xff]  ;;  %v5194_v44 = vld [vmem:[%s7293_s26 + $0x428] sm:$0xff] }
 0x53c   : > { %v6256_v3 = vsel %vm1359_vm5, %v6222_v28, %v6188_v52 }
 0x53d   : > { %7118 = vmatmul.mubr.msk.bf16.gmra.mrb[120].mxu1 %vm1423_vm6, %v6256_v3 }
 0x53e   : > { %v4586_v14 = vpop.permute.xlu1 %4585  ;;  %6469 = vmatprep.mubr.bf16.mxu1 %v12023_v33 }
 0x53f   : > { %v3860_v15 = vpop.permute.xlu0 %3859 }
 0x540   : > { %v3945_v7 = vsel %vm597_vm1, %v3909_v6, %v3860_v15 }
 0x541   : > { %v4671_v25 = vsel %vm1324_vm4, %v3945_v7, %v4586_v14 }
 0x542   : > { %v4637_v4 = vpop.permute.xlu1 %4636 }
 0x543   : > { %v4705_v9 = vsel %vm1359_vm5, %v4671_v25, %v4637_v4  ;;  %v5362_v19 = vpop.permute.xlu0 %5361  ;;  %v5212_v25 = vpack.c.bf16 %v5194_v44, %v5193_v56  ;;  %v7183_v56 = vld [vmem:[%s11896_s4 + $0x10] ss:$8 sps:$4 sm:$0xff]   ;;  %v7185_v44 = vld [vmem:[%s11896_s4 + $0x14] ss:$8 sps:$4 sm:$0xff]  }
 0x544   : > { %7102 = vmatmul.mubr.msk.bf16.gmra.mrb[124].mxu0 %vm1423_vm6, %v4705_v9  ;;  %v5462_v21 = vsel %vm545_vm0, %v5211_v40, %v5362_v19 }
 0x545   : > { %4926 = vmatprep.mubr.bf16.mxu0 %v12023_v33 }
 0x546   : > { %v6139_v59 = vpop.permute.xlu1 %6138 }
 0x547   : > { %v5413_v61 = vpop.permute.xlu0 %5412 }
 0x548   : > { %v5498_v41 = vsel %vm597_vm1, %v5462_v21, %v5413_v61  ;;  %v4828_v2 = vpop.f32.mrb[88].mxu0 }
 0x549   : > { %v4829_v63 = vadd.f32 %v4828_v2, %v8702_v34  ;;  %v4830_v45 = vpop.f32.mrb[89].mxu0  ;;  %v6224_v58 = vsel %vm1324_vm4, %v5498_v41, %v6139_v59  ;;  %v3642_v41 = vld [vmem:[%s7293_s26 + $0x320] sm:$0xff]  ;;  %v3643_v2 = vld [vmem:[%s7293_s26 + $0x328] sm:$0xff] }
 0x54a   : > { %v4831_v11 = vadd.f32 %v4830_v45, %v8708_v42  ;;  %v4832_v22 = vpop.f32.mrb[90].mxu0  ;;  %v3811_v31 = vpop.permute.xlu1 %3810 }
 0x54b   : > { %v4967_v24 = vmax.f32 %v4829_v63, 0.0  ;;  %v4833_v55 = vadd.f32 %v4832_v22, %v8702_v34  ;;  %v6190_v26 = vpop.permute.xlu0 %6189  ;;  %v4834_v50 = vpop.f32.mrb[91].mxu0  ;;  %v3912_v29 = vsel %vm545_vm0, %v3659_v12, %v3811_v31 }
 0x54c   : > { %v4968_v17 = vmax.f32 %v4831_v11, 0.0  ;;  %v6258_v32 = vsel %vm1359_vm5, %v6224_v58, %v6190_v26  ;;  %v4835_v8 = vadd.f32 %v4834_v50, %v8708_v42  ;;  %v3660_v58 = vpack.c.bf16 %v3643_v2, %v3642_v41 }
 0x54d   : > { %v5035_v0 = vmul.f32 %v4967_v24, %v12182_v53  ;;  %v4969_v18 = vmax.f32 %v4833_v55, 0.0  ;;  %7119 = vmatmul.mubr.msk.bf16.gmra.mrb[124].mxu1 %vm1423_vm6, %v6258_v32 }
 0x54e   : > { %v5036_v47 = vmul.f32 %v4968_v17, %v12182_v53  ;;  %v4970_v1 = vmax.f32 %v4835_v8, 0.0  ;;  %v4588_v38 = vpop.permute.xlu1 %4587  ;;  %6479 = vmatprep.mubr.bf16.mxu1 %v12023_v33 }
 0x54f   : > { %v5092_v20 = vadd.f32 %v11248_v60, %v5035_v0  ;;  %v5037_v13 = vmul.f32 %v4969_v18, %v12183_v35  ;;  %v3862_v51 = vpop.permute.xlu0 %3861 }
 0x550   : > { %v5131_v16 = vadd.f32 %v11251_v43, %v5036_v47  ;;  %v5038_v30 = vmul.f32 %v4970_v1, %v12183_v35  ;;  %v3947_v5 = vsel %vm597_vm1, %v3912_v29, %v3862_v51  ;;  %v6381_v46 = vpop.f32.mrb[88].mxu1  ;;  %v5195_v47 = vld [vmem:[%s7293_s26 + $0x430] sm:$0xff]  ;;  %v5196_v1 = vld [vmem:[%s7293_s26 + $0x438] sm:$0xff] }
 0x551   : > { %v11308_v28 = vadd.f32 %v5092_v20, %v5037_v13  ;;  %v6382_v52 = vadd.f32 %v6381_v46, %v8702_v34  ;;  %v6383_v3 = vpop.f32.mrb[89].mxu1  ;;  %v4673_v43 = vsel %vm1324_vm4, %v3947_v5, %v4588_v38  ;;  %v12184_v38 = vld [vmem:[#allocation12_spill] sm:$0xff]  ;;  %v12186_v51 = vld [vmem:[#allocation13_spill] sm:$0xff] }
 0x552   : > { %v11311_v6 = vadd.f32 %v5131_v16, %v5038_v30  ;;  %v6384_v60 = vadd.f32 %v6383_v3, %v8708_v42  ;;  %v6385_v14 = vpop.f32.mrb[90].mxu1  ;;  %v4639_v15 = vpop.permute.xlu1 %4638  ;;  %v11350_v20 = vadd.f32 %v12184_v38, %v8702_v34  ;;  %v11358_v16 = vadd.f32 %v12186_v51, %v8702_v34  ;;  %v12187_v30 = vld [vmem:[#allocation25_spill] sm:$0xff] }
 0x553   : > { %v6520_v7 = vmax.f32 %v6382_v52, 0.0  ;;  %v6386_v49 = vadd.f32 %v6385_v14, %v8702_v34  ;;  %v6387_v54 = vpop.f32.mrb[91].mxu1  ;;  %v4707_v4 = vsel %vm1359_vm5, %v4673_v43, %v4639_v15  ;;  %v5364_v9 = vpop.permute.xlu0 %5363  ;;  %v12188_v52 = vld [vmem:[#allocation24_spill] sm:$0xff]  ;;  %v5213_v43 = vpack.c.bf16 %v5196_v1, %v5195_v47 }
 0x554   : > { %v6521_v40 = vmax.f32 %v6384_v60, 0.0  ;;  %v6388_v19 = vadd.f32 %v6387_v54, %v8708_v42  ;;  %7103 = vmatmul.mubr.msk.bf16.gmra.mrb[128].mxu0 %vm1423_vm6, %v4707_v4  ;;  %v5465_v12 = vsel %vm545_vm0, %v5212_v25, %v5364_v9  ;;  %v11373_v3 = vadd.f32 %v12188_v52, %v8702_v34  ;;  %v12189_v60 = vld [vmem:[#allocation36_spill] sm:$0xff]  ;;  %v12191_v4 = vld [vmem:[#allocation38_spill] sm:$0xff]  ;;  %v12192_v9 = vld [vmem:[#allocation39_spill] sm:$0xff] }
 0x555   : > { %v6588_v59 = vmul.f32 %v6520_v7, %v12182_v53  ;;  %v6522_v27 = vmax.f32 %v6386_v49, 0.0  ;;  %4936 = vmatprep.mubr.bf16.mxu0 %v12023_v33  ;;  %v11377_v14 = vadd.f32 %v12189_v60, %v8708_v42  ;;  %v12190_v49 = vld [vmem:[#allocation37_spill] sm:$0xff]  ;;  %v11386_v25 = vadd.f32 %v12191_v4, %v8708_v42 }
 0x556   : > { %v6589_v62 = vmul.f32 %v6521_v40, %v12182_v53  ;;  %v6523_v21 = vmax.f32 %v6388_v19, 0.0  ;;  %v6141_v61 = vpop.permute.xlu1 %6140  ;;  %v11382_v54 = vadd.f32 %v12190_v49, %v8702_v34  ;;  %v11390_v40 = vadd.f32 %v12192_v9, %v8702_v34 }
 0x557   : > { %v6645_v63 = vadd.f32 %v11270_v37, %v6588_v59  ;;  %v6590_v45 = vmul.f32 %v6522_v27, %v12183_v35  ;;  %v5415_v11 = vpop.permute.xlu0 %5414  ;;  %v7180_v37 = vld [vmem:[%s11896_s4] ss:$8 sps:$4 sm:$0xff]   ;;  %v1723_v19 = vmax.f32 %v11350_v20, 0.0  ;;  %v12193_v59 = vld [vmem:[#allocation40_spill] sm:$0xff]  ;;  %v1725_v41 = vmax.f32 %v11358_v16, 0.0 }
 0x558   : > { %v6684_v22 = vadd.f32 %v11272_v39, %v6589_v62  ;;  %v6591_v31 = vmul.f32 %v6523_v21, %v12183_v35  ;;  %v5500_v24 = vsel %vm597_vm1, %v5465_v12, %v5415_v11  ;;  %v7182_v39 = vld [vmem:[%s11896_s4 + $0x4] ss:$8 sps:$4 sm:$0xff]   ;;  %v11396_v27 = vadd.f32 %v12193_v59, %v8708_v42  ;;  %v12194_v62 = vld [vmem:[#allocation41_spill] sm:$0xff] }
 0x559   : > { %v11330_v55 = vadd.f32 %v6645_v63, %v6590_v45  ;;  %v6226_v17 = vsel %vm1324_vm4, %v5500_v24, %v6141_v61  ;;  %6924 = vmatprep.subr.bf16.mxu0 %v7182_v39  ;;  %v12185_v35 = vld [vmem:[#allocation11_spill] sm:$0xff]  ;;  %v11400_v21 = vadd.f32 %v12194_v62, %v8702_v34  ;;  %v12195_v63 = vld [vmem:[#allocation42_spill] sm:$0xff]  ;;  %v1727_v12 = vmax.f32 %v11373_v3, 0.0 }
 0x55a   : > { %v11332_v26 = vadd.f32 %v6684_v22, %v6591_v31  ;;  %v3813_v50 = vpop.permute.xlu1 %3812  ;;  %6925 = vmatpush1.bf16.msra.mxu0 %v7180_v37  ;;  %v11354_v13 = vadd.f32 %v12185_v35, %v8708_v42  ;;  %v11407_v45 = vadd.f32 %v12195_v63, %v8708_v42  ;;  %v1728_v11 = vmax.f32 %v11377_v14, 0.0  ;;  %v12196_v22 = vld [vmem:[#allocation43_spill] sm:$0xff]  ;;  %v12199_v62 = vld [vmem:[#allocation46_spill] sm:$0xff] }
 0x55b   : > { %v6192_v32 = vpop.permute.xlu0 %6191  ;;  %v3915_v53 = vsel %vm545_vm0, %v3660_v58, %v3813_v50  ;;  %6926 = vmatprep.subr.bf16.mxu0 %v7185_v44  ;;  %v11413_v31 = vadd.f32 %v12196_v22, %v8702_v34  ;;  %v1729_v50 = vmax.f32 %v11382_v54, 0.0  ;;  %v1730_v37 = vmax.f32 %v11386_v25, 0.0  ;;  %v12200_v22 = vld [vmem:[#allocation20_spill] sm:$0xff]  ;;  %v12210_v20 = vld [vmem:[#allocation23_spill] sm:$0xff] }
 0x55c   : > { %v6260_v8 = vsel %vm1359_vm5, %v6226_v17, %v6192_v32  ;;  %v1724_v61 = vmax.f32 %v11354_v13, 0.0  ;;  %v1731_v39 = vmax.f32 %v11390_v40, 0.0  ;;  %v11447_v63 = vadd.f32 %v12199_v62, %v8708_v42 }
 0x55d   : > { %7120 = vmatmul.mubr.msk.bf16.gmra.mrb[128].mxu1 %vm1423_vm6, %v6260_v8 }
 0x55e   : > { %v4590_v0 = vpop.permute.xlu1 %4589  ;;  %6489 = vmatprep.mubr.bf16.mxu1 %v12023_v33  ;;  %v11362_v33 = vadd.f32 %v12187_v30, %v8708_v42  ;;  %6927 = vmatpush1.bf16.msra.mxu0 %v7183_v56  ;;  %v7186_v30 = vld [vmem:[%s11896_s4 + $0x20] ss:$8 sps:$4 sm:$0xff]  }
 0x55f   : > { %v3864_v18 = vpop.permute.xlu0 %3863 }
 0x560   : > { %v3949_v29 = vsel %vm597_vm1, %v3915_v53, %v3864_v18  ;;  %v1726_v2 = vmax.f32 %v11362_v33, 0.0  ;;  %v1732_v53 = vmax.f32 %v11396_v27, 0.0  ;;  %v12197_v18 = vld [vmem:[#allocation44_spill] sm:$0xff]  ;;  %v7192_v33 = vld [vmem:[%s11896_s4 + $0x40] ss:$8 sps:$4 sm:$0xff]  }
 0x561   : > { %v4675_v46 = vsel %vm1324_vm4, %v3949_v29, %v4590_v0  ;;  %v1733_v0 = vmax.f32 %v11400_v21, 0.0  ;;  %v11424_v29 = vadd.f32 %v12197_v18, %v8708_v42 }
 0x562   : > { %v4641_v5 = vpop.permute.xlu1 %4640 }
 0x563   : > { %v4709_v15 = vsel %vm1359_vm5, %v4675_v46, %v4641_v5  ;;  %v5366_v7 = vpop.permute.xlu0 %5365  ;;  %v7188_v5 = vld [vmem:[%s11896_s4 + $0x24] ss:$8 sps:$4 sm:$0xff]   ;;  %v1735_v46 = vmax.f32 %v11413_v31, 0.0  ;;  %v1736_v59 = vmax.f32 %v11424_v29, 0.0 }
 0x564   : > { %7104 = vmatmul.mubr.msk.bf16.gmra.mrb[132].mxu0 %vm1423_vm6, %v4709_v15  ;;  %v5468_v24 = vsel %vm545_vm0, %v5213_v43, %v5366_v7  ;;  %v12198_v43 = vld [vmem:[#allocation45_spill] sm:$0xff]  ;;  %6928 = vmatprep.subr.bf16.mxu0 %v7188_v5  ;;  %v12204_v5 = vld [vmem:[#allocation56_spill] sm:$0xff] }
 0x565   : > { %v11440_v7 = vadd.f32 %v12198_v43, %v8702_v34  ;;  %6929 = vmatpush1.bf16.msra.mxu0 %v7186_v30  ;;  %v12205_v30 = vld [vmem:[#allocation29_spill] sm:$0xff] }
 0x566   : > { %v6143_v17 = vpop.permute.xlu1 %6142 }
 0x567   : > { %v5417_v58 = vpop.permute.xlu0 %5416 }
 0x568   : > { %v5502_v32 = vsel %vm597_vm1, %v5468_v24, %v5417_v58  ;;  %v4838_v8 = vpop.f32.mrb[92].mxu0 }
 0x569   : > { %v4839_v47 = vadd.f32 %v4838_v8, %v8702_v34  ;;  %v4840_v1 = vpop.f32.mrb[93].mxu0  ;;  %v6228_v52 = vsel %vm1324_vm4, %v5502_v32, %v6143_v17  ;;  %v12201_v17 = vld [vmem:[#allocation55_spill] sm:$0xff] }
 0x56a   : > { %v4841_v35 = vadd.f32 %v4840_v1, %v8708_v42  ;;  %v4842_v51 = vpop.f32.mrb[94].mxu0  ;;  %v3356_v32 = vadd.f32 %v12201_v17, %v8702_v34  ;;  %v12202_v8 = vld [vmem:[#allocation59_spill] sm:$0xff]  ;;  %v12207_v17 = vld [vmem:[#allocation62_spill] sm:$0xff] }
 0x56b   : > { %v4971_v56 = vmax.f32 %v4839_v47, 0.0  ;;  %v4843_v44 = vadd.f32 %v4842_v51, %v8702_v34  ;;  %v6194_v60 = vpop.permute.xlu0 %6193  ;;  %v4844_v15 = vpop.f32.mrb[95].mxu0  ;;  %v3358_v18 = vadd.f32 %v12202_v8, %v8708_v42  ;;  %v11476_v8 = vadd.f32 %v12207_v17, %v8708_v42 }
 0x56c   : > { %v4972_v49 = vmax.f32 %v4841_v35, 0.0  ;;  %v6262_v4 = vsel %vm1359_vm5, %v6228_v52, %v6194_v60  ;;  %v4845_v9 = vadd.f32 %v4844_v15, %v8708_v42  ;;  %v12203_v35 = vld [vmem:[#allocation48_spill] sm:$0xff]  ;;  %v12206_v15 = vld [vmem:[#allocation57_spill] sm:$0xff] }
 0x56d   : > { %v5039_v24 = vmul.f32 %v4971_v56, %v12200_v22  ;;  %v4973_v58 = vmax.f32 %v4843_v44, 0.0  ;;  %7121 = vmatmul.mubr.msk.bf16.gmra.mrb[132].mxu1 %vm1423_vm6, %v6262_v4  ;;  %v11458_v51 = vadd.f32 %v12203_v35, %v8702_v34  ;;  %v11462_v56 = vadd.f32 %v12204_v5, %v8708_v42 }
 0x56e   : > { %v5040_v47 = vmul.f32 %v4972_v49, %v12200_v22  ;;  %v4974_v1 = vmax.f32 %v4845_v9, 0.0  ;;  %v11469_v43 = vadd.f32 %v12206_v15, %v8702_v34  ;;  %v3446_v35 = vmax.f32 %v3356_v32, 0.0 }
 0x56f   : > { %v5094_v44 = vadd.f32 %v11308_v28, %v5039_v24  ;;  %v5041_v52 = vmul.f32 %v4973_v58, %v12205_v30  ;;  %v3447_v5 = vmax.f32 %v3358_v18, 0.0  ;;  %v3449_v62 = vmax.f32 %v11462_v56, 0.0 }
 0x570   : > { %v5133_v49 = vadd.f32 %v11311_v6, %v5040_v47  ;;  %v5042_v4 = vmul.f32 %v4974_v1, %v12205_v30  ;;  %v6391_v9 = vpop.f32.mrb[92].mxu1  ;;  %v3448_v1 = vmax.f32 %v11458_v51, 0.0 }
 0x571   : > { %v11478_v28 = vadd.f32 %v5094_v44, %v5041_v52  ;;  %v6392_v24 = vadd.f32 %v6391_v9, %v8702_v34  ;;  %v6393_v58 = vpop.f32.mrb[93].mxu1  ;;  %v3450_v44 = vmax.f32 %v11469_v43, 0.0  ;;  %v12208_v52 = vld [vmem:[#allocation63_spill] sm:$0xff]  ;;  %v11505_v43 = vadd.f32 %v10607_v36, %v8708_v42  ;;  %v7189_v36 = vld [vmem:[%s11896_s4 + $0x30] ss:$8 sps:$4 sm:$0xff]  }
 0x572   : > { %v11481_v15 = vadd.f32 %v5133_v49, %v5042_v4  ;;  %v6394_v6 = vadd.f32 %v6393_v58, %v8708_v42  ;;  %v6395_v47 = vpop.f32.mrb[94].mxu1  ;;  %v11490_v9 = vadd.f32 %v12208_v52, %v8702_v34  ;;  %v3451_v49 = vmax.f32 %v11476_v8, 0.0  ;;  %v12209_v4 = vld [vmem:[#allocation64_spill] sm:$0xff] }
 0x573   : > { %v6524_v60 = vmax.f32 %v6392_v24, 0.0  ;;  %v6396_v17 = vadd.f32 %v6395_v47, %v8702_v34  ;;  %v6397_v38 = vpop.f32.mrb[95].mxu1  ;;  %v11496_v51 = vadd.f32 %v12209_v4, %v8708_v42  ;;  %v11501_v58 = vadd.f32 %v10602_v57, %v8702_v34 }
 0x574   : > { %v6525_v32 = vmax.f32 %v6394_v6, 0.0  ;;  %v6398_v18 = vadd.f32 %v6397_v38, %v8708_v42  ;;  %v11510_v8 = vadd.f32 %v10611_v48, %v8702_v34  ;;  %v11514_v47 = vadd.f32 %v10619_v23, %v8708_v42 }
 0x575   : > { %v6592_v56 = vmul.f32 %v6524_v60, %v12200_v22  ;;  %v6526_v24 = vmax.f32 %v6396_v17, 0.0  ;;  %v3454_v13 = vmax.f32 %v11501_v58, 0.0 }
 0x576   : > { %v6593_v6 = vmul.f32 %v6525_v32, %v12200_v22  ;;  %v6527_v38 = vmax.f32 %v6398_v18, 0.0  ;;  %v7191_v22 = vld [vmem:[%s11896_s4 + $0x34] ss:$8 sps:$4 sm:$0xff]   ;;  %v3452_v32 = vmax.f32 %v11490_v9, 0.0  ;;  %v12212_v9 = vld [vmem:[#allocation54_spill] sm:$0xff] }
 0x577   : > { %v6647_v60 = vadd.f32 %v11330_v55, %v6592_v56  ;;  %v6594_v57 = vmul.f32 %v6526_v24, %v12205_v30  ;;  %v11518_v17 = vpop.permute.xlu1 %1871  ;;  %6930 = vmatprep.subr.bf16.mxu0 %v7191_v22  ;;  %v3457_v22 = vmax.f32 %v11514_v47, 0.0  ;;  %v12215_v47 = vld [vmem:[#allocation60_spill] sm:$0xff] }
 0x578   : > { %v6686_v48 = vadd.f32 %v11332_v26, %v6593_v6  ;;  %v6595_v52 = vmul.f32 %v6527_v38, %v12205_v30  ;;  %v1961_v23 = vmul.f32 %v11518_v17, %v1723_v19  ;;  %v1962_v55 = vmul.f32 %v11518_v17, %v1724_v61  ;;  %v12211_v19 = vld [vmem:[#allocation26_spill] sm:$0xff]  ;;  %6931 = vmatpush1.bf16.msra.mxu0 %v7189_v36  ;;  %v12214_v36 = vld [vmem:[#allocation47_spill] sm:$0xff] }
 0x579   : > { %v11535_v18 = vadd.f32 %v6647_v60, %v6594_v57  ;;  %v3514_v4 = vmul.f32 %v3446_v35, %v11518_v17  ;;  %v3515_v56 = vmul.f32 %v3447_v5, %v11518_v17  ;;  %v3453_v26 = vmax.f32 %v11496_v51, 0.0  ;;  %v12213_v60 = vld [vmem:[#allocation61_spill] sm:$0xff] }
 0x57a   : > { %v11540_v30 = vadd.f32 %v6686_v48, %v6595_v52  ;;  %v2002_v24 = vadd.f32 %v12210_v20, %v1961_v23  ;;  %v2041_v6 = vadd.f32 %v12211_v19, %v1962_v55  ;;  %v3455_v61 = vmax.f32 %v11505_v43, 0.0 }
 0x57b   : > { %v3555_v38 = vadd.f32 %v12212_v9, %v3514_v4  ;;  %v3594_v35 = vadd.f32 %v12213_v60, %v3515_v56  ;;  %v11548_v57 = vpop.permute.xlu1 %1881  ;;  %v11550_v5 = vpop.permute.xlu0 %1876  ;;  %v3456_v51 = vmax.f32 %v11510_v8, 0.0  ;;  %v3386_v48 = vadd.f32 %v10694_v10, %v8702_v34  ;;  %v12216_v10 = vld [vmem:[#allocation49_spill] sm:$0xff] }
 0x57c   : > { %v3388_v58 = vadd.f32 %v12214_v36, %v8708_v42  ;;  %v1963_v43 = vmul.f32 %v11550_v5, %v1725_v41  ;;  %v1964_v52 = vmul.f32 %v11550_v5, %v1726_v2  ;;  %v3516_v23 = vmul.f32 %v3448_v1, %v11550_v5  ;;  %v7194_v41 = vld [vmem:[%s11896_s4 + $0x44] ss:$8 sps:$4 sm:$0xff]  }
 0x57d   : > { %v3517_v8 = vmul.f32 %v3449_v62, %v11550_v5  ;;  %v3390_v55 = vadd.f32 %v12215_v47, %v8702_v34  ;;  %v3392_v4 = vadd.f32 %v12216_v10, %v8708_v42  ;;  %v3518_v56 = vmul.f32 %v3450_v44, %v11548_v57  ;;  %6932 = vmatprep.subr.bf16.mxu0 %v7194_v41 }
 0x57e   : > { %v3519_v16 = vmul.f32 %v3451_v49, %v11548_v57  ;;  %v2003_v2 = vadd.f32 %v2002_v24, %v1963_v43  ;;  %v2042_v62 = vadd.f32 %v2041_v6, %v1964_v52  ;;  %v3556_v1 = vadd.f32 %v3555_v38, %v3516_v23  ;;  %6933 = vmatpush1.bf16.msra.mxu0 %v7192_v33 }
 0x57f   : > { %v3595_v20 = vadd.f32 %v3594_v35, %v3517_v8  ;;  %v11578_v19 = vpop.permute.xlu1 %1891  ;;  %v11580_v9 = vpop.permute.xlu0 %1886  ;;  %v3458_v60 = vmax.f32 %v3386_v48, 0.0  ;;  %v3459_v44 = vmax.f32 %v3388_v58, 0.0  ;;  %v1965_v49 = vmul.f32 %v11548_v57, %v1727_v12 }
 0x580   : > { %v1966_v36 = vmul.f32 %v11548_v57, %v1728_v11  ;;  %v3557_v47 = vadd.f32 %v3556_v1, %v3518_v56  ;;  %v1967_v6 = vmul.f32 %v11580_v9, %v1729_v50  ;;  %v1968_v38 = vmul.f32 %v11580_v9, %v1730_v37 }
 0x581   : > { %v3596_v24 = vadd.f32 %v3595_v20, %v3519_v16  ;;  %v2004_v35 = vadd.f32 %v2003_v2, %v1965_v49  ;;  %v3520_v12 = vmul.f32 %v3452_v32, %v11580_v9  ;;  %v3521_v14 = vmul.f32 %v3453_v26, %v11580_v9 }
 0x582   : > { %v2043_v3 = vadd.f32 %v2042_v62, %v1966_v36  ;;  %v3460_v48 = vmax.f32 %v3390_v55, 0.0  ;;  %v3461_v11 = vmax.f32 %v3392_v4, 0.0  ;;  %v1969_v58 = vmul.f32 %v11578_v19, %v1731_v39 }
 0x583   : > { %v1970_v54 = vmul.f32 %v11578_v19, %v1732_v53  ;;  %v11602_v25 = vpop.permute.xlu1 %1901  ;;  %v11604_v50 = vpop.permute.xlu0 %1896  ;;  %v2005_v37 = vadd.f32 %v2004_v35, %v1967_v6  ;;  %v3558_v52 = vadd.f32 %v3557_v47, %v3520_v12  ;;  %v3597_v32 = vadd.f32 %v3596_v24, %v3521_v14 }
 0x584   : > { %v2044_v43 = vadd.f32 %v2043_v3, %v1968_v38  ;;  %v3522_v26 = vmul.f32 %v3454_v13, %v11578_v19  ;;  %v3523_v23 = vmul.f32 %v3455_v61, %v11578_v19  ;;  %v1973_v40 = vmul.f32 %v11602_v25, %v1735_v46 }
 0x585   : > { %v1974_v27 = vmul.f32 %v11602_v25, %v1736_v59  ;;  %v1971_v39 = vmul.f32 %v11604_v50, %v1733_v0  ;;  %v12217_v53 = vmax.f32 %v11407_v45, 0.0  ;;  %v3524_v13 = vmul.f32 %v3456_v51, %v11604_v50  ;;  %v7195_v51 = vld [vmem:[%s11896_s4 + $0x50] ss:$8 sps:$4 sm:$0xff]  }
 0x586   : > { %v3525_v61 = vmul.f32 %v3457_v22, %v11604_v50  ;;  %v3559_v55 = vadd.f32 %v3558_v52, %v3522_v26  ;;  %v2006_v46 = vadd.f32 %v2005_v37, %v1969_v58  ;;  %v2045_v10 = vadd.f32 %v2044_v43, %v1970_v54  ;;  %v7197_v22 = vld [vmem:[%s11896_s4 + $0x54] ss:$8 sps:$4 sm:$0xff]  }
 0x587   : > { %v1972_v8 = vmul.f32 %v11604_v50, %v12217_v53  ;;  %v11622_v31 = vpop.permute.xlu0 %1906  ;;  %v3598_v29 = vadd.f32 %v3597_v32, %v3523_v23  ;;  %v3526_v59 = vmul.f32 %v3458_v60, %v11602_v25  ;;  %v3527_v21 = vmul.f32 %v3459_v44, %v11602_v25  ;;  %6934 = vmatprep.subr.bf16.mxu0 %v7197_v22 }
 0x588   : > { %v12218_v0 = vmax.f32 %v11440_v7, 0.0  ;;  %v3528_v4 = vmul.f32 %v3460_v48, %v11622_v31  ;;  %v4848_v56 = vpop.f32.mrb[96].mxu0  ;;  %v3560_v16 = vadd.f32 %v3559_v55, %v3524_v13  ;;  %v2007_v33 = vadd.f32 %v2006_v46, %v1971_v39  ;;  %6935 = vmatpush1.bf16.msra.mxu0 %v7195_v51  ;;  %v12221_v39 = vld [vmem:[#allocation8_spill] sm:$0xff] }
 0x589   : > { %v4849_v41 = vadd.f32 %v4848_v56, %v8702_v34  ;;  %v4850_v2 = vpop.f32.mrb[97].mxu0  ;;  %v2046_v62 = vadd.f32 %v2045_v10, %v1972_v8  ;;  %v12219_v7 = vmax.f32 %v11447_v63, 0.0  ;;  %v3529_v20 = vmul.f32 %v3461_v11, %v11622_v31  ;;  %v12220_v11 = vld [vmem:[#allocation30_spill] sm:$0xff] }
 0x58a   : > { %v1975_v45 = vmul.f32 %v11622_v31, %v12218_v0  ;;  %v4851_v60 = vadd.f32 %v4850_v2, %v8708_v42  ;;  %v4852_v44 = vpop.f32.mrb[98].mxu0  ;;  %v3599_v49 = vadd.f32 %v3598_v29, %v3525_v61  ;;  %v3561_v36 = vadd.f32 %v3560_v16, %v3526_v59  ;;  %v7200_v8 = vld [vmem:[%s11896_s4 + $0x64] ss:$8 sps:$4 sm:$0xff]  }
 0x58b   : > { %v1976_v1 = vmul.f32 %v11622_v31, %v12219_v7  ;;  %v2008_v47 = vadd.f32 %v2007_v33, %v1973_v40  ;;  %v4975_v24 = vmax.f32 %v4849_v41, 0.0  ;;  %v4853_v6 = vadd.f32 %v4852_v44, %v8702_v34  ;;  %v4854_v38 = vpop.f32.mrb[99].mxu0  ;;  %6936 = vmatprep.subr.bf16.mxu0 %v7200_v8 }
 0x58c   : > { %v4976_v35 = vmax.f32 %v4851_v60, 0.0  ;;  %v4855_v3 = vadd.f32 %v4854_v38, %v8708_v42  ;;  %v2047_v63 = vadd.f32 %v2046_v62, %v1974_v27  ;;  %v3600_v12 = vadd.f32 %v3599_v49, %v3527_v21  ;;  %v7198_v27 = vld [vmem:[%s11896_s4 + $0x60] ss:$8 sps:$4 sm:$0xff]  }
 0x58d   : > { %v2009_v14 = vadd.f32 %v2008_v47, %v1975_v45  ;;  %v3562_v48 = vadd.f32 %v3561_v36, %v3528_v4  ;;  %v5043_v58 = vmul.f32 %v4975_v24, %v12220_v11  ;;  %v4977_v54 = vmax.f32 %v4853_v6, 0.0  ;;  %6937 = vmatpush1.bf16.msra.mxu0 %v7198_v27 }
 0x58e   : > { %v5044_v37 = vmul.f32 %v4976_v35, %v12220_v11  ;;  %v4978_v43 = vmax.f32 %v4855_v3, 0.0  ;;  %v2048_v52 = vadd.f32 %v2047_v63, %v1976_v1  ;;  %v3601_v32 = vadd.f32 %v3600_v12, %v3529_v20 }
 0x58f   : > { %v2010_v26 = vrot.slane %v2009_v14, 4  ;;  %v3563_v23 = vrot.slane %v3562_v48, 4  ;;  %v5096_v40 = vadd.f32 %v11478_v28, %v5043_v58  ;;  %v5045_v53 = vmul.f32 %v4977_v54, %v12221_v39 }
 0x590   : > { %v5135_v13 = vadd.f32 %v11481_v15, %v5044_v37  ;;  %v5046_v61 = vmul.f32 %v4978_v43, %v12221_v39  ;;  %v6401_v55 = vpop.f32.mrb[96].mxu1  ;;  %v2049_v46 = vrot.slane %v2048_v52, 4  ;;  %v3602_v10 = vrot.slane %v3601_v32, 4  ;;  %v7203_v43 = vld [vmem:[%s11896_s4 + $0x74] ss:$8 sps:$4 sm:$0xff]  }
 0x591   : > { %v2011_v29 = vadd.f32 %v2010_v26, %v2009_v14  ;;  %v3564_v59 = vadd.f32 %v3563_v23, %v3562_v48  ;;  %v11656_v28 = vadd.f32 %v5096_v40, %v5045_v53  ;;  %v6402_v21 = vadd.f32 %v6401_v55, %v8702_v34  ;;  %v6403_v0 = vpop.f32.mrb[97].mxu1  ;;  %6938 = vmatprep.subr.bf16.mxu0 %v7203_v43  ;;  %v7206_v53 = vld [vmem:[%s11896_s4 + $0x84] ss:$8 sps:$4 sm:$0xff]  }
 0x592   : > { %v11659_v45 = vadd.f32 %v5135_v13, %v5046_v61  ;;  %v6404_v4 = vadd.f32 %v6403_v0, %v8708_v42  ;;  %v6405_v56 = vpop.f32.mrb[98].mxu1  ;;  %v2050_v15 = vadd.f32 %v2049_v46, %v2048_v52  ;;  %v3603_v51 = vadd.f32 %v3602_v10, %v3601_v32  ;;  %v7207_v46 = vld [vmem:[%s11896_s4 + $0x90] ss:$8 sps:$4 sm:$0xff]   ;;  %v7209_v10 = vld [vmem:[%s11896_s4 + $0x94] ss:$8 sps:$4 sm:$0xff]  }
 0x593   : > { %v6528_v22 = vmax.f32 %v6402_v21, 0.0  ;;  %v6406_v16 = vadd.f32 %v6405_v56, %v8702_v34  ;;  %v6407_v33 = vpop.f32.mrb[99].mxu1  ;;  %v2012_v41 = vrot.slane %v2011_v29, 2  ;;  %v3565_v2 = vrot.slane %v3564_v59, 2  ;;  %v12222_v56 = vld [vmem:[#allocation19_spill] sm:$0xff] }
 0x594   : > { %v6529_v62 = vmax.f32 %v6404_v4, 0.0  ;;  %v6408_v7 = vadd.f32 %v6407_v33, %v8708_v42  ;;  %v2051_v1 = vrot.slane %v2050_v15, 2  ;;  %v3604_v20 = vrot.slane %v3603_v51, 2 }
 0x595   : > { %v6596_v60 = vmul.f32 %v6528_v22, %v12220_v11  ;;  %v6530_v44 = vmax.f32 %v6406_v16, 0.0  ;;  %v2013_v49 = vadd.f32 %v2012_v41, %v2011_v29  ;;  %v3566_v36 = vadd.f32 %v3565_v2, %v3564_v59  ;;  %v12223_v41 = vld [vmem:[#allocation31_spill] sm:$0xff] }
 0x596   : > { %v6597_v47 = vmul.f32 %v6529_v62, %v12220_v11  ;;  %v6531_v24 = vmax.f32 %v6408_v7, 0.0  ;;  %v2052_v6 = vadd.f32 %v2051_v1, %v2050_v15  ;;  %v3605_v38 = vadd.f32 %v3604_v20, %v3603_v51  ;;  %v7201_v11 = vld [vmem:[%s11896_s4 + $0x70] ss:$8 sps:$4 sm:$0xff]  }
 0x597   : > { %v6649_v35 = vadd.f32 %v11535_v18, %v6596_v60  ;;  %v6598_v3 = vmul.f32 %v6530_v44, %v12221_v39  ;;  %v2014_v63 = vrot.slane %v2013_v49, 1  ;;  %v3567_v12 = vrot.slane %v3566_v36, 1  ;;  %6939 = vmatpush1.bf16.msra.mxu0 %v7201_v11 }
 0x598   : > { %v6688_v14 = vadd.f32 %v11540_v30, %v6597_v47  ;;  %v6599_v48 = vmul.f32 %v6531_v24, %v12221_v39  ;;  %v2053_v58 = vrot.slane %v2052_v6, 1  ;;  %v3606_v54 = vrot.slane %v3605_v38, 1  ;;  %v7204_v39 = vld [vmem:[%s11896_s4 + $0x80] ss:$8 sps:$4 sm:$0xff]   ;;  %6940 = vmatprep.subr.bf16.mxu0 %v7206_v53 }
 0x599   : > { %v6650_v37 = vadd.f32 %v6649_v35, %v6598_v3  ;;  %v2015_v18 = vadd.f32 %v2014_v63, %v2013_v49  ;;  %v3568_v52 = vadd.f32 %v3567_v12, %v3566_v36  ;;  %v7210_v49 = vld [vmem:[%s11896_s4 + $0xa0] ss:$8 sps:$4 sm:$0xff]   ;;  %v7212_v36 = vld [vmem:[%s11896_s4 + $0xa4] ss:$8 sps:$4 sm:$0xff]  }
 0x59a   : > { %v6689_v32 = vadd.f32 %v6688_v14, %v6599_v48  ;;  %v2054_v26 = vadd.f32 %v2053_v58, %v2052_v6  ;;  %v3607_v23 = vadd.f32 %v3606_v54, %v3605_v38 }
 0x59b   : > { %v11676_v30 = vadd.f32 %v3568_v52, %v2015_v18  ;;  %6941 = vmatpush1.bf16.msra.mxu0 %v7204_v39 }
 0x59c   : > { %v11678_v40 = vadd.f32 %v3607_v23, %v2054_v26  ;;  %6942 = vmatprep.subr.bf16.mxu0 %v7209_v10  ;;  %v7213_v26 = vld [vmem:[%s11896_s4 + $0xb0] ss:$8 sps:$4 sm:$0xff]   ;;  %v7215_v23 = vld [vmem:[%s11896_s4 + $0xb4] ss:$8 sps:$4 sm:$0xff]  }
 0x59d   : > { %v12224_v10 = vld [vmem:[#allocation32_spill] sm:$0xff] }
 0x59f   : > { %6943 = vmatpush1.bf16.msra.mxu0 %v7207_v46 }
 0x5a0   : > { %6944 = vmatprep.subr.bf16.mxu0 %v7212_v36 }
 0x5a3   : > { %6945 = vmatpush1.bf16.msra.mxu0 %v7210_v49 }
 0x5a4   : > { %6946 = vmatprep.subr.bf16.mxu0 %v7215_v23 }
 0x5a7   : > { %6947 = vmatpush1.bf16.msra.mxu0 %v7213_v26 }
 0x5a8   : > { %v4858_v27 = vpop.f32.mrb[100].mxu0 }
 0x5a9   : > { %v4859_v8 = vadd.f32 %v4858_v27, %v8702_v34  ;;  %v4860_v13 = vpop.f32.mrb[101].mxu0 }
 0x5aa   : > { %v4861_v61 = vadd.f32 %v4860_v13, %v8708_v42  ;;  %v4862_v55 = vpop.f32.mrb[102].mxu0 }
 0x5ab   : > { %v4979_v29 = vmax.f32 %v4859_v8, 0.0  ;;  %v4863_v59 = vadd.f32 %v4862_v55, %v8702_v34  ;;  %v4864_v21 = vpop.f32.mrb[103].mxu0 }
 0x5ac   : > { %v4980_v0 = vmax.f32 %v4861_v61, 0.0  ;;  %v4865_v4 = vadd.f32 %v4864_v21, %v8708_v42 }
 0x5ad   : > { %v5047_v15 = vmul.f32 %v4979_v29, %v12222_v56  ;;  %v4981_v51 = vmax.f32 %v4863_v59, 0.0 }
 0x5ae   : > { %v5048_v22 = vmul.f32 %v4980_v0, %v12222_v56  ;;  %v4982_v16 = vmax.f32 %v4865_v4, 0.0  ;;  %v7216_v4 = vld [vmem:[%s11896_s4 + $0xc0] ss:$8 sps:$4 sm:$0xff]  }
 0x5af   : > { %v5098_v33 = vadd.f32 %v11656_v28, %v5047_v15  ;;  %v5049_v2 = vmul.f32 %v4981_v51, %v12223_v41  ;;  %v12225_v51 = vld [vmem:[#allocation7_spill] sm:$0xff] }
 0x5b0   : > { %v5137_v62 = vadd.f32 %v11659_v45, %v5048_v22  ;;  %v5050_v7 = vmul.f32 %v4982_v16, %v12223_v41  ;;  %v6411_v1 = vpop.f32.mrb[100].mxu1 }
 0x5b1   : > { %v5099_v20 = vadd.f32 %v5098_v33, %v5049_v2  ;;  %v6412_v60 = vadd.f32 %v6411_v1, %v8702_v34  ;;  %v6413_v44 = vpop.f32.mrb[101].mxu1 }
 0x5b2   : > { %v5138_v28 = vadd.f32 %v5137_v62, %v5050_v7  ;;  %v6414_v47 = vadd.f32 %v6413_v44, %v8708_v42  ;;  %v6415_v24 = vpop.f32.mrb[102].mxu1 }
 0x5b3   : > { %v6532_v45 = vmax.f32 %v6412_v60, 0.0  ;;  %v6416_v6 = vadd.f32 %v6415_v24, %v8702_v34  ;;  %v6417_v38 = vpop.f32.mrb[103].mxu1 }
 0x5b4   : > { %v6533_v35 = vmax.f32 %v6414_v47, 0.0  ;;  %v6418_v3 = vadd.f32 %v6417_v38, %v8708_v42 }
 0x5b5   : > { %v6600_v63 = vmul.f32 %v6532_v45, %v12222_v56  ;;  %v6534_v12 = vmax.f32 %v6416_v6, 0.0  ;;  %v7219_v45 = vld [vmem:[%s11896_s4 + $0xd0] ss:$8 sps:$4 sm:$0xff]  }
 0x5b6   : > { %v6601_v14 = vmul.f32 %v6533_v35, %v12222_v56  ;;  %v6535_v48 = vmax.f32 %v6418_v3, 0.0  ;;  %v7218_v56 = vld [vmem:[%s11896_s4 + $0xc4] ss:$8 sps:$4 sm:$0xff]  }
 0x5b7   : > { %v6651_v58 = vadd.f32 %v6650_v37, %v6600_v63  ;;  %v6602_v54 = vmul.f32 %v6534_v12, %v12223_v41  ;;  %6948 = vmatprep.subr.bf16.mxu0 %v7218_v56  ;;  %v7224_v35 = vld [vmem:[%s11896_s4 + $0xe4] ss:$8 sps:$4 sm:$0xff]   ;;  %v7222_v12 = vld [vmem:[%s11896_s4 + $0xe0] ss:$8 sps:$4 sm:$0xff]  }
 0x5b8   : > { %v6690_v11 = vadd.f32 %v6689_v32, %v6601_v14  ;;  %v6603_v43 = vmul.f32 %v6535_v48, %v12223_v41  ;;  %6949 = vmatpush1.bf16.msra.mxu0 %v7216_v4 }
 0x5b9   : > { %v6652_v18 = vadd.f32 %v6651_v58, %v6602_v54  ;;  %v7227_v58 = vld [vmem:[%s11896_s4 + $0xf4] ss:$8 sps:$4 sm:$0xff]  }
 0x5ba   : > { %v6691_v52 = vadd.f32 %v6690_v11, %v6603_v43 }
 0x5c8   : > { %v4868_v39 = vpop.f32.mrb[104].mxu0 }
 0x5c9   : > { %v4869_v37 = vadd.f32 %v4868_v39, %v8702_v34  ;;  %v4870_v53 = vpop.f32.mrb[105].mxu0 }
 0x5ca   : > { %v4871_v32 = vadd.f32 %v4870_v53, %v8708_v42  ;;  %v4872_v27 = vpop.f32.mrb[106].mxu0 }
 0x5cb   : > { %v4983_v8 = vmax.f32 %v4869_v37, 0.0  ;;  %v4873_v13 = vadd.f32 %v4872_v27, %v8702_v34  ;;  %v4874_v61 = vpop.f32.mrb[107].mxu0 }
 0x5cc   : > { %v4984_v55 = vmax.f32 %v4871_v32, 0.0  ;;  %v4875_v46 = vadd.f32 %v4874_v61, %v8708_v42 }
 0x5cd   : > { %v5051_v29 = vmul.f32 %v4983_v8, %v12224_v10  ;;  %v4985_v59 = vmax.f32 %v4873_v13, 0.0 }
 0x5ce   : > { %v5052_v21 = vmul.f32 %v4984_v55, %v12224_v10  ;;  %v4986_v0 = vmax.f32 %v4875_v46, 0.0  ;;  %v12226_v55 = vld [vmem:[#allocation22_spill] sm:$0xff] }
 0x5cf   : > { %v5100_v15 = vadd.f32 %v5099_v20, %v5051_v29  ;;  %v5053_v22 = vmul.f32 %v4985_v59, %v12225_v51 }
 0x5d0   : > { %v5139_v16 = vadd.f32 %v5138_v28, %v5052_v21  ;;  %v5054_v33 = vmul.f32 %v4986_v0, %v12225_v51  ;;  %v6421_v41 = vpop.f32.mrb[104].mxu1  ;;  %v7221_v28 = vld [vmem:[%s11896_s4 + $0xd4] ss:$8 sps:$4 sm:$0xff]  }
 0x5d1   : > { %v5101_v2 = vadd.f32 %v5100_v15, %v5053_v22  ;;  %v6422_v62 = vadd.f32 %v6421_v41, %v8702_v34  ;;  %v6423_v7 = vpop.f32.mrb[105].mxu1  ;;  %6950 = vmatprep.subr.bf16.mxu0 %v7221_v28  ;;  %v12227_v0 = vld [vmem:[#allocation33_spill] sm:$0xff] }
 0x5d2   : > { %v5140_v1 = vadd.f32 %v5139_v16, %v5054_v33  ;;  %v6424_v60 = vadd.f32 %v6423_v7, %v8708_v42  ;;  %v6425_v44 = vpop.f32.mrb[106].mxu1  ;;  %6951 = vmatpush1.bf16.msra.mxu0 %v7219_v45 }
 0x5d3   : > { %v6536_v49 = vmax.f32 %v6422_v62, 0.0  ;;  %v6426_v36 = vadd.f32 %v6425_v44, %v8702_v34  ;;  %v6427_v20 = vpop.f32.mrb[107].mxu1  ;;  %6952 = vmatprep.subr.bf16.mxu0 %v7224_v35 }
 0x5d4   : > { %v6537_v47 = vmax.f32 %v6424_v60, 0.0  ;;  %v6428_v24 = vadd.f32 %v6427_v20, %v8708_v42 }
 0x5d5   : > { %v6604_v6 = vmul.f32 %v6536_v49, %v12224_v10  ;;  %v6538_v38 = vmax.f32 %v6426_v36, 0.0 }
 0x5d6   : > { %v6605_v3 = vmul.f32 %v6537_v47, %v12224_v10  ;;  %v6539_v63 = vmax.f32 %v6428_v24, 0.0  ;;  %6953 = vmatpush1.bf16.msra.mxu0 %v7222_v12 }
 0x5d7   : > { %v6653_v14 = vadd.f32 %v6652_v18, %v6604_v6  ;;  %v6606_v48 = vmul.f32 %v6538_v38, %v12225_v51  ;;  %v7225_v18 = vld [vmem:[%s11896_s4 + $0xf0] ss:$8 sps:$4 sm:$0xff]   ;;  %6954 = vmatprep.subr.bf16.mxu0 %v7227_v58 }
 0x5d8   : > { %v6692_v54 = vadd.f32 %v6691_v52, %v6605_v3  ;;  %v6607_v11 = vmul.f32 %v6539_v63, %v12225_v51  ;;  %v4878_v43 = vpop.f32.mrb[108].mxu0 }
 0x5d9   : > { %v6654_v26 = vadd.f32 %v6653_v14, %v6606_v48  ;;  %v4879_v23 = vadd.f32 %v4878_v43, %v8702_v34  ;;  %v4880_v39 = vpop.f32.mrb[109].mxu0 }
 0x5da   : > { %v6693_v37 = vadd.f32 %v6692_v54, %v6607_v11  ;;  %v4881_v53 = vadd.f32 %v4880_v39, %v8708_v42  ;;  %v4882_v32 = vpop.f32.mrb[110].mxu0  ;;  %6955 = vmatpush1.bf16.msra.mxu0 %v7225_v18  ;;  %v12228_v39 = vld [vmem:[#allocation34_spill] sm:$0xff] }
 0x5db   : > { %v4987_v27 = vmax.f32 %v4879_v23, 0.0  ;;  %v4883_v8 = vadd.f32 %v4882_v32, %v8702_v34  ;;  %v4884_v52 = vpop.f32.mrb[111].mxu0 }
 0x5dc   : > { %v4988_v13 = vmax.f32 %v4881_v53, 0.0  ;;  %v4885_v61 = vadd.f32 %v4884_v52, %v8708_v42 }
 0x5dd   : > { %v5055_v46 = vmul.f32 %v4987_v27, %v12226_v55  ;;  %v4989_v10 = vmax.f32 %v4883_v8, 0.0  ;;  %v12229_v8 = vld [vmem:[#allocation10_spill] sm:$0xff] }
 0x5de   : > { %v5056_v29 = vmul.f32 %v4988_v13, %v12226_v55  ;;  %v4990_v59 = vmax.f32 %v4885_v61, 0.0 }
 0x5df   : > { %v5102_v21 = vadd.f32 %v5101_v2, %v5055_v46  ;;  %v5057_v4 = vmul.f32 %v4989_v10, %v12227_v0 }
 0x5e0   : > { %v5141_v56 = vadd.f32 %v5140_v1, %v5056_v29  ;;  %v5058_v15 = vmul.f32 %v4990_v59, %v12227_v0  ;;  %v6431_v51 = vpop.f32.mrb[108].mxu1 }
 0x5e1   : > { %v5103_v22 = vadd.f32 %v5102_v21, %v5057_v4  ;;  %v6432_v16 = vadd.f32 %v6431_v51, %v8702_v34  ;;  %v6433_v33 = vpop.f32.mrb[109].mxu1 }
 0x5e2   : > { %v5142_v41 = vadd.f32 %v5141_v56, %v5058_v15  ;;  %v6434_v62 = vadd.f32 %v6433_v33, %v8708_v42  ;;  %v6435_v7 = vpop.f32.mrb[110].mxu1 }
 0x5e3   : > { %v6540_v60 = vmax.f32 %v6432_v16, 0.0  ;;  %v6436_v44 = vadd.f32 %v6435_v7, %v8702_v34  ;;  %v6437_v49 = vpop.f32.mrb[111].mxu1 }
 0x5e4   : > { %v6541_v36 = vmax.f32 %v6434_v62, 0.0  ;;  %v6438_v2 = vadd.f32 %v6437_v49, %v8708_v42 }
 0x5e5   : > { %v6608_v1 = vmul.f32 %v6540_v60, %v12226_v55  ;;  %v6542_v20 = vmax.f32 %v6436_v44, 0.0 }
 0x5e6   : > { %v6609_v28 = vmul.f32 %v6541_v36, %v12226_v55  ;;  %v6543_v47 = vmax.f32 %v6438_v2, 0.0 }
 0x5e7   : > { %v6655_v24 = vadd.f32 %v6654_v26, %v6608_v1  ;;  %v6610_v45 = vmul.f32 %v6542_v20, %v12227_v0  ;;  %v4888_v6 = vpop.f32.mrb[112].mxu0 }
 0x5e8   : > { %v6694_v38 = vadd.f32 %v6693_v37, %v6609_v28  ;;  %v6611_v35 = vmul.f32 %v6543_v47, %v12227_v0  ;;  %v4889_v3 = vadd.f32 %v4888_v6, %v8702_v34  ;;  %v4890_v63 = vpop.f32.mrb[113].mxu0 }
 0x5e9   : > { %v6656_v12 = vadd.f32 %v6655_v24, %v6610_v45  ;;  %v4891_v14 = vadd.f32 %v4890_v63, %v8708_v42  ;;  %v4892_v48 = vpop.f32.mrb[114].mxu0  ;;  %v12230_v63 = vld [vmem:[#allocation21_spill] sm:$0xff] }
 0x5ea   : > { %v6695_v58 = vadd.f32 %v6694_v38, %v6611_v35  ;;  %v4991_v54 = vmax.f32 %v4889_v3, 0.0  ;;  %v4893_v11 = vadd.f32 %v4892_v48, %v8702_v34  ;;  %v4894_v43 = vpop.f32.mrb[115].mxu0 }
 0x5eb   : > { %v4992_v23 = vmax.f32 %v4891_v14, 0.0  ;;  %v4895_v26 = vadd.f32 %v4894_v43, %v8708_v42 }
 0x5ec   : > { %v5059_v53 = vmul.f32 %v4991_v54, %v12228_v39  ;;  %v4993_v37 = vmax.f32 %v4893_v11, 0.0  ;;  %v12231_v11 = vld [vmem:[#allocation35_spill] sm:$0xff] }
 0x5ed   : > { %v5060_v32 = vmul.f32 %v4992_v23, %v12228_v39  ;;  %v4994_v18 = vmax.f32 %v4895_v26, 0.0 }
 0x5ee   : > { %v5104_v27 = vadd.f32 %v5103_v22, %v5059_v53  ;;  %v5061_v52 = vmul.f32 %v4993_v37, %v12229_v8 }
 0x5ef   : > { %v5143_v13 = vadd.f32 %v5142_v41, %v5060_v32  ;;  %v5062_v61 = vmul.f32 %v4994_v18, %v12229_v8 }
 0x5f0   : > { %v5105_v55 = vadd.f32 %v5104_v27, %v5061_v52  ;;  %v6441_v46 = vpop.f32.mrb[112].mxu1 }
 0x5f1   : > { %v5144_v10 = vadd.f32 %v5143_v13, %v5062_v61  ;;  %v6442_v29 = vadd.f32 %v6441_v46, %v8702_v34  ;;  %v6443_v59 = vpop.f32.mrb[113].mxu1 }
 0x5f2   : > { %v6444_v21 = vadd.f32 %v6443_v59, %v8708_v42  ;;  %v6445_v0 = vpop.f32.mrb[114].mxu1 }
 0x5f3   : > { %v6544_v4 = vmax.f32 %v6442_v29, 0.0  ;;  %v6446_v56 = vadd.f32 %v6445_v0, %v8702_v34  ;;  %v6447_v15 = vpop.f32.mrb[115].mxu1 }
 0x5f4   : > { %v6545_v51 = vmax.f32 %v6444_v21, 0.0  ;;  %v6448_v22 = vadd.f32 %v6447_v15, %v8708_v42 }
 0x5f5   : > { %v6612_v16 = vmul.f32 %v6544_v4, %v12228_v39  ;;  %v6546_v33 = vmax.f32 %v6446_v56, 0.0 }
 0x5f6   : > { %v6613_v41 = vmul.f32 %v6545_v51, %v12228_v39  ;;  %v6547_v62 = vmax.f32 %v6448_v22, 0.0 }
 0x5f7   : > { %v6657_v7 = vadd.f32 %v6656_v12, %v6612_v16  ;;  %v6614_v60 = vmul.f32 %v6546_v33, %v12229_v8  ;;  %v4898_v44 = vpop.f32.mrb[116].mxu0 }
 0x5f8   : > { %v6696_v49 = vadd.f32 %v6695_v58, %v6613_v41  ;;  %v6615_v36 = vmul.f32 %v6547_v62, %v12229_v8  ;;  %v4899_v2 = vadd.f32 %v4898_v44, %v8702_v34  ;;  %v4900_v1 = vpop.f32.mrb[117].mxu0 }
 0x5f9   : > { %v6658_v20 = vadd.f32 %v6657_v7, %v6614_v60  ;;  %v4901_v28 = vadd.f32 %v4900_v1, %v8708_v42  ;;  %v4902_v47 = vpop.f32.mrb[118].mxu0 }
 0x5fa   : > { %v6697_v24 = vadd.f32 %v6696_v49, %v6615_v36  ;;  %v4995_v45 = vmax.f32 %v4899_v2, 0.0  ;;  %v4903_v6 = vadd.f32 %v4902_v47, %v8702_v34  ;;  %v4904_v38 = vpop.f32.mrb[119].mxu0 }
 0x5fb   : > { %v4996_v35 = vmax.f32 %v4901_v28, 0.0  ;;  %v4905_v3 = vadd.f32 %v4904_v38, %v8708_v42 }
 0x5fc   : > { %v5063_v12 = vmul.f32 %v4995_v45, %v12230_v63  ;;  %v4997_v14 = vmax.f32 %v4903_v6, 0.0 }
 0x5fd   : > { %v5064_v48 = vmul.f32 %v4996_v35, %v12230_v63  ;;  %v4998_v58 = vmax.f32 %v4905_v3, 0.0 }
 0x5fe   : > { %v5106_v54 = vadd.f32 %v5105_v55, %v5063_v12  ;;  %v5065_v43 = vmul.f32 %v4997_v14, %v12231_v11 }
 0x5ff   : > { %v5145_v23 = vadd.f32 %v5144_v10, %v5064_v48  ;;  %v5066_v26 = vmul.f32 %v4998_v58, %v12231_v11 }
 0x600   : > { %v5107_v39 = vadd.f32 %v5106_v54, %v5065_v43  ;;  %v6451_v53 = vpop.f32.mrb[116].mxu1 }
 0x601   : > { %v5146_v37 = vadd.f32 %v5145_v23, %v5066_v26  ;;  %v6452_v32 = vadd.f32 %v6451_v53, %v8702_v34  ;;  %v6453_v18 = vpop.f32.mrb[117].mxu1 }
 0x602   : > { %v6454_v27 = vadd.f32 %v6453_v18, %v8708_v42  ;;  %v6455_v8 = vpop.f32.mrb[118].mxu1 }
 0x603   : > { %v6548_v52 = vmax.f32 %v6452_v32, 0.0  ;;  %v6456_v13 = vadd.f32 %v6455_v8, %v8702_v34  ;;  %v6457_v61 = vpop.f32.mrb[119].mxu1 }
 0x604   : > { %v6549_v46 = vmax.f32 %v6454_v27, 0.0  ;;  %v6458_v55 = vadd.f32 %v6457_v61, %v8708_v42 }
 0x605   : > { %v6616_v10 = vmul.f32 %v6548_v52, %v12230_v63  ;;  %v6550_v29 = vmax.f32 %v6456_v13, 0.0 }
 0x606   : > { %v6617_v59 = vmul.f32 %v6549_v46, %v12230_v63  ;;  %v6551_v21 = vmax.f32 %v6458_v55, 0.0 }
 0x607   : > { %v6659_v0 = vadd.f32 %v6658_v20, %v6616_v10  ;;  %v6618_v4 = vmul.f32 %v6550_v29, %v12231_v11  ;;  %v4908_v56 = vpop.f32.mrb[120].mxu0 }
 0x608   : > { %v6698_v15 = vadd.f32 %v6697_v24, %v6617_v59  ;;  %v6619_v51 = vmul.f32 %v6551_v21, %v12231_v11  ;;  %v4909_v22 = vadd.f32 %v4908_v56, %v8702_v34  ;;  %v4910_v16 = vpop.f32.mrb[121].mxu0 }
 0x609   : > { %v6660_v33 = vadd.f32 %v6659_v0, %v6618_v4  ;;  %v4911_v41 = vadd.f32 %v4910_v16, %v8708_v42  ;;  %v4912_v62 = vpop.f32.mrb[122].mxu0 }
 0x60a   : > { %v6699_v7 = vadd.f32 %v6698_v15, %v6619_v51  ;;  %v4999_v60 = vmax.f32 %v4909_v22, 0.0  ;;  %v4913_v44 = vadd.f32 %v4912_v62, %v8702_v34  ;;  %v4914_v49 = vpop.f32.mrb[123].mxu0 }
 0x60b   : > { %v5000_v36 = vmax.f32 %v4911_v41, 0.0  ;;  %v4915_v2 = vadd.f32 %v4914_v49, %v8708_v42 }
 0x60c   : > { %v5067_v1 = vmul.f32 %v4999_v60, %v11518_v17  ;;  %v5001_v20 = vmax.f32 %v4913_v44, 0.0 }
 0x60d   : > { %v5068_v28 = vmul.f32 %v5000_v36, %v11518_v17  ;;  %v5002_v47 = vmax.f32 %v4915_v2, 0.0 }
 0x60e   : > { %v5108_v24 = vadd.f32 %v5107_v39, %v5067_v1  ;;  %v5069_v45 = vmul.f32 %v5001_v20, %v11550_v5 }
 0x60f   : > { %v5147_v6 = vadd.f32 %v5146_v37, %v5068_v28  ;;  %v5070_v38 = vmul.f32 %v5002_v47, %v11550_v5 }
 0x610   : > { %v5109_v35 = vadd.f32 %v5108_v24, %v5069_v45  ;;  %v6461_v3 = vpop.f32.mrb[120].mxu1 }
 0x611   : > { %v5148_v63 = vadd.f32 %v5147_v6, %v5070_v38  ;;  %v6462_v12 = vadd.f32 %v6461_v3, %v8702_v34  ;;  %v6463_v14 = vpop.f32.mrb[121].mxu1 }
 0x612   : > { %v6464_v48 = vadd.f32 %v6463_v14, %v8708_v42  ;;  %v6465_v58 = vpop.f32.mrb[122].mxu1 }
 0x613   : > { %v6552_v54 = vmax.f32 %v6462_v12, 0.0  ;;  %v6466_v11 = vadd.f32 %v6465_v58, %v8702_v34  ;;  %v6467_v43 = vpop.f32.mrb[123].mxu1 }
 0x614   : > { %v6553_v23 = vmax.f32 %v6464_v48, 0.0  ;;  %v6468_v26 = vadd.f32 %v6467_v43, %v8708_v42 }
 0x615   : > { %v6620_v39 = vmul.f32 %v6552_v54, %v11518_v17  ;;  %v6554_v53 = vmax.f32 %v6466_v11, 0.0 }
 0x616   : > { %v6621_v37 = vmul.f32 %v6553_v23, %v11518_v17  ;;  %v6555_v32 = vmax.f32 %v6468_v26, 0.0 }
 0x617   : > { %v6661_v18 = vadd.f32 %v6660_v33, %v6620_v39  ;;  %v6622_v27 = vmul.f32 %v6554_v53, %v11550_v5  ;;  %v4918_v8 = vpop.f32.mrb[124].mxu0 }
 0x618   : > { %v6700_v52 = vadd.f32 %v6699_v7, %v6621_v37  ;;  %v6623_v13 = vmul.f32 %v6555_v32, %v11550_v5  ;;  %v4919_v61 = vadd.f32 %v4918_v8, %v8702_v34  ;;  %v4920_v46 = vpop.f32.mrb[125].mxu0 }
 0x619   : > { %v6662_v55 = vadd.f32 %v6661_v18, %v6622_v27  ;;  %v4921_v10 = vadd.f32 %v4920_v46, %v8708_v42  ;;  %v4922_v29 = vpop.f32.mrb[126].mxu0 }
 0x61a   : > { %v6701_v59 = vadd.f32 %v6700_v52, %v6623_v13  ;;  %v5003_v21 = vmax.f32 %v4919_v61, 0.0  ;;  %v4923_v0 = vadd.f32 %v4922_v29, %v8702_v34  ;;  %v4924_v17 = vpop.f32.mrb[127].mxu0 }
 0x61b   : > { %v5004_v4 = vmax.f32 %v4921_v10, 0.0  ;;  %v4925_v56 = vadd.f32 %v4924_v17, %v8708_v42 }
 0x61c   : > { %v5071_v15 = vmul.f32 %v5003_v21, %v11548_v57  ;;  %v5005_v51 = vmax.f32 %v4923_v0, 0.0 }
 0x61d   : > { %v5072_v5 = vmul.f32 %v5004_v4, %v11548_v57  ;;  %v5006_v22 = vmax.f32 %v4925_v56, 0.0 }
 0x61e   : > { %v5110_v16 = vadd.f32 %v5109_v35, %v5071_v15  ;;  %v5073_v33 = vmul.f32 %v5005_v51, %v11580_v9 }
 0x61f   : > { %v5149_v41 = vadd.f32 %v5148_v63, %v5072_v5  ;;  %v5074_v62 = vmul.f32 %v5006_v22, %v11580_v9 }
 0x620   : > { %v5111_v7 = vadd.f32 %v5110_v16, %v5073_v33  ;;  %v6471_v60 = vpop.f32.mrb[124].mxu1 }
 0x621   : > { %v5150_v44 = vadd.f32 %v5149_v41, %v5074_v62  ;;  %v6472_v49 = vadd.f32 %v6471_v60, %v8702_v34  ;;  %v6473_v36 = vpop.f32.mrb[125].mxu1 }
 0x622   : > { %v6474_v2 = vadd.f32 %v6473_v36, %v8708_v42  ;;  %v6475_v1 = vpop.f32.mrb[126].mxu1 }
 0x623   : > { %v6556_v20 = vmax.f32 %v6472_v49, 0.0  ;;  %v6476_v28 = vadd.f32 %v6475_v1, %v8702_v34  ;;  %v6477_v47 = vpop.f32.mrb[127].mxu1 }
 0x624   : > { %v6557_v24 = vmax.f32 %v6474_v2, 0.0  ;;  %v6478_v45 = vadd.f32 %v6477_v47, %v8708_v42 }
 0x625   : > { %v6624_v6 = vmul.f32 %v6556_v20, %v11548_v57  ;;  %v6558_v38 = vmax.f32 %v6476_v28, 0.0 }
 0x626   : > { %v6625_v35 = vmul.f32 %v6557_v24, %v11548_v57  ;;  %v6559_v3 = vmax.f32 %v6478_v45, 0.0 }
 0x627   : > { %v6663_v63 = vadd.f32 %v6662_v55, %v6624_v6  ;;  %v6626_v12 = vmul.f32 %v6558_v38, %v11580_v9  ;;  %v4928_v14 = vpop.f32.mrb[128].mxu0 }
 0x628   : > { %v6702_v48 = vadd.f32 %v6701_v59, %v6625_v35  ;;  %v6627_v58 = vmul.f32 %v6559_v3, %v11580_v9  ;;  %v4929_v54 = vadd.f32 %v4928_v14, %v8702_v34  ;;  %v4930_v11 = vpop.f32.mrb[129].mxu0 }
 0x629   : > { %v6664_v43 = vadd.f32 %v6663_v63, %v6626_v12  ;;  %v4931_v23 = vadd.f32 %v4930_v11, %v8708_v42  ;;  %v4932_v26 = vpop.f32.mrb[130].mxu0 }
 0x62a   : > { %v6703_v39 = vadd.f32 %v6702_v48, %v6627_v58  ;;  %v5007_v53 = vmax.f32 %v4929_v54, 0.0  ;;  %v4933_v37 = vadd.f32 %v4932_v26, %v8702_v34  ;;  %v4934_v57 = vpop.f32.mrb[131].mxu0 }
 0x62b   : > { %v5008_v32 = vmax.f32 %v4931_v23, 0.0  ;;  %v4935_v18 = vadd.f32 %v4934_v57, %v8708_v42 }
 0x62c   : > { %v5075_v27 = vmul.f32 %v5007_v53, %v11578_v19  ;;  %v5009_v8 = vmax.f32 %v4933_v37, 0.0 }
 0x62d   : > { %v5076_v9 = vmul.f32 %v5008_v32, %v11578_v19  ;;  %v5010_v52 = vmax.f32 %v4935_v18, 0.0 }
 0x62e   : > { %v5112_v13 = vadd.f32 %v5111_v7, %v5075_v27  ;;  %v5077_v61 = vmul.f32 %v5009_v8, %v11604_v50 }
 0x62f   : > { %v5151_v46 = vadd.f32 %v5150_v44, %v5076_v9  ;;  %v5078_v55 = vmul.f32 %v5010_v52, %v11604_v50 }
 0x630   : > { %v5113_v10 = vadd.f32 %v5112_v13, %v5077_v61  ;;  %v6481_v29 = vpop.f32.mrb[128].mxu1 }
 0x631   : > { %v5152_v59 = vadd.f32 %v5151_v46, %v5078_v55  ;;  %v6482_v21 = vadd.f32 %v6481_v29, %v8702_v34  ;;  %v6483_v0 = vpop.f32.mrb[129].mxu1 }
 0x632   : > { %v6484_v17 = vadd.f32 %v6483_v0, %v8708_v42  ;;  %v6485_v4 = vpop.f32.mrb[130].mxu1 }
 0x633   : > { %v6560_v56 = vmax.f32 %v6482_v21, 0.0  ;;  %v6486_v15 = vadd.f32 %v6485_v4, %v8702_v34  ;;  %v6487_v51 = vpop.f32.mrb[131].mxu1 }
 0x634   : > { %v6561_v5 = vmax.f32 %v6484_v17, 0.0  ;;  %v6488_v22 = vadd.f32 %v6487_v51, %v8708_v42 }
 0x635   : > { %v6628_v16 = vmul.f32 %v6560_v56, %v11578_v19  ;;  %v6562_v33 = vmax.f32 %v6486_v15, 0.0 }
 0x636   : > { %v6629_v41 = vmul.f32 %v6561_v5, %v11578_v19  ;;  %v6563_v62 = vmax.f32 %v6488_v22, 0.0 }
 0x637   : > { %v6665_v7 = vadd.f32 %v6664_v43, %v6628_v16  ;;  %v6630_v60 = vmul.f32 %v6562_v33, %v11604_v50  ;;  %v4938_v44 = vpop.f32.mrb[132].mxu0 }
 0x638   : > { %v6704_v49 = vadd.f32 %v6703_v39, %v6629_v41  ;;  %v6631_v36 = vmul.f32 %v6563_v62, %v11604_v50  ;;  %v4939_v2 = vadd.f32 %v4938_v44, %v8702_v34  ;;  %v4940_v1 = vpop.f32.mrb[133].mxu0 }
 0x639   : > { %v6666_v20 = vadd.f32 %v6665_v7, %v6630_v60  ;;  %v4941_v28 = vadd.f32 %v4940_v1, %v8708_v42  ;;  %v4942_v47 = vpop.f32.mrb[134].mxu0 }
 0x63a   : > { %v6705_v24 = vadd.f32 %v6704_v49, %v6631_v36  ;;  %v5011_v45 = vmax.f32 %v4939_v2, 0.0  ;;  %v4943_v6 = vadd.f32 %v4942_v47, %v8702_v34  ;;  %v4944_v19 = vpop.f32.mrb[135].mxu0 }
 0x63b   : > { %v5012_v38 = vmax.f32 %v4941_v28, 0.0  ;;  %v4945_v35 = vadd.f32 %v4944_v19, %v8708_v42 }
 0x63c   : > { %v5079_v3 = vmul.f32 %v5011_v45, %v11602_v25  ;;  %v5013_v63 = vmax.f32 %v4943_v6, 0.0 }
 0x63d   : > { %v5080_v50 = vmul.f32 %v5012_v38, %v11602_v25  ;;  %v5014_v12 = vmax.f32 %v4945_v35, 0.0 }
 0x63e   : > { %v5114_v14 = vadd.f32 %v5113_v10, %v5079_v3  ;;  %v5081_v48 = vmul.f32 %v5013_v63, %v11622_v31  ;;  %v12232_v63 = vld [vmem:[#allocation9_spill] sm:$0xff] }
 0x63f   : > { %v5153_v58 = vadd.f32 %v5152_v59, %v5080_v50  ;;  %v5082_v54 = vmul.f32 %v5014_v12, %v11622_v31  ;;  %v12233_v50 = vsub.s32 0, %v12232_v63 }
 0x640   : > { %v5115_v11 = vadd.f32 %v5114_v14, %v5081_v48  ;;  %v6491_v43 = vpop.f32.mrb[132].mxu1  ;;  %v12234_v14 = vsub.s32 1, %v12232_v63 }
 0x641   : > { %v5154_v23 = vadd.f32 %v5153_v58, %v5082_v54  ;;  %v6492_v26 = vadd.f32 %v6491_v43, %v8702_v34  ;;  %v6493_v39 = vpop.f32.mrb[133].mxu1 }
 0x642   : > { %v5116_v53 = vrot.slane %v5115_v11, 4  ;;  %v6494_v37 = vadd.f32 %v6493_v39, %v8708_v42  ;;  %v6495_v57 = vpop.f32.mrb[134].mxu1 }
 0x643   : > { %v5155_v32 = vrot.slane %v5154_v23, 4  ;;  %v6564_v18 = vmax.f32 %v6492_v26, 0.0  ;;  %v6496_v27 = vadd.f32 %v6495_v57, %v8702_v34  ;;  %v6497_v8 = vpop.f32.mrb[135].mxu1 }
 0x644   : > { %v5117_v9 = vadd.f32 %v5116_v53, %v5115_v11  ;;  %v6565_v52 = vmax.f32 %v6494_v37, 0.0  ;;  %v6498_v13 = vadd.f32 %v6497_v8, %v8708_v42 }
 0x645   : > { %v5156_v61 = vadd.f32 %v5155_v32, %v5154_v23  ;;  %v6632_v46 = vmul.f32 %v6564_v18, %v11602_v25  ;;  %v6566_v55 = vmax.f32 %v6496_v27, 0.0  ;;  %v12235_v27 = vlaneseq }
 0x646   : > { %v5118_v10 = vrot.slane %v5117_v9, 2  ;;  %v6633_v29 = vmul.f32 %v6565_v52, %v11602_v25  ;;  %v6567_v59 = vmax.f32 %v6498_v13, 0.0 }
 0x647   : > { %v5157_v21 = vrot.slane %v5156_v61, 2  ;;  %v6667_v0 = vadd.f32 %v6666_v20, %v6632_v46  ;;  %v6634_v17 = vmul.f32 %v6566_v55, %v11622_v31  ;;  %vm6987_vm7 = vcmp.lt.s32.totalorder %v12235_v27, 256 }
 0x648   : > { %v5119_v4 = vadd.f32 %v5118_v10, %v5117_v9  ;;  %v6706_v56 = vadd.f32 %v6705_v24, %v6633_v29  ;;  %v6635_v34 = vmul.f32 %v6567_v59, %v11622_v31 }
 0x649   : > { %v5158_v15 = vadd.f32 %v5157_v21, %v5156_v61  ;;  %v6668_v51 = vadd.f32 %v6667_v0, %v6634_v17 }
 0x64a   : > { %v5120_v5 = vrot.slane %v5119_v4, 1  ;;  %v6707_v42 = vadd.f32 %v6706_v56, %v6635_v34 }
 0x64b   : > { %v6669_v22 = vrot.slane %v6668_v51, 4  ;;  %v5159_v16 = vrot.slane %v5158_v15, 1 }
 0x64c   : > { %v5121_v33 = vadd.f32 %v5120_v5, %v5119_v4  ;;  %v6708_v41 = vrot.slane %v6707_v42, 4 }
 0x64d   : > { %v6670_v62 = vadd.f32 %v6669_v22, %v6668_v51  ;;  %v5160_v7 = vadd.f32 %v5159_v16, %v5158_v15 }
 0x64e   : > { %v5161_v25 = vadd.f32 %v5121_v33, %v11676_v30  ;;  %v6709_v60 = vadd.f32 %v6708_v41, %v6707_v42  ;;  %v6752_v30 = vld [vmem:[%s11897_s5] sm:$0x3] }
 0x64f   : > { %v6671_v44 = vrot.slane %v6670_v62, 2  ;;  %v5162_v49 = vadd.f32 %v5160_v7, %v11678_v40  ;;  %v7243_v40 = vmov 1966171168   ;;  %v6917_v12 = vrot.slane %v6752_v30, %v12233_v50 }
 0x650   : > { %v6710_v36 = vrot.slane %v6709_v60, 2  ;;  %v6971_v3 = vunpack.c.l.s4 %v7243_v40  ;;  %v6921_v48 = vrot.slane %v6752_v30, %v12234_v14 }
 0x651   : > { %v6672_v2 = vadd.f32 %v6671_v44, %v6670_v62 }
 0x652   : > { %v6711_v1 = vadd.f32 %v6710_v36, %v6709_v60  ;;  %v6972_v54 = vunpack.c.0.s8 %v6971_v3 }
 0x653   : > { %v6673_v31 = vrot.slane %v6672_v2, 1 }
 0x654   : > { %v6712_v20 = vrot.slane %v6711_v1, 1  ;;  %v6975_v57 = vsub.s32 %v6972_v54, %v12232_v63 }
 0x655   : > { %v6674_v28 = vadd.f32 %v6673_v31, %v6672_v2 }
 0x656   : > { %v6713_v47 = vadd.f32 %v6712_v20, %v6711_v1 }
 0x657   : > { %v6714_v24 = vadd.f32 %v6674_v28, %v5161_v25 }
 0x658   : > { %v6715_v45 = vadd.f32 %v6713_v47, %v5162_v49 }
 0x659   : > { %v6716_v6 = vmul.f32 0.0009765625, %v6714_v24 }
 0x65a   : > { %v6717_v19 = vmul.f32 0.0009765625, %v6715_v45 }
 0x65b   : > { %v6718_v35 = vpack.c.bf16 %v6716_v6, %v6716_v6 }
 0x65c   : > { %v6719_v38 = vpack.c.bf16 %v6717_v19, %v6717_v19 }
 0x65e   : > { %6956 = vmatprep.mubr.bf16.mxu0 %v6719_v38 }
 0x65f   : > { %6957 = vmatmul.mubr.bf16.vlgmr.msra.gmra.mrb[136].mxu0 %v6718_v35 }
 0x732   : > { %v6958_v58 = vpop.f32.mrb[136].mxu0 }
 0x733   : > { %v6959_v11 = vadd.f32 %v6958_v58, %v6917_v12  ;;  %v6960_v43 = vpop.f32.mrb[137].mxu0 }
 0x734   : > { %v6961_v23 = vadd.f32 %v6960_v43, %v6921_v48  ;;  %v6962_v26 = vpop.f32.mrb[138].mxu0 }
 0x735   : > { %v6965_v39 = vmax.f32 %v6959_v11, 0.0  ;;  %v6963_v53 = vpop.f32.mrb[139].mxu0 }
 0x736   : > { %v6966_v37 = vmax.f32 %v6961_v23, 0.0 }
 0x738   : > { %v6969_v32 = vcombine.low %v6965_v39, %v6966_v37 }
 0x73a   : > { %v6976_v18 = vrot.slane %v6969_v32, %v6975_v57 }
 0x73c   : > { %v6983_v8 = vrot.slane %v6976_v18, %v6975_v57 }
 0x73e   : > { %6989 = vst.msk [vmem:[%s249_s18] sm:$0x3] %vm6987_vm7, %v6983_v8 }
 0x73f PF: > { %s16_s21 = sadd.s32 1, %s7235_s21  }
 0x740   : > { %p13_p4 = scmp.ge.s32.totalorder %s16_s21, 4  }
 0x742   :  { %15 = sbr.rel (!%p13_p4) target bundleno = 1 (0x1), region = 74 }

</bundles_post_ra>
